<compile_context>
chip_gen: v7x
topology: tpu7x:2x2x1
jax: 0.10.0
libtpu: 0.0.40
codegen_flags: <defaults>
</compile_context>

<pallas_src>
import jax
import jax.numpy as jnp
import numpy as np
from jax.experimental import pallas as pl
from jax.experimental.pallas import tpu as pltpu

HIDDEN = 1000
HIDDEN_PAD = 1024      # 8 * 128 -> lane/sublane aligned hidden width
OUT_PAD = 128          # final layer padded 1 -> 128 lanes for a dense store
LEAKY_SLOPE = 0.2
BN_EPS = 1e-5


def _leaky_relu(h):
    return jnp.where(h >= 0, h, LEAKY_SLOPE * h)


def _disc_kernel(x_ref,
                 w1_ref, b1_ref,
                 w2_ref, b2_ref,
                 w3_ref, b3_ref,
                 w4_ref, b4_ref,
                 out_ref):
    """Whole MLP in one kernel; everything resident (single-buffered) in VMEM."""
    x = x_ref[...]                                          # bf16 (B_pad, D_in_pad)

    # Linear(input_dim, 1000) [+ folded BN] -> LeakyReLU(0.2) -> Dropout(identity)
    h = jnp.dot(x, w1_ref[...], preferred_element_type=jnp.float32) + b1_ref[...]
    h = _leaky_relu(h)

    # Linear(1000, 1000) [+ folded BN] -> LeakyReLU(0.2) -> Dropout(identity)
    h = jnp.dot(h.astype(jnp.bfloat16), w2_ref[...],
                preferred_element_type=jnp.float32) + b2_ref[...]
    h = _leaky_relu(h)

    # Linear(1000, 1000) -> LeakyReLU(0.2) -> Dropout(identity)
    h = jnp.dot(h.astype(jnp.bfloat16), w3_ref[...],
                preferred_element_type=jnp.float32) + b3_ref[...]
    h = _leaky_relu(h)

    # Linear(1000, 1), zero-padded to 128 output lanes (column 0 is the real output).
    out_ref[...] = (jnp.dot(h.astype(jnp.bfloat16), w4_ref[...],
                            preferred_element_type=jnp.float32) + b4_ref[...])


def init_params(key, input_dim):
    """Raw f32 parameters, PyTorch-style uniform(-1/sqrt(fan_in), 1/sqrt(fan_in))."""
    ks = jax.random.split(key, 8)

    def linear(kw, kb, fan_in, fan_out):
        bound = 1.0 / np.sqrt(fan_in)
        w = jax.random.uniform(kw, (fan_in, fan_out), jnp.float32, -bound, bound)
        b = jax.random.uniform(kb, (1, fan_out), jnp.float32, -bound, bound)
        return w, b

    w1, b1 = linear(ks[0], ks[1], input_dim, HIDDEN)
    w2, b2 = linear(ks[2], ks[3], HIDDEN, HIDDEN)
    w3, b3 = linear(ks[4], ks[5], HIDDEN, HIDDEN)
    w4, b4 = linear(ks[6], ks[7], HIDDEN, 1)

    def bn():  # freshly-initialized BatchNorm1d buffers/affine
        return dict(gamma=jnp.ones((1, HIDDEN), jnp.float32),
                    beta=jnp.zeros((1, HIDDEN), jnp.float32),
                    mean=jnp.zeros((1, HIDDEN), jnp.float32),
                    var=jnp.ones((1, HIDDEN), jnp.float32))

    return dict(w1=w1, b1=b1, bn1=bn(),
                w2=w2, b2=b2, bn2=bn(),
                w3=w3, b3=b3,
                w4=w4, b4=b4)


def _fold_bn(bn):
    scale = bn["gamma"] / jnp.sqrt(bn["var"] + BN_EPS)
    shift = bn["beta"] - bn["mean"] * scale
    return scale, shift


def _pad2(a, rows, cols):
    """Zero-pad a 2-D array up to (rows, cols)."""
    return jnp.pad(a, ((0, rows - a.shape[0]), (0, cols - a.shape[1])))


def prepare_params(params):
    """One-time parameter preparation (do NOT call per forward):
       fold eval-mode BN into the preceding Linear, cast weights to bf16,
       zero-pad every dimension to (8,128)-aligned sizes."""
    s1, t1 = _fold_bn(params["bn1"])
    s2, t2 = _fold_bn(params["bn2"])

    input_dim = params["w1"].shape[0]
    in_pad = int(np.ceil(input_dim / 128) * 128)

    w1 = _pad2(params["w1"] * s1, in_pad, HIDDEN_PAD)
    b1 = _pad2(params["b1"] * s1 + t1, 1, HIDDEN_PAD)
    w2 = _pad2(params["w2"] * s2, HIDDEN_PAD, HIDDEN_PAD)
    b2 = _pad2(params["b2"] * s2 + t2, 1, HIDDEN_PAD)
    w3 = _pad2(params["w3"], HIDDEN_PAD, HIDDEN_PAD)
    b3 = _pad2(params["b3"], 1, HIDDEN_PAD)
    w4 = _pad2(params["w4"], HIDDEN_PAD, OUT_PAD)
    b4 = _pad2(params["b4"], 1, OUT_PAD)

    return dict(
        in_pad=in_pad,
        w1=w1.astype(jnp.bfloat16), b1=b1,
        w2=w2.astype(jnp.bfloat16), b2=b2,
        w3=w3.astype(jnp.bfloat16), b3=b3,
        w4=w4.astype(jnp.bfloat16), b4=b4,
    )


def discriminator_forward(returns, condition, prepared):
    """Equivalent of Discriminator.forward(returns, condition) in eval mode."""
    B = returns.shape[0]
    x = returns.reshape(B, -1).astype(jnp.float32)
    x = jnp.concatenate([x, condition.astype(jnp.float32)], axis=1)

    # Pad batch to a multiple of 8 (sublane) and features to a multiple of 128
    # (lane). Padded rows/cols are inert: weights have matching zero rows, and
    # padded batch rows are sliced away below.
    B_pad = int(np.ceil(B / 8) * 8)
    in_pad = prepared["in_pad"]
    x = jnp.pad(x, ((0, B_pad - B), (0, in_pad - x.shape[1])))
    x = x.astype(jnp.bfloat16)

    args = (x,
            prepared["w1"], prepared["b1"],
            prepared["w2"], prepared["b2"],
            prepared["w3"], prepared["b3"],
            prepared["w4"], prepared["b4"])

    vmem = pltpu.MemorySpace.VMEM
    out = pl.pallas_call(
        _disc_kernel,
        out_shape=jax.ShapeDtypeStruct((B_pad, OUT_PAD), jnp.float32),
        in_specs=[pl.BlockSpec(memory_space=vmem) for _ in args],
        out_specs=pl.BlockSpec(memory_space=vmem),
        compiler_params=pltpu.CompilerParams(
            vmem_limit_bytes=32 * 1024 * 1024,   # actual footprint ~7 MB; safe on v7x
        ),
    )(*args)

    return out[:B, :1]


if __name__ == "__main__":
    key = jax.random.PRNGKey(0)
    k_ret, k_cond, k_param = jax.random.split(key, 3)

    # Small shapes consistent with the module: input_shape=(4, 16, 16), cond_dim=8.
    B = 2
    input_shape = (4, 16, 16)
    cond_dim = 8
    input_dim = int(np.prod(input_shape)) + cond_dim  # 1032

    returns = jax.random.normal(k_ret, (B,) + input_shape, jnp.float32)
    condition = jax.random.normal(k_cond, (B, cond_dim), jnp.float32)

    params = init_params(k_param, input_dim)
    prepared = prepare_params(params)      # one-time fold + bf16 cast + pad

    validity = discriminator_forward(returns, condition, prepared)
    jax.block_until_ready(validity)

    assert validity.shape == (B, 1), validity.shape
    assert validity.dtype == jnp.float32
    assert bool(jnp.all(jnp.isfinite(validity)))
    print("KERNEL_OK")
</pallas_src>

<mosaic_0001>
module attributes {stable_mosaic.version = 11 : i64} {
  func.func @_disc_kernel(%arg0: memref<8x1152xbf16, #tpu.memory_space<vmem>>, %arg1: memref<1152x1024xbf16, #tpu.memory_space<vmem>>, %arg2: memref<1x1024xf32, #tpu.memory_space<vmem>>, %arg3: memref<1024x1024xbf16, #tpu.memory_space<vmem>>, %arg4: memref<1x1024xf32, #tpu.memory_space<vmem>>, %arg5: memref<1024x1024xbf16, #tpu.memory_space<vmem>>, %arg6: memref<1x1024xf32, #tpu.memory_space<vmem>>, %arg7: memref<1024x128xbf16, #tpu.memory_space<vmem>>, %arg8: memref<1x128xf32, #tpu.memory_space<vmem>>, %arg9: memref<8x128xf32, #tpu.memory_space<vmem>>) attributes {dimension_semantics = [], scalar_prefetch = 0 : i64, scratch_operands = 0 : i64, tpu.core_type = #tpu.core_type<tc>} {
    %c0 = arith.constant 0 : index
    %c0_0 = arith.constant 0 : index
    %0 = vector.load %arg0[%c0, %c0_0] : memref<8x1152xbf16, #tpu.memory_space<vmem>>, vector<8x1152xbf16>
    %c0_1 = arith.constant 0 : index
    %c0_2 = arith.constant 0 : index
    %1 = vector.load %arg1[%c0_1, %c0_2] : memref<1152x1024xbf16, #tpu.memory_space<vmem>>, vector<1152x1024xbf16>
    %cst = arith.constant dense<0.000000e+00> : vector<8x1024xf32>
    %2 = tpu.matmul %0, %1, %cst {dimension_numbers = #tpu.dot_dimension_numbers<[1], [0], [0], [1], [0, 0, 1, 1], [], []>} : vector<8x1152xbf16>, vector<1152x1024xbf16>, vector<8x1024xf32> -> vector<8x1024xf32>
    %c0_3 = arith.constant 0 : index
    %c0_4 = arith.constant 0 : index
    %3 = vector.load %arg2[%c0_3, %c0_4] : memref<1x1024xf32, #tpu.memory_space<vmem>>, vector<1x1024xf32>
    %4 = vector.broadcast %3 : vector<1x1024xf32> to vector<8x1024xf32>
    %5 = arith.addf %2, %4 : vector<8x1024xf32>
    %cst_5 = arith.constant 0.000000e+00 : f32
    %6 = vector.broadcast %cst_5 : f32 to vector<8x1024xf32>
    %7 = arith.cmpf oge, %5, %6 : vector<8x1024xf32>
    %cst_6 = arith.constant 2.000000e-01 : f32
    %8 = vector.broadcast %cst_6 : f32 to vector<8x1024xf32>
    %9 = arith.mulf %8, %5 : vector<8x1024xf32>
    %10 = arith.select %7, %5, %9 : vector<8x1024xi1>, vector<8x1024xf32>
    %11 = arith.truncf %10 : vector<8x1024xf32> to vector<8x1024xbf16>
    %c0_7 = arith.constant 0 : index
    %c0_8 = arith.constant 0 : index
    %12 = vector.load %arg3[%c0_7, %c0_8] : memref<1024x1024xbf16, #tpu.memory_space<vmem>>, vector<1024x1024xbf16>
    %cst_9 = arith.constant dense<0.000000e+00> : vector<8x1024xf32>
    %13 = tpu.matmul %11, %12, %cst_9 {dimension_numbers = #tpu.dot_dimension_numbers<[1], [0], [0], [1], [0, 0, 1, 1], [], []>} : vector<8x1024xbf16>, vector<1024x1024xbf16>, vector<8x1024xf32> -> vector<8x1024xf32>
    %c0_10 = arith.constant 0 : index
    %c0_11 = arith.constant 0 : index
    %14 = vector.load %arg4[%c0_10, %c0_11] : memref<1x1024xf32, #tpu.memory_space<vmem>>, vector<1x1024xf32>
    %15 = vector.broadcast %14 : vector<1x1024xf32> to vector<8x1024xf32>
    %16 = arith.addf %13, %15 : vector<8x1024xf32>
    %cst_12 = arith.constant 0.000000e+00 : f32
    %17 = vector.broadcast %cst_12 : f32 to vector<8x1024xf32>
    %18 = arith.cmpf oge, %16, %17 : vector<8x1024xf32>
    %cst_13 = arith.constant 2.000000e-01 : f32
    %19 = vector.broadcast %cst_13 : f32 to vector<8x1024xf32>
    %20 = arith.mulf %19, %16 : vector<8x1024xf32>
    %21 = arith.select %18, %16, %20 : vector<8x1024xi1>, vector<8x1024xf32>
    %22 = arith.truncf %21 : vector<8x1024xf32> to vector<8x1024xbf16>
    %c0_14 = arith.constant 0 : index
    %c0_15 = arith.constant 0 : index
    %23 = vector.load %arg5[%c0_14, %c0_15] : memref<1024x1024xbf16, #tpu.memory_space<vmem>>, vector<1024x1024xbf16>
    %cst_16 = arith.constant dense<0.000000e+00> : vector<8x1024xf32>
    %24 = tpu.matmul %22, %23, %cst_16 {dimension_numbers = #tpu.dot_dimension_numbers<[1], [0], [0], [1], [0, 0, 1, 1], [], []>} : vector<8x1024xbf16>, vector<1024x1024xbf16>, vector<8x1024xf32> -> vector<8x1024xf32>
    %c0_17 = arith.constant 0 : index
    %c0_18 = arith.constant 0 : index
    %25 = vector.load %arg6[%c0_17, %c0_18] : memref<1x1024xf32, #tpu.memory_space<vmem>>, vector<1x1024xf32>
    %26 = vector.broadcast %25 : vector<1x1024xf32> to vector<8x1024xf32>
    %27 = arith.addf %24, %26 : vector<8x1024xf32>
    %cst_19 = arith.constant 0.000000e+00 : f32
    %28 = vector.broadcast %cst_19 : f32 to vector<8x1024xf32>
    %29 = arith.cmpf oge, %27, %28 : vector<8x1024xf32>
    %cst_20 = arith.constant 2.000000e-01 : f32
    %30 = vector.broadcast %cst_20 : f32 to vector<8x1024xf32>
    %31 = arith.mulf %30, %27 : vector<8x1024xf32>
    %32 = arith.select %29, %27, %31 : vector<8x1024xi1>, vector<8x1024xf32>
    %33 = arith.truncf %32 : vector<8x1024xf32> to vector<8x1024xbf16>
    %c0_21 = arith.constant 0 : index
    %c0_22 = arith.constant 0 : index
    %34 = vector.load %arg7[%c0_21, %c0_22] : memref<1024x128xbf16, #tpu.memory_space<vmem>>, vector<1024x128xbf16>
    %cst_23 = arith.constant dense<0.000000e+00> : vector<8x128xf32>
    %35 = tpu.matmul %33, %34, %cst_23 {dimension_numbers = #tpu.dot_dimension_numbers<[1], [0], [0], [1], [0, 0, 1, 1], [], []>} : vector<8x1024xbf16>, vector<1024x128xbf16>, vector<8x128xf32> -> vector<8x128xf32>
    %c0_24 = arith.constant 0 : index
    %c0_25 = arith.constant 0 : index
    %36 = vector.load %arg8[%c0_24, %c0_25] : memref<1x128xf32, #tpu.memory_space<vmem>>, vector<1x128xf32>
    %37 = vector.broadcast %36 : vector<1x128xf32> to vector<8x128xf32>
    %38 = arith.addf %35, %37 : vector<8x128xf32>
    %c0_26 = arith.constant 0 : index
    %c0_27 = arith.constant 0 : index
    %39 = vector.load %arg9[%c0_26, %c0_27] : memref<8x128xf32, #tpu.memory_space<vmem>>, vector<8x128xf32>
    tpu.vector_store %arg9[%c0_26, %c0_27], %38 {strides = array<i32>} : memref<8x128xf32, #tpu.memory_space<vmem>>, vector<8x128xf32>,
    return
  }
}

</mosaic_0001>

<bundles_post_ra>
// kernel: tpu_custom_call.1
= control target key start
LH: loop header
LB: loop body
LE: loop exit
PB: predicated region body
PF: predicated region fallthrough
CT: control target
= control target key end

     0   :  { %14 = vsyncpa [#allocation3], 0  ;;  %s15597_s0 = inlined_call_operand.hbm [shape: bf16[8,1152], index: 0, kind: input, shape index: {}]   ;;  %s15598_s1 = inlined_call_operand.hbm [shape: bf16[1152,1024], index: 1, kind: input, shape index: {}]   ;;  %s15599_s2 = inlined_call_operand.hbm [shape: f32[1,1024], index: 2, kind: input, shape index: {}]   ;;  %s15600_s3 = inlined_call_operand.hbm [shape: bf16[1024,1024], index: 3, kind: input, shape index: {}]   ;;  %s15601_s4 = inlined_call_operand.hbm [shape: f32[1,1024], index: 4, kind: input, shape index: {}]   ;;  %s15602_s5 = inlined_call_operand.hbm [shape: bf16[1024,1024], index: 5, kind: input, shape index: {}]   ;;  %s15603_s6 = inlined_call_operand.hbm [shape: f32[1,1024], index: 6, kind: input, shape index: {}]   ;;  %s15604_s7 = inlined_call_operand.hbm [shape: bf16[1024,128], index: 7, kind: input, shape index: {}]   ;;  %s15605_s8 = inlined_call_operand.hbm [shape: f32[1,128], index: 8, kind: input, shape index: {}]   ;;  %s15606_s9 = inlined_call_operand.hbm [shape: f32[8,128], index: 9, kind: output, shape index: {}]  }
   0x1   :  { %15 = vsyncpa [#allocation6], 0 }
   0x2   :  { %16 = vsyncpa [#allocation9], 0 }
   0x3   :  { %17 = vsyncpa [#allocation12], 0 }
   0x4   :  { %18 = vsyncpa [#allocation15], 0 }
   0x5   :  { %19 = vsyncpa [#allocation4], 0  ;;  %s15105_s30 = smov [#allocation5]   ;;  %s14873_s13 = scalar_lea.hbm %s15598_s1, 73728 }
   0x6   :  { %s35_s10 = sshll.u32 %s15105_s30, 4  ;;  %p14874_p0 = scmp.ne.s32.totalorder %s15598_s1, %s14873_s13  ;;  %s36_s10 = int_to_ptr.vmem [resolvable:$true] %s35_s10 }
   0x7   :  { %p14877_p1 = scmp.lt.u32.totalorder %s14873_s13, %s15598_s1 }
   0x9   :  { %p14879_p2 = pnand %p14877_p1, %p14874_p0 }
   0xb   :  { %14882 = shalt.err (!%p14879_p2)
}
   0xc   :  { %s14883_s18 = scalar_lea.vmem %s36_s10, 73728  ;;  %p14888_p4 = scmp.lt.s32.totalorder %s36_s10, %s36_s10 }
   0xd   :  { %p14884_p3 = scmp.ne.s32.totalorder %s36_s10, %s14883_s18  ;;  %p14889_p5 = scmp.lt.s32.totalorder %s14883_s18, %s14883_s18 }
   0xf   :  { %p14890_p6 = por %p14889_p5, %p14888_p4 }
  0x11   :  { %p14891_p7 = pnand %p14890_p6, %p14884_p3 }
  0x13   :  { %14894 = shalt.err (!%p14891_p7)
}
  0x14   :  { %s15106_s19 = smov 512   ;;  %s15107_s20 = smov 32  }
  0x15   :  { %41 = dma.hbm_to_vmem [thread:$0]  %s15598_s1, 73728, %s36_s10, [#allocation6], %s15106_s19, %s15106_s19, %s15107_s20  }
  0x16   :  { %s15108_s23 = smov [#allocation8]   ;;  %s15109_s25 = smov [#allocation11]  }
  0x17   :  { %s57_s24 = sshll.u32 %s15108_s23, 4  ;;  %s79_s26 = sshll.u32 %s15109_s25, 4  ;;  %s58_s24 = int_to_ptr.vmem [resolvable:$true] %s57_s24  ;;  %s80_s26 = int_to_ptr.vmem [resolvable:$true] %s79_s26 }
  0x18   :  { %s14895_s29 = scalar_lea.hbm %s15600_s3, 65536 }
  0x19   :  { %p14896_p8 = scmp.ne.s32.totalorder %s15600_s3, %s14895_s29  ;;  %p14899_p9 = scmp.lt.u32.totalorder %s14895_s29, %s15600_s3 }
  0x1b   :  { %p14901_p10 = pnand %p14899_p9, %p14896_p8 }
  0x1d   :  { %14904 = shalt.err (!%p14901_p10)
}
  0x1e   :  { %s14905_s1 = scalar_lea.vmem %s58_s24, 65536  ;;  %p14910_p12 = scmp.lt.s32.totalorder %s58_s24, %s58_s24 }
  0x1f   :  { %p14906_p11 = scmp.ne.s32.totalorder %s58_s24, %s14905_s1  ;;  %p14911_p13 = scmp.lt.s32.totalorder %s14905_s1, %s14905_s1 }
  0x21   :  { %p14912_p0 = por %p14911_p13, %p14910_p12 }
  0x23   :  { %p14913_p1 = pnand %p14912_p0, %p14906_p11 }
  0x25   :  { %14916 = shalt.err (!%p14913_p1)
}
  0x26   :  { %63 = dma.hbm_to_vmem [thread:$0]  %s15600_s3, 65536, %s58_s24, [#allocation9], %s15106_s19, %s15106_s19, %s15107_s20  }
  0x27   :  { %s14917_s17 = scalar_lea.hbm %s15602_s5, 65536 }
  0x28   :  { %p14918_p2 = scmp.ne.s32.totalorder %s15602_s5, %s14917_s17  ;;  %p14921_p3 = scmp.lt.u32.totalorder %s14917_s17, %s15602_s5 }
  0x2a   :  { %p14923_p4 = pnand %p14921_p3, %p14918_p2 }
  0x2c   :  { %14926 = shalt.err (!%p14923_p4)
}
  0x2d   :  { %s14927_s25 = scalar_lea.vmem %s80_s26, 65536  ;;  %p14932_p6 = scmp.lt.s32.totalorder %s80_s26, %s80_s26 }
  0x2e   :  { %p14928_p5 = scmp.ne.s32.totalorder %s80_s26, %s14927_s25  ;;  %p14933_p7 = scmp.lt.s32.totalorder %s14927_s25, %s14927_s25 }
  0x30   :  { %p14934_p8 = por %p14933_p7, %p14932_p6 }
  0x32   :  { %p14935_p9 = pnand %p14934_p8, %p14928_p5 }
  0x34   :  { %14938 = shalt.err (!%p14935_p9)
}
  0x35   :  { %85 = dma.hbm_to_vmem [thread:$0]  %s15602_s5, 65536, %s80_s26, [#allocation12], %s15106_s19, %s15106_s19, %s15107_s20  }
  0x36   :  { %s15110_s27 = smov [#allocation14]   ;;  %s14939_s11 = scalar_lea.hbm %s15604_s7, 8192 }
  0x37   :  { %s101_s28 = sshll.u32 %s15110_s27, 4  ;;  %p14940_p10 = scmp.ne.s32.totalorder %s15604_s7, %s14939_s11  ;;  %s102_s28 = int_to_ptr.vmem [resolvable:$true] %s101_s28 }
  0x38   :  { %p14943_p11 = scmp.lt.u32.totalorder %s14939_s11, %s15604_s7 }
  0x3a   :  { %p14945_p12 = pnand %p14943_p11, %p14940_p10 }
  0x3c   :  { %14948 = shalt.err (!%p14945_p12)
}
  0x3d   :  { %s14949_s14 = scalar_lea.vmem %s102_s28, 8192  ;;  %p14954_p0 = scmp.lt.s32.totalorder %s102_s28, %s102_s28 }
  0x3e   :  { %p14950_p13 = scmp.ne.s32.totalorder %s102_s28, %s14949_s14  ;;  %p14955_p1 = scmp.lt.s32.totalorder %s14949_s14, %s14949_s14 }
  0x40   :  { %p14956_p2 = por %p14955_p1, %p14954_p0 }
  0x42   :  { %p14957_p3 = pnand %p14956_p2, %p14950_p13 }
  0x44   :  { %14960 = shalt.err (!%p14957_p3)
}
  0x45   :  { %s15111_s5 = smov 64   ;;  %s15112_s19 = smov 4  }
  0x46   :  { %107 = dma.hbm_to_vmem [thread:$0]  %s15604_s7, 8192, %s102_s28, [#allocation15], %s15111_s5, %s15111_s5, %s15112_s19  }
  0x47   :  { %s15113_s15 = smov [#allocation2]   ;;  %s15114_s17 = smov [#allocation7]  }
  0x48   :  { %s26_s16 = sshll.u32 %s15113_s15, 4  ;;  %s48_s18 = sshll.u32 %s15114_s17, 4  ;;  %s27_s16 = int_to_ptr.vmem [resolvable:$true] %s26_s16  ;;  %s49_s18 = int_to_ptr.vmem [resolvable:$true] %s48_s18 }
  0x49   :  { %s14961_s23 = scalar_lea.hbm %s15597_s0, 576 }
  0x4a   :  { %p14962_p4 = scmp.ne.s32.totalorder %s15597_s0, %s14961_s23  ;;  %p14965_p5 = scmp.lt.u32.totalorder %s14961_s23, %s15597_s0 }
  0x4c   :  { %p14967_p6 = pnand %p14965_p5, %p14962_p4 }
  0x4e   :  { %14970 = shalt.err (!%p14967_p6)
}
  0x4f   :  { %s14971_s7 = scalar_lea.vmem %s27_s16, 576  ;;  %p14976_p8 = scmp.lt.s32.totalorder %s27_s16, %s27_s16 }
  0x50   :  { %p14972_p7 = scmp.ne.s32.totalorder %s27_s16, %s14971_s7  ;;  %p14977_p9 = scmp.lt.s32.totalorder %s14971_s7, %s14971_s7 }
  0x52   :  { %p14978_p10 = por %p14977_p9, %p14976_p8 }
  0x54   :  { %p14979_p11 = pnand %p14978_p10, %p14972_p7 }
  0x56   :  { %14982 = shalt.err (!%p14979_p11)
}
  0x57   :  { %29 = dma.hbm_to_vmem [thread:$0]  %s15597_s0, 576, %s27_s16, [#allocation3]  }
  0x58   :  { %s14983_s12 = scalar_lea.hbm %s15599_s2, 128 }
  0x59   :  { %p14984_p12 = scmp.ne.s32.totalorder %s15599_s2, %s14983_s12  ;;  %p14987_p13 = scmp.lt.u32.totalorder %s14983_s12, %s15599_s2 }
  0x5b   :  { %p14989_p0 = pnand %p14987_p13, %p14984_p12 }
  0x5d   :  { %14992 = shalt.err (!%p14989_p0)
}
  0x5e   :  { %s14993_s5 = scalar_lea.vmem %s49_s18, 128  ;;  %p14998_p2 = scmp.lt.s32.totalorder %s49_s18, %s49_s18 }
  0x5f   :  { %p14994_p1 = scmp.ne.s32.totalorder %s49_s18, %s14993_s5  ;;  %p14999_p3 = scmp.lt.s32.totalorder %s14993_s5, %s14993_s5 }
  0x61   :  { %p15000_p4 = por %p14999_p3, %p14998_p2 }
  0x63   :  { %p15001_p5 = pnand %p15000_p4, %p14994_p1 }
  0x65   :  { %15004 = shalt.err (!%p15001_p5)
}
  0x66   :  { %51 = dma.hbm_to_vmem [thread:$0]  %s15599_s2, 128, %s49_s18, [#allocation6]  }
  0x67   :  { %s15115_s20 = smov [#allocation10]   ;;  %s15116_s15 = smov [#allocation13]  }
  0x68   :  { %s70_s26 = sshll.u32 %s15115_s20, 4  ;;  %s92_s16 = sshll.u32 %s15116_s15, 4  ;;  %s71_s26 = int_to_ptr.vmem [resolvable:$true] %s70_s26  ;;  %s93_s16 = int_to_ptr.vmem [resolvable:$true] %s92_s16 }
  0x69   :  { %s15005_s22 = scalar_lea.hbm %s15601_s4, 128 }
  0x6a   :  { %p15006_p6 = scmp.ne.s32.totalorder %s15601_s4, %s15005_s22  ;;  %p15009_p7 = scmp.lt.u32.totalorder %s15005_s22, %s15601_s4 }
  0x6c   :  { %p15011_p8 = pnand %p15009_p7, %p15006_p6 }
  0x6e   :  { %15014 = shalt.err (!%p15011_p8)
}
  0x6f   :  { %s15015_s2 = scalar_lea.vmem %s71_s26, 128  ;;  %p15020_p10 = scmp.lt.s32.totalorder %s71_s26, %s71_s26 }
  0x70   :  { %p15016_p9 = scmp.ne.s32.totalorder %s71_s26, %s15015_s2  ;;  %p15021_p11 = scmp.lt.s32.totalorder %s15015_s2, %s15015_s2 }
  0x72   :  { %p15022_p12 = por %p15021_p11, %p15020_p10 }
  0x74   :  { %p15023_p13 = pnand %p15022_p12, %p15016_p9 }
  0x76   :  { %15026 = shalt.err (!%p15023_p13)
}
  0x77   :  { %73 = dma.hbm_to_vmem [thread:$0]  %s15601_s4, 128, %s71_s26, [#allocation9]  }
  0x78   :  { %s15027_s29 = scalar_lea.hbm %s15603_s6, 128 }
  0x79   :  { %p15028_p0 = scmp.ne.s32.totalorder %s15603_s6, %s15027_s29  ;;  %p15031_p1 = scmp.lt.u32.totalorder %s15027_s29, %s15603_s6 }
  0x7b   :  { %p15033_p2 = pnand %p15031_p1, %p15028_p0 }
  0x7d   :  { %15036 = shalt.err (!%p15033_p2)
}
  0x7e   :  { %s15037_s1 = scalar_lea.vmem %s93_s16, 128  ;;  %p15042_p4 = scmp.lt.s32.totalorder %s93_s16, %s93_s16 }
  0x7f   :  { %p15038_p3 = scmp.ne.s32.totalorder %s93_s16, %s15037_s1  ;;  %p15043_p5 = scmp.lt.s32.totalorder %s15037_s1, %s15037_s1 }
  0x81   :  { %p15044_p6 = por %p15043_p5, %p15042_p4 }
  0x83   :  { %p15045_p7 = pnand %p15044_p6, %p15038_p3 }
  0x85   :  { %15048 = shalt.err (!%p15045_p7)
}
  0x86   :  { %95 = dma.hbm_to_vmem [thread:$0]  %s15603_s6, 128, %s93_s16, [#allocation12]  }
  0x87   :  { %s15117_s14 = smov [#allocation16]   ;;  %s15049_s20 = scalar_lea.hbm %s15605_s8, 16 }
  0x88   :  { %s114_s5 = sshll.u32 %s15117_s14, 4  ;;  %p15050_p8 = scmp.ne.s32.totalorder %s15605_s8, %s15049_s20  ;;  %s115_s5 = int_to_ptr.vmem [resolvable:$true] %s114_s5 }
  0x89   :  { %p15053_p9 = scmp.lt.u32.totalorder %s15049_s20, %s15605_s8 }
  0x8b   :  { %p15055_p10 = pnand %p15053_p9, %p15050_p8 }
  0x8d   :  { %15058 = shalt.err (!%p15055_p10)
}
  0x8e   :  { %s15059_s22 = scalar_lea.vmem %s115_s5, 16  ;;  %s15063_s6 = scalar_lea.vmem %s115_s5, 32 }
  0x8f   :  { %p15060_p11 = scmp.ne.s32.totalorder %s115_s5, %s15059_s22  ;;  %p15064_p12 = scmp.lt.s32.totalorder %s115_s5, %s115_s5 }
  0x90   :  { %p15065_p13 = scmp.lt.s32.totalorder %s15063_s6, %s15059_s22 }
  0x92   :  { %p15066_p0 = por %p15065_p13, %p15064_p12 }
  0x94   :  { %p15067_p1 = pnand %p15066_p0, %p15060_p11 }
  0x96   :  { %15070 = shalt.err (!%p15067_p1)
}
  0x97   :  { %117 = dma.hbm_to_vmem [thread:$0]  %s15605_s8, 16, %s115_s5, [#allocation15]  }
  0x98   :  { %15093 = dma.done.wait [#allocation3], 576  }
  0x99   :  { %15094 = vsyncadd [#allocation3], 4294966720 }
  0x9a   :  { %15095 = dma.done.wait [#allocation6], 73856  }
  0x9b   :  { %15096 = vsyncadd [#allocation6], 4294893440 }
  0x9c   :  { %15097 = dma.done.wait [#allocation9], 65664  }
  0x9d   :  { %15098 = vsyncadd [#allocation9], 4294901632 }
  0x9e   :  { %15099 = dma.done.wait [#allocation12], 65664  }
  0x9f   :  { %15100 = vsyncadd [#allocation12], 4294901632 }
  0xa0   :  { %15101 = dma.done.wait [#allocation15], 8208  }
  0xa1   :  { %15102 = vsyncadd [#allocation15], 4294959088  ;;  %v151_v0 = vld [vmem:[#allocation5] sm:$0xff]  ;;  %v152_v2 = vld [vmem:[#allocation5 + $0x8] sm:$0xff]  ;;  %s15119_s8 = smov [#allocation17]  }
  0xa2   :  { %v155_v1 = vld [vmem:[#allocation5 + $0x20] sm:$0xff]  ;;  %v156_v4 = vld [vmem:[#allocation5 + $0x28] sm:$0xff]  ;;  %s12823_s25 = sshll.u32 %s15119_s8, 4  ;;  %s12824_s25 = int_to_ptr.vmem [resolvable:$true] %s12823_s25 }
  0xa3   :  { %v12846_v3 = vcombine.high %v151_v0, %v155_v1  ;;  %v12845_v5 = vcombine.low %v151_v0, %v155_v1  ;;  %v159_v6 = vld [vmem:[#allocation5 + $0x40] sm:$0xff]  ;;  %v12848_v8 = vcombine.high %v152_v2, %v156_v4  ;;  %v12847_v9 = vcombine.low %v152_v2, %v156_v4  ;;  %v160_v11 = vld [vmem:[#allocation5 + $0x48] sm:$0xff]  ;;  %s15071_s3 = scalar_lea.vmem %s12824_s25, 128  ;;  %p15076_p3 = scmp.lt.s32.totalorder %s12824_s25, %s12824_s25 }
  0xa4   :  { %v163_v7 = vld [vmem:[#allocation5 + $0x60] sm:$0xff]  ;;  %v164_v12 = vld [vmem:[#allocation5 + $0x68] sm:$0xff]  ;;  %p15072_p2 = scmp.ne.s32.totalorder %s12824_s25, %s15071_s3  ;;  %p15077_p4 = scmp.lt.s32.totalorder %s15071_s3, %s15071_s3 }
  0xa5   :  { %v12854_v10 = vcombine.high %v159_v6, %v163_v7  ;;  %v167_v13 = vld [vmem:[#allocation5 + $0x80] sm:$0xff]  ;;  %3681 = vmatprep.subr.bf16.mxu0 %v12846_v3  ;;  %v12856_v14 = vcombine.high %v160_v11, %v164_v12  ;;  %v168_v16 = vld [vmem:[#allocation5 + $0x88] sm:$0xff]  ;;  %3886 = vmatprep.subr.bf16.mxu1 %v12848_v8  ;;  %v12853_v18 = vcombine.low %v159_v6, %v163_v7 }
  0xa6   :  { %v171_v15 = vld [vmem:[#allocation5 + $0xa0] sm:$0xff]  ;;  %v172_v17 = vld [vmem:[#allocation5 + $0xa8] sm:$0xff]  ;;  %3682 = vmatpush1.bf16.msra.mxu0 %v12845_v5  ;;  %3887 = vmatpush1.bf16.msra.mxu1 %v12847_v9  ;;  %v12855_v19 = vcombine.low %v160_v11, %v164_v12  ;;  %p15078_p5 = por %p15077_p4, %p15076_p3 }
  0xa7   :  { %3683 = vmatprep.subr.bf16.mxu0 %v12854_v10  ;;  %v12862_v20 = vcombine.high %v167_v13, %v171_v15  ;;  %3888 = vmatprep.subr.bf16.mxu1 %v12856_v14  ;;  %v12864_v21 = vcombine.high %v168_v16, %v172_v17  ;;  %v175_v22 = vld [vmem:[#allocation5 + $0xc0] sm:$0xff]  ;;  %v176_v24 = vld [vmem:[#allocation5 + $0xc8] sm:$0xff]  ;;  %v12861_v26 = vcombine.low %v167_v13, %v171_v15 }
  0xa8   :  { %v179_v23 = vld [vmem:[#allocation5 + $0xe0] sm:$0xff]  ;;  %v180_v25 = vld [vmem:[#allocation5 + $0xe8] sm:$0xff]  ;;  %v12863_v27 = vcombine.low %v168_v16, %v172_v17  ;;  %p15079_p6 = pnand %p15078_p5, %p15072_p2 }
  0xa9   :  { %v12870_v28 = vcombine.high %v175_v22, %v179_v23  ;;  %v12872_v29 = vcombine.high %v176_v24, %v180_v25  ;;  %v183_v30 = vld [vmem:[#allocation5 + $0x100] sm:$0xff]  ;;  %v184_v32 = vld [vmem:[#allocation5 + $0x108] sm:$0xff]  ;;  %v12869_v34 = vcombine.low %v175_v22, %v179_v23  ;;  %v12871_v35 = vcombine.low %v176_v24, %v180_v25 }
  0xaa   :  { %3684 = vmatpush1.bf16.msra.mxu0 %v12853_v18  ;;  %3889 = vmatpush1.bf16.msra.mxu1 %v12855_v19  ;;  %v187_v31 = vld [vmem:[#allocation5 + $0x120] sm:$0xff]  ;;  %v188_v33 = vld [vmem:[#allocation5 + $0x128] sm:$0xff] }
  0xab   :  { %3685 = vmatprep.subr.bf16.mxu0 %v12862_v20  ;;  %3890 = vmatprep.subr.bf16.mxu1 %v12864_v21  ;;  %v12878_v36 = vcombine.high %v183_v30, %v187_v31  ;;  %v12880_v37 = vcombine.high %v184_v32, %v188_v33  ;;  %v191_v38 = vld [vmem:[#allocation5 + $0x140] sm:$0xff]  ;;  %v192_v40 = vld [vmem:[#allocation5 + $0x148] sm:$0xff]  ;;  %v12877_v42 = vcombine.low %v183_v30, %v187_v31 }
  0xac   :  { %v195_v39 = vld [vmem:[#allocation5 + $0x160] sm:$0xff]  ;;  %v196_v41 = vld [vmem:[#allocation5 + $0x168] sm:$0xff]  ;;  %v12879_v43 = vcombine.low %v184_v32, %v188_v33 }
  0xad   :  { %v12886_v44 = vcombine.high %v191_v38, %v195_v39  ;;  %v12888_v45 = vcombine.high %v192_v40, %v196_v41  ;;  %v199_v46 = vld [vmem:[#allocation5 + $0x180] sm:$0xff]  ;;  %v200_v48 = vld [vmem:[#allocation5 + $0x188] sm:$0xff]  ;;  %v12885_v50 = vcombine.low %v191_v38, %v195_v39  ;;  %v12887_v51 = vcombine.low %v192_v40, %v196_v41 }
  0xae   :  { %3686 = vmatpush1.bf16.msra.mxu0 %v12861_v26  ;;  %3891 = vmatpush1.bf16.msra.mxu1 %v12863_v27  ;;  %v203_v47 = vld [vmem:[#allocation5 + $0x1a0] sm:$0xff]  ;;  %v204_v49 = vld [vmem:[#allocation5 + $0x1a8] sm:$0xff] }
  0xaf   :  { %3687 = vmatprep.subr.bf16.mxu0 %v12870_v28  ;;  %3892 = vmatprep.subr.bf16.mxu1 %v12872_v29  ;;  %v12894_v52 = vcombine.high %v199_v46, %v203_v47  ;;  %v15287_v53 = vld [vmem:[#allocation2] sm:$0xff]  ;;  %v12896_v54 = vcombine.high %v200_v48, %v204_v49  ;;  %v208_v58 = vld [vmem:[#allocation5 + $0x1c8] sm:$0xff]  ;;  %v12893_v60 = vcombine.low %v199_v46, %v203_v47 }
  0xb0   :  { %v207_v55 = vld [vmem:[#allocation5 + $0x1c0] sm:$0xff]  ;;  %v15291_v57 = vcombine.high %v15287_v53, %v15287_v53  ;;  %v212_v59 = vld [vmem:[#allocation5 + $0x1e8] sm:$0xff]  ;;  %v12895_v61 = vcombine.low %v200_v48, %v204_v49 }
  0xb1   :  { %v211_v56 = vld [vmem:[#allocation5 + $0x1e0] sm:$0xff]  ;;  %v12904_v63 = vcombine.high %v208_v58, %v212_v59  ;;  %v216_v2 = vld [vmem:[#allocation5 + $0x208] sm:$0xff]  ;;  %v12903_v5 = vcombine.low %v208_v58, %v212_v59 }
  0xb2   :  { %3688 = vmatpush1.bf16.msra.mxu0 %v12869_v34  ;;  %3893 = vmatpush1.bf16.msra.mxu1 %v12871_v35  ;;  %v12902_v62 = vcombine.high %v207_v55, %v211_v56  ;;  %v215_v0 = vld [vmem:[#allocation5 + $0x200] sm:$0xff]  ;;  %v220_v3 = vld [vmem:[#allocation5 + $0x228] sm:$0xff]  ;;  %v12901_v4 = vcombine.low %v207_v55, %v211_v56 }
  0xb3   :  { %3689 = vmatprep.subr.bf16.mxu0 %v12878_v36  ;;  %3894 = vmatprep.subr.bf16.mxu1 %v12880_v37  ;;  %v219_v1 = vld [vmem:[#allocation5 + $0x220] sm:$0xff]  ;;  %v12912_v7 = vcombine.high %v216_v2, %v220_v3  ;;  %v224_v10 = vld [vmem:[#allocation5 + $0x248] sm:$0xff]  ;;  %v12911_v13 = vcombine.low %v216_v2, %v220_v3 }
  0xb4   :  { %3713 = vmatprep.mubr.bf16.mxu0 %v15291_v57  ;;  %3918 = vmatprep.mubr.bf16.mxu1 %v15291_v57  ;;  %v12910_v6 = vcombine.high %v215_v0, %v219_v1  ;;  %v223_v8 = vld [vmem:[#allocation5 + $0x240] sm:$0xff]  ;;  %v228_v11 = vld [vmem:[#allocation5 + $0x268] sm:$0xff]  ;;  %v12909_v12 = vcombine.low %v215_v0, %v219_v1 }
  0xb5   :  { %v227_v9 = vld [vmem:[#allocation5 + $0x260] sm:$0xff]  ;;  %v12920_v15 = vcombine.high %v224_v10, %v228_v11  ;;  %v232_v18 = vld [vmem:[#allocation5 + $0x288] sm:$0xff]  ;;  %v12919_v21 = vcombine.low %v224_v10, %v228_v11 }
  0xb6   :  { %3690 = vmatpush1.bf16.msra.mxu0 %v12877_v42  ;;  %3895 = vmatpush1.bf16.msra.mxu1 %v12879_v43  ;;  %v12918_v14 = vcombine.high %v223_v8, %v227_v9  ;;  %v231_v16 = vld [vmem:[#allocation5 + $0x280] sm:$0xff]  ;;  %v236_v19 = vld [vmem:[#allocation5 + $0x2a8] sm:$0xff]  ;;  %v12917_v20 = vcombine.low %v223_v8, %v227_v9 }
  0xb7   :  { %3691 = vmatprep.subr.bf16.mxu0 %v12886_v44  ;;  %3896 = vmatprep.subr.bf16.mxu1 %v12888_v45  ;;  %v235_v17 = vld [vmem:[#allocation5 + $0x2a0] sm:$0xff]  ;;  %v12928_v23 = vcombine.high %v232_v18, %v236_v19  ;;  %v240_v26 = vld [vmem:[#allocation5 + $0x2c8] sm:$0xff]  ;;  %v12927_v29 = vcombine.low %v232_v18, %v236_v19 }
  0xb8   :  { %v12926_v22 = vcombine.high %v231_v16, %v235_v17  ;;  %v239_v24 = vld [vmem:[#allocation5 + $0x2c0] sm:$0xff]  ;;  %v244_v27 = vld [vmem:[#allocation5 + $0x2e8] sm:$0xff]  ;;  %v12925_v28 = vcombine.low %v231_v16, %v235_v17 }
  0xb9   :  { %v243_v25 = vld [vmem:[#allocation5 + $0x2e0] sm:$0xff]  ;;  %v12936_v31 = vcombine.high %v240_v26, %v244_v27  ;;  %v248_v34 = vld [vmem:[#allocation5 + $0x308] sm:$0xff]  ;;  %v12935_v37 = vcombine.low %v240_v26, %v244_v27 }
  0xba   :  { %3692 = vmatpush1.bf16.msra.mxu0 %v12885_v50  ;;  %3897 = vmatpush1.bf16.msra.mxu1 %v12887_v51  ;;  %v12934_v30 = vcombine.high %v239_v24, %v243_v25  ;;  %v247_v32 = vld [vmem:[#allocation5 + $0x300] sm:$0xff]  ;;  %v252_v35 = vld [vmem:[#allocation5 + $0x328] sm:$0xff]  ;;  %v12933_v36 = vcombine.low %v239_v24, %v243_v25 }
  0xbb   :  { %3693 = vmatprep.subr.bf16.mxu0 %v12894_v52  ;;  %3898 = vmatprep.subr.bf16.mxu1 %v12896_v54  ;;  %v251_v33 = vld [vmem:[#allocation5 + $0x320] sm:$0xff]  ;;  %v12944_v39 = vcombine.high %v248_v34, %v252_v35  ;;  %v256_v42 = vld [vmem:[#allocation5 + $0x348] sm:$0xff]  ;;  %v12943_v45 = vcombine.low %v248_v34, %v252_v35 }
  0xbc   :  { %v12942_v38 = vcombine.high %v247_v32, %v251_v33  ;;  %v255_v40 = vld [vmem:[#allocation5 + $0x340] sm:$0xff]  ;;  %v260_v43 = vld [vmem:[#allocation5 + $0x368] sm:$0xff]  ;;  %v12941_v44 = vcombine.low %v247_v32, %v251_v33 }
  0xbd   :  { %v259_v41 = vld [vmem:[#allocation5 + $0x360] sm:$0xff]  ;;  %v12952_v47 = vcombine.high %v256_v42, %v260_v43  ;;  %v264_v50 = vld [vmem:[#allocation5 + $0x388] sm:$0xff]  ;;  %v12951_v54 = vcombine.low %v256_v42, %v260_v43 }
  0xbe   :  { %3694 = vmatpush1.bf16.msra.mxu0 %v12893_v60  ;;  %3899 = vmatpush1.bf16.msra.mxu1 %v12895_v61  ;;  %v12950_v46 = vcombine.high %v255_v40, %v259_v41  ;;  %v263_v48 = vld [vmem:[#allocation5 + $0x380] sm:$0xff]  ;;  %v268_v51 = vld [vmem:[#allocation5 + $0x3a8] sm:$0xff]  ;;  %v12949_v52 = vcombine.low %v255_v40, %v259_v41 }
  0xbf   :  { %3695 = vmatprep.subr.bf16.mxu0 %v12902_v62  ;;  %3900 = vmatprep.subr.bf16.mxu1 %v12904_v63  ;;  %v267_v49 = vld [vmem:[#allocation5 + $0x3a0] sm:$0xff]  ;;  %v12960_v56 = vcombine.high %v264_v50, %v268_v51  ;;  %v272_v60 = vld [vmem:[#allocation5 + $0x3c8] sm:$0xff]  ;;  %v12959_v63 = vcombine.low %v264_v50, %v268_v51 }
  0xc0   :  { %v12958_v55 = vcombine.high %v263_v48, %v267_v49  ;;  %v271_v58 = vld [vmem:[#allocation5 + $0x3c0] sm:$0xff]  ;;  %v276_v61 = vld [vmem:[#allocation5 + $0x3e8] sm:$0xff]  ;;  %v12957_v62 = vcombine.low %v263_v48, %v267_v49 }
  0xc1   :  { %v275_v59 = vld [vmem:[#allocation5 + $0x3e0] sm:$0xff]  ;;  %v12968_v1 = vcombine.high %v272_v60, %v276_v61 }
  0xc2   :  { %3696 = vmatpush1.bf16.msra.mxu0 %v12901_v4  ;;  %3901 = vmatpush1.bf16.msra.mxu1 %v12903_v5  ;;  %v12966_v0 = vcombine.high %v271_v58, %v275_v59  ;;  %v279_v2 = vld [vmem:[#allocation5 + $0x400] sm:$0xff]  ;;  %v280_v4 = vld [vmem:[#allocation5 + $0x408] sm:$0xff] }
  0xc3   :  { %3697 = vmatprep.subr.bf16.mxu0 %v12910_v6  ;;  %3902 = vmatprep.subr.bf16.mxu1 %v12912_v7  ;;  %v283_v3 = vld [vmem:[#allocation5 + $0x420] sm:$0xff]  ;;  %v284_v5 = vld [vmem:[#allocation5 + $0x428] sm:$0xff]  ;;  %v12965_v6 = vcombine.low %v271_v58, %v275_v59  ;;  %v12967_v7 = vcombine.low %v272_v60, %v276_v61 }
  0xc4   :  { %v12974_v8 = vcombine.high %v279_v2, %v283_v3  ;;  %v12976_v9 = vcombine.high %v280_v4, %v284_v5  ;;  %v287_v10 = vld [vmem:[#allocation5 + $0x440] sm:$0xff]  ;;  %v12973_v16 = vcombine.low %v279_v2, %v283_v3  ;;  %v12975_v17 = vcombine.low %v280_v4, %v284_v5 }
  0xc5   :  { %v291_v11 = vld [vmem:[#allocation5 + $0x460] sm:$0xff] }
  0xc6   :  { %3698 = vmatpush1.bf16.msra.mxu0 %v12909_v12  ;;  %3903 = vmatpush1.bf16.msra.mxu1 %v12911_v13  ;;  %v15297_v12 = vcombine.low %v15287_v53, %v15287_v53  ;;  %v288_v13 = vld [vmem:[#allocation5 + $0x448] sm:$0xff]  ;;  %v12982_v18 = vcombine.high %v287_v10, %v291_v11  ;;  %v295_v19 = vld [vmem:[#allocation5 + $0x480] sm:$0xff]  ;;  %v12981_v24 = vcombine.low %v287_v10, %v291_v11 }
  0xc7   :  { %3699 = vmatprep.subr.bf16.mxu0 %v12918_v14  ;;  %3904 = vmatprep.subr.bf16.mxu1 %v12920_v15  ;;  %v292_v14 = vld [vmem:[#allocation5 + $0x468] sm:$0xff]  ;;  %v303_v27 = vld [vmem:[#allocation5 + $0x4c0] sm:$0xff] }
  0xc8   :  { %v15299_v15 = vld [vmem:[#allocation2 + $0x8] sm:$0xff]  ;;  %v12983_v25 = vcombine.low %v288_v13, %v292_v14 }
  0xc9   :  { %v15303_v53 = vcombine.high %v15299_v15, %v15299_v15  ;;  %v311_v35 = vld [vmem:[#allocation5 + $0x500] sm:$0xff] }
  0xca   :  { %3700 = vmatpush1.bf16.msra.mxu0 %v12917_v20  ;;  %3905 = vmatpush1.bf16.msra.mxu1 %v12919_v21  ;;  %v299_v20 = vld [vmem:[#allocation5 + $0x4a0] sm:$0xff]  ;;  %v12984_v21 = vcombine.high %v288_v13, %v292_v14 }
  0xcb   :  { %3701 = vmatprep.subr.bf16.mxu0 %v12926_v22  ;;  %3906 = vmatprep.subr.bf16.mxu1 %v12928_v23  ;;  %v296_v22 = vld [vmem:[#allocation5 + $0x488] sm:$0xff]  ;;  %v12990_v26 = vcombine.high %v295_v19, %v299_v20  ;;  %v12989_v32 = vcombine.low %v295_v19, %v299_v20  ;;  %v319_v43 = vld [vmem:[#allocation5 + $0x540] sm:$0xff] }
  0xcc   :  { %v300_v23 = vld [vmem:[#allocation5 + $0x4a8] sm:$0xff]  ;;  %v327_v51 = vld [vmem:[#allocation5 + $0x580] sm:$0xff] }
  0xcd   :  { %v12991_v33 = vcombine.low %v296_v22, %v300_v23  ;;  %v335_v61 = vld [vmem:[#allocation5 + $0x5c0] sm:$0xff]  ;;  %v356_v19 = vld [vmem:[#allocation5 + $0x668] sm:$0xff] }
  0xce   :  { %3702 = vmatpush1.bf16.msra.mxu0 %v12925_v28  ;;  %3907 = vmatpush1.bf16.msra.mxu1 %v12927_v29  ;;  %v307_v28 = vld [vmem:[#allocation5 + $0x4e0] sm:$0xff]  ;;  %v304_v29 = vld [vmem:[#allocation5 + $0x4c8] sm:$0xff] }
  0xcf   :  { %3703 = vmatprep.subr.bf16.mxu0 %v12934_v30  ;;  %3908 = vmatprep.subr.bf16.mxu1 %v12936_v31  ;;  %v12992_v30 = vcombine.high %v296_v22, %v300_v23  ;;  %v308_v31 = vld [vmem:[#allocation5 + $0x4e8] sm:$0xff]  ;;  %v12998_v34 = vcombine.high %v303_v27, %v307_v28  ;;  %v12997_v40 = vcombine.low %v303_v27, %v307_v28  ;;  %v343_v5 = vld [vmem:[#allocation5 + $0x600] sm:$0xff] }
  0xd0   :  { %v12999_v41 = vcombine.low %v304_v29, %v308_v31  ;;  %v351_v14 = vld [vmem:[#allocation5 + $0x640] sm:$0xff]  ;;  %v364_v27 = vld [vmem:[#allocation5 + $0x6a8] sm:$0xff] }
  0xd1   :  { %v359_v23 = vld [vmem:[#allocation5 + $0x680] sm:$0xff] }
  0xd2   :  { %3704 = vmatpush1.bf16.msra.mxu0 %v12933_v36  ;;  %3909 = vmatpush1.bf16.msra.mxu1 %v12935_v37  ;;  %v315_v36 = vld [vmem:[#allocation5 + $0x520] sm:$0xff]  ;;  %v312_v37 = vld [vmem:[#allocation5 + $0x508] sm:$0xff] }
  0xd3   :  { %3705 = vmatprep.subr.bf16.mxu0 %v12942_v38  ;;  %3910 = vmatprep.subr.bf16.mxu1 %v12944_v39  ;;  %v13000_v38 = vcombine.high %v304_v29, %v308_v31  ;;  %v316_v39 = vld [vmem:[#allocation5 + $0x528] sm:$0xff]  ;;  %v13006_v42 = vcombine.high %v311_v35, %v315_v36  ;;  %v13005_v48 = vcombine.low %v311_v35, %v315_v36  ;;  %v367_v31 = vld [vmem:[#allocation5 + $0x6c0] sm:$0xff] }
  0xd4   :  { %v13007_v49 = vcombine.low %v312_v37, %v316_v39  ;;  %v372_v35 = vld [vmem:[#allocation5 + $0x6e8] sm:$0xff] }
  0xd6   :  { %3706 = vmatpush1.bf16.msra.mxu0 %v12941_v44  ;;  %3911 = vmatpush1.bf16.msra.mxu1 %v12943_v45  ;;  %v323_v44 = vld [vmem:[#allocation5 + $0x560] sm:$0xff]  ;;  %v320_v45 = vld [vmem:[#allocation5 + $0x548] sm:$0xff] }
  0xd7   :  { %3707 = vmatprep.subr.bf16.mxu0 %v12950_v46  ;;  %3912 = vmatprep.subr.bf16.mxu1 %v12952_v47  ;;  %v13008_v46 = vcombine.high %v312_v37, %v316_v39  ;;  %v324_v47 = vld [vmem:[#allocation5 + $0x568] sm:$0xff]  ;;  %v13014_v50 = vcombine.high %v319_v43, %v323_v44  ;;  %v13013_v58 = vcombine.low %v319_v43, %v323_v44  ;;  %v375_v39 = vld [vmem:[#allocation5 + $0x700] sm:$0xff] }
  0xd8   :  { %v13015_v59 = vcombine.low %v320_v45, %v324_v47  ;;  %v380_v43 = vld [vmem:[#allocation5 + $0x728] sm:$0xff] }
  0xda   :  { %3708 = vmatpush1.bf16.msra.mxu0 %v12949_v52  ;;  %3913 = vmatpush1.bf16.msra.mxu1 %v12951_v54  ;;  %v331_v52 = vld [vmem:[#allocation5 + $0x5a0] sm:$0xff]  ;;  %v328_v54 = vld [vmem:[#allocation5 + $0x588] sm:$0xff] }
  0xdb   :  { %3709 = vmatprep.subr.bf16.mxu0 %v12958_v55  ;;  %3914 = vmatprep.subr.bf16.mxu1 %v12960_v56  ;;  %v13016_v55 = vcombine.high %v320_v45, %v324_v47  ;;  %v332_v56 = vld [vmem:[#allocation5 + $0x5a8] sm:$0xff]  ;;  %v13022_v60 = vcombine.high %v327_v51, %v331_v52  ;;  %v13021_v2 = vcombine.low %v327_v51, %v331_v52  ;;  %v383_v47 = vld [vmem:[#allocation5 + $0x740] sm:$0xff] }
  0xdc   :  { %v13023_v3 = vcombine.low %v328_v54, %v332_v56  ;;  %v388_v51 = vld [vmem:[#allocation5 + $0x768] sm:$0xff] }
  0xde   :  { %3710 = vmatpush1.bf16.msra.mxu0 %v12957_v62  ;;  %3915 = vmatpush1.bf16.msra.mxu1 %v12959_v63  ;;  %v339_v62 = vld [vmem:[#allocation5 + $0x5e0] sm:$0xff]  ;;  %v336_v63 = vld [vmem:[#allocation5 + $0x5c8] sm:$0xff] }
  0xdf   :  { %3711 = vmatprep.subr.bf16.mxu0 %v12966_v0  ;;  %3916 = vmatprep.subr.bf16.mxu1 %v12968_v1  ;;  %v13024_v0 = vcombine.high %v328_v54, %v332_v56  ;;  %v340_v1 = vld [vmem:[#allocation5 + $0x5e8] sm:$0xff]  ;;  %v13030_v4 = vcombine.high %v335_v61, %v339_v62  ;;  %v13029_v10 = vcombine.low %v335_v61, %v339_v62  ;;  %v391_v56 = vld [vmem:[#allocation5 + $0x780] sm:$0xff] }
  0xe0   :  { %v13031_v11 = vcombine.low %v336_v63, %v340_v1  ;;  %v396_v61 = vld [vmem:[#allocation5 + $0x7a8] sm:$0xff] }
  0xe2   :  { %3712 = vmatpush1.bf16.msra.mxu0 %v12965_v6  ;;  %3917 = vmatpush1.bf16.msra.mxu1 %v12967_v7  ;;  %v347_v6 = vld [vmem:[#allocation5 + $0x620] sm:$0xff]  ;;  %v344_v7 = vld [vmem:[#allocation5 + $0x608] sm:$0xff] }
  0xe3   :  { %3722 = vmatprep.subr.bf16.mxu0 %v12974_v8  ;;  %3927 = vmatprep.subr.bf16.mxu1 %v12976_v9  ;;  %v13032_v8 = vcombine.high %v336_v63, %v340_v1  ;;  %v348_v9 = vld [vmem:[#allocation5 + $0x628] sm:$0xff]  ;;  %v13038_v13 = vcombine.high %v343_v5, %v347_v6  ;;  %v13037_v20 = vcombine.low %v343_v5, %v347_v6  ;;  %v399_v1 = vld [vmem:[#allocation5 + $0x7c0] sm:$0xff] }
  0xe4   :  { %v404_v5 = vld [vmem:[#allocation5 + $0x7e8] sm:$0xff] }
  0xe5   :  { %3714 = vmatmul.mubr.bf16.vlgmr.msra.gmra.mrb[0].mxu0 %v15297_v12  ;;  %3919 = vmatmul.mubr.bf16.vlgmr.msra.gmra.mrb[0].mxu1 %v15297_v12 }
  0xe6   :  { %3723 = vmatpush1.bf16.msra.mxu0 %v12973_v16  ;;  %3928 = vmatpush1.bf16.msra.mxu1 %v12975_v17  ;;  %v355_v16 = vld [vmem:[#allocation5 + $0x660] sm:$0xff]  ;;  %v352_v17 = vld [vmem:[#allocation5 + $0x648] sm:$0xff] }
  0xe7   :  { %3724 = vmatprep.subr.bf16.mxu0 %v12982_v18  ;;  %3929 = vmatprep.subr.bf16.mxu1 %v12984_v21  ;;  %v13040_v18 = vcombine.high %v344_v7, %v348_v9  ;;  %v13039_v21 = vcombine.low %v344_v7, %v348_v9  ;;  %v13046_v22 = vcombine.high %v351_v14, %v355_v16  ;;  %v407_v9 = vld [vmem:[#allocation5 + $0x800] sm:$0xff] }
  0xe8   :  { %3754 = vmatprep.mubr.bf16.mxu0 %v15303_v53  ;;  %3959 = vmatprep.mubr.bf16.mxu1 %v15303_v53  ;;  %v13045_v28 = vcombine.low %v351_v14, %v355_v16  ;;  %v13047_v29 = vcombine.low %v352_v17, %v356_v19  ;;  %v412_v14 = vld [vmem:[#allocation5 + $0x828] sm:$0xff] }
  0xea   :  { %3725 = vmatpush1.bf16.msra.mxu0 %v12981_v24  ;;  %3930 = vmatpush1.bf16.msra.mxu1 %v12983_v25  ;;  %v363_v24 = vld [vmem:[#allocation5 + $0x6a0] sm:$0xff]  ;;  %v360_v25 = vld [vmem:[#allocation5 + $0x688] sm:$0xff] }
  0xeb   :  { %3726 = vmatprep.subr.bf16.mxu0 %v12990_v26  ;;  %3931 = vmatprep.subr.bf16.mxu1 %v12992_v30  ;;  %v13048_v26 = vcombine.high %v352_v17, %v356_v19  ;;  %v13054_v30 = vcombine.high %v359_v23, %v363_v24  ;;  %v13053_v36 = vcombine.low %v359_v23, %v363_v24  ;;  %v415_v17 = vld [vmem:[#allocation5 + $0x840] sm:$0xff]  ;;  %v15309_v24 = vld [vmem:[#allocation2 + $0x10] sm:$0xff] }
  0xec   :  { %v13055_v37 = vcombine.low %v360_v25, %v364_v27 }
  0xee   :  { %3727 = vmatpush1.bf16.msra.mxu0 %v12989_v32  ;;  %3932 = vmatpush1.bf16.msra.mxu1 %v12991_v33  ;;  %v371_v32 = vld [vmem:[#allocation5 + $0x6e0] sm:$0xff]  ;;  %v368_v33 = vld [vmem:[#allocation5 + $0x6c8] sm:$0xff] }
  0xef   :  { %3728 = vmatprep.subr.bf16.mxu0 %v12998_v34  ;;  %3933 = vmatprep.subr.bf16.mxu1 %v13000_v38  ;;  %v13056_v34 = vcombine.high %v360_v25, %v364_v27  ;;  %v13062_v38 = vcombine.high %v367_v31, %v371_v32  ;;  %v13061_v44 = vcombine.low %v367_v31, %v371_v32  ;;  %v427_v31 = vld [vmem:[#allocation5 + $0x8a0] sm:$0xff] }
  0xf0   :  { %v13063_v45 = vcombine.low %v368_v33, %v372_v35  ;;  %v15313_v25 = vcombine.low %v15299_v15, %v15299_v15  ;;  %v15317_v32 = vcombine.high %v15309_v24, %v15309_v24 }
  0xf2   :  { %3729 = vmatpush1.bf16.msra.mxu0 %v12997_v40  ;;  %3934 = vmatpush1.bf16.msra.mxu1 %v12999_v41  ;;  %v379_v40 = vld [vmem:[#allocation5 + $0x720] sm:$0xff]  ;;  %v376_v41 = vld [vmem:[#allocation5 + $0x708] sm:$0xff] }
  0xf3   :  { %3730 = vmatprep.subr.bf16.mxu0 %v13006_v42  ;;  %3935 = vmatprep.subr.bf16.mxu1 %v13008_v46  ;;  %v13064_v42 = vcombine.high %v368_v33, %v372_v35  ;;  %v13070_v46 = vcombine.high %v375_v39, %v379_v40  ;;  %v13069_v52 = vcombine.low %v375_v39, %v379_v40  ;;  %v424_v33 = vld [vmem:[#allocation5 + $0x888] sm:$0xff]  ;;  %v435_v39 = vld [vmem:[#allocation5 + $0x8e0] sm:$0xff] }
  0xf4   :  { %v13071_v54 = vcombine.low %v376_v41, %v380_v43  ;;  %v432_v40 = vld [vmem:[#allocation5 + $0x8c8] sm:$0xff] }
  0xf6   :  { %3731 = vmatpush1.bf16.msra.mxu0 %v13005_v48  ;;  %3936 = vmatpush1.bf16.msra.mxu1 %v13007_v49  ;;  %v387_v48 = vld [vmem:[#allocation5 + $0x760] sm:$0xff]  ;;  %v384_v49 = vld [vmem:[#allocation5 + $0x748] sm:$0xff] }
  0xf7   :  { %3732 = vmatprep.subr.bf16.mxu0 %v13014_v50  ;;  %3937 = vmatprep.subr.bf16.mxu1 %v13016_v55  ;;  %v13072_v50 = vcombine.high %v376_v41, %v380_v43  ;;  %v13078_v55 = vcombine.high %v383_v47, %v387_v48  ;;  %v13077_v62 = vcombine.low %v383_v47, %v387_v48  ;;  %v436_v41 = vld [vmem:[#allocation5 + $0x8e8] sm:$0xff]  ;;  %v443_v47 = vld [vmem:[#allocation5 + $0x920] sm:$0xff] }
  0xf8   :  { %v13079_v63 = vcombine.low %v384_v49, %v388_v51  ;;  %v440_v48 = vld [vmem:[#allocation5 + $0x908] sm:$0xff] }
  0xfa   :  { %3733 = vmatpush1.bf16.msra.mxu0 %v13013_v58  ;;  %3938 = vmatpush1.bf16.msra.mxu1 %v13015_v59  ;;  %v395_v58 = vld [vmem:[#allocation5 + $0x7a0] sm:$0xff]  ;;  %v392_v59 = vld [vmem:[#allocation5 + $0x788] sm:$0xff] }
  0xfb   :  { %3734 = vmatprep.subr.bf16.mxu0 %v13022_v60  ;;  %3939 = vmatprep.subr.bf16.mxu1 %v13024_v0  ;;  %v13080_v60 = vcombine.high %v384_v49, %v388_v51  ;;  %v13086_v0 = vcombine.high %v391_v56, %v395_v58  ;;  %v13085_v6 = vcombine.low %v391_v56, %v395_v58  ;;  %v444_v49 = vld [vmem:[#allocation5 + $0x928] sm:$0xff]  ;;  %v451_v56 = vld [vmem:[#allocation5 + $0x960] sm:$0xff] }
  0xfc   :  { %v13087_v7 = vcombine.low %v392_v59, %v396_v61  ;;  %v13127_v51 = vcombine.low %v432_v40, %v436_v41  ;;  %v448_v58 = vld [vmem:[#allocation5 + $0x948] sm:$0xff] }
  0xfe   :  { %3735 = vmatpush1.bf16.msra.mxu0 %v13021_v2  ;;  %3940 = vmatpush1.bf16.msra.mxu1 %v13023_v3  ;;  %v403_v2 = vld [vmem:[#allocation5 + $0x7e0] sm:$0xff]  ;;  %v400_v3 = vld [vmem:[#allocation5 + $0x7c8] sm:$0xff] }
  0xff   :  { %3736 = vmatprep.subr.bf16.mxu0 %v13030_v4  ;;  %3941 = vmatprep.subr.bf16.mxu1 %v13032_v8  ;;  %v13088_v4 = vcombine.high %v392_v59, %v396_v61  ;;  %v13094_v8 = vcombine.high %v399_v1, %v403_v2  ;;  %v13093_v16 = vcombine.low %v399_v1, %v403_v2  ;;  %v452_v59 = vld [vmem:[#allocation5 + $0x968] sm:$0xff]  ;;  %v459_v1 = vld [vmem:[#allocation5 + $0x9a0] sm:$0xff] }
 0x100   :  { %v13135_v61 = vcombine.low %v440_v48, %v444_v49  ;;  %v456_v2 = vld [vmem:[#allocation5 + $0x988] sm:$0xff] }
 0x102   :  { %3737 = vmatpush1.bf16.msra.mxu0 %v13029_v10  ;;  %3942 = vmatpush1.bf16.msra.mxu1 %v13031_v11  ;;  %v411_v10 = vld [vmem:[#allocation5 + $0x820] sm:$0xff]  ;;  %v408_v11 = vld [vmem:[#allocation5 + $0x808] sm:$0xff] }
 0x103   :  { %3738 = vmatprep.subr.bf16.mxu0 %v13038_v13  ;;  %3943 = vmatprep.subr.bf16.mxu1 %v13040_v18  ;;  %v13096_v13 = vcombine.high %v400_v3, %v404_v5  ;;  %v13095_v18 = vcombine.low %v400_v3, %v404_v5  ;;  %v13102_v19 = vcombine.high %v407_v9, %v411_v10  ;;  %v460_v3 = vld [vmem:[#allocation5 + $0x9a8] sm:$0xff] }
 0x104   :  { %v13104_v23 = vcombine.high %v408_v11, %v412_v14  ;;  %v13103_v27 = vcombine.low %v408_v11, %v412_v14  ;;  %v13143_v5 = vcombine.low %v448_v58, %v452_v59  ;;  %v468_v11 = vld [vmem:[#allocation5 + $0x9e8] sm:$0xff]  ;;  %v13151_v14 = vcombine.low %v456_v2, %v460_v3 }
 0x106   :  { %3739 = vmatpush1.bf16.msra.mxu0 %v13037_v20  ;;  %3944 = vmatpush1.bf16.msra.mxu1 %v13039_v21  ;;  %v419_v20 = vld [vmem:[#allocation5 + $0x860] sm:$0xff]  ;;  %v416_v21 = vld [vmem:[#allocation5 + $0x848] sm:$0xff] }
 0x107   :  { %3740 = vmatprep.subr.bf16.mxu0 %v13046_v22  ;;  %3945 = vmatprep.subr.bf16.mxu1 %v13048_v26  ;;  %v420_v22 = vld [vmem:[#allocation5 + $0x868] sm:$0xff]  ;;  %v13101_v26 = vcombine.low %v407_v9, %v411_v10  ;;  %v13109_v15 = vcombine.low %v415_v17, %v419_v20  ;;  %v467_v9 = vld [vmem:[#allocation5 + $0x9e0] sm:$0xff] }
 0x108   :  { %v13111_v35 = vcombine.low %v416_v21, %v420_v22  ;;  %v464_v10 = vld [vmem:[#allocation5 + $0x9c8] sm:$0xff] }
 0x10a   :  { %3741 = vmatpush1.bf16.msra.mxu0 %v13045_v28  ;;  %3946 = vmatpush1.bf16.msra.mxu1 %v13047_v29  ;;  %v13110_v28 = vcombine.high %v415_v17, %v419_v20  ;;  %v13112_v29 = vcombine.high %v416_v21, %v420_v22  ;;  %v13160_v17 = vcombine.high %v464_v10, %v468_v11  ;;  %v472_v20 = vld [vmem:[#allocation5 + $0xa08] sm:$0xff] }
 0x10b   :  { %3742 = vmatprep.subr.bf16.mxu0 %v13054_v30  ;;  %3947 = vmatprep.subr.bf16.mxu1 %v13056_v34  ;;  %v423_v30 = vld [vmem:[#allocation5 + $0x880] sm:$0xff]  ;;  %v428_v34 = vld [vmem:[#allocation5 + $0x8a8] sm:$0xff] }
 0x10c   :  { %v13119_v43 = vcombine.low %v424_v33, %v428_v34  ;;  %v476_v21 = vld [vmem:[#allocation5 + $0xa28] sm:$0xff] }
 0x10e   :  { %3743 = vmatpush1.bf16.msra.mxu0 %v13053_v36  ;;  %3948 = vmatpush1.bf16.msra.mxu1 %v13055_v37  ;;  %v13118_v36 = vcombine.high %v423_v30, %v427_v31  ;;  %v13120_v37 = vcombine.high %v424_v33, %v428_v34  ;;  %v13167_v34 = vcombine.low %v472_v20, %v476_v21 }
 0x10f   :  { %3744 = vmatprep.subr.bf16.mxu0 %v13062_v38  ;;  %3949 = vmatprep.subr.bf16.mxu1 %v13064_v42  ;;  %v431_v38 = vld [vmem:[#allocation5 + $0x8c0] sm:$0xff]  ;;  %v13117_v42 = vcombine.low %v423_v30, %v427_v31  ;;  %v480_v30 = vld [vmem:[#allocation5 + $0xa48] sm:$0xff] }
 0x110   :  { %v484_v31 = vld [vmem:[#allocation5 + $0xa68] sm:$0xff] }
 0x112   :  { %3745 = vmatpush1.bf16.msra.mxu0 %v13061_v44  ;;  %3950 = vmatpush1.bf16.msra.mxu1 %v13063_v45  ;;  %v13126_v44 = vcombine.high %v431_v38, %v435_v39  ;;  %v13128_v45 = vcombine.high %v432_v40, %v436_v41  ;;  %v13175_v41 = vcombine.low %v480_v30, %v484_v31 }
 0x113   :  { %3746 = vmatprep.subr.bf16.mxu0 %v13070_v46  ;;  %3951 = vmatprep.subr.bf16.mxu1 %v13072_v50  ;;  %v439_v46 = vld [vmem:[#allocation5 + $0x900] sm:$0xff]  ;;  %v13125_v50 = vcombine.low %v431_v38, %v435_v39  ;;  %v488_v38 = vld [vmem:[#allocation5 + $0xa88] sm:$0xff] }
 0x114   :  { %v492_v39 = vld [vmem:[#allocation5 + $0xaa8] sm:$0xff] }
 0x116   :  { %3747 = vmatpush1.bf16.msra.mxu0 %v13069_v52  ;;  %3952 = vmatpush1.bf16.msra.mxu1 %v13071_v54  ;;  %v13134_v52 = vcombine.high %v439_v46, %v443_v47  ;;  %v13136_v54 = vcombine.high %v440_v48, %v444_v49  ;;  %v13183_v49 = vcombine.low %v488_v38, %v492_v39 }
 0x117   :  { %3748 = vmatprep.subr.bf16.mxu0 %v13078_v55  ;;  %3953 = vmatprep.subr.bf16.mxu1 %v13080_v60  ;;  %v447_v55 = vld [vmem:[#allocation5 + $0x940] sm:$0xff]  ;;  %v13133_v60 = vcombine.low %v439_v46, %v443_v47  ;;  %v496_v46 = vld [vmem:[#allocation5 + $0xac8] sm:$0xff] }
 0x118   :  { %v500_v47 = vld [vmem:[#allocation5 + $0xae8] sm:$0xff] }
 0x11a   :  { %3749 = vmatpush1.bf16.msra.mxu0 %v13077_v62  ;;  %3954 = vmatpush1.bf16.msra.mxu1 %v13079_v63  ;;  %v13142_v62 = vcombine.high %v447_v55, %v451_v56  ;;  %v13144_v63 = vcombine.high %v448_v58, %v452_v59  ;;  %v13191_v59 = vcombine.low %v496_v46, %v500_v47 }
 0x11b   :  { %3750 = vmatprep.subr.bf16.mxu0 %v13086_v0  ;;  %3955 = vmatprep.subr.bf16.mxu1 %v13088_v4  ;;  %v455_v0 = vld [vmem:[#allocation5 + $0x980] sm:$0xff]  ;;  %v13141_v4 = vcombine.low %v447_v55, %v451_v56  ;;  %v504_v55 = vld [vmem:[#allocation5 + $0xb08] sm:$0xff] }
 0x11c   :  { %v508_v56 = vld [vmem:[#allocation5 + $0xb28] sm:$0xff] }
 0x11e   :  { %3751 = vmatpush1.bf16.msra.mxu0 %v13085_v6  ;;  %3956 = vmatpush1.bf16.msra.mxu1 %v13087_v7  ;;  %v13150_v6 = vcombine.high %v455_v0, %v459_v1  ;;  %v13152_v7 = vcombine.high %v456_v2, %v460_v3  ;;  %v13199_v3 = vcombine.low %v504_v55, %v508_v56 }
 0x11f   :  { %3752 = vmatprep.subr.bf16.mxu0 %v13094_v8  ;;  %3957 = vmatprep.subr.bf16.mxu1 %v13096_v13  ;;  %v463_v8 = vld [vmem:[#allocation5 + $0x9c0] sm:$0xff]  ;;  %v13149_v13 = vcombine.low %v455_v0, %v459_v1  ;;  %v512_v0 = vld [vmem:[#allocation5 + $0xb48] sm:$0xff] }
 0x120   :  { %v13157_v22 = vcombine.low %v463_v8, %v467_v9  ;;  %v516_v1 = vld [vmem:[#allocation5 + $0xb68] sm:$0xff] }
 0x122   :  { %3753 = vmatpush1.bf16.msra.mxu0 %v13093_v16  ;;  %3958 = vmatpush1.bf16.msra.mxu1 %v13095_v18  ;;  %v13158_v16 = vcombine.high %v463_v8, %v467_v9  ;;  %v471_v18 = vld [vmem:[#allocation5 + $0xa00] sm:$0xff]  ;;  %v520_v8 = vld [vmem:[#allocation5 + $0xb88] sm:$0xff] }
 0x123   :  { %3763 = vmatprep.subr.bf16.mxu0 %v13102_v19  ;;  %3968 = vmatprep.subr.bf16.mxu1 %v13104_v23  ;;  %v475_v19 = vld [vmem:[#allocation5 + $0xa20] sm:$0xff]  ;;  %v13159_v23 = vcombine.low %v464_v10, %v468_v11  ;;  %v524_v9 = vld [vmem:[#allocation5 + $0xba8] sm:$0xff]  ;;  %v13207_v11 = vcombine.low %v512_v0, %v516_v1 }
 0x124   :  { %v13165_v33 = vcombine.low %v471_v18, %v475_v19 }
 0x125   :  { %3755 = vmatmul.mubr.bf16.vlgmr.msra.gmra.mrb[0].mxu0 %v15313_v25  ;;  %3960 = vmatmul.mubr.bf16.vlgmr.msra.gmra.mrb[0].mxu1 %v15313_v25 }
 0x126   :  { %3764 = vmatpush1.bf16.msra.mxu0 %v13101_v26  ;;  %3969 = vmatpush1.bf16.msra.mxu1 %v13103_v27  ;;  %v13166_v26 = vcombine.high %v471_v18, %v475_v19  ;;  %v13168_v27 = vcombine.high %v472_v20, %v476_v21  ;;  %v528_v18 = vld [vmem:[#allocation5 + $0xbc8] sm:$0xff]  ;;  %v13215_v21 = vcombine.low %v520_v8, %v524_v9 }
 0x127   :  { %3765 = vmatprep.subr.bf16.mxu0 %v13110_v28  ;;  %3970 = vmatprep.subr.bf16.mxu1 %v13112_v29  ;;  %v479_v28 = vld [vmem:[#allocation5 + $0xa40] sm:$0xff]  ;;  %v532_v19 = vld [vmem:[#allocation5 + $0xbe8] sm:$0xff] }
 0x128   :  { %3795 = vmatprep.mubr.bf16.mxu0 %v15317_v32  ;;  %4000 = vmatprep.mubr.bf16.mxu1 %v15317_v32  ;;  %v483_v29 = vld [vmem:[#allocation5 + $0xa60] sm:$0xff] }
 0x129   :  { %v13173_v40 = vcombine.low %v479_v28, %v483_v29 }
 0x12a   :  { %3766 = vmatpush1.bf16.msra.mxu0 %v13109_v15  ;;  %3971 = vmatpush1.bf16.msra.mxu1 %v13111_v35  ;;  %v13174_v15 = vcombine.high %v479_v28, %v483_v29  ;;  %v13176_v35 = vcombine.high %v480_v30, %v484_v31  ;;  %v536_v28 = vld [vmem:[#allocation5 + $0xc08] sm:$0xff]  ;;  %v13223_v31 = vcombine.low %v528_v18, %v532_v19 }
 0x12b   :  { %3767 = vmatprep.subr.bf16.mxu0 %v13118_v36  ;;  %3972 = vmatprep.subr.bf16.mxu1 %v13120_v37  ;;  %v487_v36 = vld [vmem:[#allocation5 + $0xa80] sm:$0xff]  ;;  %v540_v29 = vld [vmem:[#allocation5 + $0xc28] sm:$0xff] }
 0x12c   :  { %v491_v37 = vld [vmem:[#allocation5 + $0xaa0] sm:$0xff] }
 0x12d   :  { %v13181_v48 = vcombine.low %v487_v36, %v491_v37 }
 0x12e   :  { %3768 = vmatpush1.bf16.msra.mxu0 %v13117_v42  ;;  %3973 = vmatpush1.bf16.msra.mxu1 %v13119_v43  ;;  %v13182_v42 = vcombine.high %v487_v36, %v491_v37  ;;  %v13184_v43 = vcombine.high %v488_v38, %v492_v39  ;;  %v15325_v36 = vcombine.low %v15309_v24, %v15309_v24  ;;  %v544_v37 = vld [vmem:[#allocation5 + $0xc48] sm:$0xff]  ;;  %v15327_v39 = vld [vmem:[#allocation2 + $0x18] sm:$0xff] }
 0x12f   :  { %3769 = vmatprep.subr.bf16.mxu0 %v13126_v44  ;;  %3974 = vmatprep.subr.bf16.mxu1 %v13128_v45  ;;  %v495_v44 = vld [vmem:[#allocation5 + $0xac0] sm:$0xff]  ;;  %v548_v38 = vld [vmem:[#allocation5 + $0xc68] sm:$0xff] }
 0x130   :  { %v499_v45 = vld [vmem:[#allocation5 + $0xae0] sm:$0xff]  ;;  %v552_v24 = vld [vmem:[#allocation5 + $0xc88] sm:$0xff] }
 0x131   :  { %v13189_v58 = vcombine.low %v495_v44, %v499_v45 }
 0x132   :  { %3770 = vmatpush1.bf16.msra.mxu0 %v13125_v50  ;;  %3975 = vmatpush1.bf16.msra.mxu1 %v13127_v51  ;;  %v13190_v50 = vcombine.high %v495_v44, %v499_v45  ;;  %v13192_v51 = vcombine.high %v496_v46, %v500_v47  ;;  %v551_v44 = vld [vmem:[#allocation5 + $0xc80] sm:$0xff]  ;;  %v15331_v46 = vcombine.high %v15327_v39, %v15327_v39  ;;  %v556_v47 = vld [vmem:[#allocation5 + $0xca8] sm:$0xff] }
 0x133   :  { %3771 = vmatprep.subr.bf16.mxu0 %v13134_v52  ;;  %3976 = vmatprep.subr.bf16.mxu1 %v13136_v54  ;;  %v503_v52 = vld [vmem:[#allocation5 + $0xb00] sm:$0xff] }
 0x134   :  { %v507_v54 = vld [vmem:[#allocation5 + $0xb20] sm:$0xff] }
 0x135   :  { %v13197_v2 = vcombine.low %v503_v52, %v507_v54  ;;  %v555_v45 = vld [vmem:[#allocation5 + $0xca0] sm:$0xff] }
 0x136   :  { %3772 = vmatpush1.bf16.msra.mxu0 %v13133_v60  ;;  %3977 = vmatpush1.bf16.msra.mxu1 %v13135_v61  ;;  %v13198_v60 = vcombine.high %v503_v52, %v507_v54  ;;  %v13200_v61 = vcombine.high %v504_v55, %v508_v56  ;;  %v559_v52 = vld [vmem:[#allocation5 + $0xcc0] sm:$0xff]  ;;  %v560_v55 = vld [vmem:[#allocation5 + $0xcc8] sm:$0xff] }
 0x137   :  { %3773 = vmatprep.subr.bf16.mxu0 %v13142_v62  ;;  %3978 = vmatprep.subr.bf16.mxu1 %v13144_v63  ;;  %v511_v62 = vld [vmem:[#allocation5 + $0xb40] sm:$0xff]  ;;  %v564_v56 = vld [vmem:[#allocation5 + $0xce8] sm:$0xff] }
 0x138   :  { %v515_v63 = vld [vmem:[#allocation5 + $0xb60] sm:$0xff] }
 0x139   :  { %v13205_v10 = vcombine.low %v511_v62, %v515_v63  ;;  %v563_v54 = vld [vmem:[#allocation5 + $0xce0] sm:$0xff] }
 0x13a   :  { %3774 = vmatpush1.bf16.msra.mxu0 %v13141_v4  ;;  %3979 = vmatpush1.bf16.msra.mxu1 %v13143_v5  ;;  %v13206_v4 = vcombine.high %v511_v62, %v515_v63  ;;  %v13208_v5 = vcombine.high %v512_v0, %v516_v1  ;;  %v567_v62 = vld [vmem:[#allocation5 + $0xd00] sm:$0xff]  ;;  %v568_v0 = vld [vmem:[#allocation5 + $0xd08] sm:$0xff] }
 0x13b   :  { %3775 = vmatprep.subr.bf16.mxu0 %v13150_v6  ;;  %3980 = vmatprep.subr.bf16.mxu1 %v13152_v7  ;;  %v519_v6 = vld [vmem:[#allocation5 + $0xb80] sm:$0xff]  ;;  %v572_v1 = vld [vmem:[#allocation5 + $0xd28] sm:$0xff] }
 0x13c   :  { %v523_v7 = vld [vmem:[#allocation5 + $0xba0] sm:$0xff] }
 0x13d   :  { %v13213_v20 = vcombine.low %v519_v6, %v523_v7  ;;  %v571_v63 = vld [vmem:[#allocation5 + $0xd20] sm:$0xff] }
 0x13e   :  { %3776 = vmatpush1.bf16.msra.mxu0 %v13149_v13  ;;  %3981 = vmatpush1.bf16.msra.mxu1 %v13151_v14  ;;  %v13214_v13 = vcombine.high %v519_v6, %v523_v7  ;;  %v13216_v14 = vcombine.high %v520_v8, %v524_v9  ;;  %v575_v6 = vld [vmem:[#allocation5 + $0xd40] sm:$0xff]  ;;  %v576_v8 = vld [vmem:[#allocation5 + $0xd48] sm:$0xff] }
 0x13f   :  { %3777 = vmatprep.subr.bf16.mxu0 %v13158_v16  ;;  %3982 = vmatprep.subr.bf16.mxu1 %v13160_v17  ;;  %v527_v16 = vld [vmem:[#allocation5 + $0xbc0] sm:$0xff]  ;;  %v580_v9 = vld [vmem:[#allocation5 + $0xd68] sm:$0xff] }
 0x140   :  { %v531_v17 = vld [vmem:[#allocation5 + $0xbe0] sm:$0xff] }
 0x141   :  { %v13221_v30 = vcombine.low %v527_v16, %v531_v17  ;;  %v579_v7 = vld [vmem:[#allocation5 + $0xd60] sm:$0xff] }
 0x142   :  { %3778 = vmatpush1.bf16.msra.mxu0 %v13157_v22  ;;  %3983 = vmatpush1.bf16.msra.mxu1 %v13159_v23  ;;  %v13222_v22 = vcombine.high %v527_v16, %v531_v17  ;;  %v13224_v23 = vcombine.high %v528_v18, %v532_v19  ;;  %v583_v16 = vld [vmem:[#allocation5 + $0xd80] sm:$0xff]  ;;  %v584_v18 = vld [vmem:[#allocation5 + $0xd88] sm:$0xff] }
 0x143   :  { %3779 = vmatprep.subr.bf16.mxu0 %v13166_v26  ;;  %3984 = vmatprep.subr.bf16.mxu1 %v13168_v27  ;;  %v535_v26 = vld [vmem:[#allocation5 + $0xc00] sm:$0xff]  ;;  %v588_v19 = vld [vmem:[#allocation5 + $0xda8] sm:$0xff] }
 0x144   :  { %v539_v27 = vld [vmem:[#allocation5 + $0xc20] sm:$0xff] }
 0x145   :  { %v587_v17 = vld [vmem:[#allocation5 + $0xda0] sm:$0xff] }
 0x146   :  { %3780 = vmatpush1.bf16.msra.mxu0 %v13165_v33  ;;  %3985 = vmatpush1.bf16.msra.mxu1 %v13167_v34  ;;  %v13230_v33 = vcombine.high %v535_v26, %v539_v27  ;;  %v13232_v34 = vcombine.high %v536_v28, %v540_v29 }
 0x147   :  { %3781 = vmatprep.subr.bf16.mxu0 %v13174_v15  ;;  %3986 = vmatprep.subr.bf16.mxu1 %v13176_v35  ;;  %v543_v15 = vld [vmem:[#allocation5 + $0xc40] sm:$0xff] }
 0x148   :  { %v547_v35 = vld [vmem:[#allocation5 + $0xc60] sm:$0xff] }
 0x14a   :  { %3782 = vmatpush1.bf16.msra.mxu0 %v13173_v40  ;;  %3987 = vmatpush1.bf16.msra.mxu1 %v13175_v41  ;;  %v13229_v40 = vcombine.low %v535_v26, %v539_v27  ;;  %v13231_v41 = vcombine.low %v536_v28, %v540_v29  ;;  %v591_v26 = vld [vmem:[#allocation5 + $0xdc0] sm:$0xff]  ;;  %v592_v28 = vld [vmem:[#allocation5 + $0xdc8] sm:$0xff] }
 0x14b   :  { %3783 = vmatprep.subr.bf16.mxu0 %v13182_v42  ;;  %3988 = vmatprep.subr.bf16.mxu1 %v13184_v43  ;;  %v13238_v42 = vcombine.high %v543_v15, %v547_v35  ;;  %v13240_v43 = vcombine.high %v544_v37, %v548_v38  ;;  %v595_v27 = vld [vmem:[#allocation5 + $0xde0] sm:$0xff]  ;;  %v596_v29 = vld [vmem:[#allocation5 + $0xde8] sm:$0xff] }
 0x14e   :  { %3784 = vmatpush1.bf16.msra.mxu0 %v13181_v48  ;;  %3989 = vmatpush1.bf16.msra.mxu1 %v13183_v49  ;;  %v13237_v48 = vcombine.low %v543_v15, %v547_v35  ;;  %v13239_v49 = vcombine.low %v544_v37, %v548_v38  ;;  %v599_v15 = vld [vmem:[#allocation5 + $0xe00] sm:$0xff]  ;;  %v600_v37 = vld [vmem:[#allocation5 + $0xe08] sm:$0xff] }
 0x14f   :  { %3785 = vmatprep.subr.bf16.mxu0 %v13190_v50  ;;  %3990 = vmatprep.subr.bf16.mxu1 %v13192_v51  ;;  %v13246_v50 = vcombine.high %v551_v44, %v555_v45  ;;  %v13248_v51 = vcombine.high %v552_v24, %v556_v47  ;;  %v603_v35 = vld [vmem:[#allocation5 + $0xe20] sm:$0xff]  ;;  %v604_v38 = vld [vmem:[#allocation5 + $0xe28] sm:$0xff] }
 0x152   :  { %3786 = vmatpush1.bf16.msra.mxu0 %v13189_v58  ;;  %3991 = vmatpush1.bf16.msra.mxu1 %v13191_v59  ;;  %v13245_v58 = vcombine.low %v551_v44, %v555_v45  ;;  %v13247_v59 = vcombine.low %v552_v24, %v556_v47  ;;  %v607_v44 = vld [vmem:[#allocation5 + $0xe40] sm:$0xff]  ;;  %v608_v24 = vld [vmem:[#allocation5 + $0xe48] sm:$0xff] }
 0x153   :  { %3787 = vmatprep.subr.bf16.mxu0 %v13198_v60  ;;  %3992 = vmatprep.subr.bf16.mxu1 %v13200_v61  ;;  %v13254_v60 = vcombine.high %v559_v52, %v563_v54  ;;  %v13256_v61 = vcombine.high %v560_v55, %v564_v56  ;;  %v611_v45 = vld [vmem:[#allocation5 + $0xe60] sm:$0xff]  ;;  %v612_v47 = vld [vmem:[#allocation5 + $0xe68] sm:$0xff] }
 0x156   :  { %3788 = vmatpush1.bf16.msra.mxu0 %v13197_v2  ;;  %3993 = vmatpush1.bf16.msra.mxu1 %v13199_v3  ;;  %v13253_v2 = vcombine.low %v559_v52, %v563_v54  ;;  %v13255_v3 = vcombine.low %v560_v55, %v564_v56  ;;  %v615_v52 = vld [vmem:[#allocation5 + $0xe80] sm:$0xff]  ;;  %v616_v55 = vld [vmem:[#allocation5 + $0xe88] sm:$0xff] }
 0x157   :  { %3789 = vmatprep.subr.bf16.mxu0 %v13206_v4  ;;  %3994 = vmatprep.subr.bf16.mxu1 %v13208_v5  ;;  %v13262_v4 = vcombine.high %v567_v62, %v571_v63  ;;  %v13264_v5 = vcombine.high %v568_v0, %v572_v1  ;;  %v619_v54 = vld [vmem:[#allocation5 + $0xea0] sm:$0xff]  ;;  %v620_v56 = vld [vmem:[#allocation5 + $0xea8] sm:$0xff] }
 0x15a   :  { %3790 = vmatpush1.bf16.msra.mxu0 %v13205_v10  ;;  %3995 = vmatpush1.bf16.msra.mxu1 %v13207_v11  ;;  %v13261_v10 = vcombine.low %v567_v62, %v571_v63  ;;  %v13263_v11 = vcombine.low %v568_v0, %v572_v1  ;;  %v623_v62 = vld [vmem:[#allocation5 + $0xec0] sm:$0xff]  ;;  %v624_v0 = vld [vmem:[#allocation5 + $0xec8] sm:$0xff] }
 0x15b   :  { %3791 = vmatprep.subr.bf16.mxu0 %v13214_v13  ;;  %3996 = vmatprep.subr.bf16.mxu1 %v13216_v14  ;;  %v13270_v13 = vcombine.high %v575_v6, %v579_v7  ;;  %v13272_v14 = vcombine.high %v576_v8, %v580_v9  ;;  %v627_v63 = vld [vmem:[#allocation5 + $0xee0] sm:$0xff]  ;;  %v628_v1 = vld [vmem:[#allocation5 + $0xee8] sm:$0xff] }
 0x15e   :  { %3792 = vmatpush1.bf16.msra.mxu0 %v13213_v20  ;;  %3997 = vmatpush1.bf16.msra.mxu1 %v13215_v21  ;;  %v13269_v20 = vcombine.low %v575_v6, %v579_v7  ;;  %v13271_v21 = vcombine.low %v576_v8, %v580_v9  ;;  %v631_v6 = vld [vmem:[#allocation5 + $0xf00] sm:$0xff]  ;;  %v632_v8 = vld [vmem:[#allocation5 + $0xf08] sm:$0xff] }
 0x15f   :  { %3793 = vmatprep.subr.bf16.mxu0 %v13222_v22  ;;  %3998 = vmatprep.subr.bf16.mxu1 %v13224_v23  ;;  %v13278_v22 = vcombine.high %v583_v16, %v587_v17  ;;  %v13280_v23 = vcombine.high %v584_v18, %v588_v19  ;;  %v635_v7 = vld [vmem:[#allocation5 + $0xf20] sm:$0xff]  ;;  %v636_v9 = vld [vmem:[#allocation5 + $0xf28] sm:$0xff] }
 0x162   :  { %3794 = vmatpush1.bf16.msra.mxu0 %v13221_v30  ;;  %3999 = vmatpush1.bf16.msra.mxu1 %v13223_v31  ;;  %v13277_v30 = vcombine.low %v583_v16, %v587_v17  ;;  %v13279_v31 = vcombine.low %v584_v18, %v588_v19  ;;  %v639_v16 = vld [vmem:[#allocation5 + $0xf40] sm:$0xff]  ;;  %v640_v18 = vld [vmem:[#allocation5 + $0xf48] sm:$0xff] }
 0x163   :  { %3804 = vmatprep.subr.bf16.mxu0 %v13230_v33  ;;  %4009 = vmatprep.subr.bf16.mxu1 %v13232_v34  ;;  %v13286_v33 = vcombine.high %v591_v26, %v595_v27  ;;  %v13288_v34 = vcombine.high %v592_v28, %v596_v29  ;;  %v643_v17 = vld [vmem:[#allocation5 + $0xf60] sm:$0xff]  ;;  %v644_v19 = vld [vmem:[#allocation5 + $0xf68] sm:$0xff] }
 0x165   :  { %3796 = vmatmul.mubr.bf16.vlgmr.msra.gmra.mrb[0].mxu0 %v15325_v36  ;;  %4001 = vmatmul.mubr.bf16.vlgmr.msra.gmra.mrb[0].mxu1 %v15325_v36 }
 0x166   :  { %3805 = vmatpush1.bf16.msra.mxu0 %v13229_v40  ;;  %4010 = vmatpush1.bf16.msra.mxu1 %v13231_v41  ;;  %v13285_v40 = vcombine.low %v591_v26, %v595_v27  ;;  %v13287_v41 = vcombine.low %v592_v28, %v596_v29  ;;  %v647_v26 = vld [vmem:[#allocation5 + $0xf80] sm:$0xff]  ;;  %v648_v28 = vld [vmem:[#allocation5 + $0xf88] sm:$0xff] }
 0x167   :  { %3806 = vmatprep.subr.bf16.mxu0 %v13238_v42  ;;  %4011 = vmatprep.subr.bf16.mxu1 %v13240_v43  ;;  %v13294_v42 = vcombine.high %v599_v15, %v603_v35  ;;  %v13296_v43 = vcombine.high %v600_v37, %v604_v38  ;;  %v651_v27 = vld [vmem:[#allocation5 + $0xfa0] sm:$0xff]  ;;  %v652_v29 = vld [vmem:[#allocation5 + $0xfa8] sm:$0xff] }
 0x168   :  { %3836 = vmatprep.mubr.bf16.mxu0 %v15331_v46  ;;  %4041 = vmatprep.mubr.bf16.mxu1 %v15331_v46 }
 0x16a   :  { %3807 = vmatpush1.bf16.msra.mxu0 %v13237_v48  ;;  %4012 = vmatpush1.bf16.msra.mxu1 %v13239_v49  ;;  %v13293_v48 = vcombine.low %v599_v15, %v603_v35  ;;  %v13295_v49 = vcombine.low %v600_v37, %v604_v38  ;;  %v655_v15 = vld [vmem:[#allocation5 + $0xfc0] sm:$0xff]  ;;  %v656_v37 = vld [vmem:[#allocation5 + $0xfc8] sm:$0xff] }
 0x16b   :  { %3808 = vmatprep.subr.bf16.mxu0 %v13246_v50  ;;  %4013 = vmatprep.subr.bf16.mxu1 %v13248_v51  ;;  %v13302_v50 = vcombine.high %v607_v44, %v611_v45  ;;  %v13304_v51 = vcombine.high %v608_v24, %v612_v47  ;;  %v659_v35 = vld [vmem:[#allocation5 + $0xfe0] sm:$0xff]  ;;  %v660_v38 = vld [vmem:[#allocation5 + $0xfe8] sm:$0xff] }
 0x16e   :  { %3809 = vmatpush1.bf16.msra.mxu0 %v13245_v58  ;;  %4014 = vmatpush1.bf16.msra.mxu1 %v13247_v59  ;;  %v13301_v58 = vcombine.low %v607_v44, %v611_v45  ;;  %v13303_v59 = vcombine.low %v608_v24, %v612_v47  ;;  %v663_v44 = vld [vmem:[#allocation5 + $0x1000] sm:$0xff]  ;;  %v664_v24 = vld [vmem:[#allocation5 + $0x1008] sm:$0xff] }
 0x16f   :  { %3810 = vmatprep.subr.bf16.mxu0 %v13254_v60  ;;  %4015 = vmatprep.subr.bf16.mxu1 %v13256_v61  ;;  %v13310_v60 = vcombine.high %v615_v52, %v619_v54  ;;  %v13312_v61 = vcombine.high %v616_v55, %v620_v56  ;;  %v667_v45 = vld [vmem:[#allocation5 + $0x1020] sm:$0xff]  ;;  %v668_v47 = vld [vmem:[#allocation5 + $0x1028] sm:$0xff] }
 0x172   :  { %3811 = vmatpush1.bf16.msra.mxu0 %v13253_v2  ;;  %4016 = vmatpush1.bf16.msra.mxu1 %v13255_v3  ;;  %v13309_v2 = vcombine.low %v615_v52, %v619_v54  ;;  %v13311_v3 = vcombine.low %v616_v55, %v620_v56  ;;  %v671_v52 = vld [vmem:[#allocation5 + $0x1040] sm:$0xff]  ;;  %v15339_v55 = vcombine.low %v15327_v39, %v15327_v39  ;;  %v672_v56 = vld [vmem:[#allocation5 + $0x1048] sm:$0xff] }
 0x173   :  { %3812 = vmatprep.subr.bf16.mxu0 %v13262_v4  ;;  %4017 = vmatprep.subr.bf16.mxu1 %v13264_v5  ;;  %v13318_v4 = vcombine.high %v623_v62, %v627_v63  ;;  %v13320_v5 = vcombine.high %v624_v0, %v628_v1  ;;  %v675_v54 = vld [vmem:[#allocation5 + $0x1060] sm:$0xff] }
 0x174   :  { %v13365_v39 = vcombine.low %v671_v52, %v675_v54 }
 0x176   :  { %3813 = vmatpush1.bf16.msra.mxu0 %v13261_v10  ;;  %4018 = vmatpush1.bf16.msra.mxu1 %v13263_v11  ;;  %v13317_v10 = vcombine.low %v623_v62, %v627_v63  ;;  %v13319_v11 = vcombine.low %v624_v0, %v628_v1  ;;  %v679_v63 = vld [vmem:[#allocation5 + $0x1080] sm:$0xff]  ;;  %v680_v1 = vld [vmem:[#allocation5 + $0x1088] sm:$0xff] }
 0x177   :  { %3814 = vmatprep.subr.bf16.mxu0 %v13270_v13  ;;  %4019 = vmatprep.subr.bf16.mxu1 %v13272_v14  ;;  %v13326_v13 = vcombine.high %v631_v6, %v635_v7  ;;  %v13328_v14 = vcombine.high %v632_v8, %v636_v9  ;;  %v683_v0 = vld [vmem:[#allocation5 + $0x10a0] sm:$0xff] }
 0x17a   :  { %3815 = vmatpush1.bf16.msra.mxu0 %v13269_v20  ;;  %4020 = vmatpush1.bf16.msra.mxu1 %v13271_v21  ;;  %v13325_v20 = vcombine.low %v631_v6, %v635_v7  ;;  %v13327_v21 = vcombine.low %v632_v8, %v636_v9  ;;  %v687_v6 = vld [vmem:[#allocation5 + $0x10c0] sm:$0xff]  ;;  %v15118_v8 = vmov 0   ;;  %v688_v9 = vld [vmem:[#allocation5 + $0x10c8] sm:$0xff] }
 0x17b   :  { %3816 = vmatprep.subr.bf16.mxu0 %v13278_v22  ;;  %4021 = vmatprep.subr.bf16.mxu1 %v13280_v23  ;;  %v13334_v22 = vcombine.high %v639_v16, %v643_v17  ;;  %v13336_v23 = vcombine.high %v640_v18, %v644_v19  ;;  %v691_v7 = vld [vmem:[#allocation5 + $0x10e0] sm:$0xff] }
 0x17e   :  { %3817 = vmatpush1.bf16.msra.mxu0 %v13277_v30  ;;  %4022 = vmatpush1.bf16.msra.mxu1 %v13279_v31  ;;  %v13333_v30 = vcombine.low %v639_v16, %v643_v17  ;;  %v13335_v31 = vcombine.low %v640_v18, %v644_v19  ;;  %v695_v17 = vld [vmem:[#allocation5 + $0x1100] sm:$0xff]  ;;  %v696_v19 = vld [vmem:[#allocation5 + $0x1108] sm:$0xff] }
 0x17f   :  { %3818 = vmatprep.subr.bf16.mxu0 %v13286_v33  ;;  %4023 = vmatprep.subr.bf16.mxu1 %v13288_v34  ;;  %v13342_v33 = vcombine.high %v647_v26, %v651_v27  ;;  %v13344_v34 = vcombine.high %v648_v28, %v652_v29  ;;  %v699_v18 = vld [vmem:[#allocation5 + $0x1120] sm:$0xff] }
 0x182   :  { %3819 = vmatpush1.bf16.msra.mxu0 %v13285_v40  ;;  %4024 = vmatpush1.bf16.msra.mxu1 %v13287_v41  ;;  %v13341_v40 = vcombine.low %v647_v26, %v651_v27  ;;  %v13343_v41 = vcombine.low %v648_v28, %v652_v29  ;;  %v703_v27 = vld [vmem:[#allocation5 + $0x1140] sm:$0xff]  ;;  %v704_v29 = vld [vmem:[#allocation5 + $0x1148] sm:$0xff] }
 0x183   :  { %3820 = vmatprep.subr.bf16.mxu0 %v13294_v42  ;;  %4025 = vmatprep.subr.bf16.mxu1 %v13296_v43  ;;  %v13350_v42 = vcombine.high %v655_v15, %v659_v35  ;;  %v13352_v43 = vcombine.high %v656_v37, %v660_v38  ;;  %v707_v28 = vld [vmem:[#allocation5 + $0x1160] sm:$0xff] }
 0x186   :  { %3821 = vmatpush1.bf16.msra.mxu0 %v13293_v48  ;;  %4026 = vmatpush1.bf16.msra.mxu1 %v13295_v49  ;;  %v13349_v48 = vcombine.low %v655_v15, %v659_v35  ;;  %v13351_v49 = vcombine.low %v656_v37, %v660_v38  ;;  %v711_v35 = vld [vmem:[#allocation5 + $0x1180] sm:$0xff]  ;;  %v712_v38 = vld [vmem:[#allocation5 + $0x1188] sm:$0xff] }
 0x187   :  { %3822 = vmatprep.subr.bf16.mxu0 %v13302_v50  ;;  %4027 = vmatprep.subr.bf16.mxu1 %v13304_v51  ;;  %v13358_v50 = vcombine.high %v663_v44, %v667_v45  ;;  %v13360_v51 = vcombine.high %v664_v24, %v668_v47  ;;  %v715_v37 = vld [vmem:[#allocation5 + $0x11a0] sm:$0xff] }
 0x18a   :  { %3823 = vmatpush1.bf16.msra.mxu0 %v13301_v58  ;;  %4028 = vmatpush1.bf16.msra.mxu1 %v13303_v59  ;;  %v676_v58 = vld [vmem:[#allocation5 + $0x1068] sm:$0xff]  ;;  %v13357_v59 = vcombine.low %v663_v44, %v667_v45  ;;  %v719_v45 = vld [vmem:[#allocation5 + $0x11c0] sm:$0xff] }
 0x18b   :  { %3824 = vmatprep.subr.bf16.mxu0 %v13310_v60  ;;  %4029 = vmatprep.subr.bf16.mxu1 %v13312_v61  ;;  %v13359_v60 = vcombine.low %v664_v24, %v668_v47  ;;  %v13366_v61 = vcombine.high %v671_v52, %v675_v54  ;;  %v13368_v62 = vcombine.high %v672_v56, %v676_v58  ;;  %v723_v24 = vld [vmem:[#allocation5 + $0x11e0] sm:$0xff]  ;;  %v720_v47 = vld [vmem:[#allocation5 + $0x11c8] sm:$0xff]  ;;  %v153_v54 = vld [vmem:[#allocation5 + $0x10] sm:$0xff] }
 0x18e   :  { %3825 = vmatpush1.bf16.msra.mxu0 %v13309_v2  ;;  %4030 = vmatpush1.bf16.msra.mxu1 %v13311_v3  ;;  %v684_v2 = vld [vmem:[#allocation5 + $0x10a8] sm:$0xff]  ;;  %v13367_v3 = vcombine.low %v672_v56, %v676_v58  ;;  %v157_v56 = vld [vmem:[#allocation5 + $0x30] sm:$0xff]  ;;  %v154_v58 = vld [vmem:[#allocation5 + $0x18] sm:$0xff] }
 0x18f   :  { %3826 = vmatprep.subr.bf16.mxu0 %v13318_v4  ;;  %4031 = vmatprep.subr.bf16.mxu1 %v13320_v5  ;;  %v13374_v4 = vcombine.high %v679_v63, %v683_v0  ;;  %v13376_v5 = vcombine.high %v680_v1, %v684_v2 }
 0x192   :  { %3827 = vmatpush1.bf16.msra.mxu0 %v13317_v10  ;;  %4032 = vmatpush1.bf16.msra.mxu1 %v13319_v11  ;;  %v692_v10 = vld [vmem:[#allocation5 + $0x10e8] sm:$0xff]  ;;  %v13373_v11 = vcombine.low %v679_v63, %v683_v0  ;;  %v161_v0 = vld [vmem:[#allocation5 + $0x50] sm:$0xff] }
 0x193   :  { %3828 = vmatprep.subr.bf16.mxu0 %v13326_v13  ;;  %4033 = vmatprep.subr.bf16.mxu1 %v13328_v14  ;;  %v13375_v13 = vcombine.low %v680_v1, %v684_v2  ;;  %v13382_v14 = vcombine.high %v687_v6, %v691_v7  ;;  %v13384_v16 = vcombine.high %v688_v9, %v692_v10  ;;  %v165_v1 = vld [vmem:[#allocation5 + $0x70] sm:$0xff]  ;;  %v14805_v2 = vld [vmem:[#allocation2 + $0x20] ss:$0 sps:$4 sm:$0xff]  }
 0x196   :  { %3829 = vmatpush1.bf16.msra.mxu0 %v13325_v20  ;;  %4034 = vmatpush1.bf16.msra.mxu1 %v13327_v21  ;;  %v700_v20 = vld [vmem:[#allocation5 + $0x1128] sm:$0xff]  ;;  %v13381_v21 = vcombine.low %v687_v6, %v691_v7  ;;  %v12858_v6 = vcombine.high %v161_v0, %v165_v1 }
 0x197   :  { %3830 = vmatprep.subr.bf16.mxu0 %v13334_v22  ;;  %4035 = vmatprep.subr.bf16.mxu1 %v13336_v23  ;;  %v13383_v22 = vcombine.low %v688_v9, %v692_v10  ;;  %v13390_v23 = vcombine.high %v695_v17, %v699_v18  ;;  %v13392_v26 = vcombine.high %v696_v19, %v700_v20  ;;  %v169_v9 = vld [vmem:[#allocation5 + $0x90] sm:$0xff] }
 0x198   :  { %v173_v10 = vld [vmem:[#allocation5 + $0xb0] sm:$0xff] }
 0x19a   :  { %3831 = vmatpush1.bf16.msra.mxu0 %v13333_v30  ;;  %4036 = vmatpush1.bf16.msra.mxu1 %v13335_v31  ;;  %v708_v30 = vld [vmem:[#allocation5 + $0x1168] sm:$0xff]  ;;  %v13389_v31 = vcombine.low %v695_v17, %v699_v18  ;;  %v12866_v17 = vcombine.high %v169_v9, %v173_v10 }
 0x19b   :  { %3832 = vmatprep.subr.bf16.mxu0 %v13342_v33  ;;  %4037 = vmatprep.subr.bf16.mxu1 %v13344_v34  ;;  %v13391_v33 = vcombine.low %v696_v19, %v700_v20  ;;  %v13398_v34 = vcombine.high %v703_v27, %v707_v28  ;;  %v13400_v15 = vcombine.high %v704_v29, %v708_v30  ;;  %v177_v19 = vld [vmem:[#allocation5 + $0xd0] sm:$0xff] }
 0x19c   :  { %v181_v20 = vld [vmem:[#allocation5 + $0xf0] sm:$0xff] }
 0x19e   :  { %3833 = vmatpush1.bf16.msra.mxu0 %v13341_v40  ;;  %4038 = vmatpush1.bf16.msra.mxu1 %v13343_v41  ;;  %v716_v40 = vld [vmem:[#allocation5 + $0x11a8] sm:$0xff]  ;;  %v13397_v41 = vcombine.low %v703_v27, %v707_v28  ;;  %v12874_v27 = vcombine.high %v177_v19, %v181_v20 }
 0x19f   :  { %3834 = vmatprep.subr.bf16.mxu0 %v13350_v42  ;;  %4039 = vmatprep.subr.bf16.mxu1 %v13352_v43  ;;  %v13399_v42 = vcombine.low %v704_v29, %v708_v30  ;;  %v13406_v43 = vcombine.high %v711_v35, %v715_v37  ;;  %v13408_v44 = vcombine.high %v712_v38, %v716_v40  ;;  %v185_v29 = vld [vmem:[#allocation5 + $0x110] sm:$0xff] }
 0x1a0   :  { %v189_v30 = vld [vmem:[#allocation5 + $0x130] sm:$0xff] }
 0x1a2   :  { %3835 = vmatpush1.bf16.msra.mxu0 %v13349_v48  ;;  %4040 = vmatpush1.bf16.msra.mxu1 %v13351_v49  ;;  %v724_v48 = vld [vmem:[#allocation5 + $0x11e8] sm:$0xff]  ;;  %v13405_v49 = vcombine.low %v711_v35, %v715_v37  ;;  %v12882_v35 = vcombine.high %v185_v29, %v189_v30  ;;  %v193_v37 = vld [vmem:[#allocation5 + $0x150] sm:$0xff] }
 0x1a3   :  { %3845 = vmatprep.subr.bf16.mxu0 %v13358_v50  ;;  %4050 = vmatprep.subr.bf16.mxu1 %v13360_v51  ;;  %v13407_v50 = vcombine.low %v712_v38, %v716_v40  ;;  %v13414_v51 = vcombine.high %v719_v45, %v723_v24  ;;  %v13416_v52 = vcombine.high %v720_v47, %v724_v48  ;;  %v197_v38 = vld [vmem:[#allocation5 + $0x170] sm:$0xff]  ;;  %v194_v40 = vld [vmem:[#allocation5 + $0x158] sm:$0xff] }
 0x1a5   :  { %3837 = vmatmul.mubr.bf16.vlgmr.msra.gmra.mrb[0].mxu0 %v15339_v55  ;;  %4042 = vmatmul.mubr.bf16.vlgmr.msra.gmra.mrb[0].mxu1 %v15339_v55 }
 0x1a6   :  { %3846 = vmatpush1.bf16.msra.mxu0 %v13357_v59  ;;  %4051 = vmatpush1.bf16.msra.mxu1 %v13359_v60  ;;  %v158_v59 = vld [vmem:[#allocation5 + $0x38] sm:$0xff]  ;;  %v13413_v60 = vcombine.low %v719_v45, %v723_v24  ;;  %v201_v24 = vld [vmem:[#allocation5 + $0x190] sm:$0xff] }
 0x1a7   :  { %3847 = vmatprep.subr.bf16.mxu0 %v13366_v61  ;;  %4052 = vmatprep.subr.bf16.mxu1 %v13368_v62  ;;  %v13415_v61 = vcombine.low %v720_v47, %v724_v48  ;;  %v12850_v62 = vcombine.high %v153_v54, %v157_v56  ;;  %v12852_v63 = vcombine.high %v154_v58, %v158_v59  ;;  %v205_v47 = vld [vmem:[#allocation5 + $0x1b0] sm:$0xff]  ;;  %v202_v48 = vld [vmem:[#allocation5 + $0x198] sm:$0xff] }
 0x1a8   :  { %3877 = vmatprep.mubr.bf16.mxu0 %v15118_v8  ;;  %4082 = vmatprep.mubr.bf16.mxu1 %v15118_v8 }
 0x1aa   :  { %3848 = vmatpush1.bf16.msra.mxu0 %v13365_v39  ;;  %4053 = vmatpush1.bf16.msra.mxu1 %v13367_v3  ;;  %v162_v39 = vld [vmem:[#allocation5 + $0x58] sm:$0xff] }
 0x1ab   :  { %3849 = vmatprep.subr.bf16.mxu0 %v13374_v4  ;;  %4054 = vmatprep.subr.bf16.mxu1 %v13376_v5  ;;  %v166_v3 = vld [vmem:[#allocation5 + $0x78] sm:$0xff]  ;;  %v12849_v4 = vcombine.low %v153_v54, %v157_v56  ;;  %v12851_v5 = vcombine.low %v154_v58, %v158_v59  ;;  %v209_v56 = vld [vmem:[#allocation5 + $0x1d0] sm:$0xff] }
 0x1ac   :  { %v12860_v7 = vcombine.high %v162_v39, %v166_v3  ;;  %v213_v58 = vld [vmem:[#allocation5 + $0x1f0] sm:$0xff]  ;;  %v210_v59 = vld [vmem:[#allocation5 + $0x1d8] sm:$0xff] }
 0x1ae   :  { %3850 = vmatpush1.bf16.msra.mxu0 %v13373_v11  ;;  %4055 = vmatpush1.bf16.msra.mxu1 %v13375_v13  ;;  %v170_v11 = vld [vmem:[#allocation5 + $0x98] sm:$0xff] }
 0x1af   :  { %3851 = vmatprep.subr.bf16.mxu0 %v13382_v14  ;;  %4056 = vmatprep.subr.bf16.mxu1 %v13384_v16  ;;  %v174_v13 = vld [vmem:[#allocation5 + $0xb8] sm:$0xff]  ;;  %v12857_v14 = vcombine.low %v161_v0, %v165_v1  ;;  %v12859_v16 = vcombine.low %v162_v39, %v166_v3  ;;  %v217_v1 = vld [vmem:[#allocation5 + $0x210] sm:$0xff] }
 0x1b0   :  { %v12868_v18 = vcombine.high %v170_v11, %v174_v13  ;;  %v218_v39 = vld [vmem:[#allocation5 + $0x218] sm:$0xff] }
 0x1b1   :  { %v222_v3 = vld [vmem:[#allocation5 + $0x238] sm:$0xff] }
 0x1b2   :  { %3852 = vmatpush1.bf16.msra.mxu0 %v13381_v21  ;;  %4057 = vmatpush1.bf16.msra.mxu1 %v13383_v22  ;;  %v178_v21 = vld [vmem:[#allocation5 + $0xd8] sm:$0xff] }
 0x1b3   :  { %3853 = vmatprep.subr.bf16.mxu0 %v13390_v23  ;;  %4058 = vmatprep.subr.bf16.mxu1 %v13392_v26  ;;  %v182_v22 = vld [vmem:[#allocation5 + $0xf8] sm:$0xff]  ;;  %v12865_v23 = vcombine.low %v169_v9, %v173_v10  ;;  %v12867_v26 = vcombine.low %v170_v11, %v174_v13  ;;  %v225_v9 = vld [vmem:[#allocation5 + $0x250] sm:$0xff] }
 0x1b4   :  { %v12876_v28 = vcombine.high %v178_v21, %v182_v22  ;;  %v229_v10 = vld [vmem:[#allocation5 + $0x270] sm:$0xff]  ;;  %v226_v11 = vld [vmem:[#allocation5 + $0x258] sm:$0xff] }
 0x1b5   :  { %v230_v13 = vld [vmem:[#allocation5 + $0x278] sm:$0xff] }
 0x1b6   :  { %3854 = vmatpush1.bf16.msra.mxu0 %v13389_v31  ;;  %4059 = vmatpush1.bf16.msra.mxu1 %v13391_v33  ;;  %v186_v31 = vld [vmem:[#allocation5 + $0x118] sm:$0xff] }
 0x1b7   :  { %3855 = vmatprep.subr.bf16.mxu0 %v13398_v34  ;;  %4060 = vmatprep.subr.bf16.mxu1 %v13400_v15  ;;  %v190_v33 = vld [vmem:[#allocation5 + $0x138] sm:$0xff]  ;;  %v12873_v34 = vcombine.low %v177_v19, %v181_v20  ;;  %v12875_v15 = vcombine.low %v178_v21, %v182_v22  ;;  %v233_v19 = vld [vmem:[#allocation5 + $0x290] sm:$0xff] }
 0x1b8   :  { %v237_v20 = vld [vmem:[#allocation5 + $0x2b0] sm:$0xff]  ;;  %v234_v21 = vld [vmem:[#allocation5 + $0x298] sm:$0xff] }
 0x1b9   :  { %v238_v22 = vld [vmem:[#allocation5 + $0x2b8] sm:$0xff] }
 0x1ba   :  { %3856 = vmatpush1.bf16.msra.mxu0 %v13397_v41  ;;  %4061 = vmatpush1.bf16.msra.mxu1 %v13399_v42  ;;  %v198_v41 = vld [vmem:[#allocation5 + $0x178] sm:$0xff]  ;;  %v12881_v42 = vcombine.low %v185_v29, %v189_v30  ;;  %v241_v29 = vld [vmem:[#allocation5 + $0x2d0] sm:$0xff] }
 0x1bb   :  { %3857 = vmatprep.subr.bf16.mxu0 %v13406_v43  ;;  %4062 = vmatprep.subr.bf16.mxu1 %v13408_v44  ;;  %v12883_v43 = vcombine.low %v186_v31, %v190_v33  ;;  %v12890_v44 = vcombine.high %v193_v37, %v197_v38  ;;  %v12892_v45 = vcombine.high %v194_v40, %v198_v41  ;;  %v245_v30 = vld [vmem:[#allocation5 + $0x2f0] sm:$0xff] }
 0x1be   :  { %3858 = vmatpush1.bf16.msra.mxu0 %v13405_v49  ;;  %4063 = vmatpush1.bf16.msra.mxu1 %v13407_v50  ;;  %v206_v49 = vld [vmem:[#allocation5 + $0x1b8] sm:$0xff]  ;;  %v12889_v50 = vcombine.low %v193_v37, %v197_v38  ;;  %v249_v37 = vld [vmem:[#allocation5 + $0x310] sm:$0xff] }
 0x1bf   :  { %3859 = vmatprep.subr.bf16.mxu0 %v13414_v51  ;;  %4064 = vmatprep.subr.bf16.mxu1 %v13416_v52  ;;  %v12891_v51 = vcombine.low %v194_v40, %v198_v41  ;;  %v12898_v52 = vcombine.high %v201_v24, %v205_v47  ;;  %v12900_v54 = vcombine.high %v202_v48, %v206_v49  ;;  %v253_v38 = vld [vmem:[#allocation5 + $0x330] sm:$0xff]  ;;  %v250_v40 = vld [vmem:[#allocation5 + $0x318] sm:$0xff] }
 0x1c0   :  { %v254_v41 = vld [vmem:[#allocation5 + $0x338] sm:$0xff] }
 0x1c2   :  { %3860 = vmatpush1.bf16.msra.mxu0 %v13413_v60  ;;  %4065 = vmatpush1.bf16.msra.mxu1 %v13415_v61  ;;  %v214_v60 = vld [vmem:[#allocation5 + $0x1f8] sm:$0xff]  ;;  %v12897_v61 = vcombine.low %v201_v24, %v205_v47  ;;  %v257_v24 = vld [vmem:[#allocation5 + $0x350] sm:$0xff] }
 0x1c3   :  { %4091 = vmatprep.subr.bf16.mxu0 %v12850_v62  ;;  %4296 = vmatprep.subr.bf16.mxu1 %v12852_v63  ;;  %v12899_v62 = vcombine.low %v202_v48, %v206_v49  ;;  %v12906_v63 = vcombine.high %v209_v56, %v213_v58  ;;  %v12908_v0 = vcombine.high %v210_v59, %v214_v60  ;;  %v261_v47 = vld [vmem:[#allocation5 + $0x370] sm:$0xff]  ;;  %v258_v48 = vld [vmem:[#allocation5 + $0x358] sm:$0xff] }
 0x1c4   :  { %v262_v49 = vld [vmem:[#allocation5 + $0x378] sm:$0xff] }
 0x1c5   :  { %3878 = vmatmul.mubr.bf16.vlgmr.msra.gmra.mrb[0].mxu0 %v14805_v2  ;;  %4083 = vmatmul.mubr.bf16.vlgmr.msra.gmra.mrb[0].mxu1 %v14805_v2  ;;  %v221_v2 = vld [vmem:[#allocation5 + $0x230] sm:$0xff] }
 0x1c6   :  { %4092 = vmatpush1.bf16.msra.mxu0 %v12849_v4  ;;  %4297 = vmatpush1.bf16.msra.mxu1 %v12851_v5  ;;  %v12905_v4 = vcombine.low %v209_v56, %v213_v58  ;;  %v12907_v5 = vcombine.low %v210_v59, %v214_v60  ;;  %v265_v56 = vld [vmem:[#allocation5 + $0x390] sm:$0xff]  ;;  %v266_v59 = vld [vmem:[#allocation5 + $0x398] sm:$0xff] }
 0x1c7   :  { %4093 = vmatprep.subr.bf16.mxu0 %v12858_v6  ;;  %4298 = vmatprep.subr.bf16.mxu1 %v12860_v7  ;;  %v12914_v6 = vcombine.high %v217_v1, %v221_v2  ;;  %v12916_v7 = vcombine.high %v218_v39, %v222_v3  ;;  %v269_v58 = vld [vmem:[#allocation5 + $0x3b0] sm:$0xff]  ;;  %v270_v60 = vld [vmem:[#allocation5 + $0x3b8] sm:$0xff] }
 0x1c8   :  { %4123 = vmatprep.mubr.bf16.mxu0 %v15291_v57  ;;  %4328 = vmatprep.mubr.bf16.mxu1 %v15291_v57  ;;  %v12884_v57 = vcombine.high %v186_v31, %v190_v33  ;;  %v242_v31 = vld [vmem:[#allocation5 + $0x2d8] sm:$0xff] }
 0x1c9   :  { %v246_v33 = vld [vmem:[#allocation5 + $0x2f8] sm:$0xff] }
 0x1ca   :  { %4094 = vmatpush1.bf16.msra.mxu0 %v12857_v14  ;;  %4299 = vmatpush1.bf16.msra.mxu1 %v12859_v16  ;;  %v12913_v14 = vcombine.low %v217_v1, %v221_v2  ;;  %v12915_v16 = vcombine.low %v218_v39, %v222_v3  ;;  %v273_v1 = vld [vmem:[#allocation5 + $0x3d0] sm:$0xff]  ;;  %v274_v39 = vld [vmem:[#allocation5 + $0x3d8] sm:$0xff] }
 0x1cb   :  { %4095 = vmatprep.subr.bf16.mxu0 %v12866_v17  ;;  %4300 = vmatprep.subr.bf16.mxu1 %v12868_v18  ;;  %v12922_v17 = vcombine.high %v225_v9, %v229_v10  ;;  %v12924_v18 = vcombine.high %v226_v11, %v230_v13  ;;  %v277_v2 = vld [vmem:[#allocation5 + $0x3f0] sm:$0xff]  ;;  %v278_v3 = vld [vmem:[#allocation5 + $0x3f8] sm:$0xff] }
 0x1ce   :  { %4096 = vmatpush1.bf16.msra.mxu0 %v12865_v23  ;;  %4301 = vmatpush1.bf16.msra.mxu1 %v12867_v26  ;;  %v12921_v23 = vcombine.low %v225_v9, %v229_v10  ;;  %v12923_v26 = vcombine.low %v226_v11, %v230_v13  ;;  %v281_v9 = vld [vmem:[#allocation5 + $0x410] sm:$0xff]  ;;  %v282_v11 = vld [vmem:[#allocation5 + $0x418] sm:$0xff] }
 0x1cf   :  { %4097 = vmatprep.subr.bf16.mxu0 %v12874_v27  ;;  %4302 = vmatprep.subr.bf16.mxu1 %v12876_v28  ;;  %v12930_v27 = vcombine.high %v233_v19, %v237_v20  ;;  %v12932_v28 = vcombine.high %v234_v21, %v238_v22  ;;  %v285_v10 = vld [vmem:[#allocation5 + $0x430] sm:$0xff]  ;;  %v286_v13 = vld [vmem:[#allocation5 + $0x438] sm:$0xff] }
 0x1d2   :  { %4098 = vmatpush1.bf16.msra.mxu0 %v12873_v34  ;;  %4303 = vmatpush1.bf16.msra.mxu1 %v12875_v15  ;;  %v12929_v34 = vcombine.low %v233_v19, %v237_v20  ;;  %v12931_v15 = vcombine.low %v234_v21, %v238_v22  ;;  %v289_v19 = vld [vmem:[#allocation5 + $0x450] sm:$0xff]  ;;  %v290_v21 = vld [vmem:[#allocation5 + $0x458] sm:$0xff] }
 0x1d3   :  { %4099 = vmatprep.subr.bf16.mxu0 %v12882_v35  ;;  %4304 = vmatprep.subr.bf16.mxu1 %v12884_v57  ;;  %v12938_v35 = vcombine.high %v241_v29, %v245_v30  ;;  %v12940_v57 = vcombine.high %v242_v31, %v246_v33  ;;  %v293_v20 = vld [vmem:[#allocation5 + $0x470] sm:$0xff]  ;;  %v294_v22 = vld [vmem:[#allocation5 + $0x478] sm:$0xff] }
 0x1d6   :  { %4100 = vmatpush1.bf16.msra.mxu0 %v12881_v42  ;;  %4305 = vmatpush1.bf16.msra.mxu1 %v12883_v43  ;;  %v12937_v42 = vcombine.low %v241_v29, %v245_v30  ;;  %v12939_v43 = vcombine.low %v242_v31, %v246_v33  ;;  %v297_v29 = vld [vmem:[#allocation5 + $0x490] sm:$0xff]  ;;  %v298_v31 = vld [vmem:[#allocation5 + $0x498] sm:$0xff] }
 0x1d7   :  { %4101 = vmatprep.subr.bf16.mxu0 %v12890_v44  ;;  %4306 = vmatprep.subr.bf16.mxu1 %v12892_v45  ;;  %v12946_v44 = vcombine.high %v249_v37, %v253_v38  ;;  %v12948_v45 = vcombine.high %v250_v40, %v254_v41  ;;  %v301_v30 = vld [vmem:[#allocation5 + $0x4b0] sm:$0xff]  ;;  %v302_v33 = vld [vmem:[#allocation5 + $0x4b8] sm:$0xff] }
 0x1da   :  { %4102 = vmatpush1.bf16.msra.mxu0 %v12889_v50  ;;  %4307 = vmatpush1.bf16.msra.mxu1 %v12891_v51  ;;  %v12945_v50 = vcombine.low %v249_v37, %v253_v38  ;;  %v12947_v51 = vcombine.low %v250_v40, %v254_v41  ;;  %v305_v37 = vld [vmem:[#allocation5 + $0x4d0] sm:$0xff]  ;;  %v306_v40 = vld [vmem:[#allocation5 + $0x4d8] sm:$0xff] }
 0x1db   :  { %4103 = vmatprep.subr.bf16.mxu0 %v12898_v52  ;;  %4308 = vmatprep.subr.bf16.mxu1 %v12900_v54  ;;  %v12954_v52 = vcombine.high %v257_v24, %v261_v47  ;;  %v12956_v54 = vcombine.high %v258_v48, %v262_v49  ;;  %v309_v38 = vld [vmem:[#allocation5 + $0x4f0] sm:$0xff]  ;;  %v310_v41 = vld [vmem:[#allocation5 + $0x4f8] sm:$0xff] }
 0x1de   :  { %4104 = vmatpush1.bf16.msra.mxu0 %v12897_v61  ;;  %4309 = vmatpush1.bf16.msra.mxu1 %v12899_v62  ;;  %v12953_v61 = vcombine.low %v257_v24, %v261_v47  ;;  %v12955_v62 = vcombine.low %v258_v48, %v262_v49  ;;  %v317_v24 = vld [vmem:[#allocation5 + $0x530] sm:$0xff]  ;;  %v314_v47 = vld [vmem:[#allocation5 + $0x518] sm:$0xff]  ;;  %v13001_v49 = vcombine.low %v305_v37, %v309_v38 }
 0x1df   :  { %4105 = vmatprep.subr.bf16.mxu0 %v12906_v63  ;;  %4310 = vmatprep.subr.bf16.mxu1 %v12908_v0  ;;  %v12962_v63 = vcombine.high %v265_v56, %v269_v58  ;;  %v12964_v0 = vcombine.high %v266_v59, %v270_v60  ;;  %v318_v48 = vld [vmem:[#allocation5 + $0x538] sm:$0xff] }
 0x1e2   :  { %4106 = vmatpush1.bf16.msra.mxu0 %v12905_v4  ;;  %4311 = vmatpush1.bf16.msra.mxu1 %v12907_v5  ;;  %v12961_v4 = vcombine.low %v265_v56, %v269_v58  ;;  %v12963_v5 = vcombine.low %v266_v59, %v270_v60  ;;  %v322_v56 = vld [vmem:[#allocation5 + $0x558] sm:$0xff]  ;;  %v13011_v60 = vcombine.low %v314_v47, %v318_v48 }
 0x1e3   :  { %4107 = vmatprep.subr.bf16.mxu0 %v12914_v6  ;;  %4312 = vmatprep.subr.bf16.mxu1 %v12916_v7  ;;  %v12970_v6 = vcombine.high %v273_v1, %v277_v2  ;;  %v12972_v7 = vcombine.high %v274_v39, %v278_v3  ;;  %v326_v58 = vld [vmem:[#allocation5 + $0x578] sm:$0xff] }
 0x1e6   :  { %4108 = vmatpush1.bf16.msra.mxu0 %v12913_v14  ;;  %4313 = vmatpush1.bf16.msra.mxu1 %v12915_v16  ;;  %v12969_v14 = vcombine.low %v273_v1, %v277_v2  ;;  %v12971_v16 = vcombine.low %v274_v39, %v278_v3  ;;  %v330_v1 = vld [vmem:[#allocation5 + $0x598] sm:$0xff]  ;;  %v13019_v3 = vcombine.low %v322_v56, %v326_v58 }
 0x1e7   :  { %4109 = vmatprep.subr.bf16.mxu0 %v12922_v17  ;;  %4314 = vmatprep.subr.bf16.mxu1 %v12924_v18  ;;  %v12978_v17 = vcombine.high %v281_v9, %v285_v10  ;;  %v12980_v18 = vcombine.high %v282_v11, %v286_v13  ;;  %v334_v2 = vld [vmem:[#allocation5 + $0x5b8] sm:$0xff] }
 0x1ea   :  { %4110 = vmatpush1.bf16.msra.mxu0 %v12921_v23  ;;  %4315 = vmatpush1.bf16.msra.mxu1 %v12923_v26  ;;  %v12977_v23 = vcombine.low %v281_v9, %v285_v10  ;;  %v12979_v26 = vcombine.low %v282_v11, %v286_v13  ;;  %v338_v9 = vld [vmem:[#allocation5 + $0x5d8] sm:$0xff]  ;;  %v13027_v13 = vcombine.low %v330_v1, %v334_v2 }
 0x1eb   :  { %4111 = vmatprep.subr.bf16.mxu0 %v12930_v27  ;;  %4316 = vmatprep.subr.bf16.mxu1 %v12932_v28  ;;  %v12986_v27 = vcombine.high %v289_v19, %v293_v20  ;;  %v12988_v28 = vcombine.high %v290_v21, %v294_v22  ;;  %v342_v10 = vld [vmem:[#allocation5 + $0x5f8] sm:$0xff] }
 0x1ee   :  { %4112 = vmatpush1.bf16.msra.mxu0 %v12929_v34  ;;  %4317 = vmatpush1.bf16.msra.mxu1 %v12931_v15  ;;  %v12985_v34 = vcombine.low %v289_v19, %v293_v20  ;;  %v12987_v15 = vcombine.low %v290_v21, %v294_v22  ;;  %v346_v19 = vld [vmem:[#allocation5 + $0x618] sm:$0xff]  ;;  %v13035_v22 = vcombine.low %v338_v9, %v342_v10 }
 0x1ef   :  { %4113 = vmatprep.subr.bf16.mxu0 %v12938_v35  ;;  %4318 = vmatprep.subr.bf16.mxu1 %v12940_v57  ;;  %v12994_v35 = vcombine.high %v297_v29, %v301_v30  ;;  %v12996_v57 = vcombine.high %v298_v31, %v302_v33  ;;  %v350_v20 = vld [vmem:[#allocation5 + $0x638] sm:$0xff] }
 0x1f2   :  { %4114 = vmatpush1.bf16.msra.mxu0 %v12937_v42  ;;  %4319 = vmatpush1.bf16.msra.mxu1 %v12939_v43  ;;  %v12993_v42 = vcombine.low %v297_v29, %v301_v30  ;;  %v13002_v43 = vcombine.high %v305_v37, %v309_v38  ;;  %v354_v29 = vld [vmem:[#allocation5 + $0x658] sm:$0xff] }
 0x1f3   :  { %4115 = vmatprep.subr.bf16.mxu0 %v12946_v44  ;;  %4320 = vmatprep.subr.bf16.mxu1 %v12948_v45  ;;  %v13004_v44 = vcombine.high %v306_v40, %v310_v41  ;;  %v313_v45 = vld [vmem:[#allocation5 + $0x510] sm:$0xff]  ;;  %v358_v30 = vld [vmem:[#allocation5 + $0x678] sm:$0xff] }
 0x1f4   :  { %v13009_v59 = vcombine.low %v313_v45, %v317_v24  ;;  %v362_v37 = vld [vmem:[#allocation5 + $0x698] sm:$0xff] }
 0x1f5   :  { %v366_v38 = vld [vmem:[#allocation5 + $0x6b8] sm:$0xff] }
 0x1f6   :  { %4116 = vmatpush1.bf16.msra.mxu0 %v12945_v50  ;;  %4321 = vmatpush1.bf16.msra.mxu1 %v12947_v51  ;;  %v13003_v50 = vcombine.low %v306_v40, %v310_v41  ;;  %v13010_v51 = vcombine.high %v313_v45, %v317_v24  ;;  %v13051_v41 = vcombine.low %v354_v29, %v358_v30  ;;  %v370_v45 = vld [vmem:[#allocation5 + $0x6d8] sm:$0xff] }
 0x1f7   :  { %4117 = vmatprep.subr.bf16.mxu0 %v12954_v52  ;;  %4322 = vmatprep.subr.bf16.mxu1 %v12956_v54  ;;  %v321_v52 = vld [vmem:[#allocation5 + $0x550] sm:$0xff]  ;;  %v374_v24 = vld [vmem:[#allocation5 + $0x6f8] sm:$0xff] }
 0x1f8   :  { %v325_v54 = vld [vmem:[#allocation5 + $0x570] sm:$0xff] }
 0x1f9   :  { %v13017_v39 = vcombine.low %v321_v52, %v325_v54 }
 0x1fa   :  { %4118 = vmatpush1.bf16.msra.mxu0 %v12953_v61  ;;  %4323 = vmatpush1.bf16.msra.mxu1 %v12955_v62  ;;  %v13018_v61 = vcombine.high %v321_v52, %v325_v54  ;;  %v13020_v62 = vcombine.high %v322_v56, %v326_v58  ;;  %v378_v52 = vld [vmem:[#allocation5 + $0x718] sm:$0xff]  ;;  %v13067_v58 = vcombine.low %v370_v45, %v374_v24 }
 0x1fb   :  { %4119 = vmatprep.subr.bf16.mxu0 %v12962_v63  ;;  %4324 = vmatprep.subr.bf16.mxu1 %v12964_v0  ;;  %v329_v63 = vld [vmem:[#allocation5 + $0x590] sm:$0xff]  ;;  %v382_v54 = vld [vmem:[#allocation5 + $0x738] sm:$0xff] }
 0x1fc   :  { %v333_v0 = vld [vmem:[#allocation5 + $0x5b0] sm:$0xff] }
 0x1fd   :  { %v13025_v11 = vcombine.low %v329_v63, %v333_v0 }
 0x1fe   :  { %4120 = vmatpush1.bf16.msra.mxu0 %v12961_v4  ;;  %4325 = vmatpush1.bf16.msra.mxu1 %v12963_v5  ;;  %v13026_v4 = vcombine.high %v329_v63, %v333_v0  ;;  %v13028_v5 = vcombine.high %v330_v1, %v334_v2  ;;  %v386_v63 = vld [vmem:[#allocation5 + $0x758] sm:$0xff]  ;;  %v13075_v2 = vcombine.low %v378_v52, %v382_v54 }
 0x1ff   :  { %4121 = vmatprep.subr.bf16.mxu0 %v12970_v6  ;;  %4326 = vmatprep.subr.bf16.mxu1 %v12972_v7  ;;  %v337_v6 = vld [vmem:[#allocation5 + $0x5d0] sm:$0xff]  ;;  %v390_v0 = vld [vmem:[#allocation5 + $0x778] sm:$0xff] }
 0x200   :  { %v341_v7 = vld [vmem:[#allocation5 + $0x5f0] sm:$0xff] }
 0x201   :  { %v13033_v21 = vcombine.low %v337_v6, %v341_v7 }
 0x202   :  { %4122 = vmatpush1.bf16.msra.mxu0 %v12969_v14  ;;  %4327 = vmatpush1.bf16.msra.mxu1 %v12971_v16  ;;  %v13034_v14 = vcombine.high %v337_v6, %v341_v7  ;;  %v13036_v16 = vcombine.high %v338_v9, %v342_v10  ;;  %v394_v6 = vld [vmem:[#allocation5 + $0x798] sm:$0xff]  ;;  %v13083_v10 = vcombine.low %v386_v63, %v390_v0 }
 0x203   :  { %4132 = vmatprep.subr.bf16.mxu0 %v12978_v17  ;;  %4337 = vmatprep.subr.bf16.mxu1 %v12980_v18  ;;  %v345_v17 = vld [vmem:[#allocation5 + $0x610] sm:$0xff]  ;;  %v398_v7 = vld [vmem:[#allocation5 + $0x7b8] sm:$0xff] }
 0x204   :  { %v349_v18 = vld [vmem:[#allocation5 + $0x630] sm:$0xff] }
 0x205   :  { %4124 = vmatmul.mubr.bf16.vlgmr.msra.gmra.mrb[4].mxu0 %v15297_v12  ;;  %4329 = vmatmul.mubr.bf16.vlgmr.msra.gmra.mrb[4].mxu1 %v15297_v12  ;;  %v12995_v12 = vcombine.low %v298_v31, %v302_v33  ;;  %v13041_v31 = vcombine.low %v345_v17, %v349_v18  ;;  %v13043_v33 = vcombine.low %v346_v19, %v350_v20 }
 0x206   :  { %4133 = vmatpush1.bf16.msra.mxu0 %v12977_v23  ;;  %4338 = vmatpush1.bf16.msra.mxu1 %v12979_v26  ;;  %v13042_v23 = vcombine.high %v345_v17, %v349_v18  ;;  %v13044_v26 = vcombine.high %v346_v19, %v350_v20  ;;  %v402_v17 = vld [vmem:[#allocation5 + $0x7d8] sm:$0xff]  ;;  %v13091_v20 = vcombine.low %v394_v6, %v398_v7 }
 0x207   :  { %4134 = vmatprep.subr.bf16.mxu0 %v12986_v27  ;;  %4339 = vmatprep.subr.bf16.mxu1 %v12988_v28  ;;  %v353_v27 = vld [vmem:[#allocation5 + $0x650] sm:$0xff]  ;;  %v406_v18 = vld [vmem:[#allocation5 + $0x7f8] sm:$0xff] }
 0x208   :  { %4164 = vmatprep.mubr.bf16.mxu0 %v15303_v53  ;;  %4369 = vmatprep.mubr.bf16.mxu1 %v15303_v53  ;;  %v13012_v53 = vcombine.high %v314_v47, %v318_v48  ;;  %v357_v28 = vld [vmem:[#allocation5 + $0x670] sm:$0xff]  ;;  %v13059_v48 = vcombine.low %v362_v37, %v366_v38 }
 0x209   :  { %v13049_v40 = vcombine.low %v353_v27, %v357_v28 }
 0x20a   :  { %4135 = vmatpush1.bf16.msra.mxu0 %v12985_v34  ;;  %4340 = vmatpush1.bf16.msra.mxu1 %v12987_v15  ;;  %v13050_v34 = vcombine.high %v353_v27, %v357_v28  ;;  %v13052_v15 = vcombine.high %v354_v29, %v358_v30  ;;  %v410_v27 = vld [vmem:[#allocation5 + $0x818] sm:$0xff]  ;;  %v13099_v30 = vcombine.low %v402_v17, %v406_v18 }
 0x20b   :  { %4136 = vmatprep.subr.bf16.mxu0 %v12994_v35  ;;  %4341 = vmatprep.subr.bf16.mxu1 %v12996_v57  ;;  %v361_v35 = vld [vmem:[#allocation5 + $0x690] sm:$0xff]  ;;  %v414_v28 = vld [vmem:[#allocation5 + $0x838] sm:$0xff] }
 0x20c   :  { %v365_v57 = vld [vmem:[#allocation5 + $0x6b0] sm:$0xff] }
 0x20d   :  { %v13057_v47 = vcombine.low %v361_v35, %v365_v57 }
 0x20e   :  { %4137 = vmatpush1.bf16.msra.mxu0 %v12993_v42  ;;  %4342 = vmatpush1.bf16.msra.mxu1 %v12995_v12  ;;  %v13058_v42 = vcombine.high %v361_v35, %v365_v57  ;;  %v13060_v12 = vcombine.high %v362_v37, %v366_v38  ;;  %v418_v35 = vld [vmem:[#allocation5 + $0x858] sm:$0xff]  ;;  %v13107_v38 = vcombine.low %v410_v27, %v414_v28 }
 0x20f   :  { %4138 = vmatprep.subr.bf16.mxu0 %v13002_v43  ;;  %4343 = vmatprep.subr.bf16.mxu1 %v13004_v44  ;;  %v369_v43 = vld [vmem:[#allocation5 + $0x6d0] sm:$0xff]  ;;  %v422_v57 = vld [vmem:[#allocation5 + $0x878] sm:$0xff] }
 0x210   :  { %v373_v44 = vld [vmem:[#allocation5 + $0x6f0] sm:$0xff] }
 0x211   :  { %v13065_v56 = vcombine.low %v369_v43, %v373_v44 }
 0x212   :  { %4139 = vmatpush1.bf16.msra.mxu0 %v13001_v49  ;;  %4344 = vmatpush1.bf16.msra.mxu1 %v13003_v50  ;;  %v13066_v49 = vcombine.high %v369_v43, %v373_v44  ;;  %v13068_v50 = vcombine.high %v370_v45, %v374_v24  ;;  %v426_v43 = vld [vmem:[#allocation5 + $0x898] sm:$0xff]  ;;  %v13115_v24 = vcombine.low %v418_v35, %v422_v57 }
 0x213   :  { %4140 = vmatprep.subr.bf16.mxu0 %v13010_v51  ;;  %4345 = vmatprep.subr.bf16.mxu1 %v13012_v53  ;;  %v377_v51 = vld [vmem:[#allocation5 + $0x710] sm:$0xff]  ;;  %v430_v44 = vld [vmem:[#allocation5 + $0x8b8] sm:$0xff] }
 0x214   :  { %v381_v53 = vld [vmem:[#allocation5 + $0x730] sm:$0xff] }
 0x215   :  { %v13073_v1 = vcombine.low %v377_v51, %v381_v53 }
 0x216   :  { %4141 = vmatpush1.bf16.msra.mxu0 %v13009_v59  ;;  %4346 = vmatpush1.bf16.msra.mxu1 %v13011_v60  ;;  %v13074_v59 = vcombine.high %v377_v51, %v381_v53  ;;  %v13076_v60 = vcombine.high %v378_v52, %v382_v54  ;;  %v434_v51 = vld [vmem:[#allocation5 + $0x8d8] sm:$0xff] }
 0x217   :  { %4142 = vmatprep.subr.bf16.mxu0 %v13018_v61  ;;  %4347 = vmatprep.subr.bf16.mxu1 %v13020_v62  ;;  %v385_v61 = vld [vmem:[#allocation5 + $0x750] sm:$0xff]  ;;  %v438_v53 = vld [vmem:[#allocation5 + $0x8f8] sm:$0xff] }
 0x218   :  { %v389_v62 = vld [vmem:[#allocation5 + $0x770] sm:$0xff] }
 0x219   :  { %v13081_v9 = vcombine.low %v385_v61, %v389_v62 }
 0x21a   :  { %4143 = vmatpush1.bf16.msra.mxu0 %v13017_v39  ;;  %4348 = vmatpush1.bf16.msra.mxu1 %v13019_v3  ;;  %v13082_v39 = vcombine.high %v385_v61, %v389_v62  ;;  %v13084_v3 = vcombine.high %v386_v63, %v390_v0  ;;  %v446_v61 = vld [vmem:[#allocation5 + $0x938] sm:$0xff]  ;;  %v13131_v63 = vcombine.low %v434_v51, %v438_v53 }
 0x21b   :  { %4144 = vmatprep.subr.bf16.mxu0 %v13026_v4  ;;  %4349 = vmatprep.subr.bf16.mxu1 %v13028_v5  ;;  %v393_v4 = vld [vmem:[#allocation5 + $0x790] sm:$0xff] }
 0x21c   :  { %v397_v5 = vld [vmem:[#allocation5 + $0x7b0] sm:$0xff] }
 0x21d   :  { %v13089_v19 = vcombine.low %v393_v4, %v397_v5 }
 0x21e   :  { %4145 = vmatpush1.bf16.msra.mxu0 %v13025_v11  ;;  %4350 = vmatpush1.bf16.msra.mxu1 %v13027_v13  ;;  %v13090_v11 = vcombine.high %v393_v4, %v397_v5  ;;  %v13092_v13 = vcombine.high %v394_v6, %v398_v7 }
 0x21f   :  { %4146 = vmatprep.subr.bf16.mxu0 %v13034_v14  ;;  %4351 = vmatprep.subr.bf16.mxu1 %v13036_v16  ;;  %v401_v14 = vld [vmem:[#allocation5 + $0x7d0] sm:$0xff] }
 0x220   :  { %v405_v16 = vld [vmem:[#allocation5 + $0x7f0] sm:$0xff] }
 0x221   :  { %v13097_v29 = vcombine.low %v401_v14, %v405_v16 }
 0x222   :  { %4147 = vmatpush1.bf16.msra.mxu0 %v13033_v21  ;;  %4352 = vmatpush1.bf16.msra.mxu1 %v13035_v22  ;;  %v13098_v21 = vcombine.high %v401_v14, %v405_v16  ;;  %v13100_v22 = vcombine.high %v402_v17, %v406_v18 }
 0x223   :  { %4148 = vmatprep.subr.bf16.mxu0 %v13042_v23  ;;  %4353 = vmatprep.subr.bf16.mxu1 %v13044_v26  ;;  %v409_v23 = vld [vmem:[#allocation5 + $0x810] sm:$0xff] }
 0x224   :  { %v413_v26 = vld [vmem:[#allocation5 + $0x830] sm:$0xff] }
 0x225   :  { %v13105_v37 = vcombine.low %v409_v23, %v413_v26 }
 0x226   :  { %4149 = vmatpush1.bf16.msra.mxu0 %v13041_v31  ;;  %4354 = vmatpush1.bf16.msra.mxu1 %v13043_v33  ;;  %v13106_v31 = vcombine.high %v409_v23, %v413_v26  ;;  %v13108_v33 = vcombine.high %v410_v27, %v414_v28 }
 0x227   :  { %4150 = vmatprep.subr.bf16.mxu0 %v13050_v34  ;;  %4355 = vmatprep.subr.bf16.mxu1 %v13052_v15  ;;  %v417_v34 = vld [vmem:[#allocation5 + $0x850] sm:$0xff] }
 0x228   :  { %v421_v15 = vld [vmem:[#allocation5 + $0x870] sm:$0xff] }
 0x229   :  { %v13113_v45 = vcombine.low %v417_v34, %v421_v15 }
 0x22a   :  { %4151 = vmatpush1.bf16.msra.mxu0 %v13049_v40  ;;  %4356 = vmatpush1.bf16.msra.mxu1 %v13051_v41  ;;  %v13114_v40 = vcombine.high %v417_v34, %v421_v15  ;;  %v13116_v41 = vcombine.high %v418_v35, %v422_v57 }
 0x22b   :  { %4152 = vmatprep.subr.bf16.mxu0 %v13058_v42  ;;  %4357 = vmatprep.subr.bf16.mxu1 %v13060_v12  ;;  %v425_v42 = vld [vmem:[#allocation5 + $0x890] sm:$0xff] }
 0x22c   :  { %v429_v12 = vld [vmem:[#allocation5 + $0x8b0] sm:$0xff] }
 0x22d   :  { %v13121_v52 = vcombine.low %v425_v42, %v429_v12 }
 0x22e   :  { %4153 = vmatpush1.bf16.msra.mxu0 %v13057_v47  ;;  %4358 = vmatpush1.bf16.msra.mxu1 %v13059_v48  ;;  %v13122_v47 = vcombine.high %v425_v42, %v429_v12  ;;  %v13124_v48 = vcombine.high %v426_v43, %v430_v44 }
 0x22f   :  { %4154 = vmatprep.subr.bf16.mxu0 %v13066_v49  ;;  %4359 = vmatprep.subr.bf16.mxu1 %v13068_v50  ;;  %v433_v49 = vld [vmem:[#allocation5 + $0x8d0] sm:$0xff] }
 0x230   :  { %v437_v50 = vld [vmem:[#allocation5 + $0x8f0] sm:$0xff] }
 0x231   :  { %v13130_v54 = vcombine.high %v433_v49, %v437_v50  ;;  %v13129_v62 = vcombine.low %v433_v49, %v437_v50 }
 0x232   :  { %4155 = vmatpush1.bf16.msra.mxu0 %v13065_v56  ;;  %4360 = vmatpush1.bf16.msra.mxu1 %v13067_v58  ;;  %v13132_v56 = vcombine.high %v434_v51, %v438_v53  ;;  %v441_v58 = vld [vmem:[#allocation5 + $0x910] sm:$0xff] }
 0x233   :  { %4156 = vmatprep.subr.bf16.mxu0 %v13074_v59  ;;  %4361 = vmatprep.subr.bf16.mxu1 %v13076_v60  ;;  %v445_v59 = vld [vmem:[#allocation5 + $0x930] sm:$0xff]  ;;  %v442_v60 = vld [vmem:[#allocation5 + $0x918] sm:$0xff] }
 0x234   :  { %v13138_v0 = vcombine.high %v441_v58, %v445_v59  ;;  %v13137_v4 = vcombine.low %v441_v58, %v445_v59  ;;  %v13139_v5 = vcombine.low %v442_v60, %v446_v61 }
 0x236   :  { %4157 = vmatpush1.bf16.msra.mxu0 %v13073_v1  ;;  %4362 = vmatpush1.bf16.msra.mxu1 %v13075_v2  ;;  %v449_v1 = vld [vmem:[#allocation5 + $0x950] sm:$0xff] }
 0x237   :  { %4158 = vmatprep.subr.bf16.mxu0 %v13082_v39  ;;  %4363 = vmatprep.subr.bf16.mxu1 %v13084_v3  ;;  %v453_v2 = vld [vmem:[#allocation5 + $0x970] sm:$0xff]  ;;  %v450_v39 = vld [vmem:[#allocation5 + $0x958] sm:$0xff] }
 0x238   :  { %v454_v3 = vld [vmem:[#allocation5 + $0x978] sm:$0xff]  ;;  %v13146_v6 = vcombine.high %v449_v1, %v453_v2  ;;  %v13145_v14 = vcombine.low %v449_v1, %v453_v2 }
 0x239   :  { %v13148_v7 = vcombine.high %v450_v39, %v454_v3  ;;  %v13147_v16 = vcombine.low %v450_v39, %v454_v3 }
 0x23a   :  { %4159 = vmatpush1.bf16.msra.mxu0 %v13081_v9  ;;  %4364 = vmatpush1.bf16.msra.mxu1 %v13083_v10  ;;  %v457_v9 = vld [vmem:[#allocation5 + $0x990] sm:$0xff] }
 0x23b   :  { %4160 = vmatprep.subr.bf16.mxu0 %v13090_v11  ;;  %4365 = vmatprep.subr.bf16.mxu1 %v13092_v13  ;;  %v461_v10 = vld [vmem:[#allocation5 + $0x9b0] sm:$0xff]  ;;  %v458_v11 = vld [vmem:[#allocation5 + $0x998] sm:$0xff] }
 0x23c   :  { %v462_v13 = vld [vmem:[#allocation5 + $0x9b8] sm:$0xff]  ;;  %v13154_v17 = vcombine.high %v457_v9, %v461_v10  ;;  %v13153_v23 = vcombine.low %v457_v9, %v461_v10 }
 0x23d   :  { %v13156_v18 = vcombine.high %v458_v11, %v462_v13  ;;  %v13155_v26 = vcombine.low %v458_v11, %v462_v13 }
 0x23e   :  { %4161 = vmatpush1.bf16.msra.mxu0 %v13089_v19  ;;  %4366 = vmatpush1.bf16.msra.mxu1 %v13091_v20  ;;  %v465_v19 = vld [vmem:[#allocation5 + $0x9d0] sm:$0xff] }
 0x23f   :  { %4162 = vmatprep.subr.bf16.mxu0 %v13098_v21  ;;  %4367 = vmatprep.subr.bf16.mxu1 %v13100_v22  ;;  %v469_v20 = vld [vmem:[#allocation5 + $0x9f0] sm:$0xff]  ;;  %v466_v21 = vld [vmem:[#allocation5 + $0x9d8] sm:$0xff] }
 0x240   :  { %v470_v22 = vld [vmem:[#allocation5 + $0x9f8] sm:$0xff]  ;;  %v13162_v27 = vcombine.high %v465_v19, %v469_v20  ;;  %v13161_v34 = vcombine.low %v465_v19, %v469_v20 }
 0x241   :  { %v13164_v28 = vcombine.high %v466_v21, %v470_v22  ;;  %v13163_v15 = vcombine.low %v466_v21, %v470_v22 }
 0x242   :  { %4163 = vmatpush1.bf16.msra.mxu0 %v13097_v29  ;;  %4368 = vmatpush1.bf16.msra.mxu1 %v13099_v30  ;;  %v473_v29 = vld [vmem:[#allocation5 + $0xa10] sm:$0xff] }
 0x243   :  { %4173 = vmatprep.subr.bf16.mxu0 %v13106_v31  ;;  %4378 = vmatprep.subr.bf16.mxu1 %v13108_v33  ;;  %v477_v30 = vld [vmem:[#allocation5 + $0xa30] sm:$0xff]  ;;  %v474_v31 = vld [vmem:[#allocation5 + $0xa18] sm:$0xff] }
 0x244   :  { %v478_v33 = vld [vmem:[#allocation5 + $0xa38] sm:$0xff]  ;;  %v13170_v35 = vcombine.high %v473_v29, %v477_v30  ;;  %v13169_v42 = vcombine.low %v473_v29, %v477_v30 }
 0x245   :  { %4165 = vmatmul.mubr.bf16.vlgmr.msra.gmra.mrb[4].mxu0 %v15313_v25  ;;  %4370 = vmatmul.mubr.bf16.vlgmr.msra.gmra.mrb[4].mxu1 %v15313_v25  ;;  %v13123_v25 = vcombine.low %v426_v43, %v430_v44  ;;  %v13172_v57 = vcombine.high %v474_v31, %v478_v33  ;;  %v13171_v12 = vcombine.low %v474_v31, %v478_v33 }
 0x246   :  { %4174 = vmatpush1.bf16.msra.mxu0 %v13105_v37  ;;  %4379 = vmatpush1.bf16.msra.mxu1 %v13107_v38  ;;  %v481_v37 = vld [vmem:[#allocation5 + $0xa50] sm:$0xff] }
 0x247   :  { %4175 = vmatprep.subr.bf16.mxu0 %v13114_v40  ;;  %4380 = vmatprep.subr.bf16.mxu1 %v13116_v41  ;;  %v485_v38 = vld [vmem:[#allocation5 + $0xa70] sm:$0xff]  ;;  %v482_v40 = vld [vmem:[#allocation5 + $0xa58] sm:$0xff] }
 0x248   :  { %4205 = vmatprep.mubr.bf16.mxu0 %v15317_v32  ;;  %4410 = vmatprep.mubr.bf16.mxu1 %v15317_v32  ;;  %v13140_v32 = vcombine.high %v442_v60, %v446_v61  ;;  %v486_v41 = vld [vmem:[#allocation5 + $0xa78] sm:$0xff]  ;;  %v13178_v43 = vcombine.high %v481_v37, %v485_v38  ;;  %v13177_v49 = vcombine.low %v481_v37, %v485_v38 }
 0x249   :  { %v13180_v44 = vcombine.high %v482_v40, %v486_v41  ;;  %v13179_v50 = vcombine.low %v482_v40, %v486_v41 }
 0x24a   :  { %4176 = vmatpush1.bf16.msra.mxu0 %v13113_v45  ;;  %4381 = vmatpush1.bf16.msra.mxu1 %v13115_v24  ;;  %v489_v45 = vld [vmem:[#allocation5 + $0xa90] sm:$0xff] }
 0x24b   :  { %4177 = vmatprep.subr.bf16.mxu0 %v13122_v47  ;;  %4382 = vmatprep.subr.bf16.mxu1 %v13124_v48  ;;  %v493_v24 = vld [vmem:[#allocation5 + $0xab0] sm:$0xff]  ;;  %v490_v47 = vld [vmem:[#allocation5 + $0xa98] sm:$0xff] }
 0x24c   :  { %v494_v48 = vld [vmem:[#allocation5 + $0xab8] sm:$0xff]  ;;  %v13186_v51 = vcombine.high %v489_v45, %v493_v24  ;;  %v13185_v58 = vcombine.low %v489_v45, %v493_v24 }
 0x24d   :  { %v13188_v53 = vcombine.high %v490_v47, %v494_v48  ;;  %v13187_v59 = vcombine.low %v490_v47, %v494_v48 }
 0x24e   :  { %4178 = vmatpush1.bf16.msra.mxu0 %v13121_v52  ;;  %4383 = vmatpush1.bf16.msra.mxu1 %v13123_v25  ;;  %v497_v52 = vld [vmem:[#allocation5 + $0xad0] sm:$0xff] }
 0x24f   :  { %4179 = vmatprep.subr.bf16.mxu0 %v13130_v54  ;;  %4384 = vmatprep.subr.bf16.mxu1 %v13132_v56  ;;  %v501_v25 = vld [vmem:[#allocation5 + $0xaf0] sm:$0xff]  ;;  %v498_v54 = vld [vmem:[#allocation5 + $0xad8] sm:$0xff] }
 0x250   :  { %v502_v56 = vld [vmem:[#allocation5 + $0xaf8] sm:$0xff]  ;;  %v13194_v60 = vcombine.high %v497_v52, %v501_v25  ;;  %v13193_v1 = vcombine.low %v497_v52, %v501_v25 }
 0x251   :  { %v13196_v61 = vcombine.high %v498_v54, %v502_v56  ;;  %v13195_v2 = vcombine.low %v498_v54, %v502_v56 }
 0x252   :  { %4180 = vmatpush1.bf16.msra.mxu0 %v13129_v62  ;;  %4385 = vmatpush1.bf16.msra.mxu1 %v13131_v63  ;;  %v505_v62 = vld [vmem:[#allocation5 + $0xb10] sm:$0xff] }
 0x253   :  { %4181 = vmatprep.subr.bf16.mxu0 %v13138_v0  ;;  %4386 = vmatprep.subr.bf16.mxu1 %v13140_v32  ;;  %v509_v63 = vld [vmem:[#allocation5 + $0xb30] sm:$0xff]  ;;  %v506_v0 = vld [vmem:[#allocation5 + $0xb18] sm:$0xff] }
 0x254   :  { %v510_v32 = vld [vmem:[#allocation5 + $0xb38] sm:$0xff]  ;;  %v13202_v39 = vcombine.high %v505_v62, %v509_v63  ;;  %v13201_v9 = vcombine.low %v505_v62, %v509_v63 }
 0x255   :  { %v13204_v3 = vcombine.high %v506_v0, %v510_v32  ;;  %v13203_v10 = vcombine.low %v506_v0, %v510_v32  ;;  %v569_v32 = vld [vmem:[#allocation5 + $0xd10] sm:$0xff] }
 0x256   :  { %4182 = vmatpush1.bf16.msra.mxu0 %v13137_v4  ;;  %4387 = vmatpush1.bf16.msra.mxu1 %v13139_v5  ;;  %v513_v4 = vld [vmem:[#allocation5 + $0xb50] sm:$0xff] }
 0x257   :  { %4183 = vmatprep.subr.bf16.mxu0 %v13146_v6  ;;  %4388 = vmatprep.subr.bf16.mxu1 %v13148_v7  ;;  %v517_v5 = vld [vmem:[#allocation5 + $0xb70] sm:$0xff]  ;;  %v514_v6 = vld [vmem:[#allocation5 + $0xb58] sm:$0xff] }
 0x258   :  { %v518_v7 = vld [vmem:[#allocation5 + $0xb78] sm:$0xff]  ;;  %v13210_v11 = vcombine.high %v513_v4, %v517_v5  ;;  %v13209_v19 = vcombine.low %v513_v4, %v517_v5 }
 0x259   :  { %v13212_v13 = vcombine.high %v514_v6, %v518_v7  ;;  %v13211_v20 = vcombine.low %v514_v6, %v518_v7  ;;  %v577_v6 = vld [vmem:[#allocation5 + $0xd50] sm:$0xff] }
 0x25a   :  { %4184 = vmatpush1.bf16.msra.mxu0 %v13145_v14  ;;  %4389 = vmatpush1.bf16.msra.mxu1 %v13147_v16  ;;  %v521_v14 = vld [vmem:[#allocation5 + $0xb90] sm:$0xff] }
 0x25b   :  { %4185 = vmatprep.subr.bf16.mxu0 %v13154_v17  ;;  %4390 = vmatprep.subr.bf16.mxu1 %v13156_v18  ;;  %v525_v16 = vld [vmem:[#allocation5 + $0xbb0] sm:$0xff]  ;;  %v522_v17 = vld [vmem:[#allocation5 + $0xb98] sm:$0xff] }
 0x25c   :  { %v526_v18 = vld [vmem:[#allocation5 + $0xbb8] sm:$0xff]  ;;  %v13218_v21 = vcombine.high %v521_v14, %v525_v16  ;;  %v13217_v29 = vcombine.low %v521_v14, %v525_v16  ;;  %v581_v7 = vld [vmem:[#allocation5 + $0xd70] sm:$0xff] }
 0x25d   :  { %v13220_v22 = vcombine.high %v522_v17, %v526_v18  ;;  %v13219_v30 = vcombine.low %v522_v17, %v526_v18  ;;  %v13274_v14 = vcombine.high %v577_v6, %v581_v7  ;;  %v585_v17 = vld [vmem:[#allocation5 + $0xd90] sm:$0xff] }
 0x25e   :  { %4186 = vmatpush1.bf16.msra.mxu0 %v13153_v23  ;;  %4391 = vmatpush1.bf16.msra.mxu1 %v13155_v26  ;;  %v529_v23 = vld [vmem:[#allocation5 + $0xbd0] sm:$0xff] }
 0x25f   :  { %4187 = vmatprep.subr.bf16.mxu0 %v13162_v27  ;;  %4392 = vmatprep.subr.bf16.mxu1 %v13164_v28  ;;  %v533_v26 = vld [vmem:[#allocation5 + $0xbf0] sm:$0xff]  ;;  %v530_v27 = vld [vmem:[#allocation5 + $0xbd8] sm:$0xff] }
 0x260   :  { %v534_v28 = vld [vmem:[#allocation5 + $0xbf8] sm:$0xff]  ;;  %v13226_v31 = vcombine.high %v529_v23, %v533_v26  ;;  %v13225_v37 = vcombine.low %v529_v23, %v533_v26  ;;  %v589_v18 = vld [vmem:[#allocation5 + $0xdb0] sm:$0xff] }
 0x261   :  { %v13228_v33 = vcombine.high %v530_v27, %v534_v28  ;;  %v13227_v38 = vcombine.low %v530_v27, %v534_v28  ;;  %v13282_v23 = vcombine.high %v585_v17, %v589_v18  ;;  %v593_v28 = vld [vmem:[#allocation5 + $0xdd0] sm:$0xff] }
 0x262   :  { %4188 = vmatpush1.bf16.msra.mxu0 %v13161_v34  ;;  %4393 = vmatpush1.bf16.msra.mxu1 %v13163_v15  ;;  %v537_v34 = vld [vmem:[#allocation5 + $0xc10] sm:$0xff] }
 0x263   :  { %4189 = vmatprep.subr.bf16.mxu0 %v13170_v35  ;;  %4394 = vmatprep.subr.bf16.mxu1 %v13172_v57  ;;  %v541_v15 = vld [vmem:[#allocation5 + $0xc30] sm:$0xff]  ;;  %v538_v35 = vld [vmem:[#allocation5 + $0xc18] sm:$0xff] }
 0x264   :  { %v542_v57 = vld [vmem:[#allocation5 + $0xc38] sm:$0xff]  ;;  %v13234_v40 = vcombine.high %v537_v34, %v541_v15  ;;  %v13233_v45 = vcombine.low %v537_v34, %v541_v15 }
 0x265   :  { %v13236_v41 = vcombine.high %v538_v35, %v542_v57  ;;  %v13235_v24 = vcombine.low %v538_v35, %v542_v57  ;;  %v598_v34 = vld [vmem:[#allocation5 + $0xdf8] sm:$0xff]  ;;  %v13281_v57 = vcombine.low %v585_v17, %v589_v18 }
 0x266   :  { %4190 = vmatpush1.bf16.msra.mxu0 %v13169_v42  ;;  %4395 = vmatpush1.bf16.msra.mxu1 %v13171_v12  ;;  %v545_v42 = vld [vmem:[#allocation5 + $0xc50] sm:$0xff] }
 0x267   :  { %4191 = vmatprep.subr.bf16.mxu0 %v13178_v43  ;;  %4396 = vmatprep.subr.bf16.mxu1 %v13180_v44  ;;  %v549_v12 = vld [vmem:[#allocation5 + $0xc70] sm:$0xff]  ;;  %v546_v43 = vld [vmem:[#allocation5 + $0xc58] sm:$0xff] }
 0x268   :  { %v550_v44 = vld [vmem:[#allocation5 + $0xc78] sm:$0xff]  ;;  %v13242_v47 = vcombine.high %v545_v42, %v549_v12  ;;  %v13241_v52 = vcombine.low %v545_v42, %v549_v12  ;;  %v601_v12 = vld [vmem:[#allocation5 + $0xe10] sm:$0xff] }
 0x269   :  { %v13244_v48 = vcombine.high %v546_v43, %v550_v44  ;;  %v13243_v25 = vcombine.low %v546_v43, %v550_v44  ;;  %v605_v43 = vld [vmem:[#allocation5 + $0xe30] sm:$0xff] }
 0x26a   :  { %4192 = vmatpush1.bf16.msra.mxu0 %v13177_v49  ;;  %4397 = vmatpush1.bf16.msra.mxu1 %v13179_v50  ;;  %v553_v49 = vld [vmem:[#allocation5 + $0xc90] sm:$0xff] }
 0x26b   :  { %4193 = vmatprep.subr.bf16.mxu0 %v13186_v51  ;;  %4398 = vmatprep.subr.bf16.mxu1 %v13188_v53  ;;  %v557_v50 = vld [vmem:[#allocation5 + $0xcb0] sm:$0xff]  ;;  %v554_v51 = vld [vmem:[#allocation5 + $0xc98] sm:$0xff] }
 0x26c   :  { %v558_v53 = vld [vmem:[#allocation5 + $0xcb8] sm:$0xff]  ;;  %v13250_v54 = vcombine.high %v553_v49, %v557_v50  ;;  %v13249_v62 = vcombine.low %v553_v49, %v557_v50  ;;  %v13298_v49 = vcombine.high %v601_v12, %v605_v43 }
 0x26d   :  { %v13252_v56 = vcombine.high %v554_v51, %v558_v53 }
 0x26e   :  { %4194 = vmatpush1.bf16.msra.mxu0 %v13185_v58  ;;  %4399 = vmatpush1.bf16.msra.mxu1 %v13187_v59  ;;  %v561_v58 = vld [vmem:[#allocation5 + $0xcd0] sm:$0xff] }
 0x26f   :  { %4195 = vmatprep.subr.bf16.mxu0 %v13194_v60  ;;  %4400 = vmatprep.subr.bf16.mxu1 %v13196_v61  ;;  %v565_v59 = vld [vmem:[#allocation5 + $0xcf0] sm:$0xff]  ;;  %v562_v60 = vld [vmem:[#allocation5 + $0xcd8] sm:$0xff] }
 0x270   :  { %v566_v61 = vld [vmem:[#allocation5 + $0xcf8] sm:$0xff]  ;;  %v13258_v63 = vcombine.high %v561_v58, %v565_v59 }
 0x271   :  { %v13260_v0 = vcombine.high %v562_v60, %v566_v61  ;;  %v13259_v4 = vcombine.low %v562_v60, %v566_v61  ;;  %v617_v60 = vld [vmem:[#allocation5 + $0xe90] sm:$0xff] }
 0x272   :  { %4196 = vmatpush1.bf16.msra.mxu0 %v13193_v1  ;;  %4401 = vmatpush1.bf16.msra.mxu1 %v13195_v2  ;;  %v573_v1 = vld [vmem:[#allocation5 + $0xd30] sm:$0xff]  ;;  %v570_v2 = vld [vmem:[#allocation5 + $0xd18] sm:$0xff] }
 0x273   :  { %4197 = vmatprep.subr.bf16.mxu0 %v13202_v39  ;;  %4402 = vmatprep.subr.bf16.mxu1 %v13204_v3  ;;  %v574_v39 = vld [vmem:[#allocation5 + $0xd38] sm:$0xff]  ;;  %v13257_v3 = vcombine.low %v561_v58, %v565_v59  ;;  %v13266_v5 = vcombine.high %v569_v32, %v573_v1  ;;  %v621_v61 = vld [vmem:[#allocation5 + $0xeb0] sm:$0xff] }
 0x276   :  { %4198 = vmatpush1.bf16.msra.mxu0 %v13201_v9  ;;  %4403 = vmatpush1.bf16.msra.mxu1 %v13203_v10  ;;  %v578_v9 = vld [vmem:[#allocation5 + $0xd58] sm:$0xff] }
 0x277   :  { %4199 = vmatprep.subr.bf16.mxu0 %v13210_v11  ;;  %4404 = vmatprep.subr.bf16.mxu1 %v13212_v13  ;;  %v582_v10 = vld [vmem:[#allocation5 + $0xd78] sm:$0xff]  ;;  %v13265_v11 = vcombine.low %v569_v32, %v573_v1  ;;  %v13267_v13 = vcombine.low %v570_v2, %v574_v39  ;;  %v13314_v32 = vcombine.high %v617_v60, %v621_v61 }
 0x278   :  { %v13276_v16 = vcombine.high %v578_v9, %v582_v10 }
 0x27a   :  { %4200 = vmatpush1.bf16.msra.mxu0 %v13209_v19  ;;  %4405 = vmatpush1.bf16.msra.mxu1 %v13211_v20  ;;  %v586_v19 = vld [vmem:[#allocation5 + $0xd98] sm:$0xff] }
 0x27b   :  { %4201 = vmatprep.subr.bf16.mxu0 %v13218_v21  ;;  %4406 = vmatprep.subr.bf16.mxu1 %v13220_v22  ;;  %v590_v20 = vld [vmem:[#allocation5 + $0xdb8] sm:$0xff]  ;;  %v13273_v21 = vcombine.low %v577_v6, %v581_v7  ;;  %v13275_v22 = vcombine.low %v578_v9, %v582_v10  ;;  %v633_v9 = vld [vmem:[#allocation5 + $0xf10] sm:$0xff] }
 0x27c   :  { %v13284_v27 = vcombine.high %v586_v19, %v590_v20  ;;  %v637_v10 = vld [vmem:[#allocation5 + $0xf30] sm:$0xff] }
 0x27d   :  { %v13330_v17 = vcombine.high %v633_v9, %v637_v10 }
 0x27e   :  { %4202 = vmatpush1.bf16.msra.mxu0 %v13217_v29  ;;  %4407 = vmatpush1.bf16.msra.mxu1 %v13219_v30  ;;  %v597_v29 = vld [vmem:[#allocation5 + $0xdf0] sm:$0xff] }
 0x27f   :  { %4203 = vmatprep.subr.bf16.mxu0 %v13226_v31  ;;  %4408 = vmatprep.subr.bf16.mxu1 %v13228_v33  ;;  %v594_v33 = vld [vmem:[#allocation5 + $0xdd8] sm:$0xff] }
 0x280   :  { %v13292_v42 = vcombine.high %v594_v33, %v598_v34 }
 0x282   :  { %4204 = vmatpush1.bf16.msra.mxu0 %v13225_v37  ;;  %4409 = vmatpush1.bf16.msra.mxu1 %v13227_v38 }
 0x283   :  { %4214 = vmatprep.subr.bf16.mxu0 %v13234_v40  ;;  %4419 = vmatprep.subr.bf16.mxu1 %v13236_v41  ;;  %v13283_v40 = vcombine.low %v586_v19, %v590_v20  ;;  %v13290_v41 = vcombine.high %v593_v28, %v597_v29  ;;  %v641_v19 = vld [vmem:[#allocation5 + $0xf50] sm:$0xff] }
 0x284   :  { %v645_v20 = vld [vmem:[#allocation5 + $0xf70] sm:$0xff] }
 0x285   :  { %4206 = vmatmul.mubr.bf16.vlgmr.msra.gmra.mrb[4].mxu0 %v15325_v36  ;;  %4411 = vmatmul.mubr.bf16.vlgmr.msra.gmra.mrb[4].mxu1 %v15325_v36  ;;  %v13251_v36 = vcombine.low %v554_v51, %v558_v53  ;;  %v609_v51 = vld [vmem:[#allocation5 + $0xe50] sm:$0xff] }
 0x286   :  { %4215 = vmatpush1.bf16.msra.mxu0 %v13233_v45  ;;  %4420 = vmatpush1.bf16.msra.mxu1 %v13235_v24  ;;  %v602_v45 = vld [vmem:[#allocation5 + $0xe18] sm:$0xff]  ;;  %v613_v53 = vld [vmem:[#allocation5 + $0xe70] sm:$0xff] }
 0x287   :  { %4216 = vmatprep.subr.bf16.mxu0 %v13242_v47  ;;  %4421 = vmatprep.subr.bf16.mxu1 %v13244_v48  ;;  %v606_v24 = vld [vmem:[#allocation5 + $0xe38] sm:$0xff]  ;;  %v13289_v47 = vcombine.low %v593_v28, %v597_v29  ;;  %v13291_v48 = vcombine.low %v594_v33, %v598_v34  ;;  %v13306_v58 = vcombine.high %v609_v51, %v613_v53  ;;  %v649_v33 = vld [vmem:[#allocation5 + $0xf90] sm:$0xff] }
 0x288   :  { %4246 = vmatprep.mubr.bf16.mxu0 %v15331_v46  ;;  %4451 = vmatprep.mubr.bf16.mxu1 %v15331_v46  ;;  %v13268_v46 = vcombine.high %v570_v2, %v574_v39  ;;  %v13300_v50 = vcombine.high %v602_v45, %v606_v24  ;;  %v625_v2 = vld [vmem:[#allocation5 + $0xed0] sm:$0xff]  ;;  %v13338_v28 = vcombine.high %v641_v19, %v645_v20 }
 0x289   :  { %v629_v39 = vld [vmem:[#allocation5 + $0xef0] sm:$0xff] }
 0x28a   :  { %4217 = vmatpush1.bf16.msra.mxu0 %v13241_v52  ;;  %4422 = vmatpush1.bf16.msra.mxu1 %v13243_v25  ;;  %v610_v52 = vld [vmem:[#allocation5 + $0xe58] sm:$0xff]  ;;  %v13322_v6 = vcombine.high %v625_v2, %v629_v39  ;;  %v653_v34 = vld [vmem:[#allocation5 + $0xfb0] sm:$0xff] }
 0x28b   :  { %4218 = vmatprep.subr.bf16.mxu0 %v13250_v54  ;;  %4423 = vmatprep.subr.bf16.mxu1 %v13252_v56  ;;  %v614_v25 = vld [vmem:[#allocation5 + $0xe78] sm:$0xff]  ;;  %v13297_v54 = vcombine.low %v601_v12, %v605_v43  ;;  %v13299_v56 = vcombine.low %v602_v45, %v606_v24  ;;  %v661_v12 = vld [vmem:[#allocation5 + $0xff0] sm:$0xff]  ;;  %v13345_v45 = vcombine.low %v649_v33, %v653_v34 }
 0x28c   :  { %v13308_v59 = vcombine.high %v610_v52, %v614_v25  ;;  %v658_v43 = vld [vmem:[#allocation5 + $0xfd8] sm:$0xff] }
 0x28e   :  { %4219 = vmatpush1.bf16.msra.mxu0 %v13249_v62  ;;  %4424 = vmatpush1.bf16.msra.mxu1 %v13251_v36  ;;  %v618_v62 = vld [vmem:[#allocation5 + $0xe98] sm:$0xff] }
 0x28f   :  { %4220 = vmatprep.subr.bf16.mxu0 %v13258_v63  ;;  %4425 = vmatprep.subr.bf16.mxu1 %v13260_v0  ;;  %v622_v36 = vld [vmem:[#allocation5 + $0xeb8] sm:$0xff]  ;;  %v13305_v63 = vcombine.low %v609_v51, %v613_v53  ;;  %v13307_v0 = vcombine.low %v610_v52, %v614_v25 }
 0x290   :  { %v13316_v1 = vcombine.high %v618_v62, %v622_v36  ;;  %v666_v51 = vld [vmem:[#allocation5 + $0x1018] sm:$0xff] }
 0x291   :  { %v670_v53 = vld [vmem:[#allocation5 + $0x1038] sm:$0xff] }
 0x292   :  { %4221 = vmatpush1.bf16.msra.mxu0 %v13257_v3  ;;  %4426 = vmatpush1.bf16.msra.mxu1 %v13259_v4  ;;  %v626_v3 = vld [vmem:[#allocation5 + $0xed8] sm:$0xff] }
 0x293   :  { %4222 = vmatprep.subr.bf16.mxu0 %v13266_v5  ;;  %4427 = vmatprep.subr.bf16.mxu1 %v13268_v46  ;;  %v630_v4 = vld [vmem:[#allocation5 + $0xef8] sm:$0xff]  ;;  %v13313_v5 = vcombine.low %v617_v60, %v621_v61  ;;  %v13315_v46 = vcombine.low %v618_v62, %v622_v36  ;;  %v13363_v36 = vcombine.low %v666_v51, %v670_v53 }
 0x294   :  { %v13324_v7 = vcombine.high %v626_v3, %v630_v4  ;;  %v674_v60 = vld [vmem:[#allocation5 + $0x1058] sm:$0xff] }
 0x295   :  { %v678_v61 = vld [vmem:[#allocation5 + $0x1078] sm:$0xff] }
 0x296   :  { %4223 = vmatpush1.bf16.msra.mxu0 %v13265_v11  ;;  %4428 = vmatpush1.bf16.msra.mxu1 %v13267_v13  ;;  %v634_v11 = vld [vmem:[#allocation5 + $0xf18] sm:$0xff] }
 0x297   :  { %4224 = vmatprep.subr.bf16.mxu0 %v13274_v14  ;;  %4429 = vmatprep.subr.bf16.mxu1 %v13276_v16  ;;  %v638_v13 = vld [vmem:[#allocation5 + $0xf38] sm:$0xff]  ;;  %v13321_v14 = vcombine.low %v625_v2, %v629_v39  ;;  %v13323_v16 = vcombine.low %v626_v3, %v630_v4  ;;  %v13371_v4 = vcombine.low %v674_v60, %v678_v61 }
 0x298   :  { %v15359_v26 = vpop.f32.mrb[0].mxu0  ;;  %v15361_v30 = vpop.f32.mrb[0].mxu1  ;;  %v13332_v18 = vcombine.high %v634_v11, %v638_v13  ;;  %v682_v2 = vld [vmem:[#allocation5 + $0x1098] sm:$0xff] }
 0x299   :  { %v15363_v31 = vpop.f32.mrb[1].mxu0  ;;  %v15365_v15 = vpop.f32.mrb[1].mxu1  ;;  %v686_v39 = vld [vmem:[#allocation5 + $0x10b8] sm:$0xff] }
 0x29a   :  { %v3883_v35 = vpop.f32.mrb[2].mxu0  ;;  %4225 = vmatpush1.bf16.msra.mxu0 %v13273_v21  ;;  %v4088_v37 = vpop.f32.mrb[2].mxu1  ;;  %4430 = vmatpush1.bf16.msra.mxu1 %v13275_v22  ;;  %v642_v21 = vld [vmem:[#allocation5 + $0xf58] sm:$0xff] }
 0x29b   :  { %v3884_v38 = vpop.f32.mrb[3].mxu0  ;;  %4226 = vmatprep.subr.bf16.mxu0 %v13282_v23  ;;  %4431 = vmatprep.subr.bf16.mxu1 %v13284_v27  ;;  %v4089_v44 = vpop.f32.mrb[3].mxu1  ;;  %v646_v22 = vld [vmem:[#allocation5 + $0xf78] sm:$0xff]  ;;  %v13329_v23 = vcombine.low %v633_v9, %v637_v10  ;;  %v13331_v27 = vcombine.low %v634_v11, %v638_v13  ;;  %v13337_v37 = vcombine.low %v641_v19, %v645_v20  ;;  %v729_v11 = vlaneseq }
 0x29c   :  { %v13340_v29 = vcombine.high %v642_v21, %v646_v22  ;;  %v650_v35 = vld [vmem:[#allocation5 + $0xf98] sm:$0xff]  ;;  %v13339_v38 = vcombine.low %v642_v21, %v646_v22 }
 0x29d   :  { %v662_v44 = vld [vmem:[#allocation5 + $0xff8] sm:$0xff]  ;;  %v15371_v21 = vshrl.u32 %v729_v11, 7 }
 0x29e   :  { %4227 = vmatpush1.bf16.msra.mxu0 %v13281_v57  ;;  %4432 = vmatpush1.bf16.msra.mxu1 %v13283_v40  ;;  %v654_v57 = vld [vmem:[#allocation5 + $0xfb8] sm:$0xff]  ;;  %v13346_v40 = vcombine.high %v649_v33, %v653_v34  ;;  %v13355_v25 = vcombine.low %v658_v43, %v662_v44 }
 0x29f   :  { %4228 = vmatprep.subr.bf16.mxu0 %v13290_v41  ;;  %4433 = vmatprep.subr.bf16.mxu1 %v13292_v42  ;;  %v13348_v41 = vcombine.high %v650_v35, %v654_v57  ;;  %v657_v42 = vld [vmem:[#allocation5 + $0xfd0] sm:$0xff]  ;;  %v13347_v24 = vcombine.low %v650_v35, %v654_v57  ;;  %v690_v9 = vld [vmem:[#allocation5 + $0x10d8] sm:$0xff]  ;;  %v15374_v35 = vsub.s32 1, %v15371_v21 }
 0x2a0   :  { %v13353_v52 = vcombine.low %v657_v42, %v661_v12  ;;  %v694_v10 = vld [vmem:[#allocation5 + $0x10f8] sm:$0xff] }
 0x2a1   :  { %v698_v19 = vld [vmem:[#allocation5 + $0x1118] sm:$0xff] }
 0x2a2   :  { %4229 = vmatpush1.bf16.msra.mxu0 %v13289_v47  ;;  %4434 = vmatpush1.bf16.msra.mxu1 %v13291_v48  ;;  %v13354_v47 = vcombine.high %v657_v42, %v661_v12  ;;  %v13356_v48 = vcombine.high %v658_v43, %v662_v44  ;;  %v702_v20 = vld [vmem:[#allocation5 + $0x1138] sm:$0xff]  ;;  %v713_v42 = vld [vmem:[#allocation5 + $0x1190] sm:$0xff] }
 0x2a3   :  { %4230 = vmatprep.subr.bf16.mxu0 %v13298_v49  ;;  %4435 = vmatprep.subr.bf16.mxu1 %v13300_v50  ;;  %v665_v49 = vld [vmem:[#allocation5 + $0x1010] sm:$0xff]  ;;  %v706_v33 = vld [vmem:[#allocation5 + $0x1158] sm:$0xff] }
 0x2a4   :  { %v669_v50 = vld [vmem:[#allocation5 + $0x1030] sm:$0xff]  ;;  %v710_v34 = vld [vmem:[#allocation5 + $0x1178] sm:$0xff] }
 0x2a5   :  { %v13361_v62 = vcombine.low %v665_v49, %v669_v50  ;;  %v717_v12 = vld [vmem:[#allocation5 + $0x11b0] sm:$0xff]  ;;  %v714_v43 = vld [vmem:[#allocation5 + $0x1198] sm:$0xff] }
 0x2a6   :  { %4231 = vmatpush1.bf16.msra.mxu0 %v13297_v54  ;;  %4436 = vmatpush1.bf16.msra.mxu1 %v13299_v56  ;;  %v13362_v54 = vcombine.high %v665_v49, %v669_v50  ;;  %v13364_v56 = vcombine.high %v666_v51, %v670_v53  ;;  %v718_v44 = vld [vmem:[#allocation5 + $0x11b8] sm:$0xff]  ;;  %v721_v50 = vld [vmem:[#allocation5 + $0x11d0] sm:$0xff] }
 0x2a7   :  { %4232 = vmatprep.subr.bf16.mxu0 %v13306_v58  ;;  %4437 = vmatprep.subr.bf16.mxu1 %v13308_v59  ;;  %v673_v58 = vld [vmem:[#allocation5 + $0x1050] sm:$0xff]  ;;  %v13412_v49 = vcombine.high %v714_v43, %v718_v44  ;;  %v722_v53 = vld [vmem:[#allocation5 + $0x11d8] sm:$0xff] }
 0x2a8   :  { %v677_v59 = vld [vmem:[#allocation5 + $0x1070] sm:$0xff] }
 0x2a9   :  { %v13369_v3 = vcombine.low %v673_v58, %v677_v59  ;;  %v725_v51 = vld [vmem:[#allocation5 + $0x11f0] sm:$0xff] }
 0x2aa   :  { %4233 = vmatpush1.bf16.msra.mxu0 %v13305_v63  ;;  %4438 = vmatpush1.bf16.msra.mxu1 %v13307_v0  ;;  %v13370_v63 = vcombine.high %v673_v58, %v677_v59  ;;  %v13372_v0 = vcombine.high %v674_v60, %v678_v61  ;;  %v13418_v58 = vcombine.high %v721_v50, %v725_v51  ;;  %v4533_v60 = vld [vmem:[#allocation8] sm:$0xff] }
 0x2ab   :  { %4234 = vmatprep.subr.bf16.mxu0 %v13314_v32  ;;  %4439 = vmatprep.subr.bf16.mxu1 %v13316_v1  ;;  %v681_v32 = vld [vmem:[#allocation5 + $0x1090] sm:$0xff]  ;;  %v4537_v61 = vld [vmem:[#allocation8 + $0x20] sm:$0xff] }
 0x2ac   :  { %v685_v1 = vld [vmem:[#allocation5 + $0x10b0] sm:$0xff] }
 0x2ad   :  { %v13377_v13 = vcombine.low %v681_v32, %v685_v1 }
 0x2ae   :  { %4235 = vmatpush1.bf16.msra.mxu0 %v13313_v5  ;;  %4440 = vmatpush1.bf16.msra.mxu1 %v13315_v46  ;;  %v13378_v5 = vcombine.high %v681_v32, %v685_v1  ;;  %v13380_v46 = vcombine.high %v682_v2, %v686_v39 }
 0x2af   :  { %4236 = vmatprep.subr.bf16.mxu0 %v13322_v6  ;;  %4441 = vmatprep.subr.bf16.mxu1 %v13324_v7  ;;  %v689_v6 = vld [vmem:[#allocation5 + $0x10d0] sm:$0xff] }
 0x2b0   :  { %v693_v7 = vld [vmem:[#allocation5 + $0x10f0] sm:$0xff] }
 0x2b1   :  { %v13385_v22 = vcombine.low %v689_v6, %v693_v7 }
 0x2b2   :  { %4237 = vmatpush1.bf16.msra.mxu0 %v13321_v14  ;;  %4442 = vmatpush1.bf16.msra.mxu1 %v13323_v16  ;;  %v13386_v14 = vcombine.high %v689_v6, %v693_v7  ;;  %v13388_v16 = vcombine.high %v690_v9, %v694_v10 }
 0x2b3   :  { %4238 = vmatprep.subr.bf16.mxu0 %v13330_v17  ;;  %4443 = vmatprep.subr.bf16.mxu1 %v13332_v18  ;;  %v697_v17 = vld [vmem:[#allocation5 + $0x1110] sm:$0xff] }
 0x2b4   :  { %v701_v18 = vld [vmem:[#allocation5 + $0x1130] sm:$0xff] }
 0x2b5   :  { %v13393_v57 = vcombine.low %v697_v17, %v701_v18 }
 0x2b6   :  { %4239 = vmatpush1.bf16.msra.mxu0 %v13329_v23  ;;  %4444 = vmatpush1.bf16.msra.mxu1 %v13331_v27  ;;  %v13394_v23 = vcombine.high %v697_v17, %v701_v18  ;;  %v13396_v27 = vcombine.high %v698_v19, %v702_v20 }
 0x2b7   :  { %4240 = vmatprep.subr.bf16.mxu0 %v13338_v28  ;;  %4445 = vmatprep.subr.bf16.mxu1 %v13340_v29  ;;  %v705_v28 = vld [vmem:[#allocation5 + $0x1150] sm:$0xff] }
 0x2b8   :  { %v709_v29 = vld [vmem:[#allocation5 + $0x1170] sm:$0xff] }
 0x2ba   :  { %4241 = vmatpush1.bf16.msra.mxu0 %v13337_v37  ;;  %4446 = vmatpush1.bf16.msra.mxu1 %v13339_v38  ;;  %v15376_v37 = vld [vmem:[#allocation7] sm:$0xff]  ;;  %v13395_v38 = vcombine.low %v698_v19, %v702_v20 }
 0x2bb   :  { %4242 = vmatprep.subr.bf16.mxu0 %v13346_v40  ;;  %4447 = vmatprep.subr.bf16.mxu1 %v13348_v41  ;;  %v13402_v40 = vcombine.high %v705_v28, %v709_v29  ;;  %v13404_v41 = vcombine.high %v706_v33, %v710_v34 }
 0x2be   :  { %4243 = vmatpush1.bf16.msra.mxu0 %v13345_v45  ;;  %4448 = vmatpush1.bf16.msra.mxu1 %v13347_v24  ;;  %v736_v45 = vrot.slane %v15376_v37, %v15374_v35  ;;  %v13401_v24 = vcombine.low %v705_v28, %v709_v29 }
 0x2bf   :  { %4244 = vmatprep.subr.bf16.mxu0 %v13354_v47  ;;  %4449 = vmatprep.subr.bf16.mxu1 %v13356_v48  ;;  %v13403_v47 = vcombine.low %v706_v33, %v710_v34  ;;  %v13410_v48 = vcombine.high %v713_v42, %v717_v12 }
 0x2c2   :  { %4245 = vmatpush1.bf16.msra.mxu0 %v13353_v52  ;;  %4450 = vmatpush1.bf16.msra.mxu1 %v13355_v25  ;;  %v726_v52 = vld [vmem:[#allocation5 + $0x11f8] sm:$0xff]  ;;  %v14599_v25 = vadd.f32 %v15363_v31, %v736_v45  ;;  %v13422_v31 = vcombine.high %v4533_v60, %v4537_v61  ;;  %v4573_v45 = vld [vmem:[#allocation8 + $0x140] sm:$0xff] }
 0x2c3   :  { %4255 = vmatprep.subr.bf16.mxu0 %v13362_v54  ;;  %4460 = vmatprep.subr.bf16.mxu1 %v13364_v56  ;;  %v13409_v54 = vcombine.low %v713_v42, %v717_v12  ;;  %v13411_v56 = vcombine.low %v714_v43, %v718_v44  ;;  %v13420_v59 = vcombine.high %v722_v53, %v726_v52 }
 0x2c4   :  { %vm4502_vm0 = vcmp.ge.f32.partialorder %v14599_v25, 0.0  ;;  %v13419_v32 = vcombine.low %v722_v53, %v726_v52  ;;  %v4581_v52 = vld [vmem:[#allocation8 + $0x180] sm:$0xff] }
 0x2c5   :  { %4247 = vmatmul.mubr.bf16.vlgmr.msra.gmra.mrb[4].mxu0 %v15339_v55  ;;  %4452 = vmatmul.mubr.bf16.vlgmr.msra.gmra.mrb[4].mxu1 %v15339_v55  ;;  %v13379_v55 = vcombine.low %v682_v2, %v686_v39  ;;  %v4541_v2 = vld [vmem:[#allocation8 + $0x40] sm:$0xff] }
 0x2c6   :  { %4256 = vmatpush1.bf16.msra.mxu0 %v13361_v62  ;;  %4461 = vmatpush1.bf16.msra.mxu1 %v13363_v36  ;;  %v4534_v62 = vld [vmem:[#allocation8 + $0x8] sm:$0xff]  ;;  %v4545_v39 = vld [vmem:[#allocation8 + $0x60] sm:$0xff] }
 0x2c7   :  { %4257 = vmatprep.subr.bf16.mxu0 %v13370_v63  ;;  %4462 = vmatprep.subr.bf16.mxu1 %v13372_v0  ;;  %v4538_v36 = vld [vmem:[#allocation8 + $0x28] sm:$0xff]  ;;  %v4510_v63 = vmul.f32 0.2, %v14599_v25  ;;  %v13417_v0 = vcombine.low %v721_v50, %v725_v51  ;;  %v13430_v7 = vcombine.high %v4541_v2, %v4545_v39  ;;  %v13429_v17 = vcombine.low %v4541_v2, %v4545_v39  ;;  %v4597_v39 = vld [vmem:[#allocation8 + $0x200] sm:$0xff] }
 0x2c8   :  { %4287 = vmatprep.mubr.bf16.mxu0 %v15118_v8  ;;  %4492 = vmatprep.mubr.bf16.mxu1 %v15118_v8  ;;  %v13387_v8 = vcombine.low %v690_v9, %v694_v10  ;;  %v13424_v1 = vcombine.high %v4534_v62, %v4538_v36  ;;  %v13423_v6 = vcombine.low %v4534_v62, %v4538_v36  ;;  %v4549_v9 = vld [vmem:[#allocation8 + $0x80] sm:$0xff] }
 0x2c9   :  { %v4553_v10 = vld [vmem:[#allocation8 + $0xa0] sm:$0xff] }
 0x2ca   :  { %4258 = vmatpush1.bf16.msra.mxu0 %v13369_v3  ;;  %4463 = vmatpush1.bf16.msra.mxu1 %v13371_v4  ;;  %v4518_v3 = vsel %vm4502_vm0, %v14599_v25, %v4510_v63  ;;  %v13421_v4 = vcombine.low %v4533_v60, %v4537_v61  ;;  %v13438_v19 = vcombine.high %v4549_v9, %v4553_v10  ;;  %v4585_v25 = vld [vmem:[#allocation8 + $0x1a0] sm:$0xff]  ;;  %v4590_v63 = vld [vmem:[#allocation8 + $0x1c8] sm:$0xff] }
 0x2cb   :  { %4259 = vmatprep.subr.bf16.mxu0 %v13378_v5  ;;  %4464 = vmatprep.subr.bf16.mxu1 %v13380_v46  ;;  %v4542_v5 = vld [vmem:[#allocation8 + $0x48] sm:$0xff]  ;;  %v15381_v11 = vpack.c.bf16 %v4518_v3, %v4518_v3  ;;  %v13437_v28 = vcombine.low %v4549_v9, %v4553_v10  ;;  %v13470_v60 = vcombine.high %v4581_v52, %v4585_v25  ;;  %v4589_v62 = vld [vmem:[#allocation8 + $0x1c0] sm:$0xff] }
 0x2cc   :  { %v4546_v46 = vld [vmem:[#allocation8 + $0x68] sm:$0xff]  ;;  %v4593_v36 = vld [vmem:[#allocation8 + $0x1e0] sm:$0xff] }
 0x2cd   :  { %v13431_v18 = vcombine.low %v4542_v5, %v4546_v46  ;;  %v4601_v3 = vld [vmem:[#allocation8 + $0x220] sm:$0xff] }
 0x2ce   :  { %4260 = vmatpush1.bf16.msra.mxu0 %v13377_v13  ;;  %4465 = vmatpush1.bf16.msra.mxu1 %v13379_v55  ;;  %v14870_v13 = vld [vmem:[#allocation2 + $0x20] ss:$0 sps:$4 sm:$0xff]   ;;  %v13432_v55 = vcombine.high %v4542_v5, %v4546_v46  ;;  %v4602_v5 = vld [vmem:[#allocation8 + $0x228] sm:$0xff]  ;;  %v13477_v46 = vcombine.low %v4589_v62, %v4593_v36  ;;  %v4605_v10 = vld [vmem:[#allocation8 + $0x240] sm:$0xff] }
 0x2cf   :  { %4261 = vmatprep.subr.bf16.mxu0 %v13386_v14  ;;  %4466 = vmatprep.subr.bf16.mxu1 %v13388_v16  ;;  %v4550_v14 = vld [vmem:[#allocation8 + $0x88] sm:$0xff] }
 0x2d0   :  { %v4554_v16 = vld [vmem:[#allocation8 + $0xa8] sm:$0xff] }
 0x2d1   :  { %v13440_v20 = vcombine.high %v4550_v14, %v4554_v16  ;;  %v13439_v29 = vcombine.low %v4550_v14, %v4554_v16  ;;  %v4610_v14 = vld [vmem:[#allocation8 + $0x268] sm:$0xff]  ;;  %v13485_v16 = vcombine.low %v4597_v39, %v4601_v3 }
 0x2d2   :  { %4262 = vmatpush1.bf16.msra.mxu0 %v13385_v22  ;;  %4467 = vmatpush1.bf16.msra.mxu1 %v13387_v8  ;;  %v4557_v22 = vld [vmem:[#allocation8 + $0xc0] sm:$0xff] }
 0x2d3   :  { %4263 = vmatprep.subr.bf16.mxu0 %v13394_v23  ;;  %4468 = vmatprep.subr.bf16.mxu1 %v13396_v27  ;;  %v4561_v8 = vld [vmem:[#allocation8 + $0xe0] sm:$0xff]  ;;  %v4558_v23 = vld [vmem:[#allocation8 + $0xc8] sm:$0xff] }
 0x2d4   :  { %v4562_v27 = vld [vmem:[#allocation8 + $0xe8] sm:$0xff]  ;;  %v13446_v33 = vcombine.high %v4557_v22, %v4561_v8  ;;  %v13445_v42 = vcombine.low %v4557_v22, %v4561_v8  ;;  %v4617_v22 = vld [vmem:[#allocation8 + $0x2a0] sm:$0xff] }
 0x2d5   :  { %v13448_v34 = vcombine.high %v4558_v23, %v4562_v27  ;;  %v13447_v12 = vcombine.low %v4558_v23, %v4562_v27  ;;  %v4614_v8 = vld [vmem:[#allocation8 + $0x288] sm:$0xff] }
 0x2d6   :  { %4264 = vmatpush1.bf16.msra.mxu0 %v13393_v57  ;;  %4469 = vmatpush1.bf16.msra.mxu1 %v13395_v38  ;;  %v4565_v57 = vld [vmem:[#allocation8 + $0x100] sm:$0xff]  ;;  %v4618_v23 = vld [vmem:[#allocation8 + $0x2a8] sm:$0xff] }
 0x2d7   :  { %4265 = vmatprep.subr.bf16.mxu0 %v13402_v40  ;;  %4470 = vmatprep.subr.bf16.mxu1 %v13404_v41  ;;  %v4569_v38 = vld [vmem:[#allocation8 + $0x120] sm:$0xff]  ;;  %v4566_v40 = vld [vmem:[#allocation8 + $0x108] sm:$0xff] }
 0x2d8   :  { %v4570_v41 = vld [vmem:[#allocation8 + $0x128] sm:$0xff]  ;;  %v13454_v43 = vcombine.high %v4565_v57, %v4569_v38 }
 0x2d9   :  { %v13456_v44 = vcombine.high %v4566_v40, %v4570_v41  ;;  %v13455_v50 = vcombine.low %v4566_v40, %v4570_v41  ;;  %v4626_v40 = vld [vmem:[#allocation8 + $0x2e8] sm:$0xff] }
 0x2da   :  { %4266 = vmatpush1.bf16.msra.mxu0 %v13401_v24  ;;  %4471 = vmatpush1.bf16.msra.mxu1 %v13403_v47  ;;  %v4577_v24 = vld [vmem:[#allocation8 + $0x160] sm:$0xff]  ;;  %v4574_v47 = vld [vmem:[#allocation8 + $0x148] sm:$0xff] }
 0x2db   :  { %4267 = vmatprep.subr.bf16.mxu0 %v13410_v48  ;;  %4472 = vmatprep.subr.bf16.mxu1 %v13412_v49  ;;  %v4578_v48 = vld [vmem:[#allocation8 + $0x168] sm:$0xff]  ;;  %v13453_v49 = vcombine.low %v4565_v57, %v4569_v38  ;;  %v13462_v51 = vcombine.high %v4573_v45, %v4577_v24  ;;  %v4625_v57 = vld [vmem:[#allocation8 + $0x2e0] sm:$0xff] }
 0x2dc   :  { %v13464_v53 = vcombine.high %v4574_v47, %v4578_v48  ;;  %v4622_v38 = vld [vmem:[#allocation8 + $0x2c8] sm:$0xff] }
 0x2de   :  { %4268 = vmatpush1.bf16.msra.mxu0 %v13409_v54  ;;  %4473 = vmatpush1.bf16.msra.mxu1 %v13411_v56  ;;  %v4582_v54 = vld [vmem:[#allocation8 + $0x188] sm:$0xff] }
 0x2df   :  { %4269 = vmatprep.subr.bf16.mxu0 %v13418_v58  ;;  %4474 = vmatprep.subr.bf16.mxu1 %v13420_v59  ;;  %v4586_v56 = vld [vmem:[#allocation8 + $0x1a8] sm:$0xff]  ;;  %v13461_v58 = vcombine.low %v4573_v45, %v4577_v24  ;;  %v13463_v59 = vcombine.low %v4574_v47, %v4578_v48  ;;  %v4633_v45 = vld [vmem:[#allocation8 + $0x320] sm:$0xff] }
 0x2e0   :  { %v13472_v61 = vcombine.high %v4582_v54, %v4586_v56  ;;  %v4630_v24 = vld [vmem:[#allocation8 + $0x308] sm:$0xff] }
 0x2e1   :  { %v4634_v47 = vld [vmem:[#allocation8 + $0x328] sm:$0xff] }
 0x2e2   :  { %4270 = vmatpush1.bf16.msra.mxu0 %v13417_v0  ;;  %4475 = vmatpush1.bf16.msra.mxu1 %v13419_v32  ;;  %v4594_v0 = vld [vmem:[#allocation8 + $0x1e8] sm:$0xff]  ;;  %v13469_v32 = vcombine.low %v4581_v52, %v4585_v25  ;;  %v4637_v52 = vld [vmem:[#allocation8 + $0x340] sm:$0xff] }
 0x2e3   :  { %7647 = vmatprep.subr.bf16.mxu0 %v13422_v31  ;;  %7811 = vmatprep.subr.bf16.mxu1 %v13424_v1  ;;  %v13471_v31 = vcombine.low %v4582_v54, %v4586_v56  ;;  %v13478_v1 = vcombine.high %v4589_v62, %v4593_v36  ;;  %v13480_v2 = vcombine.high %v4590_v63, %v4594_v0  ;;  %v4641_v25 = vld [vmem:[#allocation8 + $0x360] sm:$0xff]  ;;  %v4638_v54 = vld [vmem:[#allocation8 + $0x348] sm:$0xff] }
 0x2e4   :  { %v4642_v56 = vld [vmem:[#allocation8 + $0x368] sm:$0xff] }
 0x2e5   :  { %4288 = vmatmul.mubr.bf16.vlgmr.msra.gmra.mrb[4].mxu0 %v14870_v13  ;;  %4493 = vmatmul.mubr.bf16.vlgmr.msra.gmra.mrb[4].mxu1 %v14870_v13  ;;  %v4609_v13 = vld [vmem:[#allocation8 + $0x260] sm:$0xff]  ;;  %v13528_v36 = vcombine.high %v4638_v54, %v4642_v56 }
 0x2e6   :  { %7648 = vmatpush1.bf16.msra.mxu0 %v13421_v4  ;;  %7679 = vmatprep.mubr.bf16.mxu0 %v15381_v11  ;;  %v4598_v4 = vld [vmem:[#allocation8 + $0x208] sm:$0xff]  ;;  %v13493_v27 = vcombine.low %v4605_v10, %v4609_v13 }
 0x2e7   :  { %7812 = vmatpush1.bf16.msra.mxu1 %v13423_v6  ;;  %7843 = vmatprep.mubr.bf16.mxu1 %v15381_v11  ;;  %v13479_v6 = vcombine.low %v4590_v63, %v4594_v0  ;;  %v13488_v9 = vcombine.high %v4598_v4, %v4602_v5  ;;  %v4645_v63 = vld [vmem:[#allocation8 + $0x380] sm:$0xff] }
 0x2e8   :  { %7649 = vmatprep.subr.bf16.mxu0 %v13430_v7  ;;  %7813 = vmatprep.subr.bf16.mxu1 %v13432_v55  ;;  %v13486_v7 = vcombine.high %v4597_v39, %v4601_v3  ;;  %v4606_v55 = vld [vmem:[#allocation8 + $0x248] sm:$0xff]  ;;  %v4649_v0 = vld [vmem:[#allocation8 + $0x3a0] sm:$0xff]  ;;  %v13527_v39 = vcombine.low %v4638_v54, %v4642_v56 }
 0x2e9   :  { %v13534_v3 = vcombine.high %v4645_v63, %v4649_v0  ;;  %v4689_v54 = vld [vmem:[#allocation8 + $0x4e0] sm:$0xff]  ;;  %v4686_v56 = vld [vmem:[#allocation8 + $0x4c8] sm:$0xff] }
 0x2ea   :  { %7650 = vmatpush1.bf16.msra.mxu0 %v13429_v17  ;;  %v13487_v17 = vcombine.low %v4598_v4, %v4602_v5 }
 0x2eb   :  { %7814 = vmatpush1.bf16.msra.mxu1 %v13431_v18  ;;  %7651 = vmatprep.subr.bf16.mxu0 %v13438_v19  ;;  %v13494_v18 = vcombine.high %v4605_v10, %v4609_v13  ;;  %v13496_v19 = vcombine.high %v4606_v55, %v4610_v14  ;;  %v13533_v13 = vcombine.low %v4645_v63, %v4649_v0  ;;  %v4693_v63 = vld [vmem:[#allocation8 + $0x500] sm:$0xff] }
 0x2ec   :  { %7815 = vmatprep.subr.bf16.mxu1 %v13440_v20  ;;  %v4613_v20 = vld [vmem:[#allocation8 + $0x280] sm:$0xff] }
 0x2ed   :  { %v13501_v41 = vcombine.low %v4613_v20, %v4617_v22  ;;  %v4697_v0 = vld [vmem:[#allocation8 + $0x520] sm:$0xff] }
 0x2ee   :  { %7652 = vmatpush1.bf16.msra.mxu0 %v13437_v28  ;;  %v13495_v28 = vcombine.low %v4606_v55, %v4610_v14 }
 0x2ef   :  { %7816 = vmatpush1.bf16.msra.mxu1 %v13439_v29  ;;  %7653 = vmatprep.subr.bf16.mxu0 %v13446_v33  ;;  %v13502_v29 = vcombine.high %v4613_v20, %v4617_v22  ;;  %v13504_v33 = vcombine.high %v4614_v8, %v4618_v23  ;;  %v4666_v20 = vld [vmem:[#allocation8 + $0x428] sm:$0xff] }
 0x2f0   :  { %7817 = vmatprep.subr.bf16.mxu1 %v13448_v34  ;;  %v4621_v34 = vld [vmem:[#allocation8 + $0x2c0] sm:$0xff] }
 0x2f1   :  { %v13509_v48 = vcombine.low %v4621_v34, %v4625_v57 }
 0x2f2   :  { %7654 = vmatpush1.bf16.msra.mxu0 %v13445_v42  ;;  %v13503_v42 = vcombine.low %v4614_v8, %v4618_v23 }
 0x2f3   :  { %7818 = vmatpush1.bf16.msra.mxu1 %v13447_v12  ;;  %7655 = vmatprep.subr.bf16.mxu0 %v13454_v43  ;;  %v13510_v12 = vcombine.high %v4621_v34, %v4625_v57  ;;  %v13512_v43 = vcombine.high %v4622_v38, %v4626_v40 }
 0x2f4   :  { %7819 = vmatprep.subr.bf16.mxu1 %v13456_v44  ;;  %v4629_v44 = vld [vmem:[#allocation8 + $0x300] sm:$0xff] }
 0x2f6   :  { %7656 = vmatpush1.bf16.msra.mxu0 %v13453_v49  ;;  %v13511_v49 = vcombine.low %v4622_v38, %v4626_v40  ;;  %v4670_v38 = vld [vmem:[#allocation8 + $0x448] sm:$0xff] }
 0x2f7   :  { %7820 = vmatpush1.bf16.msra.mxu1 %v13455_v50  ;;  %7657 = vmatprep.subr.bf16.mxu0 %v13462_v51  ;;  %v13518_v50 = vcombine.high %v4629_v44, %v4633_v45  ;;  %v15386_v51 = vsub.s32 0, %v15371_v21  ;;  %v4674_v40 = vld [vmem:[#allocation8 + $0x468] sm:$0xff] }
 0x2f8   :  { %7821 = vmatprep.subr.bf16.mxu1 %v13464_v53  ;;  %v13520_v53 = vcombine.high %v4630_v24, %v4634_v47 }
 0x2f9   :  { %v732_v62 = vrot.slane %v15376_v37, %v15386_v51 }
 0x2fa   :  { %7658 = vmatpush1.bf16.msra.mxu0 %v13461_v58  ;;  %v15389_v58 = vsub.s32 3, %v15371_v21 }
 0x2fb   :  { %7822 = vmatpush1.bf16.msra.mxu1 %v13463_v59  ;;  %7659 = vmatprep.subr.bf16.mxu0 %v13470_v60  ;;  %v13517_v59 = vcombine.low %v4629_v44, %v4633_v45  ;;  %v13519_v60 = vcombine.low %v4630_v24, %v4634_v47  ;;  %v14598_v4 = vadd.f32 %v15359_v26, %v732_v62  ;;  %v4662_v26 = vld [vmem:[#allocation8 + $0x408] sm:$0xff]  ;;  %v4681_v44 = vld [vmem:[#allocation8 + $0x4a0] sm:$0xff] }
 0x2fc   :  { %7823 = vmatprep.subr.bf16.mxu1 %v13472_v61  ;;  %v13526_v61 = vcombine.high %v4637_v52, %v4641_v25  ;;  %v13560_v24 = vcombine.high %v4670_v38, %v4674_v40  ;;  %v4678_v47 = vld [vmem:[#allocation8 + $0x488] sm:$0xff] }
 0x2fd   :  { %vm4501_vm1 = vcmp.ge.f32.partialorder %v14598_v4, 0.0 }
 0x2fe   :  { %7660 = vmatpush1.bf16.msra.mxu0 %v13469_v32  ;;  %v4646_v32 = vld [vmem:[#allocation8 + $0x388] sm:$0xff] }
 0x2ff   :  { %7824 = vmatpush1.bf16.msra.mxu1 %v13471_v31  ;;  %7661 = vmatprep.subr.bf16.mxu0 %v13478_v1  ;;  %v4650_v31 = vld [vmem:[#allocation8 + $0x3a8] sm:$0xff]  ;;  %v744_v1 = vrot.slane %v15376_v37, %v15389_v58 }
 0x300   :  { %7825 = vmatprep.subr.bf16.mxu1 %v13480_v2  ;;  %v13525_v2 = vcombine.low %v4637_v52, %v4641_v25  ;;  %v13536_v5 = vcombine.high %v4646_v32, %v4650_v31  ;;  %v13535_v55 = vcombine.low %v4646_v32, %v4650_v31  ;;  %v4685_v25 = vld [vmem:[#allocation8 + $0x4c0] sm:$0xff]  ;;  %v4694_v32 = vld [vmem:[#allocation8 + $0x508] sm:$0xff] }
 0x301   :  { %v14601_v10 = vadd.f32 %v15365_v15, %v744_v1  ;;  %v13574_v62 = vcombine.high %v4685_v25, %v4689_v54  ;;  %v4698_v31 = vld [vmem:[#allocation8 + $0x528] sm:$0xff]  ;;  %v13573_v1 = vcombine.low %v4685_v25, %v4689_v54  ;;  %v4741_v54 = vld [vmem:[#allocation8 + $0x680] sm:$0xff] }
 0x302   :  { %7662 = vmatpush1.bf16.msra.mxu0 %v13477_v46  ;;  %v4653_v46 = vld [vmem:[#allocation8 + $0x3c0] sm:$0xff] }
 0x303   :  { %7826 = vmatpush1.bf16.msra.mxu1 %v13479_v6  ;;  %7663 = vmatprep.subr.bf16.mxu0 %v13486_v7  ;;  %v4657_v6 = vld [vmem:[#allocation8 + $0x3e0] sm:$0xff]  ;;  %v4654_v7 = vld [vmem:[#allocation8 + $0x3c8] sm:$0xff]  ;;  %v4512_v22 = vmul.f32 0.2, %v14601_v10  ;;  %vm4504_vm2 = vcmp.ge.f32.partialorder %v14601_v10, 0.0 }
 0x304   :  { %7827 = vmatprep.subr.bf16.mxu1 %v13488_v9  ;;  %v4658_v9 = vld [vmem:[#allocation8 + $0x3e8] sm:$0xff]  ;;  %v13542_v14 = vcombine.high %v4653_v46, %v4657_v6  ;;  %v13541_v8 = vcombine.low %v4653_v46, %v4657_v6 }
 0x305   :  { %v13543_v15 = vcombine.low %v4654_v7, %v4658_v9  ;;  %v4520_v34 = vsel %vm4504_vm2, %v14601_v10, %v4512_v22  ;;  %v4702_v46 = vld [vmem:[#allocation8 + $0x548] sm:$0xff]  ;;  %v4717_v22 = vld [vmem:[#allocation8 + $0x5c0] sm:$0xff] }
 0x306   :  { %7664 = vmatpush1.bf16.msra.mxu0 %v13485_v16  ;;  %v4509_v16 = vmul.f32 0.2, %v14598_v4  ;;  %v15399_v45 = vpack.c.bf16 %v4520_v34, %v4520_v34  ;;  %v4706_v6 = vld [vmem:[#allocation8 + $0x568] sm:$0xff]  ;;  %v4725_v34 = vld [vmem:[#allocation8 + $0x600] sm:$0xff] }
 0x307   :  { %7828 = vmatpush1.bf16.msra.mxu1 %v13487_v17  ;;  %7665 = vmatprep.subr.bf16.mxu0 %v13494_v18  ;;  %v13544_v17 = vcombine.high %v4654_v7, %v4658_v9  ;;  %v4661_v18 = vld [vmem:[#allocation8 + $0x400] sm:$0xff]  ;;  %v13581_v7 = vcombine.low %v4693_v63, %v4697_v0  ;;  %v13583_v9 = vcombine.low %v4694_v32, %v4698_v31 }
 0x308   :  { %7829 = vmatprep.subr.bf16.mxu1 %v13496_v19  ;;  %v4665_v19 = vld [vmem:[#allocation8 + $0x420] sm:$0xff] }
 0x309   :  { %v13550_v23 = vcombine.high %v4661_v18, %v4665_v19  ;;  %v13549_v57 = vcombine.low %v4661_v18, %v4665_v19  ;;  %v13591_v19 = vcombine.low %v4702_v46, %v4706_v6 }
 0x30a   :  { %7666 = vmatpush1.bf16.msra.mxu0 %v13493_v27  ;;  %v4517_v27 = vsel %vm4501_vm1, %v14598_v4, %v4509_v16  ;;  %v4701_v4 = vld [vmem:[#allocation8 + $0x540] sm:$0xff]  ;;  %v4710_v16 = vld [vmem:[#allocation8 + $0x588] sm:$0xff] }
 0x30b   :  { %7830 = vmatpush1.bf16.msra.mxu1 %v13495_v28  ;;  %7667 = vmatprep.subr.bf16.mxu0 %v13502_v29  ;;  %v13552_v28 = vcombine.high %v4662_v26, %v4666_v20  ;;  %v4669_v29 = vld [vmem:[#allocation8 + $0x440] sm:$0xff] }
 0x30c   :  { %7831 = vmatprep.subr.bf16.mxu1 %v13504_v33  ;;  %v4673_v33 = vld [vmem:[#allocation8 + $0x460] sm:$0xff] }
 0x30e   :  { %7668 = vmatpush1.bf16.msra.mxu0 %v13501_v41  ;;  %v15397_v41 = vpack.c.bf16 %v4517_v27, %v4517_v27 }
 0x30f   :  { %7832 = vmatpush1.bf16.msra.mxu1 %v13503_v42  ;;  %7669 = vmatprep.subr.bf16.mxu0 %v13510_v12  ;;  %v13551_v42 = vcombine.low %v4662_v26, %v4666_v20  ;;  %v13558_v12 = vcombine.high %v4669_v29, %v4673_v33 }
 0x310   :  { %7833 = vmatprep.subr.bf16.mxu1 %v13512_v43  ;;  %v4677_v43 = vld [vmem:[#allocation8 + $0x480] sm:$0xff] }
 0x312   :  { %7670 = vmatpush1.bf16.msra.mxu0 %v13509_v48  ;;  %v4682_v48 = vld [vmem:[#allocation8 + $0x4a8] sm:$0xff] }
 0x313   :  { %7834 = vmatpush1.bf16.msra.mxu1 %v13511_v49  ;;  %7671 = vmatprep.subr.bf16.mxu0 %v13518_v50  ;;  %v13557_v49 = vcombine.low %v4669_v29, %v4673_v33  ;;  %v13559_v50 = vcombine.low %v4670_v38, %v4674_v40  ;;  %v13568_v52 = vcombine.high %v4678_v47, %v4682_v48  ;;  %v4726_v38 = vld [vmem:[#allocation8 + $0x608] sm:$0xff] }
 0x314   :  { %7835 = vmatprep.subr.bf16.mxu1 %v13520_v53  ;;  %v13566_v53 = vcombine.high %v4677_v43, %v4681_v44  ;;  %v4730_v40 = vld [vmem:[#allocation8 + $0x628] sm:$0xff] }
 0x316   :  { %7672 = vmatpush1.bf16.msra.mxu0 %v13517_v59  ;;  %v4690_v59 = vld [vmem:[#allocation8 + $0x4e8] sm:$0xff] }
 0x317   :  { %7836 = vmatpush1.bf16.msra.mxu1 %v13519_v60  ;;  %7673 = vmatprep.subr.bf16.mxu0 %v13526_v61  ;;  %v13565_v60 = vcombine.low %v4677_v43, %v4681_v44  ;;  %v13567_v61 = vcombine.low %v4678_v47, %v4682_v48  ;;  %v13616_v44 = vcombine.high %v4726_v38, %v4730_v40  ;;  %v4737_v47 = vld [vmem:[#allocation8 + $0x660] sm:$0xff]  ;;  %v4734_v48 = vld [vmem:[#allocation8 + $0x648] sm:$0xff] }
 0x318   :  { %7837 = vmatprep.subr.bf16.mxu1 %v13528_v36  ;;  %v13576_v36 = vcombine.high %v4686_v56, %v4690_v59 }
 0x31a   :  { %7674 = vmatpush1.bf16.msra.mxu0 %v13525_v2  ;;  %v13575_v2 = vcombine.low %v4686_v56, %v4690_v59  ;;  %v4745_v56 = vld [vmem:[#allocation8 + $0x6a0] sm:$0xff]  ;;  %v4742_v59 = vld [vmem:[#allocation8 + $0x688] sm:$0xff] }
 0x31b   :  { %7838 = vmatpush1.bf16.msra.mxu1 %v13527_v39  ;;  %7675 = vmatprep.subr.bf16.mxu0 %v13534_v3  ;;  %v13582_v39 = vcombine.high %v4693_v63, %v4697_v0  ;;  %v13584_v3 = vcombine.high %v4694_v32, %v4698_v31  ;;  %v4749_v0 = vld [vmem:[#allocation8 + $0x6c0] sm:$0xff]  ;;  %v4750_v31 = vld [vmem:[#allocation8 + $0x6c8] sm:$0xff] }
 0x31c   :  { %7839 = vmatprep.subr.bf16.mxu1 %v13536_v5  ;;  %v4705_v5 = vld [vmem:[#allocation8 + $0x560] sm:$0xff] }
 0x31d   :  { %v13590_v10 = vcombine.high %v4701_v4, %v4705_v5  ;;  %v13589_v18 = vcombine.low %v4701_v4, %v4705_v5  ;;  %v4753_v32 = vld [vmem:[#allocation8 + $0x6e0] sm:$0xff] }
 0x31e   :  { %7676 = vmatpush1.bf16.msra.mxu0 %v13533_v13  ;;  %v13592_v13 = vcombine.high %v4702_v46, %v4706_v6  ;;  %v4757_v5 = vld [vmem:[#allocation8 + $0x700] sm:$0xff]  ;;  %v4758_v6 = vld [vmem:[#allocation8 + $0x708] sm:$0xff] }
 0x31f   :  { %7840 = vmatpush1.bf16.msra.mxu1 %v13535_v55  ;;  %7677 = vmatprep.subr.bf16.mxu0 %v13542_v14  ;;  %v4709_v55 = vld [vmem:[#allocation8 + $0x580] sm:$0xff] }
 0x320   :  { %7841 = vmatprep.subr.bf16.mxu1 %v13544_v17  ;;  %v4713_v14 = vld [vmem:[#allocation8 + $0x5a0] sm:$0xff]  ;;  %v4714_v17 = vld [vmem:[#allocation8 + $0x5a8] sm:$0xff] }
 0x321   :  { %v13598_v26 = vcombine.high %v4709_v55, %v4713_v14  ;;  %v13600_v20 = vcombine.high %v4710_v16, %v4714_v17  ;;  %v13597_v27 = vcombine.low %v4709_v55, %v4713_v14  ;;  %v4761_v46 = vld [vmem:[#allocation8 + $0x720] sm:$0xff]  ;;  %v15406_v55 = vsub.s32 2, %v15371_v21 }
 0x322   :  { %7678 = vmatpush1.bf16.msra.mxu0 %v13541_v8  ;;  %v4721_v8 = vld [vmem:[#allocation8 + $0x5e0] sm:$0xff] }
 0x323   :  { %7842 = vmatpush1.bf16.msra.mxu1 %v13543_v15  ;;  %7688 = vmatprep.subr.bf16.mxu0 %v13550_v23  ;;  %v4718_v15 = vld [vmem:[#allocation8 + $0x5c8] sm:$0xff]  ;;  %v13606_v29 = vcombine.high %v4717_v22, %v4721_v8 }
 0x324   :  { %7852 = vmatprep.subr.bf16.mxu1 %v13552_v28  ;;  %v4722_v23 = vld [vmem:[#allocation8 + $0x5e8] sm:$0xff]  ;;  %v13599_v28 = vcombine.low %v4710_v16, %v4714_v17  ;;  %v4765_v16 = vld [vmem:[#allocation8 + $0x740] sm:$0xff] }
 0x325   :  { %7680 = vmatmul.mubr.bf16.vlgmr.msra.gmra.mrb[8].mxu0 %v15397_v41  ;;  %v13608_v33 = vcombine.high %v4718_v15, %v4722_v23  ;;  %v4769_v17 = vld [vmem:[#allocation8 + $0x760] sm:$0xff] }
 0x326   :  { %7844 = vmatmul.mubr.bf16.vlgmr.msra.gmra.mrb[8].mxu1 %v15397_v41  ;;  %7689 = vmatpush1.bf16.msra.mxu0 %v13549_v57  ;;  %v4729_v57 = vld [vmem:[#allocation8 + $0x620] sm:$0xff] }
 0x327   :  { %7720 = vmatprep.mubr.bf16.mxu0 %v15399_v45  ;;  %7853 = vmatpush1.bf16.msra.mxu1 %v13551_v42  ;;  %v13605_v42 = vcombine.low %v4717_v22, %v4721_v8  ;;  %v13614_v43 = vcombine.high %v4725_v34, %v4729_v57  ;;  %v13654_v22 = vcombine.high %v4765_v16, %v4769_v17 }
 0x328   :  { %7884 = vmatprep.mubr.bf16.mxu1 %v15399_v45  ;;  %7690 = vmatprep.subr.bf16.mxu0 %v13558_v12  ;;  %v13607_v12 = vcombine.low %v4718_v15, %v4722_v23  ;;  %v740_v8 = vrot.slane %v15376_v37, %v15406_v55  ;;  %v4773_v23 = vld [vmem:[#allocation8 + $0x780] sm:$0xff]  ;;  %v4786_v37 = vld [vmem:[#allocation8 + $0x7e8] sm:$0xff] }
 0x329   :  { %7854 = vmatprep.subr.bf16.mxu1 %v13560_v24  ;;  %v4733_v24 = vld [vmem:[#allocation8 + $0x640] sm:$0xff] }
 0x32a   :  { %7691 = vmatpush1.bf16.msra.mxu0 %v13557_v49  ;;  %v4738_v49 = vld [vmem:[#allocation8 + $0x668] sm:$0xff] }
 0x32b   :  { %7855 = vmatpush1.bf16.msra.mxu1 %v13559_v50  ;;  %7692 = vmatprep.subr.bf16.mxu0 %v13566_v53  ;;  %v13613_v50 = vcombine.low %v4725_v34, %v4729_v57  ;;  %v13615_v53 = vcombine.low %v4726_v38, %v4730_v40  ;;  %v13624_v25 = vcombine.high %v4734_v48, %v4738_v49 }
 0x32c   :  { %7856 = vmatprep.subr.bf16.mxu1 %v13568_v52  ;;  %v13622_v52 = vcombine.high %v4733_v24, %v4737_v47  ;;  %v14600_v38 = vadd.f32 %v15361_v30, %v740_v8  ;;  %v4794_v30 = vld [vmem:[#allocation8 + $0x828] sm:$0xff] }
 0x32d   :  { %v4822_v8 = vld [vmem:[#allocation8 + $0x908] sm:$0xff] }
 0x32e   :  { %7693 = vmatpush1.bf16.msra.mxu0 %v13565_v60  ;;  %v4746_v60 = vld [vmem:[#allocation8 + $0x6a8] sm:$0xff]  ;;  %vm4503_vm3 = vcmp.ge.f32.partialorder %v14600_v38, 0.0 }
 0x32f   :  { %7857 = vmatpush1.bf16.msra.mxu1 %v13567_v61  ;;  %7694 = vmatprep.subr.bf16.mxu0 %v13574_v62  ;;  %v13621_v61 = vcombine.low %v4733_v24, %v4737_v47  ;;  %v13623_v62 = vcombine.low %v4734_v48, %v4738_v49  ;;  %v13632_v63 = vcombine.high %v4742_v59, %v4746_v60  ;;  %v4511_v48 = vmul.f32 0.2, %v14600_v38 }
 0x330   :  { %7858 = vmatprep.subr.bf16.mxu1 %v13576_v36  ;;  %v13630_v36 = vcombine.high %v4741_v54, %v4745_v56 }
 0x332   :  { %7695 = vmatpush1.bf16.msra.mxu0 %v13573_v1  ;;  %v4754_v1 = vld [vmem:[#allocation8 + $0x6e8] sm:$0xff] }
 0x333   :  { %7859 = vmatpush1.bf16.msra.mxu1 %v13575_v2  ;;  %7696 = vmatprep.subr.bf16.mxu0 %v13582_v39  ;;  %v13629_v2 = vcombine.low %v4741_v54, %v4745_v56  ;;  %v13631_v39 = vcombine.low %v4742_v59, %v4746_v60  ;;  %v13640_v4 = vcombine.high %v4750_v31, %v4754_v1 }
 0x334   :  { %7860 = vmatprep.subr.bf16.mxu1 %v13584_v3  ;;  %v13638_v3 = vcombine.high %v4749_v0, %v4753_v32  ;;  %v4519_v59 = vsel %vm4503_vm3, %v14600_v38, %v4511_v48  ;;  %v4834_v38 = vld [vmem:[#allocation8 + $0x968] sm:$0xff] }
 0x336   :  { %7697 = vmatpush1.bf16.msra.mxu0 %v13581_v7  ;;  %v4762_v7 = vld [vmem:[#allocation8 + $0x728] sm:$0xff] }
 0x337   :  { %7861 = vmatpush1.bf16.msra.mxu1 %v13583_v9  ;;  %7698 = vmatprep.subr.bf16.mxu0 %v13590_v10  ;;  %v13637_v9 = vcombine.low %v4749_v0, %v4753_v32  ;;  %v13639_v10 = vcombine.low %v4750_v31, %v4754_v1  ;;  %v13648_v14 = vcombine.high %v4758_v6, %v4762_v7 }
 0x338   :  { %7862 = vmatprep.subr.bf16.mxu1 %v13592_v13  ;;  %v13646_v13 = vcombine.high %v4757_v5, %v4761_v46  ;;  %v15411_v32 = vpack.c.bf16 %v4519_v59, %v4519_v59 }
 0x33a   :  { %7699 = vmatpush1.bf16.msra.mxu0 %v13589_v18  ;;  %v4766_v18 = vld [vmem:[#allocation8 + $0x748] sm:$0xff] }
 0x33b   :  { %7863 = vmatpush1.bf16.msra.mxu1 %v13591_v19  ;;  %7700 = vmatprep.subr.bf16.mxu0 %v13598_v26  ;;  %v4770_v19 = vld [vmem:[#allocation8 + $0x768] sm:$0xff]  ;;  %v13645_v26 = vcombine.low %v4757_v5, %v4761_v46 }
 0x33c   :  { %7864 = vmatprep.subr.bf16.mxu1 %v13600_v20  ;;  %v13647_v20 = vcombine.low %v4758_v6, %v4762_v7  ;;  %v13656_v15 = vcombine.high %v4766_v18, %v4770_v19  ;;  %v13655_v34 = vcombine.low %v4766_v18, %v4770_v19  ;;  %v4810_v5 = vld [vmem:[#allocation8 + $0x8a8] sm:$0xff] }
 0x33e   :  { %7701 = vmatpush1.bf16.msra.mxu0 %v13597_v27  ;;  %v4777_v27 = vld [vmem:[#allocation8 + $0x7a0] sm:$0xff] }
 0x33f   :  { %7865 = vmatpush1.bf16.msra.mxu1 %v13599_v28  ;;  %7702 = vmatprep.subr.bf16.mxu0 %v13606_v29  ;;  %v4774_v28 = vld [vmem:[#allocation8 + $0x788] sm:$0xff]  ;;  %v13662_v57 = vcombine.high %v4773_v23, %v4777_v27 }
 0x340   :  { %7866 = vmatprep.subr.bf16.mxu1 %v13608_v33  ;;  %v4778_v29 = vld [vmem:[#allocation8 + $0x7a8] sm:$0xff]  ;;  %v13653_v33 = vcombine.low %v4765_v16, %v4769_v17 }
 0x341   :  { %v13664_v40 = vcombine.high %v4774_v28, %v4778_v29  ;;  %v13663_v24 = vcombine.low %v4774_v28, %v4778_v29  ;;  %v4818_v16 = vld [vmem:[#allocation8 + $0x8e8] sm:$0xff] }
 0x342   :  { %7703 = vmatpush1.bf16.msra.mxu0 %v13605_v42  ;;  %v4781_v42 = vld [vmem:[#allocation8 + $0x7c0] sm:$0xff] }
 0x343   :  { %7867 = vmatpush1.bf16.msra.mxu1 %v13607_v12  ;;  %7704 = vmatprep.subr.bf16.mxu0 %v13614_v43  ;;  %v4785_v12 = vld [vmem:[#allocation8 + $0x7e0] sm:$0xff]  ;;  %v4782_v43 = vld [vmem:[#allocation8 + $0x7c8] sm:$0xff] }
 0x344   :  { %7868 = vmatprep.subr.bf16.mxu1 %v13616_v44  ;;  %v13661_v44 = vcombine.low %v4773_v23, %v4777_v27  ;;  %v13670_v47 = vcombine.high %v4781_v42, %v4785_v12  ;;  %v13672_v49 = vcombine.high %v4782_v43, %v4786_v37  ;;  %v13671_v54 = vcombine.low %v4782_v43, %v4786_v37  ;;  %v4837_v37 = vld [vmem:[#allocation8 + $0x980] sm:$0xff] }
 0x346   :  { %7705 = vmatpush1.bf16.msra.mxu0 %v13613_v50  ;;  %v4789_v50 = vld [vmem:[#allocation8 + $0x800] sm:$0xff] }
 0x347   :  { %7869 = vmatpush1.bf16.msra.mxu1 %v13615_v53  ;;  %7706 = vmatprep.subr.bf16.mxu0 %v13622_v52  ;;  %v4793_v53 = vld [vmem:[#allocation8 + $0x820] sm:$0xff]  ;;  %v4790_v52 = vld [vmem:[#allocation8 + $0x808] sm:$0xff] }
 0x348   :  { %7870 = vmatprep.subr.bf16.mxu1 %v13624_v25  ;;  %v13669_v25 = vcombine.low %v4781_v42, %v4785_v12  ;;  %v13678_v56 = vcombine.high %v4789_v50, %v4793_v53  ;;  %v13680_v60 = vcombine.high %v4790_v52, %v4794_v30  ;;  %v13677_v0 = vcombine.low %v4789_v50, %v4793_v53 }
 0x349   :  { %v13679_v31 = vcombine.low %v4790_v52, %v4794_v30  ;;  %v4845_v52 = vld [vmem:[#allocation8 + $0x9c0] sm:$0xff] }
 0x34a   :  { %7707 = vmatpush1.bf16.msra.mxu0 %v13621_v61  ;;  %v4797_v61 = vld [vmem:[#allocation8 + $0x840] sm:$0xff] }
 0x34b   :  { %7871 = vmatpush1.bf16.msra.mxu1 %v13623_v62  ;;  %7708 = vmatprep.subr.bf16.mxu0 %v13630_v36  ;;  %v4801_v62 = vld [vmem:[#allocation8 + $0x860] sm:$0xff]  ;;  %v4798_v36 = vld [vmem:[#allocation8 + $0x848] sm:$0xff] }
 0x34c   :  { %7872 = vmatprep.subr.bf16.mxu1 %v13632_v63  ;;  %v4802_v63 = vld [vmem:[#allocation8 + $0x868] sm:$0xff]  ;;  %v13686_v1 = vcombine.high %v4797_v61, %v4801_v62  ;;  %v13685_v46 = vcombine.low %v4797_v61, %v4801_v62  ;;  %v4849_v30 = vld [vmem:[#allocation8 + $0x9e0] sm:$0xff] }
 0x34d   :  { %v13687_v6 = vcombine.low %v4798_v36, %v4802_v63  ;;  %v4853_v62 = vld [vmem:[#allocation8 + $0xa00] sm:$0xff] }
 0x34e   :  { %7709 = vmatpush1.bf16.msra.mxu0 %v13629_v2  ;;  %v13688_v2 = vcombine.high %v4798_v36, %v4802_v63  ;;  %v4857_v36 = vld [vmem:[#allocation8 + $0xa20] sm:$0xff]  ;;  %v4854_v63 = vld [vmem:[#allocation8 + $0xa08] sm:$0xff] }
 0x34f   :  { %7873 = vmatpush1.bf16.msra.mxu1 %v13631_v39  ;;  %7710 = vmatprep.subr.bf16.mxu0 %v13638_v3  ;;  %v4805_v39 = vld [vmem:[#allocation8 + $0x880] sm:$0xff] }
 0x350   :  { %7874 = vmatprep.subr.bf16.mxu1 %v13640_v4  ;;  %v4809_v3 = vld [vmem:[#allocation8 + $0x8a0] sm:$0xff]  ;;  %v4806_v4 = vld [vmem:[#allocation8 + $0x888] sm:$0xff] }
 0x351   :  { %v13694_v7 = vcombine.high %v4805_v39, %v4809_v3  ;;  %v13693_v17 = vcombine.low %v4805_v39, %v4809_v3  ;;  %v13695_v18 = vcombine.low %v4806_v4, %v4810_v5  ;;  %v4861_v3 = vld [vmem:[#allocation8 + $0xa40] sm:$0xff] }
 0x352   :  { %7711 = vmatpush1.bf16.msra.mxu0 %v13637_v9  ;;  %v13696_v9 = vcombine.high %v4806_v4, %v4810_v5  ;;  %v4865_v4 = vld [vmem:[#allocation8 + $0xa60] sm:$0xff]  ;;  %v4862_v5 = vld [vmem:[#allocation8 + $0xa48] sm:$0xff] }
 0x353   :  { %7875 = vmatpush1.bf16.msra.mxu1 %v13639_v10  ;;  %7712 = vmatprep.subr.bf16.mxu0 %v13646_v13  ;;  %v4813_v10 = vld [vmem:[#allocation8 + $0x8c0] sm:$0xff] }
 0x354   :  { %7876 = vmatprep.subr.bf16.mxu1 %v13648_v14  ;;  %v4817_v13 = vld [vmem:[#allocation8 + $0x8e0] sm:$0xff]  ;;  %v4814_v14 = vld [vmem:[#allocation8 + $0x8c8] sm:$0xff] }
 0x355   :  { %v13702_v19 = vcombine.high %v4813_v10, %v4817_v13  ;;  %v13701_v23 = vcombine.low %v4813_v10, %v4817_v13  ;;  %v13703_v27 = vcombine.low %v4814_v14, %v4818_v16  ;;  %v4869_v13 = vld [vmem:[#allocation8 + $0xa80] sm:$0xff] }
 0x356   :  { %7713 = vmatpush1.bf16.msra.mxu0 %v13645_v26  ;;  %v13704_v26 = vcombine.high %v4814_v14, %v4818_v16  ;;  %v4873_v14 = vld [vmem:[#allocation8 + $0xaa0] sm:$0xff]  ;;  %v4870_v16 = vld [vmem:[#allocation8 + $0xa88] sm:$0xff] }
 0x357   :  { %7877 = vmatpush1.bf16.msra.mxu1 %v13647_v20  ;;  %7714 = vmatprep.subr.bf16.mxu0 %v13654_v22  ;;  %v4821_v20 = vld [vmem:[#allocation8 + $0x900] sm:$0xff] }
 0x358   :  { %7878 = vmatprep.subr.bf16.mxu1 %v13656_v15  ;;  %v4825_v22 = vld [vmem:[#allocation8 + $0x920] sm:$0xff]  ;;  %v4826_v15 = vld [vmem:[#allocation8 + $0x928] sm:$0xff] }
 0x359   :  { %v13710_v28 = vcombine.high %v4821_v20, %v4825_v22  ;;  %v13712_v29 = vcombine.high %v4822_v8, %v4826_v15  ;;  %v13711_v42 = vcombine.low %v4822_v8, %v4826_v15  ;;  %v4881_v8 = vld [vmem:[#allocation8 + $0xae0] sm:$0xff]  ;;  %v4878_v15 = vld [vmem:[#allocation8 + $0xac8] sm:$0xff] }
 0x35a   :  { %7715 = vmatpush1.bf16.msra.mxu0 %v13653_v33  ;;  %v4829_v33 = vld [vmem:[#allocation8 + $0x940] sm:$0xff] }
 0x35b   :  { %7879 = vmatpush1.bf16.msra.mxu1 %v13655_v34  ;;  %7716 = vmatprep.subr.bf16.mxu0 %v13662_v57  ;;  %v4833_v34 = vld [vmem:[#allocation8 + $0x960] sm:$0xff]  ;;  %v4830_v57 = vld [vmem:[#allocation8 + $0x948] sm:$0xff] }
 0x35c   :  { %7880 = vmatprep.subr.bf16.mxu1 %v13664_v40  ;;  %v13709_v40 = vcombine.low %v4821_v20, %v4825_v22  ;;  %v13718_v12 = vcombine.high %v4829_v33, %v4833_v34  ;;  %v13720_v43 = vcombine.high %v4830_v57, %v4834_v38  ;;  %v13717_v48 = vcombine.low %v4829_v33, %v4833_v34  ;;  %v4877_v22 = vld [vmem:[#allocation8 + $0xac0] sm:$0xff] }
 0x35d   :  { %v4885_v34 = vld [vmem:[#allocation8 + $0xb00] sm:$0xff] }
 0x35e   :  { %7717 = vmatpush1.bf16.msra.mxu0 %v13661_v44  ;;  %v4841_v44 = vld [vmem:[#allocation8 + $0x9a0] sm:$0xff] }
 0x35f   :  { %7881 = vmatpush1.bf16.msra.mxu1 %v13663_v24  ;;  %7718 = vmatprep.subr.bf16.mxu0 %v13670_v47  ;;  %v4838_v24 = vld [vmem:[#allocation8 + $0x988] sm:$0xff]  ;;  %v13726_v50 = vcombine.high %v4837_v37, %v4841_v44 }
 0x360   :  { %7882 = vmatprep.subr.bf16.mxu1 %v13672_v49  ;;  %v4842_v47 = vld [vmem:[#allocation8 + $0x9a8] sm:$0xff]  ;;  %v13719_v49 = vcombine.low %v4830_v57, %v4834_v38  ;;  %v4889_v57 = vld [vmem:[#allocation8 + $0xb20] sm:$0xff] }
 0x361   :  { %v13728_v53 = vcombine.high %v4838_v24, %v4842_v47  ;;  %v13727_v59 = vcombine.low %v4838_v24, %v4842_v47  ;;  %v4886_v38 = vld [vmem:[#allocation8 + $0xb08] sm:$0xff]  ;;  %v4897_v24 = vld [vmem:[#allocation8 + $0xb60] sm:$0xff] }
 0x362   :  { %7719 = vmatpush1.bf16.msra.mxu0 %v13669_v25  ;;  %v4846_v25 = vld [vmem:[#allocation8 + $0x9c8] sm:$0xff] }
 0x363   :  { %7883 = vmatpush1.bf16.msra.mxu1 %v13671_v54  ;;  %7729 = vmatprep.subr.bf16.mxu0 %v13678_v56  ;;  %v4850_v54 = vld [vmem:[#allocation8 + $0x9e8] sm:$0xff]  ;;  %v13725_v56 = vcombine.low %v4837_v37, %v4841_v44  ;;  %v4893_v44 = vld [vmem:[#allocation8 + $0xb40] sm:$0xff] }
 0x364   :  { %7893 = vmatprep.subr.bf16.mxu1 %v13680_v60  ;;  %v13734_v60 = vcombine.high %v4845_v52, %v4849_v30  ;;  %v13736_v61 = vcombine.high %v4846_v25, %v4850_v54  ;;  %v4894_v47 = vld [vmem:[#allocation8 + $0xb48] sm:$0xff] }
 0x365   :  { %7721 = vmatmul.mubr.bf16.vlgmr.msra.gmra.mrb[8].mxu0 %v15411_v32 }
 0x366   :  { %7885 = vmatmul.mubr.bf16.vlgmr.msra.gmra.mrb[8].mxu1 %v15411_v32  ;;  %7730 = vmatpush1.bf16.msra.mxu0 %v13677_v0  ;;  %v4858_v0 = vld [vmem:[#allocation8 + $0xa28] sm:$0xff] }
 0x367   :  { %7894 = vmatpush1.bf16.msra.mxu1 %v13679_v31  ;;  %7731 = vmatprep.subr.bf16.mxu0 %v13686_v1  ;;  %v13733_v31 = vcombine.low %v4845_v52, %v4849_v30  ;;  %v13735_v1 = vcombine.low %v4846_v25, %v4850_v54  ;;  %v13744_v39 = vcombine.high %v4854_v63, %v4858_v0  ;;  %v4901_v30 = vld [vmem:[#allocation8 + $0xb80] sm:$0xff]  ;;  %v4902_v54 = vld [vmem:[#allocation8 + $0xb88] sm:$0xff] }
 0x368   :  { %7895 = vmatprep.subr.bf16.mxu1 %v13688_v2  ;;  %v13742_v2 = vcombine.high %v4853_v62, %v4857_v36  ;;  %v4905_v25 = vld [vmem:[#allocation8 + $0xba0] sm:$0xff] }
 0x36a   :  { %7732 = vmatpush1.bf16.msra.mxu0 %v13685_v46  ;;  %v4866_v46 = vld [vmem:[#allocation8 + $0xa68] sm:$0xff] }
 0x36b   :  { %7896 = vmatpush1.bf16.msra.mxu1 %v13687_v6  ;;  %7733 = vmatprep.subr.bf16.mxu0 %v13694_v7  ;;  %v13741_v6 = vcombine.low %v4853_v62, %v4857_v36  ;;  %v13743_v7 = vcombine.low %v4854_v63, %v4858_v0  ;;  %v13752_v10 = vcombine.high %v4862_v5, %v4866_v46  ;;  %v4909_v36 = vld [vmem:[#allocation8 + $0xbc0] sm:$0xff]  ;;  %v4910_v0 = vld [vmem:[#allocation8 + $0xbc8] sm:$0xff] }
 0x36c   :  { %7897 = vmatprep.subr.bf16.mxu1 %v13696_v9  ;;  %v13750_v9 = vcombine.high %v4861_v3, %v4865_v4  ;;  %v4913_v63 = vld [vmem:[#allocation8 + $0xbe0] sm:$0xff] }
 0x36e   :  { %7734 = vmatpush1.bf16.msra.mxu0 %v13693_v17  ;;  %v4874_v17 = vld [vmem:[#allocation8 + $0xaa8] sm:$0xff] }
 0x36f   :  { %7898 = vmatpush1.bf16.msra.mxu1 %v13695_v18  ;;  %7735 = vmatprep.subr.bf16.mxu0 %v13702_v19  ;;  %v13749_v18 = vcombine.low %v4861_v3, %v4865_v4  ;;  %v13751_v19 = vcombine.low %v4862_v5, %v4866_v46  ;;  %v13760_v20 = vcombine.high %v4870_v16, %v4874_v17  ;;  %v4917_v4 = vld [vmem:[#allocation8 + $0xc00] sm:$0xff]  ;;  %v4918_v46 = vld [vmem:[#allocation8 + $0xc08] sm:$0xff] }
 0x370   :  { %7899 = vmatprep.subr.bf16.mxu1 %v13704_v26  ;;  %v13758_v26 = vcombine.high %v4869_v13, %v4873_v14  ;;  %v4921_v5 = vld [vmem:[#allocation8 + $0xc20] sm:$0xff] }
 0x372   :  { %7736 = vmatpush1.bf16.msra.mxu0 %v13701_v23  ;;  %v4882_v23 = vld [vmem:[#allocation8 + $0xae8] sm:$0xff] }
 0x373   :  { %7900 = vmatpush1.bf16.msra.mxu1 %v13703_v27  ;;  %7737 = vmatprep.subr.bf16.mxu0 %v13710_v28  ;;  %v13757_v27 = vcombine.low %v4869_v13, %v4873_v14  ;;  %v13759_v28 = vcombine.low %v4870_v16, %v4874_v17  ;;  %v13768_v33 = vcombine.high %v4878_v15, %v4882_v23  ;;  %v15416_v14 = vsub.s32 4, %v15371_v21 }
 0x374   :  { %7901 = vmatprep.subr.bf16.mxu1 %v13712_v29  ;;  %v13766_v29 = vcombine.high %v4877_v22, %v4881_v8  ;;  %v15419_v16 = vsub.s32 5, %v15371_v21  ;;  %v15422_v17 = vsub.s32 7, %v15371_v21 }
 0x376   :  { %7738 = vmatpush1.bf16.msra.mxu0 %v13709_v40  ;;  %v4890_v40 = vld [vmem:[#allocation8 + $0xb28] sm:$0xff] }
 0x377   :  { %7902 = vmatpush1.bf16.msra.mxu1 %v13711_v42  ;;  %7739 = vmatprep.subr.bf16.mxu0 %v13718_v12  ;;  %v13765_v42 = vcombine.low %v4877_v22, %v4881_v8  ;;  %v13767_v12 = vcombine.low %v4878_v15, %v4882_v23  ;;  %v13776_v37 = vcombine.high %v4886_v38, %v4890_v40 }
 0x378   :  { %7903 = vmatprep.subr.bf16.mxu1 %v13720_v43  ;;  %v13774_v43 = vcombine.high %v4885_v34, %v4889_v57 }
 0x37a   :  { %7740 = vmatpush1.bf16.msra.mxu0 %v13717_v48  ;;  %v4898_v48 = vld [vmem:[#allocation8 + $0xb68] sm:$0xff] }
 0x37b   :  { %7904 = vmatpush1.bf16.msra.mxu1 %v13719_v49  ;;  %7741 = vmatprep.subr.bf16.mxu0 %v13726_v50  ;;  %v13773_v49 = vcombine.low %v4885_v34, %v4889_v57  ;;  %v13775_v50 = vcombine.low %v4886_v38, %v4890_v40  ;;  %v13784_v52 = vcombine.high %v4894_v47, %v4898_v48 }
 0x37c   :  { %7905 = vmatprep.subr.bf16.mxu1 %v13728_v53  ;;  %v13782_v53 = vcombine.high %v4893_v44, %v4897_v24 }
 0x37e   :  { %7742 = vmatpush1.bf16.msra.mxu0 %v13725_v56  ;;  %v4906_v56 = vld [vmem:[#allocation8 + $0xba8] sm:$0xff] }
 0x37f   :  { %7906 = vmatpush1.bf16.msra.mxu1 %v13727_v59  ;;  %7743 = vmatprep.subr.bf16.mxu0 %v13734_v60  ;;  %v13781_v59 = vcombine.low %v4893_v44, %v4897_v24  ;;  %v13783_v60 = vcombine.low %v4894_v47, %v4898_v48  ;;  %v13792_v62 = vcombine.high %v4902_v54, %v4906_v56  ;;  %v4929_v24 = vld [vmem:[#allocation8 + $0xc60] sm:$0xff]  ;;  %v4926_v47 = vld [vmem:[#allocation8 + $0xc48] sm:$0xff] }
 0x380   :  { %7907 = vmatprep.subr.bf16.mxu1 %v13736_v61  ;;  %v13790_v61 = vcombine.high %v4901_v30, %v4905_v25  ;;  %v4930_v48 = vld [vmem:[#allocation8 + $0xc68] sm:$0xff] }
 0x382   :  { %7744 = vmatpush1.bf16.msra.mxu0 %v13733_v31  ;;  %v4914_v31 = vld [vmem:[#allocation8 + $0xbe8] sm:$0xff] }
 0x383   :  { %7908 = vmatpush1.bf16.msra.mxu1 %v13735_v1  ;;  %7745 = vmatprep.subr.bf16.mxu0 %v13742_v2  ;;  %v13789_v1 = vcombine.low %v4901_v30, %v4905_v25  ;;  %v13791_v2 = vcombine.low %v4902_v54, %v4906_v56  ;;  %v13800_v3 = vcombine.high %v4910_v0, %v4914_v31  ;;  %v4933_v25 = vld [vmem:[#allocation8 + $0xc80] sm:$0xff] }
 0x384   :  { %7909 = vmatprep.subr.bf16.mxu1 %v13744_v39  ;;  %v13798_v39 = vcombine.high %v4909_v36, %v4913_v63  ;;  %v13816_v56 = vcombine.high %v4926_v47, %v4930_v48 }
 0x386   :  { %7746 = vmatpush1.bf16.msra.mxu0 %v13741_v6  ;;  %v4922_v6 = vld [vmem:[#allocation8 + $0xc28] sm:$0xff] }
 0x387   :  { %7910 = vmatpush1.bf16.msra.mxu1 %v13743_v7  ;;  %7747 = vmatprep.subr.bf16.mxu0 %v13750_v9  ;;  %v13797_v7 = vcombine.low %v4909_v36, %v4913_v63  ;;  %v13799_v9 = vcombine.low %v4910_v0, %v4914_v31  ;;  %v13808_v13 = vcombine.high %v4918_v46, %v4922_v6 }
 0x388   :  { %7911 = vmatprep.subr.bf16.mxu1 %v13752_v10  ;;  %v13806_v10 = vcombine.high %v4917_v4, %v4921_v5  ;;  %v13815_v63 = vcombine.low %v4926_v47, %v4930_v48  ;;  %v4973_v47 = vld [vmem:[#allocation8 + $0xdc0] sm:$0xff] }
 0x389   :  { %v4977_v48 = vld [vmem:[#allocation8 + $0xde0] sm:$0xff] }
 0x38a   :  { %7748 = vmatpush1.bf16.msra.mxu0 %v13749_v18  ;;  %v15424_v18 = vld [vmem:[#allocation7] sm:$0xff] }
 0x38b   :  { %7912 = vmatpush1.bf16.msra.mxu1 %v13751_v19  ;;  %7749 = vmatprep.subr.bf16.mxu0 %v13758_v26  ;;  %v748_v19 = vrot.slane %v15424_v18, %v15416_v14  ;;  %v752_v26 = vrot.slane %v15424_v18, %v15419_v16 }
 0x38c   :  { %7913 = vmatprep.subr.bf16.mxu1 %v13760_v20  ;;  %v760_v20 = vrot.slane %v15424_v18, %v15422_v17 }
 0x38e   :  { %7750 = vmatpush1.bf16.msra.mxu0 %v13757_v27 }
 0x38f   :  { %7914 = vmatpush1.bf16.msra.mxu1 %v13759_v28  ;;  %7751 = vmatprep.subr.bf16.mxu0 %v13766_v29 }
 0x390   :  { %7915 = vmatprep.subr.bf16.mxu1 %v13768_v33 }
 0x392   :  { %7752 = vmatpush1.bf16.msra.mxu0 %v13765_v42 }
 0x393   :  { %7916 = vmatpush1.bf16.msra.mxu1 %v13767_v12  ;;  %7753 = vmatprep.subr.bf16.mxu0 %v13774_v43 }
 0x394   :  { %7917 = vmatprep.subr.bf16.mxu1 %v13776_v37  ;;  %v4925_v37 = vld [vmem:[#allocation8 + $0xc40] sm:$0xff] }
 0x395   :  { %v13814_v54 = vcombine.high %v4925_v37, %v4929_v24  ;;  %v13813_v36 = vcombine.low %v4925_v37, %v4929_v24 }
 0x396   :  { %7754 = vmatpush1.bf16.msra.mxu0 %v13773_v49 }
 0x397   :  { %7918 = vmatpush1.bf16.msra.mxu1 %v13775_v50  ;;  %7755 = vmatprep.subr.bf16.mxu0 %v13782_v53  ;;  %v13805_v53 = vcombine.low %v4917_v4, %v4921_v5 }
 0x398   :  { %7919 = vmatprep.subr.bf16.mxu1 %v13784_v52  ;;  %v13807_v52 = vcombine.low %v4918_v46, %v4922_v6 }
 0x39a   :  { %7756 = vmatpush1.bf16.msra.mxu0 %v13781_v59  ;;  %v4937_v59 = vld [vmem:[#allocation8 + $0xca0] sm:$0xff] }
 0x39b   :  { %7920 = vmatpush1.bf16.msra.mxu1 %v13783_v60  ;;  %7757 = vmatprep.subr.bf16.mxu0 %v13790_v61  ;;  %v4934_v60 = vld [vmem:[#allocation8 + $0xc88] sm:$0xff]  ;;  %v13822_v0 = vcombine.high %v4933_v25, %v4937_v59  ;;  %v13821_v4 = vcombine.low %v4933_v25, %v4937_v59  ;;  %v4981_v59 = vld [vmem:[#allocation8 + $0xe00] sm:$0xff] }
 0x39c   :  { %7921 = vmatprep.subr.bf16.mxu1 %v13792_v62  ;;  %v4938_v61 = vld [vmem:[#allocation8 + $0xca8] sm:$0xff] }
 0x39d   :  { %v13824_v31 = vcombine.high %v4934_v60, %v4938_v61  ;;  %v13823_v5 = vcombine.low %v4934_v60, %v4938_v61  ;;  %v4985_v60 = vld [vmem:[#allocation8 + $0xe20] sm:$0xff]  ;;  %v4982_v61 = vld [vmem:[#allocation8 + $0xe08] sm:$0xff] }
 0x39e   :  { %7758 = vmatpush1.bf16.msra.mxu0 %v13789_v1  ;;  %v4941_v1 = vld [vmem:[#allocation8 + $0xcc0] sm:$0xff] }
 0x39f   :  { %7922 = vmatpush1.bf16.msra.mxu1 %v13791_v2  ;;  %7759 = vmatprep.subr.bf16.mxu0 %v13798_v39  ;;  %v4945_v2 = vld [vmem:[#allocation8 + $0xce0] sm:$0xff]  ;;  %v4942_v39 = vld [vmem:[#allocation8 + $0xcc8] sm:$0xff] }
 0x3a0   :  { %7923 = vmatprep.subr.bf16.mxu1 %v13800_v3  ;;  %v4946_v3 = vld [vmem:[#allocation8 + $0xce8] sm:$0xff]  ;;  %v13830_v46 = vcombine.high %v4941_v1, %v4945_v2 }
 0x3a1   :  { %v13832_v6 = vcombine.high %v4942_v39, %v4946_v3 }
 0x3a2   :  { %7760 = vmatpush1.bf16.msra.mxu0 %v13797_v7  ;;  %v4949_v7 = vld [vmem:[#allocation8 + $0xd00] sm:$0xff] }
 0x3a3   :  { %7924 = vmatpush1.bf16.msra.mxu1 %v13799_v9  ;;  %7770 = vmatprep.subr.bf16.mxu0 %v13806_v10  ;;  %v4953_v9 = vld [vmem:[#allocation8 + $0xd20] sm:$0xff]  ;;  %v4950_v10 = vld [vmem:[#allocation8 + $0xd08] sm:$0xff] }
 0x3a4   :  { %7934 = vmatprep.subr.bf16.mxu1 %v13808_v13  ;;  %v4954_v13 = vld [vmem:[#allocation8 + $0xd28] sm:$0xff] }
 0x3b8   :  { %v4289_v22 = vpop.f32.mrb[4].mxu0  ;;  %v15432_v15 = vpop.f32.mrb[4].mxu1 }
 0x3b9   :  { %v14602_v8 = vadd.f32 %v4289_v22, %v748_v19  ;;  %v4291_v23 = vpop.f32.mrb[5].mxu0  ;;  %v4496_v28 = vpop.f32.mrb[5].mxu1  ;;  %v13829_v19 = vcombine.low %v4941_v1, %v4945_v2  ;;  %v13840_v22 = vcombine.high %v4950_v10, %v4954_v13  ;;  %v4989_v2 = vld [vmem:[#allocation8 + $0xe40] sm:$0xff] }
 0x3ba   :  { %v14603_v27 = vadd.f32 %v4291_v23, %v752_v26  ;;  %v4293_v29 = vpop.f32.mrb[6].mxu0  ;;  %v14605_v34 = vadd.f32 %v4496_v28, %v760_v20  ;;  %v4498_v57 = vpop.f32.mrb[6].mxu1  ;;  %v13831_v26 = vcombine.low %v4942_v39, %v4946_v3  ;;  %v13838_v20 = vcombine.high %v4949_v7, %v4953_v9  ;;  %v4961_v23 = vld [vmem:[#allocation8 + $0xd60] sm:$0xff]  ;;  %v4962_v28 = vld [vmem:[#allocation8 + $0xd68] sm:$0xff] }
 0x3bb   :  { %vm4505_vm4 = vcmp.ge.f32.partialorder %v14602_v8, 0.0  ;;  %v4513_v33 = vmul.f32 0.2, %v14602_v8  ;;  %v4294_v38 = vpop.f32.mrb[7].mxu0  ;;  %v4499_v43 = vpop.f32.mrb[7].mxu1  ;;  %v13837_v29 = vcombine.low %v4949_v7, %v4953_v9  ;;  %v4993_v39 = vld [vmem:[#allocation8 + $0xe60] sm:$0xff] }
 0x3bc   :  { %vm4506_vm5 = vcmp.ge.f32.partialorder %v14603_v27, 0.0  ;;  %v4514_v40 = vmul.f32 0.2, %v14603_v27  ;;  %vm4508_vm6 = vcmp.ge.f32.partialorder %v14605_v34, 0.0  ;;  %v4516_v12 = vmul.f32 0.2, %v14605_v34 }
 0x3bd   :  { %v4521_v42 = vsel %vm4505_vm4, %v14602_v8, %v4513_v33  ;;  %v4957_v8 = vld [vmem:[#allocation8 + $0xd40] sm:$0xff]  ;;  %v13839_v33 = vcombine.low %v4950_v10, %v4954_v13  ;;  %v4990_v3 = vld [vmem:[#allocation8 + $0xe48] sm:$0xff] }
 0x3be   :  { %v4522_v44 = vsel %vm4506_vm5, %v14603_v27, %v4514_v40  ;;  %v4524_v50 = vsel %vm4508_vm6, %v14605_v34, %v4516_v12  ;;  %v15436_v30 = vpack.c.bf16 %v4521_v42, %v4521_v42  ;;  %v4958_v27 = vld [vmem:[#allocation8 + $0xd48] sm:$0xff]  ;;  %v13846_v34 = vcombine.high %v4957_v8, %v4961_v23  ;;  %v4965_v38 = vld [vmem:[#allocation8 + $0xd80] sm:$0xff] }
 0x3bf   :  { %v15434_v49 = vpack.c.bf16 %v4522_v44, %v4522_v44  ;;  %v15440_v62 = vpack.c.bf16 %v4524_v50, %v4524_v50  ;;  %v13848_v57 = vcombine.high %v4958_v27, %v4962_v28  ;;  %v4969_v40 = vld [vmem:[#allocation8 + $0xda0] sm:$0xff]  ;;  %v4966_v42 = vld [vmem:[#allocation8 + $0xd88] sm:$0xff]  ;;  %v13845_v43 = vcombine.low %v4957_v8, %v4961_v23 }
 0x3c0   :  { %v4970_v12 = vld [vmem:[#allocation8 + $0xda8] sm:$0xff]  ;;  %v13847_v37 = vcombine.low %v4958_v27, %v4962_v28  ;;  %v13854_v44 = vcombine.high %v4965_v38, %v4969_v40  ;;  %v4997_v9 = vld [vmem:[#allocation8 + $0xe80] sm:$0xff] }
 0x3c1   :  { %7761 = vmatprep.mubr.bf16.mxu0 %v15434_v49  ;;  %7925 = vmatprep.mubr.bf16.mxu1 %v15434_v49  ;;  %v13856_v24 = vcombine.high %v4966_v42, %v4970_v12  ;;  %v4974_v50 = vld [vmem:[#allocation8 + $0xdc8] sm:$0xff]  ;;  %v13855_v25 = vcombine.low %v4966_v42, %v4970_v12  ;;  %v5001_v10 = vld [vmem:[#allocation8 + $0xea0] sm:$0xff] }
 0x3c2   :  { %7762 = vmatmul.mubr.bf16.vlgmr.msra.gmra.mrb[8].mxu0 %v15436_v30  ;;  %7926 = vmatmul.mubr.bf16.vlgmr.msra.gmra.mrb[8].mxu1 %v15436_v30  ;;  %v4998_v13 = vld [vmem:[#allocation8 + $0xe88] sm:$0xff]  ;;  %v5005_v23 = vld [vmem:[#allocation8 + $0xec0] sm:$0xff] }
 0x3c3   :  { %7771 = vmatpush1.bf16.msra.mxu0 %v13805_v53  ;;  %7935 = vmatpush1.bf16.msra.mxu1 %v13807_v52  ;;  %v4978_v53 = vld [vmem:[#allocation8 + $0xde8] sm:$0xff]  ;;  %v13853_v52 = vcombine.low %v4965_v38, %v4969_v40  ;;  %v5009_v27 = vld [vmem:[#allocation8 + $0xee0] sm:$0xff] }
 0x3c4   :  { %7802 = vmatprep.mubr.bf16.mxu0 %v15440_v62  ;;  %7966 = vmatprep.mubr.bf16.mxu1 %v15440_v62  ;;  %v5006_v28 = vld [vmem:[#allocation8 + $0xec8] sm:$0xff]  ;;  %v5013_v40 = vld [vmem:[#allocation8 + $0xf00] sm:$0xff] }
 0x3c5   :  { %7772 = vmatprep.subr.bf16.mxu0 %v13814_v54  ;;  %7936 = vmatprep.subr.bf16.mxu1 %v13816_v56  ;;  %v13862_v54 = vcombine.high %v4973_v47, %v4977_v48  ;;  %v13864_v56 = vcombine.high %v4974_v50, %v4978_v53  ;;  %v5017_v42 = vld [vmem:[#allocation8 + $0xf20] sm:$0xff]  ;;  %v5014_v12 = vld [vmem:[#allocation8 + $0xf08] sm:$0xff] }
 0x3c7   :  { %7773 = vmatpush1.bf16.msra.mxu0 %v13813_v36  ;;  %7937 = vmatpush1.bf16.msra.mxu1 %v13815_v63  ;;  %v4986_v36 = vld [vmem:[#allocation8 + $0xe28] sm:$0xff]  ;;  %v13861_v63 = vcombine.low %v4973_v47, %v4977_v48  ;;  %v5021_v48 = vld [vmem:[#allocation8 + $0xf40] sm:$0xff] }
 0x3c8   :  { %7774 = vmatprep.subr.bf16.mxu0 %v13822_v0  ;;  %7938 = vmatprep.subr.bf16.mxu1 %v13824_v31  ;;  %v13863_v0 = vcombine.low %v4974_v50, %v4978_v53  ;;  %v13870_v31 = vcombine.high %v4981_v59, %v4985_v60  ;;  %v13872_v1 = vcombine.high %v4982_v61, %v4986_v36  ;;  %v15447_v50 = vsub.s32 6, %v15371_v21  ;;  %v5025_v53 = vld [vmem:[#allocation8 + $0xf60] sm:$0xff] }
 0x3c9   :  { %v13909_v21 = vcombine.low %v5021_v48, %v5025_v53 }
 0x3cb   :  { %7775 = vmatpush1.bf16.msra.mxu0 %v13821_v4  ;;  %7939 = vmatpush1.bf16.msra.mxu1 %v13823_v5  ;;  %v4994_v4 = vld [vmem:[#allocation8 + $0xe68] sm:$0xff]  ;;  %v13869_v5 = vcombine.low %v4981_v59, %v4985_v60  ;;  %v13910_v59 = vcombine.high %v5021_v48, %v5025_v53 }
 0x3cc   :  { %7776 = vmatprep.subr.bf16.mxu0 %v13830_v46  ;;  %7940 = vmatprep.subr.bf16.mxu1 %v13832_v6  ;;  %v13871_v46 = vcombine.low %v4982_v61, %v4986_v36  ;;  %v13878_v6 = vcombine.high %v4989_v2, %v4993_v39  ;;  %v13880_v7 = vcombine.high %v4990_v3, %v4994_v4  ;;  %v5029_v61 = vld [vmem:[#allocation8 + $0xf80] sm:$0xff] }
 0x3cd   :  { %v756_v36 = vrot.slane %v15424_v18, %v15447_v50 }
 0x3cf   :  { %7777 = vmatpush1.bf16.msra.mxu0 %v13829_v19  ;;  %7941 = vmatpush1.bf16.msra.mxu1 %v13831_v26  ;;  %v5002_v19 = vld [vmem:[#allocation8 + $0xea8] sm:$0xff]  ;;  %v13877_v26 = vcombine.low %v4989_v2, %v4993_v39 }
 0x3d0   :  { %7778 = vmatprep.subr.bf16.mxu0 %v13838_v20  ;;  %7942 = vmatprep.subr.bf16.mxu1 %v13840_v22  ;;  %v13879_v20 = vcombine.low %v4990_v3, %v4994_v4  ;;  %v13886_v22 = vcombine.high %v4997_v9, %v5001_v10  ;;  %v13888_v8 = vcombine.high %v4998_v13, %v5002_v19  ;;  %v5037_v3 = vld [vmem:[#allocation8 + $0xfc0] sm:$0xff] }
 0x3d1   :  { %v14604_v4 = vadd.f32 %v15432_v15, %v756_v36 }
 0x3d3   :  { %7779 = vmatpush1.bf16.msra.mxu0 %v13837_v29  ;;  %7943 = vmatpush1.bf16.msra.mxu1 %v13839_v33  ;;  %v5010_v29 = vld [vmem:[#allocation8 + $0xee8] sm:$0xff]  ;;  %v13885_v33 = vcombine.low %v4997_v9, %v5001_v10  ;;  %vm4507_vm7 = vcmp.ge.f32.partialorder %v14604_v4, 0.0 }
 0x3d4   :  { %7780 = vmatprep.subr.bf16.mxu0 %v13846_v34  ;;  %7944 = vmatprep.subr.bf16.mxu1 %v13848_v57  ;;  %v13887_v34 = vcombine.low %v4998_v13, %v5002_v19  ;;  %v13894_v57 = vcombine.high %v5005_v23, %v5009_v27  ;;  %v13896_v38 = vcombine.high %v5006_v28, %v5010_v29  ;;  %v4535_v13 = vld [vmem:[#allocation8 + $0x10] sm:$0xff]  ;;  %v4515_v19 = vmul.f32 0.2, %v14604_v4 }
 0x3d7   :  { %7781 = vmatpush1.bf16.msra.mxu0 %v13845_v43  ;;  %7945 = vmatpush1.bf16.msra.mxu1 %v13847_v37  ;;  %v5018_v43 = vld [vmem:[#allocation8 + $0xf28] sm:$0xff]  ;;  %v13893_v37 = vcombine.low %v5005_v23, %v5009_v27 }
 0x3d8   :  { %7782 = vmatprep.subr.bf16.mxu0 %v13854_v44  ;;  %7946 = vmatprep.subr.bf16.mxu1 %v13856_v24  ;;  %v13895_v44 = vcombine.low %v5006_v28, %v5010_v29  ;;  %v13902_v24 = vcombine.high %v5013_v40, %v5017_v42  ;;  %v13904_v47 = vcombine.high %v5014_v12, %v5018_v43  ;;  %v4543_v29 = vld [vmem:[#allocation8 + $0x50] sm:$0xff] }
 0x3d9   :  { %v4523_v28 = vsel %vm4507_vm7, %v14604_v4, %v4515_v19  ;;  %v4583_v19 = vld [vmem:[#allocation8 + $0x190] sm:$0xff] }
 0x3db   :  { %7783 = vmatpush1.bf16.msra.mxu0 %v13853_v52  ;;  %7947 = vmatpush1.bf16.msra.mxu1 %v13855_v25  ;;  %v5022_v52 = vld [vmem:[#allocation8 + $0xf48] sm:$0xff] }
 0x3dc   :  { %7784 = vmatprep.subr.bf16.mxu0 %v13862_v54  ;;  %7948 = vmatprep.subr.bf16.mxu1 %v13864_v56  ;;  %v5026_v25 = vld [vmem:[#allocation8 + $0xf68] sm:$0xff]  ;;  %v13901_v54 = vcombine.low %v5013_v40, %v5017_v42  ;;  %v13903_v56 = vcombine.low %v5014_v12, %v5018_v43  ;;  %v15452_v40 = vpack.c.bf16 %v4523_v28, %v4523_v28  ;;  %v4591_v28 = vld [vmem:[#allocation8 + $0x1d0] sm:$0xff] }
 0x3dd   :  { %v13912_v60 = vcombine.high %v5022_v52, %v5026_v25 }
 0x3df   :  { %7785 = vmatpush1.bf16.msra.mxu0 %v13861_v63  ;;  %7949 = vmatpush1.bf16.msra.mxu1 %v13863_v0  ;;  %v5033_v63 = vld [vmem:[#allocation8 + $0xfa0] sm:$0xff]  ;;  %v5030_v0 = vld [vmem:[#allocation8 + $0xf88] sm:$0xff] }
 0x3e0   :  { %7786 = vmatprep.subr.bf16.mxu0 %v13870_v31  ;;  %7950 = vmatprep.subr.bf16.mxu1 %v13872_v1  ;;  %v5034_v31 = vld [vmem:[#allocation8 + $0xfa8] sm:$0xff]  ;;  %v13911_v1 = vcombine.low %v5022_v52, %v5026_v25  ;;  %v13918_v2 = vcombine.high %v5029_v61, %v5033_v63  ;;  %v13917_v18 = vcombine.low %v5029_v61, %v5033_v63 }
 0x3e1   :  { %v13920_v39 = vcombine.high %v5030_v0, %v5034_v31 }
 0x3e3   :  { %7787 = vmatpush1.bf16.msra.mxu0 %v13869_v5  ;;  %7951 = vmatpush1.bf16.msra.mxu1 %v13871_v46  ;;  %v5041_v5 = vld [vmem:[#allocation8 + $0xfe0] sm:$0xff]  ;;  %v5038_v46 = vld [vmem:[#allocation8 + $0xfc8] sm:$0xff] }
 0x3e4   :  { %7788 = vmatprep.subr.bf16.mxu0 %v13878_v6  ;;  %7952 = vmatprep.subr.bf16.mxu1 %v13880_v7  ;;  %v5042_v6 = vld [vmem:[#allocation8 + $0xfe8] sm:$0xff]  ;;  %v13919_v7 = vcombine.low %v5030_v0, %v5034_v31  ;;  %v13926_v9 = vcombine.high %v5037_v3, %v5041_v5  ;;  %v13925_v15 = vcombine.low %v5037_v3, %v5041_v5  ;;  %v4567_v31 = vld [vmem:[#allocation8 + $0x110] sm:$0xff] }
 0x3e5   :  { %v13928_v10 = vcombine.high %v5038_v46, %v5042_v6  ;;  %v4575_v5 = vld [vmem:[#allocation8 + $0x150] sm:$0xff] }
 0x3e7   :  { %7789 = vmatpush1.bf16.msra.mxu0 %v13877_v26  ;;  %7953 = vmatpush1.bf16.msra.mxu1 %v13879_v20  ;;  %v4539_v26 = vld [vmem:[#allocation8 + $0x30] sm:$0xff]  ;;  %v4536_v20 = vld [vmem:[#allocation8 + $0x18] sm:$0xff] }
 0x3e8   :  { %7790 = vmatprep.subr.bf16.mxu0 %v13886_v22  ;;  %7954 = vmatprep.subr.bf16.mxu1 %v13888_v8  ;;  %v4540_v22 = vld [vmem:[#allocation8 + $0x38] sm:$0xff]  ;;  %v13927_v8 = vcombine.low %v5038_v46, %v5042_v6  ;;  %v13426_v23 = vcombine.high %v4535_v13, %v4539_v26  ;;  %v4579_v46 = vld [vmem:[#allocation8 + $0x170] sm:$0xff] }
 0x3e9   :  { %v13428_v27 = vcombine.high %v4536_v20, %v4540_v22  ;;  %v13427_v42 = vcombine.low %v4536_v20, %v4540_v22  ;;  %v4576_v6 = vld [vmem:[#allocation8 + $0x158] sm:$0xff] }
 0x3ea   :  { %v4584_v20 = vld [vmem:[#allocation8 + $0x198] sm:$0xff] }
 0x3eb   :  { %7791 = vmatpush1.bf16.msra.mxu0 %v13885_v33  ;;  %7955 = vmatpush1.bf16.msra.mxu1 %v13887_v34  ;;  %v4547_v33 = vld [vmem:[#allocation8 + $0x70] sm:$0xff]  ;;  %v4544_v34 = vld [vmem:[#allocation8 + $0x58] sm:$0xff] }
 0x3ec   :  { %7792 = vmatprep.subr.bf16.mxu0 %v13894_v57  ;;  %7956 = vmatprep.subr.bf16.mxu1 %v13896_v38  ;;  %v4548_v57 = vld [vmem:[#allocation8 + $0x78] sm:$0xff]  ;;  %v13425_v38 = vcombine.low %v4535_v13, %v4539_v26  ;;  %v13434_v12 = vcombine.high %v4543_v29, %v4547_v33  ;;  %v13433_v48 = vcombine.low %v4543_v29, %v4547_v33  ;;  %v4587_v26 = vld [vmem:[#allocation8 + $0x1b0] sm:$0xff] }
 0x3ed   :  { %v13436_v43 = vcombine.high %v4544_v34, %v4548_v57  ;;  %v13435_v53 = vcombine.low %v4544_v34, %v4548_v57  ;;  %v4588_v22 = vld [vmem:[#allocation8 + $0x1b8] sm:$0xff]  ;;  %v4595_v29 = vld [vmem:[#allocation8 + $0x1f0] sm:$0xff]  ;;  %v13473_v57 = vcombine.low %v4583_v19, %v4587_v26 }
 0x3ee   :  { %v4592_v33 = vld [vmem:[#allocation8 + $0x1d8] sm:$0xff] }
 0x3ef   :  { %7793 = vmatpush1.bf16.msra.mxu0 %v13893_v37  ;;  %7957 = vmatpush1.bf16.msra.mxu1 %v13895_v44  ;;  %v4551_v37 = vld [vmem:[#allocation8 + $0x90] sm:$0xff]  ;;  %v4596_v34 = vld [vmem:[#allocation8 + $0x1f8] sm:$0xff] }
 0x3f0   :  { %7794 = vmatprep.subr.bf16.mxu0 %v13902_v24  ;;  %7958 = vmatprep.subr.bf16.mxu1 %v13904_v47  ;;  %v4555_v44 = vld [vmem:[#allocation8 + $0xb0] sm:$0xff]  ;;  %v4552_v24 = vld [vmem:[#allocation8 + $0x98] sm:$0xff] }
 0x3f1   :  { %v4556_v47 = vld [vmem:[#allocation8 + $0xb8] sm:$0xff]  ;;  %v13442_v52 = vcombine.high %v4551_v37, %v4555_v44  ;;  %v13441_v61 = vcombine.low %v4551_v37, %v4555_v44  ;;  %v4603_v37 = vld [vmem:[#allocation8 + $0x230] sm:$0xff] }
 0x3f2   :  { %v13444_v25 = vcombine.high %v4552_v24, %v4556_v47  ;;  %v13443_v36 = vcombine.low %v4552_v24, %v4556_v47  ;;  %v4600_v44 = vld [vmem:[#allocation8 + $0x218] sm:$0xff]  ;;  %v13481_v47 = vcombine.low %v4591_v28, %v4595_v29 }
 0x3f3   :  { %7795 = vmatpush1.bf16.msra.mxu0 %v13901_v54  ;;  %7959 = vmatpush1.bf16.msra.mxu1 %v13903_v56  ;;  %v4559_v54 = vld [vmem:[#allocation8 + $0xd0] sm:$0xff]  ;;  %v4604_v24 = vld [vmem:[#allocation8 + $0x238] sm:$0xff] }
 0x3f4   :  { %7796 = vmatprep.subr.bf16.mxu0 %v13910_v59  ;;  %7960 = vmatprep.subr.bf16.mxu1 %v13912_v60  ;;  %v4563_v56 = vld [vmem:[#allocation8 + $0xf0] sm:$0xff]  ;;  %v4560_v59 = vld [vmem:[#allocation8 + $0xd8] sm:$0xff] }
 0x3f5   :  { %v4564_v60 = vld [vmem:[#allocation8 + $0xf8] sm:$0xff]  ;;  %v13450_v63 = vcombine.high %v4559_v54, %v4563_v56 }
 0x3f6   :  { %v13452_v0 = vcombine.high %v4560_v59, %v4564_v60 }
 0x3f7   :  { %7797 = vmatpush1.bf16.msra.mxu0 %v13909_v21  ;;  %7961 = vmatpush1.bf16.msra.mxu1 %v13911_v1  ;;  %v4571_v21 = vld [vmem:[#allocation8 + $0x130] sm:$0xff]  ;;  %v4572_v1 = vld [vmem:[#allocation8 + $0x138] sm:$0xff] }
 0x3f8   :  { %7798 = vmatprep.subr.bf16.mxu0 %v13918_v2  ;;  %7962 = vmatprep.subr.bf16.mxu1 %v13920_v39  ;;  %v13449_v2 = vcombine.low %v4559_v54, %v4563_v56  ;;  %v13451_v39 = vcombine.low %v4560_v59, %v4564_v60  ;;  %v13458_v3 = vcombine.high %v4567_v31, %v4571_v21  ;;  %v4611_v54 = vld [vmem:[#allocation8 + $0x270] sm:$0xff]  ;;  %v4608_v56 = vld [vmem:[#allocation8 + $0x258] sm:$0xff] }
 0x3f9   :  { %v4612_v59 = vld [vmem:[#allocation8 + $0x278] sm:$0xff] }
 0x3fb   :  { %7799 = vmatpush1.bf16.msra.mxu0 %v13917_v18  ;;  %7963 = vmatpush1.bf16.msra.mxu1 %v13919_v7  ;;  %v4580_v18 = vld [vmem:[#allocation8 + $0x178] sm:$0xff]  ;;  %v13457_v7 = vcombine.low %v4567_v31, %v4571_v21  ;;  %v4619_v31 = vld [vmem:[#allocation8 + $0x2b0] sm:$0xff] }
 0x3fc   :  { %7800 = vmatprep.subr.bf16.mxu0 %v13926_v9  ;;  %7964 = vmatprep.subr.bf16.mxu1 %v13928_v10  ;;  %v13466_v10 = vcombine.high %v4575_v5, %v4579_v46  ;;  %v13468_v13 = vcombine.high %v4576_v6, %v4580_v18  ;;  %v4616_v21 = vld [vmem:[#allocation8 + $0x298] sm:$0xff] }
 0x3ff   :  { %7801 = vmatpush1.bf16.msra.mxu0 %v13925_v15  ;;  %7965 = vmatpush1.bf16.msra.mxu1 %v13927_v8  ;;  %v13465_v15 = vcombine.low %v4575_v5, %v4579_v46  ;;  %v13467_v8 = vcombine.low %v4576_v6, %v4580_v18  ;;  %v4627_v5 = vld [vmem:[#allocation8 + $0x2f0] sm:$0xff]  ;;  %v4624_v46 = vld [vmem:[#allocation8 + $0x2d8] sm:$0xff] }
 0x400   :  { %7975 = vmatprep.subr.bf16.mxu0 %v13426_v23  ;;  %8139 = vmatprep.subr.bf16.mxu1 %v13428_v27  ;;  %v13474_v23 = vcombine.high %v4583_v19, %v4587_v26  ;;  %v13476_v27 = vcombine.high %v4584_v20, %v4588_v22  ;;  %v4628_v6 = vld [vmem:[#allocation8 + $0x2f8] sm:$0xff]  ;;  %v4635_v19 = vld [vmem:[#allocation8 + $0x330] sm:$0xff] }
 0x401   :  { %v4632_v26 = vld [vmem:[#allocation8 + $0x318] sm:$0xff] }
 0x402   :  { %7803 = vmatmul.mubr.bf16.vlgmr.msra.gmra.mrb[8].mxu0 %v15452_v40  ;;  %7967 = vmatmul.mubr.bf16.vlgmr.msra.gmra.mrb[8].mxu1 %v15452_v40 }
 0x403   :  { %7976 = vmatpush1.bf16.msra.mxu0 %v13425_v38  ;;  %8007 = vmatprep.mubr.bf16.mxu0 %v15381_v11  ;;  %v13475_v38 = vcombine.low %v4584_v20, %v4588_v22  ;;  %v4636_v20 = vld [vmem:[#allocation8 + $0x338] sm:$0xff] }
 0x404   :  { %8140 = vmatpush1.bf16.msra.mxu1 %v13427_v42  ;;  %8171 = vmatprep.mubr.bf16.mxu1 %v15381_v11  ;;  %v4568_v11 = vld [vmem:[#allocation8 + $0x118] sm:$0xff]  ;;  %v13482_v42 = vcombine.high %v4591_v28, %v4595_v29  ;;  %v4643_v28 = vld [vmem:[#allocation8 + $0x370] sm:$0xff] }
 0x405   :  { %7977 = vmatprep.subr.bf16.mxu0 %v13434_v12  ;;  %8141 = vmatprep.subr.bf16.mxu1 %v13436_v43  ;;  %v13460_v4 = vcombine.high %v4568_v11, %v4572_v1  ;;  %v13459_v9 = vcombine.low %v4568_v11, %v4572_v1  ;;  %v13484_v12 = vcombine.high %v4592_v33, %v4596_v34  ;;  %v4599_v43 = vld [vmem:[#allocation8 + $0x210] sm:$0xff]  ;;  %v4620_v11 = vld [vmem:[#allocation8 + $0x2b8] sm:$0xff] }
 0x406   :  { %v13489_v60 = vcombine.low %v4599_v43, %v4603_v37  ;;  %v4640_v29 = vld [vmem:[#allocation8 + $0x358] sm:$0xff] }
 0x407   :  { %7978 = vmatpush1.bf16.msra.mxu0 %v13433_v48  ;;  %v13483_v48 = vcombine.low %v4592_v33, %v4596_v34  ;;  %v4644_v33 = vld [vmem:[#allocation8 + $0x378] sm:$0xff] }
 0x408   :  { %8142 = vmatpush1.bf16.msra.mxu1 %v13435_v53  ;;  %7979 = vmatprep.subr.bf16.mxu0 %v13442_v52  ;;  %v13490_v53 = vcombine.high %v4599_v43, %v4603_v37  ;;  %v13492_v52 = vcombine.high %v4600_v44, %v4604_v24  ;;  %v4651_v43 = vld [vmem:[#allocation8 + $0x3b0] sm:$0xff]  ;;  %v4648_v37 = vld [vmem:[#allocation8 + $0x398] sm:$0xff] }
 0x409   :  { %8143 = vmatprep.subr.bf16.mxu1 %v13444_v25  ;;  %v4607_v25 = vld [vmem:[#allocation8 + $0x250] sm:$0xff] }
 0x40a   :  { %v13497_v1 = vcombine.low %v4607_v25, %v4611_v54 }
 0x40b   :  { %7980 = vmatpush1.bf16.msra.mxu0 %v13441_v61  ;;  %v13491_v61 = vcombine.low %v4600_v44, %v4604_v24  ;;  %v4652_v44 = vld [vmem:[#allocation8 + $0x3b8] sm:$0xff] }
 0x40c   :  { %8144 = vmatpush1.bf16.msra.mxu1 %v13443_v36  ;;  %7981 = vmatprep.subr.bf16.mxu0 %v13450_v63  ;;  %v13498_v36 = vcombine.high %v4607_v25, %v4611_v54  ;;  %v13500_v63 = vcombine.high %v4608_v56, %v4612_v59  ;;  %v4659_v25 = vld [vmem:[#allocation8 + $0x3f0] sm:$0xff]  ;;  %v4656_v54 = vld [vmem:[#allocation8 + $0x3d8] sm:$0xff] }
 0x40d   :  { %8145 = vmatprep.subr.bf16.mxu1 %v13452_v0  ;;  %v4615_v0 = vld [vmem:[#allocation8 + $0x290] sm:$0xff] }
 0x40e   :  { %v13505_v18 = vcombine.low %v4615_v0, %v4619_v31 }
 0x40f   :  { %7982 = vmatpush1.bf16.msra.mxu0 %v13449_v2  ;;  %v13499_v2 = vcombine.low %v4608_v56, %v4612_v59  ;;  %v4660_v56 = vld [vmem:[#allocation8 + $0x3f8] sm:$0xff] }
 0x410   :  { %8146 = vmatpush1.bf16.msra.mxu1 %v13451_v39  ;;  %7983 = vmatprep.subr.bf16.mxu0 %v13458_v3  ;;  %v13506_v39 = vcombine.high %v4615_v0, %v4619_v31  ;;  %v13508_v3 = vcombine.high %v4616_v21, %v4620_v11  ;;  %v4667_v0 = vld [vmem:[#allocation8 + $0x430] sm:$0xff]  ;;  %v4664_v31 = vld [vmem:[#allocation8 + $0x418] sm:$0xff] }
 0x411   :  { %8147 = vmatprep.subr.bf16.mxu1 %v13460_v4  ;;  %v4623_v4 = vld [vmem:[#allocation8 + $0x2d0] sm:$0xff] }
 0x412   :  { %v13513_v22 = vcombine.low %v4623_v4, %v4627_v5 }
 0x413   :  { %7984 = vmatpush1.bf16.msra.mxu0 %v13457_v7  ;;  %v13507_v7 = vcombine.low %v4616_v21, %v4620_v11  ;;  %v4668_v21 = vld [vmem:[#allocation8 + $0x438] sm:$0xff] }
 0x414   :  { %8148 = vmatpush1.bf16.msra.mxu1 %v13459_v9  ;;  %7985 = vmatprep.subr.bf16.mxu0 %v13466_v10  ;;  %v13514_v9 = vcombine.high %v4623_v4, %v4627_v5  ;;  %v13516_v10 = vcombine.high %v4624_v46, %v4628_v6  ;;  %v4675_v4 = vld [vmem:[#allocation8 + $0x470] sm:$0xff] }
 0x415   :  { %8149 = vmatprep.subr.bf16.mxu1 %v13468_v13  ;;  %v4631_v13 = vld [vmem:[#allocation8 + $0x310] sm:$0xff] }
 0x416   :  { %v13521_v34 = vcombine.low %v4631_v13, %v4635_v19 }
 0x417   :  { %7986 = vmatpush1.bf16.msra.mxu0 %v13465_v15  ;;  %v13515_v15 = vcombine.low %v4624_v46, %v4628_v6  ;;  %v4672_v46 = vld [vmem:[#allocation8 + $0x458] sm:$0xff] }
 0x418   :  { %8150 = vmatpush1.bf16.msra.mxu1 %v13467_v8  ;;  %7987 = vmatprep.subr.bf16.mxu0 %v13474_v23  ;;  %v13522_v8 = vcombine.high %v4631_v13, %v4635_v19  ;;  %v13524_v23 = vcombine.high %v4632_v26, %v4636_v20  ;;  %v4676_v6 = vld [vmem:[#allocation8 + $0x478] sm:$0xff] }
 0x419   :  { %8151 = vmatprep.subr.bf16.mxu1 %v13476_v27  ;;  %v4639_v27 = vld [vmem:[#allocation8 + $0x350] sm:$0xff]  ;;  %v13564_v13 = vcombine.high %v4672_v46, %v4676_v6  ;;  %v4680_v19 = vld [vmem:[#allocation8 + $0x498] sm:$0xff] }
 0x41a   :  { %v13529_v24 = vcombine.low %v4639_v27, %v4643_v28 }
 0x41b   :  { %7988 = vmatpush1.bf16.msra.mxu0 %v13473_v57  ;;  %v13523_v57 = vcombine.low %v4632_v26, %v4636_v20  ;;  %v4684_v26 = vld [vmem:[#allocation8 + $0x4b8] sm:$0xff] }
 0x41c   :  { %8152 = vmatpush1.bf16.msra.mxu1 %v13475_v38  ;;  %7989 = vmatprep.subr.bf16.mxu0 %v13482_v42  ;;  %v13530_v38 = vcombine.high %v4639_v27, %v4643_v28  ;;  %v13532_v42 = vcombine.high %v4640_v29, %v4644_v33  ;;  %v4691_v27 = vld [vmem:[#allocation8 + $0x4f0] sm:$0xff]  ;;  %v4688_v28 = vld [vmem:[#allocation8 + $0x4d8] sm:$0xff] }
 0x41d   :  { %8153 = vmatprep.subr.bf16.mxu1 %v13484_v12  ;;  %v4647_v12 = vld [vmem:[#allocation8 + $0x390] sm:$0xff] }
 0x41e   :  { %v13537_v59 = vcombine.low %v4647_v12, %v4651_v43 }
 0x41f   :  { %7990 = vmatpush1.bf16.msra.mxu0 %v13481_v47  ;;  %v13531_v47 = vcombine.low %v4640_v29, %v4644_v33  ;;  %v4692_v29 = vld [vmem:[#allocation8 + $0x4f8] sm:$0xff] }
 0x420   :  { %8154 = vmatpush1.bf16.msra.mxu1 %v13483_v48  ;;  %7991 = vmatprep.subr.bf16.mxu0 %v13490_v53  ;;  %v13538_v48 = vcombine.high %v4647_v12, %v4651_v43  ;;  %v13540_v53 = vcombine.high %v4648_v37, %v4652_v44  ;;  %v4696_v12 = vld [vmem:[#allocation8 + $0x518] sm:$0xff] }
 0x421   :  { %8155 = vmatprep.subr.bf16.mxu1 %v13492_v52  ;;  %v4655_v52 = vld [vmem:[#allocation8 + $0x3d0] sm:$0xff]  ;;  %v4700_v43 = vld [vmem:[#allocation8 + $0x538] sm:$0xff] }
 0x422   :  { %v13545_v11 = vcombine.low %v4655_v52, %v4659_v25 }
 0x423   :  { %7992 = vmatpush1.bf16.msra.mxu0 %v13489_v60  ;;  %v13539_v60 = vcombine.low %v4648_v37, %v4652_v44  ;;  %v13579_v37 = vcombine.low %v4688_v28, %v4692_v29 }
 0x424   :  { %8156 = vmatpush1.bf16.msra.mxu1 %v13491_v61  ;;  %7993 = vmatprep.subr.bf16.mxu0 %v13498_v36  ;;  %v13546_v61 = vcombine.high %v4655_v52, %v4659_v25  ;;  %v13548_v36 = vcombine.high %v4656_v54, %v4660_v56  ;;  %v4708_v52 = vld [vmem:[#allocation8 + $0x578] sm:$0xff] }
 0x425   :  { %8157 = vmatprep.subr.bf16.mxu1 %v13500_v63  ;;  %v4663_v63 = vld [vmem:[#allocation8 + $0x410] sm:$0xff] }
 0x426   :  { %v13553_v5 = vcombine.low %v4663_v63, %v4667_v0 }
 0x427   :  { %7994 = vmatpush1.bf16.msra.mxu0 %v13497_v1  ;;  %v13547_v1 = vcombine.low %v4656_v54, %v4660_v56  ;;  %v13587_v54 = vcombine.low %v4696_v12, %v4700_v43 }
 0x428   :  { %8158 = vmatpush1.bf16.msra.mxu1 %v13499_v2  ;;  %7995 = vmatprep.subr.bf16.mxu0 %v13506_v39  ;;  %v13554_v2 = vcombine.high %v4663_v63, %v4667_v0  ;;  %v13556_v39 = vcombine.high %v4664_v31, %v4668_v21  ;;  %v4716_v63 = vld [vmem:[#allocation8 + $0x5b8] sm:$0xff] }
 0x429   :  { %8159 = vmatprep.subr.bf16.mxu1 %v13508_v3  ;;  %v4671_v3 = vld [vmem:[#allocation8 + $0x450] sm:$0xff] }
 0x42a   :  { %v13561_v20 = vcombine.low %v4671_v3, %v4675_v4 }
 0x42b   :  { %7996 = vmatpush1.bf16.msra.mxu0 %v13505_v18  ;;  %v13555_v18 = vcombine.low %v4664_v31, %v4668_v21 }
 0x42c   :  { %8160 = vmatpush1.bf16.msra.mxu1 %v13507_v7  ;;  %7997 = vmatprep.subr.bf16.mxu0 %v13514_v9  ;;  %v13562_v7 = vcombine.high %v4671_v3, %v4675_v4  ;;  %v4679_v9 = vld [vmem:[#allocation8 + $0x490] sm:$0xff]  ;;  %v4724_v3 = vld [vmem:[#allocation8 + $0x5f8] sm:$0xff] }
 0x42d   :  { %8161 = vmatprep.subr.bf16.mxu1 %v13516_v10  ;;  %v4683_v10 = vld [vmem:[#allocation8 + $0x4b0] sm:$0xff] }
 0x42e   :  { %v13569_v33 = vcombine.low %v4679_v9, %v4683_v10 }
 0x42f   :  { %7998 = vmatpush1.bf16.msra.mxu0 %v13513_v22  ;;  %v13563_v22 = vcombine.low %v4672_v46, %v4676_v6 }
 0x430   :  { %8162 = vmatpush1.bf16.msra.mxu1 %v13515_v15  ;;  %7999 = vmatprep.subr.bf16.mxu0 %v13522_v8  ;;  %v13570_v15 = vcombine.high %v4679_v9, %v4683_v10  ;;  %v13572_v8 = vcombine.high %v4680_v19, %v4684_v26  ;;  %v4728_v9 = vld [vmem:[#allocation8 + $0x618] sm:$0xff] }
 0x431   :  { %8163 = vmatprep.subr.bf16.mxu1 %v13524_v23  ;;  %v4687_v23 = vld [vmem:[#allocation8 + $0x4d0] sm:$0xff]  ;;  %v4732_v10 = vld [vmem:[#allocation8 + $0x638] sm:$0xff] }
 0x433   :  { %8000 = vmatpush1.bf16.msra.mxu0 %v13521_v34  ;;  %v13578_v34 = vcombine.high %v4687_v23, %v4691_v27 }
 0x434   :  { %8164 = vmatpush1.bf16.msra.mxu1 %v13523_v57  ;;  %8001 = vmatprep.subr.bf16.mxu0 %v13530_v38  ;;  %v13580_v57 = vcombine.high %v4688_v28, %v4692_v29  ;;  %v4695_v38 = vld [vmem:[#allocation8 + $0x510] sm:$0xff]  ;;  %v13619_v28 = vcombine.low %v4728_v9, %v4732_v10 }
 0x435   :  { %8165 = vmatprep.subr.bf16.mxu1 %v13532_v42  ;;  %v4699_v42 = vld [vmem:[#allocation8 + $0x530] sm:$0xff] }
 0x436   :  { %v13586_v44 = vcombine.high %v4695_v38, %v4699_v42  ;;  %v13585_v25 = vcombine.low %v4695_v38, %v4699_v42  ;;  %v4748_v38 = vld [vmem:[#allocation8 + $0x6b8] sm:$0xff] }
 0x437   :  { %8002 = vmatpush1.bf16.msra.mxu0 %v13529_v24  ;;  %v13588_v24 = vcombine.high %v4696_v12, %v4700_v43 }
 0x438   :  { %8166 = vmatpush1.bf16.msra.mxu1 %v13531_v47  ;;  %8003 = vmatprep.subr.bf16.mxu0 %v13538_v48  ;;  %v4703_v47 = vld [vmem:[#allocation8 + $0x550] sm:$0xff] }
 0x439   :  { %8167 = vmatprep.subr.bf16.mxu1 %v13540_v53  ;;  %v4707_v48 = vld [vmem:[#allocation8 + $0x570] sm:$0xff]  ;;  %v4704_v53 = vld [vmem:[#allocation8 + $0x558] sm:$0xff] }
 0x43a   :  { %v13594_v56 = vcombine.high %v4703_v47, %v4707_v48  ;;  %v13593_v0 = vcombine.low %v4703_v47, %v4707_v48  ;;  %v13595_v31 = vcombine.low %v4704_v53, %v4708_v52  ;;  %v4756_v47 = vld [vmem:[#allocation8 + $0x6f8] sm:$0xff] }
 0x43b   :  { %8004 = vmatpush1.bf16.msra.mxu0 %v13537_v59  ;;  %v13596_v59 = vcombine.high %v4704_v53, %v4708_v52 }
 0x43c   :  { %8168 = vmatpush1.bf16.msra.mxu1 %v13539_v60  ;;  %8005 = vmatprep.subr.bf16.mxu0 %v13546_v61  ;;  %v4711_v60 = vld [vmem:[#allocation8 + $0x590] sm:$0xff] }
 0x43d   :  { %8169 = vmatprep.subr.bf16.mxu1 %v13548_v36  ;;  %v4715_v61 = vld [vmem:[#allocation8 + $0x5b0] sm:$0xff]  ;;  %v4712_v36 = vld [vmem:[#allocation8 + $0x598] sm:$0xff] }
 0x43e   :  { %v13602_v21 = vcombine.high %v4711_v60, %v4715_v61  ;;  %v13601_v4 = vcombine.low %v4711_v60, %v4715_v61  ;;  %v4764_v60 = vld [vmem:[#allocation8 + $0x738] sm:$0xff] }
 0x43f   :  { %8006 = vmatpush1.bf16.msra.mxu0 %v13545_v11  ;;  %v13604_v11 = vcombine.high %v4712_v36, %v4716_v63 }
 0x440   :  { %8170 = vmatpush1.bf16.msra.mxu1 %v13547_v1  ;;  %8016 = vmatprep.subr.bf16.mxu0 %v13554_v2  ;;  %v4719_v1 = vld [vmem:[#allocation8 + $0x5d0] sm:$0xff] }
 0x441   :  { %8180 = vmatprep.subr.bf16.mxu1 %v13556_v39  ;;  %v4723_v2 = vld [vmem:[#allocation8 + $0x5f0] sm:$0xff]  ;;  %v4720_v39 = vld [vmem:[#allocation8 + $0x5d8] sm:$0xff] }
 0x442   :  { %8008 = vmatmul.mubr.bf16.vlgmr.msra.gmra.mrb[12].mxu0 %v15397_v41  ;;  %v13610_v46 = vcombine.high %v4719_v1, %v4723_v2  ;;  %v13612_v6 = vcombine.high %v4720_v39, %v4724_v3 }
 0x443   :  { %8172 = vmatmul.mubr.bf16.vlgmr.msra.gmra.mrb[12].mxu1 %v15397_v41  ;;  %8017 = vmatpush1.bf16.msra.mxu0 %v13553_v5  ;;  %v13571_v41 = vcombine.low %v4680_v19, %v4684_v26  ;;  %v13603_v5 = vcombine.low %v4712_v36, %v4716_v63  ;;  %v13611_v19 = vcombine.low %v4720_v39, %v4724_v3 }
 0x444   :  { %8048 = vmatprep.mubr.bf16.mxu0 %v15399_v45  ;;  %8181 = vmatpush1.bf16.msra.mxu1 %v13555_v18  ;;  %v4727_v18 = vld [vmem:[#allocation8 + $0x610] sm:$0xff] }
 0x445   :  { %8212 = vmatprep.mubr.bf16.mxu1 %v15399_v45  ;;  %8018 = vmatprep.subr.bf16.mxu0 %v13562_v7  ;;  %v13577_v45 = vcombine.low %v4687_v23, %v4691_v27  ;;  %v4731_v7 = vld [vmem:[#allocation8 + $0x630] sm:$0xff]  ;;  %v4740_v23 = vld [vmem:[#allocation8 + $0x678] sm:$0xff] }
 0x446   :  { %8182 = vmatprep.subr.bf16.mxu1 %v13564_v13  ;;  %v13609_v13 = vcombine.low %v4719_v1, %v4723_v2  ;;  %v13618_v26 = vcombine.high %v4727_v18, %v4731_v7  ;;  %v13617_v27 = vcombine.low %v4727_v18, %v4731_v7  ;;  %v4772_v1 = vld [vmem:[#allocation8 + $0x778] sm:$0xff] }
 0x447   :  { %8019 = vmatpush1.bf16.msra.mxu0 %v13561_v20  ;;  %v13620_v20 = vcombine.high %v4728_v9, %v4732_v10  ;;  %v4780_v18 = vld [vmem:[#allocation8 + $0x7b8] sm:$0xff] }
 0x448   :  { %8183 = vmatpush1.bf16.msra.mxu1 %v13563_v22  ;;  %8020 = vmatprep.subr.bf16.mxu0 %v13570_v15  ;;  %v4735_v22 = vld [vmem:[#allocation8 + $0x650] sm:$0xff] }
 0x449   :  { %8184 = vmatprep.subr.bf16.mxu1 %v13572_v8  ;;  %v4739_v15 = vld [vmem:[#allocation8 + $0x670] sm:$0xff]  ;;  %v4736_v8 = vld [vmem:[#allocation8 + $0x658] sm:$0xff] }
 0x44a   :  { %v13626_v29 = vcombine.high %v4735_v22, %v4739_v15  ;;  %v13625_v42 = vcombine.low %v4735_v22, %v4739_v15  ;;  %v13627_v12 = vcombine.low %v4736_v8, %v4740_v23  ;;  %v4788_v22 = vld [vmem:[#allocation8 + $0x7f8] sm:$0xff] }
 0x44b   :  { %8021 = vmatpush1.bf16.msra.mxu0 %v13569_v33  ;;  %v13628_v33 = vcombine.high %v4736_v8, %v4740_v23 }
 0x44c   :  { %8185 = vmatpush1.bf16.msra.mxu1 %v13571_v41  ;;  %8022 = vmatprep.subr.bf16.mxu0 %v13578_v34  ;;  %v4743_v41 = vld [vmem:[#allocation8 + $0x690] sm:$0xff] }
 0x44d   :  { %8186 = vmatprep.subr.bf16.mxu1 %v13580_v57  ;;  %v4747_v34 = vld [vmem:[#allocation8 + $0x6b0] sm:$0xff]  ;;  %v4744_v57 = vld [vmem:[#allocation8 + $0x698] sm:$0xff] }
 0x44e   :  { %v13634_v43 = vcombine.high %v4743_v41, %v4747_v34  ;;  %v13633_v48 = vcombine.low %v4743_v41, %v4747_v34  ;;  %v13635_v53 = vcombine.low %v4744_v57, %v4748_v38  ;;  %v4796_v41 = vld [vmem:[#allocation8 + $0x838] sm:$0xff] }
 0x44f   :  { %8023 = vmatpush1.bf16.msra.mxu0 %v13577_v45  ;;  %v13636_v45 = vcombine.high %v4744_v57, %v4748_v38 }
 0x450   :  { %8187 = vmatpush1.bf16.msra.mxu1 %v13579_v37  ;;  %8024 = vmatprep.subr.bf16.mxu0 %v13586_v44  ;;  %v4751_v37 = vld [vmem:[#allocation8 + $0x6d0] sm:$0xff] }
 0x451   :  { %8188 = vmatprep.subr.bf16.mxu1 %v13588_v24  ;;  %v4755_v44 = vld [vmem:[#allocation8 + $0x6f0] sm:$0xff]  ;;  %v4752_v24 = vld [vmem:[#allocation8 + $0x6d8] sm:$0xff] }
 0x452   :  { %v13642_v52 = vcombine.high %v4751_v37, %v4755_v44  ;;  %v13641_v61 = vcombine.low %v4751_v37, %v4755_v44  ;;  %v13643_v36 = vcombine.low %v4752_v24, %v4756_v47  ;;  %v4800_v37 = vld [vmem:[#allocation8 + $0x858] sm:$0xff] }
 0x453   :  { %8025 = vmatpush1.bf16.msra.mxu0 %v13585_v25  ;;  %v13644_v25 = vcombine.high %v4752_v24, %v4756_v47  ;;  %v4804_v44 = vld [vmem:[#allocation8 + $0x878] sm:$0xff] }
 0x454   :  { %8189 = vmatpush1.bf16.msra.mxu1 %v13587_v54  ;;  %8026 = vmatprep.subr.bf16.mxu0 %v13594_v56  ;;  %v4759_v54 = vld [vmem:[#allocation8 + $0x710] sm:$0xff] }
 0x455   :  { %8190 = vmatprep.subr.bf16.mxu1 %v13596_v59  ;;  %v4763_v56 = vld [vmem:[#allocation8 + $0x730] sm:$0xff]  ;;  %v4760_v59 = vld [vmem:[#allocation8 + $0x718] sm:$0xff] }
 0x456   :  { %v13650_v63 = vcombine.high %v4759_v54, %v4763_v56  ;;  %v13649_v2 = vcombine.low %v4759_v54, %v4763_v56  ;;  %v13651_v39 = vcombine.low %v4760_v59, %v4764_v60  ;;  %v4812_v54 = vld [vmem:[#allocation8 + $0x8b8] sm:$0xff] }
 0x457   :  { %8027 = vmatpush1.bf16.msra.mxu0 %v13593_v0  ;;  %v13652_v0 = vcombine.high %v4760_v59, %v4764_v60  ;;  %v13691_v59 = vcombine.low %v4800_v37, %v4804_v44 }
 0x458   :  { %8191 = vmatpush1.bf16.msra.mxu1 %v13595_v31  ;;  %8028 = vmatprep.subr.bf16.mxu0 %v13602_v21  ;;  %v4767_v31 = vld [vmem:[#allocation8 + $0x750] sm:$0xff] }
 0x459   :  { %8192 = vmatprep.subr.bf16.mxu1 %v13604_v11  ;;  %v4771_v21 = vld [vmem:[#allocation8 + $0x770] sm:$0xff]  ;;  %v4768_v11 = vld [vmem:[#allocation8 + $0x758] sm:$0xff] }
 0x45a   :  { %v13658_v3 = vcombine.high %v4767_v31, %v4771_v21  ;;  %v13657_v7 = vcombine.low %v4767_v31, %v4771_v21  ;;  %v13659_v9 = vcombine.low %v4768_v11, %v4772_v1  ;;  %v4820_v31 = vld [vmem:[#allocation8 + $0x8f8] sm:$0xff] }
 0x45b   :  { %8029 = vmatpush1.bf16.msra.mxu0 %v13601_v4  ;;  %v13660_v4 = vcombine.high %v4768_v11, %v4772_v1 }
 0x45c   :  { %8193 = vmatpush1.bf16.msra.mxu1 %v13603_v5  ;;  %8030 = vmatprep.subr.bf16.mxu0 %v13610_v46  ;;  %v4775_v5 = vld [vmem:[#allocation8 + $0x790] sm:$0xff] }
 0x45d   :  { %8194 = vmatprep.subr.bf16.mxu1 %v13612_v6  ;;  %v4779_v46 = vld [vmem:[#allocation8 + $0x7b0] sm:$0xff]  ;;  %v4776_v6 = vld [vmem:[#allocation8 + $0x798] sm:$0xff] }
 0x45e   :  { %v13666_v10 = vcombine.high %v4775_v5, %v4779_v46  ;;  %v13665_v15 = vcombine.low %v4775_v5, %v4779_v46  ;;  %v13667_v8 = vcombine.low %v4776_v6, %v4780_v18 }
 0x45f   :  { %8031 = vmatpush1.bf16.msra.mxu0 %v13609_v13  ;;  %v13668_v13 = vcombine.high %v4776_v6, %v4780_v18  ;;  %v4831_v18 = vld [vmem:[#allocation8 + $0x950] sm:$0xff] }
 0x460   :  { %8195 = vmatpush1.bf16.msra.mxu1 %v13611_v19  ;;  %8032 = vmatprep.subr.bf16.mxu0 %v13618_v26  ;;  %v4783_v19 = vld [vmem:[#allocation8 + $0x7d0] sm:$0xff] }
 0x461   :  { %8196 = vmatprep.subr.bf16.mxu1 %v13620_v20  ;;  %v4787_v26 = vld [vmem:[#allocation8 + $0x7f0] sm:$0xff]  ;;  %v4784_v20 = vld [vmem:[#allocation8 + $0x7d8] sm:$0xff] }
 0x462   :  { %v13674_v23 = vcombine.high %v4783_v19, %v4787_v26  ;;  %v13673_v34 = vcombine.low %v4783_v19, %v4787_v26  ;;  %v13675_v57 = vcombine.low %v4784_v20, %v4788_v22 }
 0x463   :  { %8033 = vmatpush1.bf16.msra.mxu0 %v13617_v27  ;;  %v13676_v27 = vcombine.high %v4784_v20, %v4788_v22  ;;  %v4839_v22 = vld [vmem:[#allocation8 + $0x990] sm:$0xff] }
 0x464   :  { %8197 = vmatpush1.bf16.msra.mxu1 %v13619_v28  ;;  %8034 = vmatprep.subr.bf16.mxu0 %v13626_v29  ;;  %v4791_v28 = vld [vmem:[#allocation8 + $0x810] sm:$0xff] }
 0x465   :  { %8198 = vmatprep.subr.bf16.mxu1 %v13628_v33  ;;  %v4795_v29 = vld [vmem:[#allocation8 + $0x830] sm:$0xff]  ;;  %v4792_v33 = vld [vmem:[#allocation8 + $0x818] sm:$0xff] }
 0x466   :  { %v13682_v38 = vcombine.high %v4791_v28, %v4795_v29  ;;  %v13683_v24 = vcombine.low %v4792_v33, %v4796_v41 }
 0x467   :  { %8035 = vmatpush1.bf16.msra.mxu0 %v13625_v42  ;;  %v13684_v42 = vcombine.high %v4792_v33, %v4796_v41  ;;  %v4847_v41 = vld [vmem:[#allocation8 + $0x9d0] sm:$0xff] }
 0x468   :  { %8199 = vmatpush1.bf16.msra.mxu1 %v13627_v12  ;;  %8036 = vmatprep.subr.bf16.mxu0 %v13634_v43  ;;  %v4799_v12 = vld [vmem:[#allocation8 + $0x850] sm:$0xff] }
 0x469   :  { %8200 = vmatprep.subr.bf16.mxu1 %v13636_v45  ;;  %v4803_v43 = vld [vmem:[#allocation8 + $0x870] sm:$0xff]  ;;  %v13681_v45 = vcombine.low %v4791_v28, %v4795_v29 }
 0x46a   :  { %v13690_v47 = vcombine.high %v4799_v12, %v4803_v43  ;;  %v13689_v56 = vcombine.low %v4799_v12, %v4803_v43 }
 0x46b   :  { %8037 = vmatpush1.bf16.msra.mxu0 %v13633_v48  ;;  %v4807_v48 = vld [vmem:[#allocation8 + $0x890] sm:$0xff] }
 0x46c   :  { %8201 = vmatpush1.bf16.msra.mxu1 %v13635_v53  ;;  %8038 = vmatprep.subr.bf16.mxu0 %v13642_v52  ;;  %v4811_v53 = vld [vmem:[#allocation8 + $0x8b0] sm:$0xff]  ;;  %v13692_v52 = vcombine.high %v4800_v37, %v4804_v44 }
 0x46d   :  { %8202 = vmatprep.subr.bf16.mxu1 %v13644_v25  ;;  %v4808_v25 = vld [vmem:[#allocation8 + $0x898] sm:$0xff]  ;;  %v13698_v60 = vcombine.high %v4807_v48, %v4811_v53  ;;  %v13697_v21 = vcombine.low %v4807_v48, %v4811_v53  ;;  %v4855_v37 = vld [vmem:[#allocation8 + $0xa10] sm:$0xff] }
 0x46e   :  { %v4859_v44 = vld [vmem:[#allocation8 + $0xa30] sm:$0xff] }
 0x46f   :  { %8039 = vmatpush1.bf16.msra.mxu0 %v13641_v61  ;;  %v13700_v61 = vcombine.high %v4808_v25, %v4812_v54 }
 0x470   :  { %8203 = vmatpush1.bf16.msra.mxu1 %v13643_v36  ;;  %8040 = vmatprep.subr.bf16.mxu0 %v13650_v63  ;;  %v4815_v36 = vld [vmem:[#allocation8 + $0x8d0] sm:$0xff] }
 0x471   :  { %8204 = vmatprep.subr.bf16.mxu1 %v13652_v0  ;;  %v4819_v63 = vld [vmem:[#allocation8 + $0x8f0] sm:$0xff]  ;;  %v4816_v0 = vld [vmem:[#allocation8 + $0x8d8] sm:$0xff] }
 0x472   :  { %v13706_v11 = vcombine.high %v4815_v36, %v4819_v63  ;;  %v13708_v1 = vcombine.high %v4816_v0, %v4820_v31  ;;  %v13707_v5 = vcombine.low %v4816_v0, %v4820_v31  ;;  %v4871_v31 = vld [vmem:[#allocation8 + $0xa90] sm:$0xff] }
 0x473   :  { %8041 = vmatpush1.bf16.msra.mxu0 %v13649_v2  ;;  %v4823_v2 = vld [vmem:[#allocation8 + $0x910] sm:$0xff] }
 0x474   :  { %8205 = vmatpush1.bf16.msra.mxu1 %v13651_v39  ;;  %8042 = vmatprep.subr.bf16.mxu0 %v13658_v3  ;;  %v4827_v39 = vld [vmem:[#allocation8 + $0x930] sm:$0xff]  ;;  %v4824_v3 = vld [vmem:[#allocation8 + $0x918] sm:$0xff] }
 0x475   :  { %8206 = vmatprep.subr.bf16.mxu1 %v13660_v4  ;;  %v4828_v4 = vld [vmem:[#allocation8 + $0x938] sm:$0xff]  ;;  %v13714_v46 = vcombine.high %v4823_v2, %v4827_v39 }
 0x476   :  { %v13716_v6 = vcombine.high %v4824_v3, %v4828_v4  ;;  %v13715_v19 = vcombine.low %v4824_v3, %v4828_v4  ;;  %v4879_v4 = vld [vmem:[#allocation8 + $0xad0] sm:$0xff] }
 0x477   :  { %8043 = vmatpush1.bf16.msra.mxu0 %v13657_v7  ;;  %v4835_v7 = vld [vmem:[#allocation8 + $0x970] sm:$0xff] }
 0x478   :  { %8207 = vmatpush1.bf16.msra.mxu1 %v13659_v9  ;;  %8044 = vmatprep.subr.bf16.mxu0 %v13666_v10  ;;  %v4832_v9 = vld [vmem:[#allocation8 + $0x958] sm:$0xff]  ;;  %v13722_v26 = vcombine.high %v4831_v18, %v4835_v7 }
 0x479   :  { %8208 = vmatprep.subr.bf16.mxu1 %v13668_v13  ;;  %v4836_v10 = vld [vmem:[#allocation8 + $0x978] sm:$0xff]  ;;  %v13713_v13 = vcombine.low %v4823_v2, %v4827_v39 }
 0x47a   :  { %v13724_v20 = vcombine.high %v4832_v9, %v4836_v10  ;;  %v13723_v28 = vcombine.low %v4832_v9, %v4836_v10  ;;  %v4887_v10 = vld [vmem:[#allocation8 + $0xb10] sm:$0xff] }
 0x47b   :  { %8045 = vmatpush1.bf16.msra.mxu0 %v13665_v15  ;;  %v4843_v15 = vld [vmem:[#allocation8 + $0x9b0] sm:$0xff] }
 0x47c   :  { %8209 = vmatpush1.bf16.msra.mxu1 %v13667_v8  ;;  %8046 = vmatprep.subr.bf16.mxu0 %v13674_v23  ;;  %v4840_v8 = vld [vmem:[#allocation8 + $0x998] sm:$0xff]  ;;  %v13730_v29 = vcombine.high %v4839_v22, %v4843_v15 }
 0x47d   :  { %8210 = vmatprep.subr.bf16.mxu1 %v13676_v27  ;;  %v4844_v23 = vld [vmem:[#allocation8 + $0x9b8] sm:$0xff]  ;;  %v13721_v27 = vcombine.low %v4831_v18, %v4835_v7 }
 0x47e   :  { %v13732_v33 = vcombine.high %v4840_v8, %v4844_v23  ;;  %v13731_v12 = vcombine.low %v4840_v8, %v4844_v23  ;;  %v4895_v23 = vld [vmem:[#allocation8 + $0xb50] sm:$0xff] }
 0x47f   :  { %8047 = vmatpush1.bf16.msra.mxu0 %v13673_v34  ;;  %v4851_v34 = vld [vmem:[#allocation8 + $0x9f0] sm:$0xff] }
 0x480   :  { %8211 = vmatpush1.bf16.msra.mxu1 %v13675_v57  ;;  %8057 = vmatprep.subr.bf16.mxu0 %v13682_v38  ;;  %v4848_v57 = vld [vmem:[#allocation8 + $0x9d8] sm:$0xff]  ;;  %v13738_v43 = vcombine.high %v4847_v41, %v4851_v34  ;;  %v13737_v48 = vcombine.low %v4847_v41, %v4851_v34 }
 0x481   :  { %8221 = vmatprep.subr.bf16.mxu1 %v13684_v42  ;;  %v4852_v38 = vld [vmem:[#allocation8 + $0x9f8] sm:$0xff]  ;;  %v13729_v42 = vcombine.low %v4839_v22, %v4843_v15 }
 0x482   :  { %8049 = vmatmul.mubr.bf16.vlgmr.msra.gmra.mrb[12].mxu0 %v15411_v32  ;;  %v13739_v53 = vcombine.low %v4848_v57, %v4852_v38 }
 0x483   :  { %8213 = vmatmul.mubr.bf16.vlgmr.msra.gmra.mrb[12].mxu1 %v15411_v32  ;;  %8058 = vmatpush1.bf16.msra.mxu0 %v13681_v45  ;;  %v13699_v32 = vcombine.low %v4808_v25, %v4812_v54  ;;  %v13740_v45 = vcombine.high %v4848_v57, %v4852_v38  ;;  %v4863_v54 = vld [vmem:[#allocation8 + $0xa50] sm:$0xff] }
 0x484   :  { %8089 = vmatprep.mubr.bf16.mxu0 %v15434_v49  ;;  %8222 = vmatpush1.bf16.msra.mxu1 %v13683_v24  ;;  %v4856_v24 = vld [vmem:[#allocation8 + $0xa18] sm:$0xff]  ;;  %v4903_v38 = vld [vmem:[#allocation8 + $0xb90] sm:$0xff] }
 0x485   :  { %8253 = vmatprep.mubr.bf16.mxu1 %v15434_v49  ;;  %8059 = vmatprep.subr.bf16.mxu0 %v13690_v47  ;;  %v13705_v49 = vcombine.low %v4815_v36, %v4819_v63  ;;  %v4860_v47 = vld [vmem:[#allocation8 + $0xa38] sm:$0xff] }
 0x486   :  { %8223 = vmatprep.subr.bf16.mxu1 %v13692_v52  ;;  %v13746_v52 = vcombine.high %v4855_v37, %v4859_v44  ;;  %v13748_v25 = vcombine.high %v4856_v24, %v4860_v47  ;;  %v13747_v36 = vcombine.low %v4856_v24, %v4860_v47  ;;  %v4911_v47 = vld [vmem:[#allocation8 + $0xbd0] sm:$0xff] }
 0x487   :  { %8060 = vmatpush1.bf16.msra.mxu0 %v13689_v56  ;;  %v4867_v56 = vld [vmem:[#allocation8 + $0xa70] sm:$0xff] }
 0x488   :  { %8224 = vmatpush1.bf16.msra.mxu1 %v13691_v59  ;;  %8061 = vmatprep.subr.bf16.mxu0 %v13698_v60  ;;  %v4864_v59 = vld [vmem:[#allocation8 + $0xa58] sm:$0xff]  ;;  %v13754_v63 = vcombine.high %v4863_v54, %v4867_v56 }
 0x489   :  { %8225 = vmatprep.subr.bf16.mxu1 %v13700_v61  ;;  %v4868_v60 = vld [vmem:[#allocation8 + $0xa78] sm:$0xff]  ;;  %v13745_v61 = vcombine.low %v4855_v37, %v4859_v44 }
 0x48a   :  { %v13756_v0 = vcombine.high %v4864_v59, %v4868_v60  ;;  %v13755_v2 = vcombine.low %v4864_v59, %v4868_v60  ;;  %v4919_v60 = vld [vmem:[#allocation8 + $0xc10] sm:$0xff] }
 0x48b   :  { %8062 = vmatpush1.bf16.msra.mxu0 %v13697_v21  ;;  %v4875_v21 = vld [vmem:[#allocation8 + $0xab0] sm:$0xff] }
 0x48c   :  { %8226 = vmatpush1.bf16.msra.mxu1 %v13699_v32  ;;  %8063 = vmatprep.subr.bf16.mxu0 %v13706_v11  ;;  %v4872_v32 = vld [vmem:[#allocation8 + $0xa98] sm:$0xff]  ;;  %v13762_v39 = vcombine.high %v4871_v31, %v4875_v21 }
 0x48d   :  { %8227 = vmatprep.subr.bf16.mxu1 %v13708_v1  ;;  %v4876_v11 = vld [vmem:[#allocation8 + $0xab8] sm:$0xff]  ;;  %v13753_v1 = vcombine.low %v4863_v54, %v4867_v56 }
 0x48e   :  { %v13764_v3 = vcombine.high %v4872_v32, %v4876_v11  ;;  %v13763_v18 = vcombine.low %v4872_v32, %v4876_v11  ;;  %v4927_v11 = vld [vmem:[#allocation8 + $0xc50] sm:$0xff] }
 0x48f   :  { %8064 = vmatpush1.bf16.msra.mxu0 %v13705_v49  ;;  %v4883_v49 = vld [vmem:[#allocation8 + $0xaf0] sm:$0xff] }
 0x490   :  { %8228 = vmatpush1.bf16.msra.mxu1 %v13707_v5  ;;  %8065 = vmatprep.subr.bf16.mxu0 %v13714_v46  ;;  %v4880_v5 = vld [vmem:[#allocation8 + $0xad8] sm:$0xff]  ;;  %v13770_v7 = vcombine.high %v4879_v4, %v4883_v49 }
 0x491   :  { %8229 = vmatprep.subr.bf16.mxu1 %v13716_v6  ;;  %v4884_v46 = vld [vmem:[#allocation8 + $0xaf8] sm:$0xff]  ;;  %v13761_v6 = vcombine.low %v4871_v31, %v4875_v21 }
 0x492   :  { %v13772_v9 = vcombine.high %v4880_v5, %v4884_v46  ;;  %v13771_v22 = vcombine.low %v4880_v5, %v4884_v46  ;;  %v4935_v5 = vld [vmem:[#allocation8 + $0xc90] sm:$0xff] }
 0x493   :  { %8066 = vmatpush1.bf16.msra.mxu0 %v13713_v13  ;;  %v4891_v13 = vld [vmem:[#allocation8 + $0xb30] sm:$0xff] }
 0x494   :  { %8230 = vmatpush1.bf16.msra.mxu1 %v13715_v19  ;;  %8067 = vmatprep.subr.bf16.mxu0 %v13722_v26  ;;  %v4888_v19 = vld [vmem:[#allocation8 + $0xb18] sm:$0xff]  ;;  %v13778_v15 = vcombine.high %v4887_v10, %v4891_v13  ;;  %v4939_v46 = vld [vmem:[#allocation8 + $0xcb0] sm:$0xff] }
 0x495   :  { %8231 = vmatprep.subr.bf16.mxu1 %v13724_v20  ;;  %v4892_v26 = vld [vmem:[#allocation8 + $0xb38] sm:$0xff]  ;;  %v13769_v20 = vcombine.low %v4879_v4, %v4883_v49 }
 0x496   :  { %v13780_v8 = vcombine.high %v4888_v19, %v4892_v26  ;;  %v13779_v41 = vcombine.low %v4888_v19, %v4892_v26  ;;  %v4943_v26 = vld [vmem:[#allocation8 + $0xcd0] sm:$0xff] }
 0x497   :  { %8068 = vmatpush1.bf16.msra.mxu0 %v13721_v27  ;;  %v4899_v27 = vld [vmem:[#allocation8 + $0xb70] sm:$0xff] }
 0x498   :  { %8232 = vmatpush1.bf16.msra.mxu1 %v13723_v28  ;;  %8069 = vmatprep.subr.bf16.mxu0 %v13730_v29  ;;  %v4896_v28 = vld [vmem:[#allocation8 + $0xb58] sm:$0xff]  ;;  %v13786_v34 = vcombine.high %v4895_v23, %v4899_v27 }
 0x499   :  { %8233 = vmatprep.subr.bf16.mxu1 %v13732_v33  ;;  %v4900_v29 = vld [vmem:[#allocation8 + $0xb78] sm:$0xff]  ;;  %v13777_v33 = vcombine.low %v4887_v10, %v4891_v13  ;;  %v13826_v13 = vcombine.high %v4935_v5, %v4939_v46 }
 0x49a   :  { %v13788_v57 = vcombine.high %v4896_v28, %v4900_v29  ;;  %v13787_v37 = vcombine.low %v4896_v28, %v4900_v29  ;;  %v4951_v28 = vld [vmem:[#allocation8 + $0xd10] sm:$0xff] }
 0x49b   :  { %8070 = vmatpush1.bf16.msra.mxu0 %v13729_v42  ;;  %v4907_v42 = vld [vmem:[#allocation8 + $0xbb0] sm:$0xff] }
 0x49c   :  { %8234 = vmatpush1.bf16.msra.mxu1 %v13731_v12  ;;  %8071 = vmatprep.subr.bf16.mxu0 %v13738_v43  ;;  %v4904_v12 = vld [vmem:[#allocation8 + $0xb98] sm:$0xff]  ;;  %v13794_v44 = vcombine.high %v4903_v38, %v4907_v42  ;;  %v4955_v29 = vld [vmem:[#allocation8 + $0xd30] sm:$0xff] }
 0x49d   :  { %8235 = vmatprep.subr.bf16.mxu1 %v13740_v45  ;;  %v4908_v43 = vld [vmem:[#allocation8 + $0xbb8] sm:$0xff]  ;;  %v13785_v45 = vcombine.low %v4895_v23, %v4899_v27 }
 0x49e   :  { %v13796_v24 = vcombine.high %v4904_v12, %v4908_v43  ;;  %v13795_v54 = vcombine.low %v4904_v12, %v4908_v43  ;;  %v4963_v12 = vld [vmem:[#allocation8 + $0xd70] sm:$0xff]  ;;  %v4960_v43 = vld [vmem:[#allocation8 + $0xd58] sm:$0xff] }
 0x49f   :  { %8072 = vmatpush1.bf16.msra.mxu0 %v13737_v48  ;;  %v4915_v48 = vld [vmem:[#allocation8 + $0xbf0] sm:$0xff] }
 0x4a0   :  { %8236 = vmatpush1.bf16.msra.mxu1 %v13739_v53  ;;  %8073 = vmatprep.subr.bf16.mxu0 %v13746_v52  ;;  %v4912_v53 = vld [vmem:[#allocation8 + $0xbd8] sm:$0xff]  ;;  %v13802_v56 = vcombine.high %v4911_v47, %v4915_v48 }
 0x4a1   :  { %8237 = vmatprep.subr.bf16.mxu1 %v13748_v25  ;;  %v4916_v52 = vld [vmem:[#allocation8 + $0xbf8] sm:$0xff]  ;;  %v13793_v25 = vcombine.low %v4903_v38, %v4907_v42  ;;  %v4959_v42 = vld [vmem:[#allocation8 + $0xd50] sm:$0xff] }
 0x4a2   :  { %v13804_v59 = vcombine.high %v4912_v53, %v4916_v52  ;;  %v13803_v31 = vcombine.low %v4912_v53, %v4916_v52  ;;  %v4971_v53 = vld [vmem:[#allocation8 + $0xdb0] sm:$0xff]  ;;  %v4968_v52 = vld [vmem:[#allocation8 + $0xd98] sm:$0xff] }
 0x4a3   :  { %8074 = vmatpush1.bf16.msra.mxu0 %v13745_v61  ;;  %v4923_v61 = vld [vmem:[#allocation8 + $0xc30] sm:$0xff] }
 0x4a4   :  { %8238 = vmatpush1.bf16.msra.mxu1 %v13747_v36  ;;  %8075 = vmatprep.subr.bf16.mxu0 %v13754_v63  ;;  %v4920_v36 = vld [vmem:[#allocation8 + $0xc18] sm:$0xff]  ;;  %v13810_v21 = vcombine.high %v4919_v60, %v4923_v61 }
 0x4a5   :  { %8239 = vmatprep.subr.bf16.mxu1 %v13756_v0  ;;  %v4924_v63 = vld [vmem:[#allocation8 + $0xc38] sm:$0xff]  ;;  %v13801_v0 = vcombine.low %v4911_v47, %v4915_v48  ;;  %v4967_v48 = vld [vmem:[#allocation8 + $0xd90] sm:$0xff] }
 0x4a6   :  { %v13812_v32 = vcombine.high %v4920_v36, %v4924_v63  ;;  %v13811_v4 = vcombine.low %v4920_v36, %v4924_v63  ;;  %v4975_v63 = vld [vmem:[#allocation8 + $0xdd0] sm:$0xff] }
 0x4a7   :  { %8076 = vmatpush1.bf16.msra.mxu0 %v13753_v1  ;;  %v4931_v1 = vld [vmem:[#allocation8 + $0xc70] sm:$0xff] }
 0x4a8   :  { %8240 = vmatpush1.bf16.msra.mxu1 %v13755_v2  ;;  %8077 = vmatprep.subr.bf16.mxu0 %v13762_v39  ;;  %v13809_v2 = vcombine.low %v4919_v60, %v4923_v61  ;;  %v4928_v39 = vld [vmem:[#allocation8 + $0xc58] sm:$0xff]  ;;  %v13818_v49 = vcombine.high %v4927_v11, %v4931_v1 }
 0x4a9   :  { %8241 = vmatprep.subr.bf16.mxu1 %v13764_v3  ;;  %v4932_v3 = vld [vmem:[#allocation8 + $0xc78] sm:$0xff] }
 0x4aa   :  { %v13819_v10 = vcombine.low %v4928_v39, %v4932_v3 }
 0x4ab   :  { %8078 = vmatpush1.bf16.msra.mxu0 %v13761_v6  ;;  %v13820_v6 = vcombine.high %v4928_v39, %v4932_v3  ;;  %v13857_v39 = vcombine.low %v4967_v48, %v4971_v53 }
 0x4ac   :  { %8242 = vmatpush1.bf16.msra.mxu1 %v13763_v18  ;;  %8079 = vmatprep.subr.bf16.mxu0 %v13770_v7  ;;  %v4936_v18 = vld [vmem:[#allocation8 + $0xc98] sm:$0xff] }
 0x4ad   :  { %8243 = vmatprep.subr.bf16.mxu1 %v13772_v9  ;;  %v4940_v7 = vld [vmem:[#allocation8 + $0xcb8] sm:$0xff]  ;;  %v13817_v9 = vcombine.low %v4927_v11, %v4931_v1 }
 0x4ae   :  { %v13828_v19 = vcombine.high %v4936_v18, %v4940_v7  ;;  %v4980_v11 = vld [vmem:[#allocation8 + $0xdf8] sm:$0xff] }
 0x4af   :  { %8080 = vmatpush1.bf16.msra.mxu0 %v13769_v20  ;;  %v4947_v20 = vld [vmem:[#allocation8 + $0xcf0] sm:$0xff] }
 0x4b0   :  { %8244 = vmatpush1.bf16.msra.mxu1 %v13771_v22  ;;  %8081 = vmatprep.subr.bf16.mxu0 %v13778_v15  ;;  %v4944_v22 = vld [vmem:[#allocation8 + $0xcd8] sm:$0xff]  ;;  %v13834_v23 = vcombine.high %v4943_v26, %v4947_v20 }
 0x4b1   :  { %8245 = vmatprep.subr.bf16.mxu1 %v13780_v8  ;;  %v4948_v15 = vld [vmem:[#allocation8 + $0xcf8] sm:$0xff]  ;;  %v13825_v8 = vcombine.low %v4935_v5, %v4939_v46  ;;  %v4983_v5 = vld [vmem:[#allocation8 + $0xe10] sm:$0xff] }
 0x4b2   :  { %v13836_v27 = vcombine.high %v4944_v22, %v4948_v15  ;;  %v4987_v46 = vld [vmem:[#allocation8 + $0xe30] sm:$0xff] }
 0x4b3   :  { %8082 = vmatpush1.bf16.msra.mxu0 %v13777_v33  ;;  %v4952_v33 = vld [vmem:[#allocation8 + $0xd18] sm:$0xff] }
 0x4b4   :  { %8246 = vmatpush1.bf16.msra.mxu1 %v13779_v41  ;;  %8083 = vmatprep.subr.bf16.mxu0 %v13786_v34  ;;  %v4956_v41 = vld [vmem:[#allocation8 + $0xd38] sm:$0xff]  ;;  %v13835_v34 = vcombine.low %v4944_v22, %v4948_v15  ;;  %v4995_v22 = vld [vmem:[#allocation8 + $0xe70] sm:$0xff] }
 0x4b5   :  { %8247 = vmatprep.subr.bf16.mxu1 %v13788_v57  ;;  %v13842_v57 = vcombine.high %v4951_v28, %v4955_v29  ;;  %v13844_v38 = vcombine.high %v4952_v33, %v4956_v41  ;;  %v4992_v15 = vld [vmem:[#allocation8 + $0xe58] sm:$0xff] }
 0x4b7   :  { %8084 = vmatpush1.bf16.msra.mxu0 %v13785_v45  ;;  %v4964_v45 = vld [vmem:[#allocation8 + $0xd78] sm:$0xff] }
 0x4b8   :  { %8248 = vmatpush1.bf16.msra.mxu1 %v13787_v37  ;;  %8085 = vmatprep.subr.bf16.mxu0 %v13794_v44  ;;  %v13841_v37 = vcombine.low %v4951_v28, %v4955_v29  ;;  %v13843_v44 = vcombine.low %v4952_v33, %v4956_v41  ;;  %v13852_v47 = vcombine.high %v4960_v43, %v4964_v45  ;;  %v4999_v29 = vld [vmem:[#allocation8 + $0xe90] sm:$0xff]  ;;  %v5000_v41 = vld [vmem:[#allocation8 + $0xe98] sm:$0xff] }
 0x4b9   :  { %8249 = vmatprep.subr.bf16.mxu1 %v13796_v24  ;;  %v13850_v24 = vcombine.high %v4959_v42, %v4963_v12  ;;  %v5003_v33 = vld [vmem:[#allocation8 + $0xeb0] sm:$0xff] }
 0x4bb   :  { %8086 = vmatpush1.bf16.msra.mxu0 %v13793_v25  ;;  %v4972_v25 = vld [vmem:[#allocation8 + $0xdb8] sm:$0xff] }
 0x4bc   :  { %8250 = vmatpush1.bf16.msra.mxu1 %v13795_v54  ;;  %8087 = vmatprep.subr.bf16.mxu0 %v13802_v56  ;;  %v13849_v54 = vcombine.low %v4959_v42, %v4963_v12  ;;  %v13851_v56 = vcombine.low %v4960_v43, %v4964_v45  ;;  %v13860_v36 = vcombine.high %v4968_v52, %v4972_v25  ;;  %v5007_v12 = vld [vmem:[#allocation8 + $0xed0] sm:$0xff]  ;;  %v5008_v45 = vld [vmem:[#allocation8 + $0xed8] sm:$0xff] }
 0x4bd   :  { %8251 = vmatprep.subr.bf16.mxu1 %v13804_v59  ;;  %v13858_v59 = vcombine.high %v4967_v48, %v4971_v53  ;;  %v13859_v3 = vcombine.low %v4968_v52, %v4972_v25  ;;  %v5011_v43 = vld [vmem:[#allocation8 + $0xef0] sm:$0xff]  ;;  %v5016_v25 = vld [vmem:[#allocation8 + $0xf18] sm:$0xff] }
 0x4be   :  { %v5015_v53 = vld [vmem:[#allocation8 + $0xf10] sm:$0xff] }
 0x4bf   :  { %8088 = vmatpush1.bf16.msra.mxu0 %v13801_v0  ;;  %v4979_v0 = vld [vmem:[#allocation8 + $0xdf0] sm:$0xff] }
 0x4c0   :  { %8252 = vmatpush1.bf16.msra.mxu1 %v13803_v31  ;;  %8098 = vmatprep.subr.bf16.mxu0 %v13810_v21  ;;  %v5019_v52 = vld [vmem:[#allocation8 + $0xf30] sm:$0xff] }
 0x4c1   :  { %8262 = vmatprep.subr.bf16.mxu1 %v13812_v32  ;;  %v4976_v32 = vld [vmem:[#allocation8 + $0xdd8] sm:$0xff] }
 0x4c2   :  { %8090 = vmatmul.mubr.bf16.vlgmr.msra.gmra.mrb[12].mxu0 %v15436_v30 }
 0x4c3   :  { %8254 = vmatmul.mubr.bf16.vlgmr.msra.gmra.mrb[12].mxu1 %v15436_v30  ;;  %8099 = vmatpush1.bf16.msra.mxu0 %v13809_v2  ;;  %v13827_v30 = vcombine.low %v4936_v18, %v4940_v7  ;;  %v4984_v7 = vld [vmem:[#allocation8 + $0xe18] sm:$0xff] }
 0x4c4   :  { %8130 = vmatprep.mubr.bf16.mxu0 %v15440_v62  ;;  %8263 = vmatpush1.bf16.msra.mxu1 %v13811_v4  ;;  %v13866_v4 = vcombine.high %v4975_v63, %v4979_v0 }
 0x4c5   :  { %8294 = vmatprep.mubr.bf16.mxu1 %v15440_v62  ;;  %8100 = vmatprep.subr.bf16.mxu0 %v13818_v49  ;;  %v13833_v62 = vcombine.low %v4943_v26, %v4947_v20  ;;  %v13868_v49 = vcombine.high %v4976_v32, %v4980_v11  ;;  %v4991_v20 = vld [vmem:[#allocation8 + $0xe50] sm:$0xff] }
 0x4c6   :  { %8264 = vmatprep.subr.bf16.mxu1 %v13820_v6 }
 0x4c7   :  { %8101 = vmatpush1.bf16.msra.mxu0 %v13817_v9  ;;  %v4988_v9 = vld [vmem:[#allocation8 + $0xe38] sm:$0xff] }
 0x4c8   :  { %8265 = vmatpush1.bf16.msra.mxu1 %v13819_v10  ;;  %8102 = vmatprep.subr.bf16.mxu0 %v13826_v13  ;;  %v13865_v10 = vcombine.low %v4975_v63, %v4979_v0  ;;  %v13867_v13 = vcombine.low %v4976_v32, %v4980_v11  ;;  %v13876_v26 = vcombine.high %v4984_v7, %v4988_v9  ;;  %v5023_v0 = vld [vmem:[#allocation8 + $0xf50] sm:$0xff]  ;;  %v5024_v11 = vld [vmem:[#allocation8 + $0xf58] sm:$0xff] }
 0x4c9   :  { %8266 = vmatprep.subr.bf16.mxu1 %v13828_v19  ;;  %v13874_v19 = vcombine.high %v4983_v5, %v4987_v46  ;;  %v5027_v32 = vld [vmem:[#allocation8 + $0xf70] sm:$0xff] }
 0x4cb   :  { %8103 = vmatpush1.bf16.msra.mxu0 %v13825_v8  ;;  %v4996_v8 = vld [vmem:[#allocation8 + $0xe78] sm:$0xff] }
 0x4cc   :  { %8267 = vmatpush1.bf16.msra.mxu1 %v13827_v30  ;;  %8104 = vmatprep.subr.bf16.mxu0 %v13834_v23  ;;  %v13873_v30 = vcombine.low %v4983_v5, %v4987_v46  ;;  %v13875_v23 = vcombine.low %v4984_v7, %v4988_v9  ;;  %v13884_v28 = vcombine.high %v4992_v15, %v4996_v8  ;;  %v5031_v5 = vld [vmem:[#allocation8 + $0xf90] sm:$0xff] }
 0x4cd   :  { %8268 = vmatprep.subr.bf16.mxu1 %v13836_v27  ;;  %v13882_v27 = vcombine.high %v4991_v20, %v4995_v22  ;;  %v5035_v46 = vld [vmem:[#allocation8 + $0xfb0] sm:$0xff]  ;;  %v13913_v9 = vcombine.low %v5023_v0, %v5027_v32 }
 0x4cf   :  { %8105 = vmatpush1.bf16.msra.mxu0 %v13833_v62  ;;  %v5004_v62 = vld [vmem:[#allocation8 + $0xeb8] sm:$0xff] }
 0x4d0   :  { %8269 = vmatpush1.bf16.msra.mxu1 %v13835_v34  ;;  %8106 = vmatprep.subr.bf16.mxu0 %v13842_v57  ;;  %v13881_v34 = vcombine.low %v4991_v20, %v4995_v22  ;;  %v13883_v57 = vcombine.low %v4992_v15, %v4996_v8  ;;  %v13892_v42 = vcombine.high %v5000_v41, %v5004_v62  ;;  %v5043_v20 = vld [vmem:[#allocation8 + $0xff0] sm:$0xff]  ;;  %v5040_v22 = vld [vmem:[#allocation8 + $0xfd8] sm:$0xff] }
 0x4d1   :  { %8270 = vmatprep.subr.bf16.mxu1 %v13844_v38  ;;  %v13890_v38 = vcombine.high %v4999_v29, %v5003_v33  ;;  %v5044_v15 = vld [vmem:[#allocation8 + $0xff8] sm:$0xff] }
 0x4d3   :  { %8107 = vmatpush1.bf16.msra.mxu0 %v13841_v37  ;;  %v5012_v37 = vld [vmem:[#allocation8 + $0xef8] sm:$0xff] }
 0x4d4   :  { %8271 = vmatpush1.bf16.msra.mxu1 %v13843_v44  ;;  %8108 = vmatprep.subr.bf16.mxu0 %v13850_v24  ;;  %v13889_v44 = vcombine.low %v4999_v29, %v5003_v33  ;;  %v13891_v24 = vcombine.low %v5000_v41, %v5004_v62  ;;  %v13900_v48 = vcombine.high %v5008_v45, %v5012_v37  ;;  %v8335_v29 = vld [vmem:[#allocation11] sm:$0xff]  ;;  %v8336_v41 = vld [vmem:[#allocation11 + $0x8] sm:$0xff] }
 0x4d5   :  { %v15470_v60 = vpop.f32.mrb[8].mxu0  ;;  %v15472_v61 = vpop.f32.mrb[8].mxu1  ;;  %8272 = vmatprep.subr.bf16.mxu1 %v13852_v47  ;;  %v13898_v47 = vcombine.high %v5007_v12, %v5011_v43  ;;  %v8339_v33 = vld [vmem:[#allocation11 + $0x20] sm:$0xff]  ;;  %v8340_v62 = vld [vmem:[#allocation11 + $0x28] sm:$0xff] }
 0x4d6   :  { %v15474_v31 = vpop.f32.mrb[9].mxu0  ;;  %v15476_v21 = vpop.f32.mrb[9].mxu1 }
 0x4d7   :  { %v7808_v1 = vpop.f32.mrb[10].mxu0  ;;  %v7972_v2 = vpop.f32.mrb[10].mxu1  ;;  %8109 = vmatpush1.bf16.msra.mxu0 %v13849_v54  ;;  %v5020_v54 = vld [vmem:[#allocation8 + $0xf38] sm:$0xff] }
 0x4d8   :  { %8273 = vmatpush1.bf16.msra.mxu1 %v13851_v56  ;;  %8110 = vmatprep.subr.bf16.mxu0 %v13858_v59  ;;  %v7809_v6 = vpop.f32.mrb[11].mxu0  ;;  %v7973_v18 = vpop.f32.mrb[11].mxu1  ;;  %v13897_v56 = vcombine.low %v5007_v12, %v5011_v43  ;;  %v13899_v59 = vcombine.low %v5008_v45, %v5012_v37  ;;  %v13908_v63 = vcombine.high %v5016_v25, %v5020_v54  ;;  %v5028_v1 = vld [vmem:[#allocation8 + $0xf78] sm:$0xff]  ;;  %v8343_v12 = vld [vmem:[#allocation11 + $0x40] sm:$0xff] }
 0x4d9   :  { %8274 = vmatprep.subr.bf16.mxu1 %v13860_v36  ;;  %v13906_v36 = vcombine.high %v5015_v53, %v5019_v52  ;;  %v13905_v2 = vcombine.low %v5015_v53, %v5019_v52  ;;  %v5032_v6 = vld [vmem:[#allocation8 + $0xf98] sm:$0xff]  ;;  %v8347_v43 = vld [vmem:[#allocation11 + $0x60] sm:$0xff]  ;;  %v13933_v37 = vcombine.low %v8335_v29, %v8339_v33 }
 0x4da   :  { %v5036_v18 = vld [vmem:[#allocation8 + $0xfb8] sm:$0xff]  ;;  %v8351_v53 = vld [vmem:[#allocation11 + $0x80] sm:$0xff] }
 0x4db   :  { %8111 = vmatpush1.bf16.msra.mxu0 %v13857_v39  ;;  %v15478_v39 = vld [vmem:[#allocation10] sm:$0xff]  ;;  %v8355_v52 = vld [vmem:[#allocation11 + $0xa0] sm:$0xff] }
 0x4dc   :  { %8275 = vmatpush1.bf16.msra.mxu1 %v13859_v3  ;;  %8112 = vmatprep.subr.bf16.mxu0 %v13866_v4  ;;  %v13907_v3 = vcombine.low %v5016_v25, %v5020_v54  ;;  %v13914_v4 = vcombine.high %v5023_v0, %v5027_v32  ;;  %v5054_v7 = vrot.slane %v15478_v39, %v15374_v35 }
 0x4dd   :  { %8276 = vmatprep.subr.bf16.mxu1 %v13868_v49  ;;  %v13916_v49 = vcombine.high %v5024_v11, %v5028_v1  ;;  %v13950_v0 = vcombine.high %v8351_v53, %v8355_v52 }
 0x4de   :  { %v14607_v8 = vadd.f32 %v15474_v31, %v5054_v7  ;;  %v13934_v31 = vcombine.high %v8335_v29, %v8339_v33  ;;  %v8372_v7 = vld [vmem:[#allocation11 + $0x128] sm:$0xff]  ;;  %v8387_v29 = vld [vmem:[#allocation11 + $0x1a0] sm:$0xff] }
 0x4df   :  { %8113 = vmatpush1.bf16.msra.mxu0 %v13865_v10  ;;  %v13915_v10 = vcombine.low %v5024_v11, %v5028_v1  ;;  %v8359_v11 = vld [vmem:[#allocation11 + $0xc0] sm:$0xff]  ;;  %v8384_v33 = vld [vmem:[#allocation11 + $0x188] sm:$0xff] }
 0x4e0   :  { %8277 = vmatpush1.bf16.msra.mxu1 %v13867_v13  ;;  %8114 = vmatprep.subr.bf16.mxu0 %v13874_v19  ;;  %v13922_v13 = vcombine.high %v5031_v5, %v5035_v46  ;;  %v13924_v19 = vcombine.high %v5032_v6, %v5036_v18  ;;  %vm8304_vm8 = vcmp.ge.f32.partialorder %v14607_v8, 0.0  ;;  %v8363_v1 = vld [vmem:[#allocation11 + $0xe0] sm:$0xff] }
 0x4e1   :  { %8278 = vmatprep.subr.bf16.mxu1 %v13876_v26  ;;  %v5039_v26 = vld [vmem:[#allocation8 + $0xfd0] sm:$0xff] }
 0x4e3   :  { %8115 = vmatpush1.bf16.msra.mxu0 %v13873_v30  ;;  %v13921_v30 = vcombine.low %v5031_v5, %v5035_v46  ;;  %v8367_v46 = vld [vmem:[#allocation11 + $0x100] sm:$0xff] }
 0x4e4   :  { %8279 = vmatpush1.bf16.msra.mxu1 %v13875_v23  ;;  %8116 = vmatprep.subr.bf16.mxu0 %v13882_v27  ;;  %v13923_v23 = vcombine.low %v5032_v6, %v5036_v18  ;;  %v13930_v27 = vcombine.high %v5039_v26, %v5043_v20  ;;  %v8371_v6 = vld [vmem:[#allocation11 + $0x120] sm:$0xff]  ;;  %v8368_v18 = vld [vmem:[#allocation11 + $0x108] sm:$0xff] }
 0x4e5   :  { %8280 = vmatprep.subr.bf16.mxu1 %v13884_v28  ;;  %v13932_v28 = vcombine.high %v5040_v22, %v5044_v15 }
 0x4e7   :  { %8117 = vmatpush1.bf16.msra.mxu0 %v13881_v34  ;;  %v8312_v34 = vmul.f32 0.2, %v14607_v8 }
 0x4e8   :  { %8281 = vmatpush1.bf16.msra.mxu1 %v13883_v57  ;;  %8118 = vmatprep.subr.bf16.mxu0 %v13890_v38  ;;  %v13929_v57 = vcombine.low %v5039_v26, %v5043_v20  ;;  %v13931_v38 = vcombine.low %v5040_v22, %v5044_v15  ;;  %v8375_v26 = vld [vmem:[#allocation11 + $0x140] sm:$0xff]  ;;  %v8376_v22 = vld [vmem:[#allocation11 + $0x148] sm:$0xff] }
 0x4e9   :  { %8282 = vmatprep.subr.bf16.mxu1 %v13892_v42  ;;  %v13936_v42 = vcombine.high %v8336_v41, %v8340_v62  ;;  %v8320_v45 = vsel %vm8304_vm8, %v14607_v8, %v8312_v34  ;;  %v8379_v20 = vld [vmem:[#allocation11 + $0x160] sm:$0xff]  ;;  %v8380_v15 = vld [vmem:[#allocation11 + $0x168] sm:$0xff]  ;;  %v13965_v8 = vcombine.low %v8367_v46, %v8371_v6 }
 0x4ea   :  { %v15483_v25 = vpack.c.bf16 %v8320_v45, %v8320_v45  ;;  %v13975_v34 = vcombine.low %v8376_v22, %v8380_v15 }
 0x4eb   :  { %8119 = vmatpush1.bf16.msra.mxu0 %v13889_v44  ;;  %v8344_v44 = vld [vmem:[#allocation11 + $0x48] sm:$0xff] }
 0x4ec   :  { %8283 = vmatpush1.bf16.msra.mxu1 %v13891_v24  ;;  %8120 = vmatprep.subr.bf16.mxu0 %v13898_v47  ;;  %v8348_v24 = vld [vmem:[#allocation11 + $0x68] sm:$0xff]  ;;  %v13935_v47 = vcombine.low %v8336_v41, %v8340_v62  ;;  %v13973_v62 = vcombine.low %v8375_v26, %v8379_v20 }
 0x4ed   :  { %8284 = vmatprep.subr.bf16.mxu1 %v13900_v48  ;;  %v13942_v48 = vcombine.high %v8343_v12, %v8347_v43  ;;  %v13944_v54 = vcombine.high %v8344_v44, %v8348_v24  ;;  %v8388_v41 = vld [vmem:[#allocation11 + $0x1a8] sm:$0xff] }
 0x4ef   :  { %8121 = vmatpush1.bf16.msra.mxu0 %v13897_v56  ;;  %v8352_v56 = vld [vmem:[#allocation11 + $0x88] sm:$0xff] }
 0x4f0   :  { %8285 = vmatpush1.bf16.msra.mxu1 %v13899_v59  ;;  %8122 = vmatprep.subr.bf16.mxu0 %v13906_v36  ;;  %v8356_v59 = vld [vmem:[#allocation11 + $0xa8] sm:$0xff]  ;;  %v13941_v36 = vcombine.low %v8343_v12, %v8347_v43 }
 0x4f1   :  { %8286 = vmatprep.subr.bf16.mxu1 %v13908_v63  ;;  %v13943_v63 = vcombine.low %v8344_v44, %v8348_v24  ;;  %v13952_v32 = vcombine.high %v8352_v56, %v8356_v59  ;;  %v8392_v12 = vld [vmem:[#allocation11 + $0x1c8] sm:$0xff] }
 0x4f2   :  { %v8396_v43 = vld [vmem:[#allocation11 + $0x1e8] sm:$0xff] }
 0x4f3   :  { %8123 = vmatpush1.bf16.msra.mxu0 %v13905_v2  ;;  %v8360_v2 = vld [vmem:[#allocation11 + $0xc8] sm:$0xff]  ;;  %v13992_v24 = vcombine.high %v8392_v12, %v8396_v43 }
 0x4f4   :  { %8287 = vmatpush1.bf16.msra.mxu1 %v13907_v3  ;;  %8124 = vmatprep.subr.bf16.mxu0 %v13914_v4  ;;  %v8364_v3 = vld [vmem:[#allocation11 + $0xe8] sm:$0xff]  ;;  %v13949_v4 = vcombine.low %v8351_v53, %v8355_v52 }
 0x4f5   :  { %8288 = vmatprep.subr.bf16.mxu1 %v13916_v49  ;;  %v13958_v49 = vcombine.high %v8359_v11, %v8363_v1  ;;  %v13960_v5 = vcombine.high %v8360_v2, %v8364_v3  ;;  %v8400_v53 = vld [vmem:[#allocation11 + $0x208] sm:$0xff] }
 0x4f6   :  { %v8404_v52 = vld [vmem:[#allocation11 + $0x228] sm:$0xff] }
 0x4f7   :  { %8125 = vmatpush1.bf16.msra.mxu0 %v13913_v9  ;;  %v13957_v9 = vcombine.low %v8359_v11, %v8363_v1  ;;  %v8412_v11 = vld [vmem:[#allocation11 + $0x268] sm:$0xff] }
 0x4f8   :  { %8289 = vmatpush1.bf16.msra.mxu1 %v13915_v10  ;;  %8126 = vmatprep.subr.bf16.mxu0 %v13922_v13  ;;  %v13959_v10 = vcombine.low %v8360_v2, %v8364_v3  ;;  %v13966_v13 = vcombine.high %v8367_v46, %v8371_v6  ;;  %v13999_v2 = vcombine.low %v8400_v53, %v8404_v52  ;;  %v8420_v46 = vld [vmem:[#allocation11 + $0x2a8] sm:$0xff] }
 0x4f9   :  { %8290 = vmatprep.subr.bf16.mxu1 %v13924_v19  ;;  %v13968_v19 = vcombine.high %v8368_v18, %v8372_v7 }
 0x4fb   :  { %8127 = vmatpush1.bf16.msra.mxu0 %v13921_v30  ;;  %v13967_v30 = vcombine.low %v8368_v18, %v8372_v7 }
 0x4fc   :  { %8291 = vmatpush1.bf16.msra.mxu1 %v13923_v23  ;;  %8128 = vmatprep.subr.bf16.mxu0 %v13930_v27  ;;  %v13974_v23 = vcombine.high %v8375_v26, %v8379_v20  ;;  %v13976_v27 = vcombine.high %v8376_v22, %v8380_v15  ;;  %v8428_v26 = vld [vmem:[#allocation11 + $0x2e8] sm:$0xff] }
 0x4fd   :  { %8292 = vmatprep.subr.bf16.mxu1 %v13932_v28  ;;  %v8383_v28 = vld [vmem:[#allocation11 + $0x180] sm:$0xff] }
 0x4fe   :  { %v13981_v45 = vcombine.low %v8383_v28, %v8387_v29 }
 0x4ff   :  { %8129 = vmatpush1.bf16.msra.mxu0 %v13929_v57  ;;  %v13982_v57 = vcombine.high %v8383_v28, %v8387_v29  ;;  %v8436_v28 = vld [vmem:[#allocation11 + $0x328] sm:$0xff] }
 0x500   :  { %8293 = vmatpush1.bf16.msra.mxu1 %v13931_v38  ;;  %11449 = vmatprep.subr.bf16.mxu0 %v13934_v31  ;;  %v13984_v38 = vcombine.high %v8384_v33, %v8388_v41  ;;  %v8391_v31 = vld [vmem:[#allocation11 + $0x1c0] sm:$0xff] }
 0x501   :  { %11613 = vmatprep.subr.bf16.mxu1 %v13936_v42  ;;  %v8395_v42 = vld [vmem:[#allocation11 + $0x1e0] sm:$0xff] }
 0x502   :  { %8131 = vmatmul.mubr.bf16.vlgmr.msra.gmra.mrb[12].mxu0 %v15452_v40  ;;  %v13990_v44 = vcombine.high %v8391_v31, %v8395_v42 }
 0x503   :  { %8295 = vmatmul.mubr.bf16.vlgmr.msra.gmra.mrb[12].mxu1 %v15452_v40  ;;  %11450 = vmatpush1.bf16.msra.mxu0 %v13933_v37  ;;  %v13951_v40 = vcombine.low %v8352_v56, %v8356_v59  ;;  %v13983_v37 = vcombine.low %v8384_v33, %v8388_v41  ;;  %v13991_v56 = vcombine.low %v8392_v12, %v8396_v43 }
 0x504   :  { %11481 = vmatprep.mubr.bf16.mxu0 %v15483_v25  ;;  %11614 = vmatpush1.bf16.msra.mxu1 %v13935_v47  ;;  %v8399_v47 = vld [vmem:[#allocation11 + $0x200] sm:$0xff] }
 0x505   :  { %11645 = vmatprep.mubr.bf16.mxu1 %v15483_v25  ;;  %11451 = vmatprep.subr.bf16.mxu0 %v13942_v48  ;;  %v8403_v48 = vld [vmem:[#allocation11 + $0x220] sm:$0xff] }
 0x506   :  { %11615 = vmatprep.subr.bf16.mxu1 %v13944_v54  ;;  %v13989_v54 = vcombine.low %v8391_v31, %v8395_v42  ;;  %v13998_v59 = vcombine.high %v8399_v47, %v8403_v48  ;;  %v13997_v1 = vcombine.low %v8399_v47, %v8403_v48  ;;  %v8444_v31 = vld [vmem:[#allocation11 + $0x368] sm:$0xff] }
 0x507   :  { %11452 = vmatpush1.bf16.msra.mxu0 %v13941_v36  ;;  %v14000_v36 = vcombine.high %v8400_v53, %v8404_v52  ;;  %v8448_v47 = vld [vmem:[#allocation11 + $0x388] sm:$0xff]  ;;  %v5062_v53 = vrot.slane %v15478_v39, %v15389_v58 }
 0x508   :  { %11616 = vmatpush1.bf16.msra.mxu1 %v13943_v63  ;;  %11453 = vmatprep.subr.bf16.mxu0 %v13950_v0  ;;  %v8407_v63 = vld [vmem:[#allocation11 + $0x240] sm:$0xff]  ;;  %v8452_v48 = vld [vmem:[#allocation11 + $0x3a8] sm:$0xff] }
 0x509   :  { %11617 = vmatprep.subr.bf16.mxu1 %v13952_v32  ;;  %v8411_v0 = vld [vmem:[#allocation11 + $0x260] sm:$0xff]  ;;  %v8408_v32 = vld [vmem:[#allocation11 + $0x248] sm:$0xff] }
 0x50a   :  { %v14006_v3 = vcombine.high %v8407_v63, %v8411_v0  ;;  %v14005_v6 = vcombine.low %v8407_v63, %v8411_v0  ;;  %v14007_v18 = vcombine.low %v8408_v32, %v8412_v11  ;;  %v8455_v63 = vld [vmem:[#allocation11 + $0x3c0] sm:$0xff] }
 0x50b   :  { %11454 = vmatpush1.bf16.msra.mxu0 %v13949_v4  ;;  %v14008_v4 = vcombine.high %v8408_v32, %v8412_v11  ;;  %v8459_v0 = vld [vmem:[#allocation11 + $0x3e0] sm:$0xff]  ;;  %v8456_v32 = vld [vmem:[#allocation11 + $0x3c8] sm:$0xff] }
 0x50c   :  { %11618 = vmatpush1.bf16.msra.mxu1 %v13951_v40  ;;  %11455 = vmatprep.subr.bf16.mxu0 %v13958_v49  ;;  %v8415_v40 = vld [vmem:[#allocation11 + $0x280] sm:$0xff]  ;;  %v8460_v11 = vld [vmem:[#allocation11 + $0x3e8] sm:$0xff] }
 0x50d   :  { %11619 = vmatprep.subr.bf16.mxu1 %v13960_v5  ;;  %v8419_v49 = vld [vmem:[#allocation11 + $0x2a0] sm:$0xff]  ;;  %v8416_v5 = vld [vmem:[#allocation11 + $0x288] sm:$0xff] }
 0x50e   :  { %v14014_v7 = vcombine.high %v8415_v40, %v8419_v49  ;;  %v14013_v20 = vcombine.low %v8415_v40, %v8419_v49  ;;  %v14015_v22 = vcombine.low %v8416_v5, %v8420_v46  ;;  %v14056_v49 = vcombine.high %v8456_v32, %v8460_v11 }
 0x50f   :  { %11456 = vmatpush1.bf16.msra.mxu0 %v13957_v9  ;;  %v14016_v9 = vcombine.high %v8416_v5, %v8420_v46  ;;  %v8463_v5 = vld [vmem:[#allocation11 + $0x400] sm:$0xff] }
 0x510   :  { %11620 = vmatpush1.bf16.msra.mxu1 %v13959_v10  ;;  %11457 = vmatprep.subr.bf16.mxu0 %v13966_v13  ;;  %v8423_v10 = vld [vmem:[#allocation11 + $0x2c0] sm:$0xff] }
 0x511   :  { %11621 = vmatprep.subr.bf16.mxu1 %v13968_v19  ;;  %v8427_v13 = vld [vmem:[#allocation11 + $0x2e0] sm:$0xff]  ;;  %v8424_v19 = vld [vmem:[#allocation11 + $0x2c8] sm:$0xff] }
 0x512   :  { %v14022_v15 = vcombine.high %v8423_v10, %v8427_v13  ;;  %v14021_v29 = vcombine.low %v8423_v10, %v8427_v13  ;;  %v14023_v33 = vcombine.low %v8424_v19, %v8428_v26  ;;  %v8467_v46 = vld [vmem:[#allocation11 + $0x420] sm:$0xff] }
 0x513   :  { %11458 = vmatpush1.bf16.msra.mxu0 %v13965_v8  ;;  %v14024_v8 = vcombine.high %v8424_v19, %v8428_v26  ;;  %v8471_v19 = vld [vmem:[#allocation11 + $0x440] sm:$0xff] }
 0x514   :  { %11622 = vmatpush1.bf16.msra.mxu1 %v13967_v30  ;;  %11459 = vmatprep.subr.bf16.mxu0 %v13974_v23  ;;  %v8431_v30 = vld [vmem:[#allocation11 + $0x300] sm:$0xff] }
 0x515   :  { %11623 = vmatprep.subr.bf16.mxu1 %v13976_v27  ;;  %v8435_v23 = vld [vmem:[#allocation11 + $0x320] sm:$0xff]  ;;  %v8432_v27 = vld [vmem:[#allocation11 + $0x308] sm:$0xff] }
 0x516   :  { %v14030_v41 = vcombine.high %v8431_v30, %v8435_v23  ;;  %v14029_v42 = vcombine.low %v8431_v30, %v8435_v23  ;;  %v14031_v12 = vcombine.low %v8432_v27, %v8436_v28  ;;  %v8475_v26 = vld [vmem:[#allocation11 + $0x460] sm:$0xff] }
 0x517   :  { %11460 = vmatpush1.bf16.msra.mxu0 %v13973_v62  ;;  %v14032_v62 = vcombine.high %v8432_v27, %v8436_v28  ;;  %v14070_v27 = vcombine.high %v8471_v19, %v8475_v26  ;;  %v8479_v28 = vld [vmem:[#allocation11 + $0x480] sm:$0xff] }
 0x518   :  { %11624 = vmatpush1.bf16.msra.mxu1 %v13975_v34  ;;  %11461 = vmatprep.subr.bf16.mxu0 %v13982_v57  ;;  %v8439_v34 = vld [vmem:[#allocation11 + $0x340] sm:$0xff] }
 0x519   :  { %11625 = vmatprep.subr.bf16.mxu1 %v13984_v38  ;;  %v8443_v57 = vld [vmem:[#allocation11 + $0x360] sm:$0xff]  ;;  %v8440_v38 = vld [vmem:[#allocation11 + $0x348] sm:$0xff] }
 0x51a   :  { %v14038_v43 = vcombine.high %v8439_v34, %v8443_v57  ;;  %v14037_v52 = vcombine.low %v8439_v34, %v8443_v57  ;;  %v8484_v34 = vld [vmem:[#allocation11 + $0x4a8] sm:$0xff]  ;;  %v14069_v57 = vcombine.low %v8471_v19, %v8475_v26 }
 0x51b   :  { %11462 = vmatpush1.bf16.msra.mxu0 %v13981_v45  ;;  %v5050_v45 = vrot.slane %v15478_v39, %v15386_v51  ;;  %v8520_v19 = vld [vmem:[#allocation11 + $0x5c8] sm:$0xff] }
 0x51c   :  { %11626 = vmatpush1.bf16.msra.mxu1 %v13983_v37  ;;  %11463 = vmatprep.subr.bf16.mxu0 %v13990_v44  ;;  %v14040_v37 = vcombine.high %v8440_v38, %v8444_v31  ;;  %v8447_v44 = vld [vmem:[#allocation11 + $0x380] sm:$0xff]  ;;  %v8524_v26 = vld [vmem:[#allocation11 + $0x5e8] sm:$0xff] }
 0x51d   :  { %11627 = vmatprep.subr.bf16.mxu1 %v13992_v24  ;;  %v8451_v24 = vld [vmem:[#allocation11 + $0x3a0] sm:$0xff] }
 0x51f   :  { %11464 = vmatpush1.bf16.msra.mxu0 %v13989_v54  ;;  %v14039_v54 = vcombine.low %v8440_v38, %v8444_v31 }
 0x520   :  { %11628 = vmatpush1.bf16.msra.mxu1 %v13991_v56  ;;  %11465 = vmatprep.subr.bf16.mxu0 %v13998_v59  ;;  %v14046_v56 = vcombine.high %v8447_v44, %v8451_v24  ;;  %v14606_v59 = vadd.f32 %v15470_v60, %v5050_v45  ;;  %v8464_v60 = vld [vmem:[#allocation11 + $0x408] sm:$0xff] }
 0x521   :  { %11629 = vmatprep.subr.bf16.mxu1 %v14000_v36  ;;  %v14048_v36 = vcombine.high %v8448_v47, %v8452_v48  ;;  %v8488_v45 = vld [vmem:[#allocation11 + $0x4c8] sm:$0xff] }
 0x522   :  { %v8311_v40 = vmul.f32 0.2, %v14606_v59  ;;  %vm8303_vm9 = vcmp.ge.f32.partialorder %v14606_v59, 0.0 }
 0x523   :  { %11466 = vmatpush1.bf16.msra.mxu0 %v13997_v1  ;;  %v14609_v1 = vadd.f32 %v15476_v21, %v5062_v53  ;;  %v14055_v21 = vcombine.low %v8456_v32, %v8460_v11  ;;  %v8495_v53 = vld [vmem:[#allocation11 + $0x500] sm:$0xff] }
 0x524   :  { %11630 = vmatpush1.bf16.msra.mxu1 %v13999_v2  ;;  %11467 = vmatprep.subr.bf16.mxu0 %v14006_v3  ;;  %v14045_v2 = vcombine.low %v8447_v44, %v8451_v24  ;;  %v14047_v3 = vcombine.low %v8448_v47, %v8452_v48  ;;  %v8319_v10 = vsel %vm8303_vm9, %v14606_v59, %v8311_v40  ;;  %v8503_v32 = vld [vmem:[#allocation11 + $0x540] sm:$0xff] }
 0x525   :  { %11631 = vmatprep.subr.bf16.mxu1 %v14008_v4  ;;  %v14054_v4 = vcombine.high %v8455_v63, %v8459_v0  ;;  %vm8306_vm10 = vcmp.ge.f32.partialorder %v14609_v1, 0.0  ;;  %v15495_v30 = vpack.c.bf16 %v8319_v10, %v8319_v10  ;;  %v8507_v11 = vld [vmem:[#allocation11 + $0x560] sm:$0xff] }
 0x526   :  { %v14102_v40 = vcombine.high %v8503_v32, %v8507_v11  ;;  %v8519_v10 = vld [vmem:[#allocation11 + $0x5c0] sm:$0xff] }
 0x527   :  { %11468 = vmatpush1.bf16.msra.mxu0 %v14005_v6  ;;  %v8468_v6 = vld [vmem:[#allocation11 + $0x428] sm:$0xff] }
 0x528   :  { %11632 = vmatpush1.bf16.msra.mxu1 %v14007_v18  ;;  %11469 = vmatprep.subr.bf16.mxu0 %v14014_v7  ;;  %v8314_v18 = vmul.f32 0.2, %v14609_v1  ;;  %v14053_v7 = vcombine.low %v8455_v63, %v8459_v0  ;;  %v14064_v13 = vcombine.high %v8464_v60, %v8468_v6  ;;  %v14063_v23 = vcombine.low %v8464_v60, %v8468_v6  ;;  %v8512_v60 = vld [vmem:[#allocation11 + $0x588] sm:$0xff] }
 0x529   :  { %11633 = vmatprep.subr.bf16.mxu1 %v14016_v9  ;;  %v14062_v9 = vcombine.high %v8463_v5, %v8467_v46  ;;  %v8516_v6 = vld [vmem:[#allocation11 + $0x5a8] sm:$0xff] }
 0x52b   :  { %11470 = vmatpush1.bf16.msra.mxu0 %v14013_v20  ;;  %v8322_v20 = vsel %vm8306_vm10, %v14609_v1, %v8314_v18  ;;  %v8504_v1 = vld [vmem:[#allocation11 + $0x548] sm:$0xff]  ;;  %v14101_v18 = vcombine.low %v8503_v32, %v8507_v11 }
 0x52c   :  { %11634 = vmatpush1.bf16.msra.mxu1 %v14015_v22  ;;  %11471 = vmatprep.subr.bf16.mxu0 %v14022_v15  ;;  %v14061_v22 = vcombine.low %v8463_v5, %v8467_v46  ;;  %v8472_v15 = vld [vmem:[#allocation11 + $0x448] sm:$0xff]  ;;  %v8511_v5 = vld [vmem:[#allocation11 + $0x580] sm:$0xff] }
 0x52d   :  { %11635 = vmatprep.subr.bf16.mxu1 %v14024_v8  ;;  %v8476_v8 = vld [vmem:[#allocation11 + $0x468] sm:$0xff]  ;;  %v8515_v46 = vld [vmem:[#allocation11 + $0x5a0] sm:$0xff] }
 0x52e   :  { %v14071_v38 = vcombine.low %v8472_v15, %v8476_v8  ;;  %v8556_v32 = vld [vmem:[#allocation11 + $0x6e8] sm:$0xff] }
 0x52f   :  { %11472 = vmatpush1.bf16.msra.mxu0 %v14021_v29  ;;  %v8483_v29 = vld [vmem:[#allocation11 + $0x4a0] sm:$0xff] }
 0x530   :  { %11636 = vmatpush1.bf16.msra.mxu1 %v14023_v33  ;;  %11473 = vmatprep.subr.bf16.mxu0 %v14030_v41  ;;  %v15497_v33 = vpack.c.bf16 %v8322_v20, %v8322_v20  ;;  %v14072_v41 = vcombine.high %v8472_v15, %v8476_v8  ;;  %v14078_v31 = vcombine.high %v8479_v28, %v8483_v29 }
 0x531   :  { %11637 = vmatprep.subr.bf16.mxu1 %v14032_v62  ;;  %v8480_v62 = vld [vmem:[#allocation11 + $0x488] sm:$0xff]  ;;  %v14077_v44 = vcombine.low %v8479_v28, %v8483_v29  ;;  %v14109_v20 = vcombine.low %v8511_v5, %v8515_v46  ;;  %v14120_v8 = vcombine.high %v8520_v19, %v8524_v26 }
 0x532   :  { %v14079_v24 = vcombine.low %v8480_v62, %v8484_v34  ;;  %v8528_v28 = vld [vmem:[#allocation11 + $0x608] sm:$0xff] }
 0x533   :  { %11474 = vmatpush1.bf16.msra.mxu0 %v14029_v42  ;;  %v14080_v42 = vcombine.high %v8480_v62, %v8484_v34  ;;  %v8532_v29 = vld [vmem:[#allocation11 + $0x628] sm:$0xff]  ;;  %v14119_v62 = vcombine.low %v8520_v19, %v8524_v26 }
 0x534   :  { %11638 = vmatpush1.bf16.msra.mxu1 %v14031_v12  ;;  %11475 = vmatprep.subr.bf16.mxu0 %v14038_v43  ;;  %v8487_v12 = vld [vmem:[#allocation11 + $0x4c0] sm:$0xff] }
 0x535   :  { %11639 = vmatprep.subr.bf16.mxu1 %v14040_v37  ;;  %v8491_v43 = vld [vmem:[#allocation11 + $0x4e0] sm:$0xff]  ;;  %v8492_v37 = vld [vmem:[#allocation11 + $0x4e8] sm:$0xff] }
 0x536   :  { %v14086_v47 = vcombine.high %v8487_v12, %v8491_v43  ;;  %v14088_v48 = vcombine.high %v8488_v45, %v8492_v37  ;;  %v14085_v59 = vcombine.low %v8487_v12, %v8491_v43  ;;  %v8540_v12 = vld [vmem:[#allocation11 + $0x668] sm:$0xff] }
 0x537   :  { %11476 = vmatpush1.bf16.msra.mxu0 %v14037_v52  ;;  %v8499_v52 = vld [vmem:[#allocation11 + $0x520] sm:$0xff] }
 0x538   :  { %11640 = vmatpush1.bf16.msra.mxu1 %v14039_v54  ;;  %11477 = vmatprep.subr.bf16.mxu0 %v14046_v56  ;;  %v8496_v54 = vld [vmem:[#allocation11 + $0x508] sm:$0xff]  ;;  %v14094_v63 = vcombine.high %v8495_v53, %v8499_v52 }
 0x539   :  { %11641 = vmatprep.subr.bf16.mxu1 %v14048_v36  ;;  %v8500_v56 = vld [vmem:[#allocation11 + $0x528] sm:$0xff]  ;;  %v14087_v36 = vcombine.low %v8488_v45, %v8492_v37  ;;  %v14127_v45 = vcombine.low %v8528_v28, %v8532_v29 }
 0x53a   :  { %v14096_v0 = vcombine.high %v8496_v54, %v8500_v56 }
 0x53b   :  { %11478 = vmatpush1.bf16.msra.mxu0 %v14045_v2  ;;  %v8508_v2 = vld [vmem:[#allocation11 + $0x568] sm:$0xff] }
 0x53c   :  { %11642 = vmatpush1.bf16.msra.mxu1 %v14047_v3  ;;  %11479 = vmatprep.subr.bf16.mxu0 %v14054_v4  ;;  %v14093_v3 = vcombine.low %v8495_v53, %v8499_v52  ;;  %v14095_v4 = vcombine.low %v8496_v54, %v8500_v56  ;;  %v8548_v53 = vld [vmem:[#allocation11 + $0x6a8] sm:$0xff] }
 0x53d   :  { %11643 = vmatprep.subr.bf16.mxu1 %v14056_v49  ;;  %v14104_v49 = vcombine.high %v8504_v1, %v8508_v2 }
 0x53f   :  { %11480 = vmatpush1.bf16.msra.mxu0 %v14053_v7  ;;  %v14103_v7 = vcombine.low %v8504_v1, %v8508_v2 }
 0x540   :  { %11644 = vmatpush1.bf16.msra.mxu1 %v14055_v21  ;;  %11490 = vmatprep.subr.bf16.mxu0 %v14062_v9  ;;  %v14110_v21 = vcombine.high %v8511_v5, %v8515_v46  ;;  %v14112_v9 = vcombine.high %v8512_v60, %v8516_v6  ;;  %v8564_v5 = vld [vmem:[#allocation11 + $0x728] sm:$0xff] }
 0x541   :  { %11654 = vmatprep.subr.bf16.mxu1 %v14064_v13  ;;  %v8523_v13 = vld [vmem:[#allocation11 + $0x5e0] sm:$0xff] }
 0x542   :  { %11482 = vmatmul.mubr.bf16.vlgmr.msra.gmra.mrb[16].mxu0 %v15495_v30  ;;  %v14118_v15 = vcombine.high %v8519_v10, %v8523_v13 }
 0x543   :  { %11646 = vmatmul.mubr.bf16.vlgmr.msra.gmra.mrb[16].mxu1 %v15495_v30  ;;  %11491 = vmatpush1.bf16.msra.mxu0 %v14061_v22  ;;  %v14111_v22 = vcombine.low %v8512_v60, %v8516_v6 }
 0x544   :  { %11522 = vmatprep.mubr.bf16.mxu0 %v15497_v33  ;;  %11655 = vmatpush1.bf16.msra.mxu1 %v14063_v23  ;;  %v8527_v23 = vld [vmem:[#allocation11 + $0x600] sm:$0xff] }
 0x545   :  { %11686 = vmatprep.mubr.bf16.mxu1 %v15497_v33  ;;  %11492 = vmatprep.subr.bf16.mxu0 %v14070_v27  ;;  %v8531_v27 = vld [vmem:[#allocation11 + $0x620] sm:$0xff] }
 0x546   :  { %11656 = vmatprep.subr.bf16.mxu1 %v14072_v41  ;;  %v14117_v41 = vcombine.low %v8519_v10, %v8523_v13  ;;  %v14126_v34 = vcombine.high %v8527_v23, %v8531_v27  ;;  %v14125_v43 = vcombine.low %v8527_v23, %v8531_v27  ;;  %v8572_v10 = vld [vmem:[#allocation11 + $0x768] sm:$0xff] }
 0x547   :  { %11493 = vmatpush1.bf16.msra.mxu0 %v14069_v57  ;;  %v14128_v57 = vcombine.high %v8528_v28, %v8532_v29  ;;  %v8576_v23 = vld [vmem:[#allocation11 + $0x788] sm:$0xff] }
 0x548   :  { %11657 = vmatpush1.bf16.msra.mxu1 %v14071_v38  ;;  %11494 = vmatprep.subr.bf16.mxu0 %v14078_v31  ;;  %v8535_v38 = vld [vmem:[#allocation11 + $0x640] sm:$0xff]  ;;  %v8580_v27 = vld [vmem:[#allocation11 + $0x7a8] sm:$0xff] }
 0x549   :  { %11658 = vmatprep.subr.bf16.mxu1 %v14080_v42  ;;  %v8539_v31 = vld [vmem:[#allocation11 + $0x660] sm:$0xff]  ;;  %v8536_v42 = vld [vmem:[#allocation11 + $0x648] sm:$0xff] }
 0x54a   :  { %v14134_v37 = vcombine.high %v8535_v38, %v8539_v31  ;;  %v14133_v52 = vcombine.low %v8535_v38, %v8539_v31  ;;  %v14135_v54 = vcombine.low %v8536_v42, %v8540_v12  ;;  %v8587_v38 = vld [vmem:[#allocation11 + $0x7e0] sm:$0xff]  ;;  %v8584_v31 = vld [vmem:[#allocation11 + $0x7c8] sm:$0xff] }
 0x54b   :  { %11495 = vmatpush1.bf16.msra.mxu0 %v14077_v44  ;;  %v14136_v44 = vcombine.high %v8536_v42, %v8540_v12  ;;  %v14175_v12 = vcombine.low %v8576_v23, %v8580_v27 }
 0x54c   :  { %11659 = vmatpush1.bf16.msra.mxu1 %v14079_v24  ;;  %11496 = vmatprep.subr.bf16.mxu0 %v14086_v47  ;;  %v8543_v24 = vld [vmem:[#allocation11 + $0x680] sm:$0xff] }
 0x54d   :  { %11660 = vmatprep.subr.bf16.mxu1 %v14088_v48  ;;  %v8547_v47 = vld [vmem:[#allocation11 + $0x6a0] sm:$0xff]  ;;  %v8544_v48 = vld [vmem:[#allocation11 + $0x688] sm:$0xff] }
 0x54e   :  { %v14142_v56 = vcombine.high %v8543_v24, %v8547_v47  ;;  %v14141_v11 = vcombine.low %v8543_v24, %v8547_v47  ;;  %v14143_v1 = vcombine.low %v8544_v48, %v8548_v53  ;;  %v8595_v24 = vld [vmem:[#allocation11 + $0x820] sm:$0xff]  ;;  %v8592_v47 = vld [vmem:[#allocation11 + $0x808] sm:$0xff] }
 0x54f   :  { %11497 = vmatpush1.bf16.msra.mxu0 %v14085_v59  ;;  %v14144_v59 = vcombine.high %v8544_v48, %v8548_v53 }
 0x550   :  { %11661 = vmatpush1.bf16.msra.mxu1 %v14087_v36  ;;  %11498 = vmatprep.subr.bf16.mxu0 %v14094_v63  ;;  %v8551_v36 = vld [vmem:[#allocation11 + $0x6c0] sm:$0xff] }
 0x551   :  { %11662 = vmatprep.subr.bf16.mxu1 %v14096_v0  ;;  %v8555_v63 = vld [vmem:[#allocation11 + $0x6e0] sm:$0xff]  ;;  %v8552_v0 = vld [vmem:[#allocation11 + $0x6c8] sm:$0xff] }
 0x552   :  { %v14150_v2 = vcombine.high %v8551_v36, %v8555_v63  ;;  %v14149_v46 = vcombine.low %v8551_v36, %v8555_v63  ;;  %v14151_v60 = vcombine.low %v8552_v0, %v8556_v32  ;;  %v8603_v36 = vld [vmem:[#allocation11 + $0x860] sm:$0xff]  ;;  %v8600_v63 = vld [vmem:[#allocation11 + $0x848] sm:$0xff] }
 0x553   :  { %11499 = vmatpush1.bf16.msra.mxu0 %v14093_v3  ;;  %v14152_v3 = vcombine.high %v8552_v0, %v8556_v32  ;;  %v8604_v0 = vld [vmem:[#allocation11 + $0x868] sm:$0xff] }
 0x554   :  { %11663 = vmatpush1.bf16.msra.mxu1 %v14095_v4  ;;  %11500 = vmatprep.subr.bf16.mxu0 %v14102_v40  ;;  %v8559_v4 = vld [vmem:[#allocation11 + $0x700] sm:$0xff] }
 0x555   :  { %11664 = vmatprep.subr.bf16.mxu1 %v14104_v49  ;;  %v8563_v40 = vld [vmem:[#allocation11 + $0x720] sm:$0xff]  ;;  %v8560_v49 = vld [vmem:[#allocation11 + $0x708] sm:$0xff] }
 0x556   :  { %v14158_v6 = vcombine.high %v8559_v4, %v8563_v40  ;;  %v14157_v13 = vcombine.low %v8559_v4, %v8563_v40  ;;  %v14159_v19 = vcombine.low %v8560_v49, %v8564_v5  ;;  %v8607_v4 = vld [vmem:[#allocation11 + $0x880] sm:$0xff] }
 0x557   :  { %11501 = vmatpush1.bf16.msra.mxu0 %v14101_v18  ;;  %v14160_v18 = vcombine.high %v8560_v49, %v8564_v5  ;;  %v8611_v40 = vld [vmem:[#allocation11 + $0x8a0] sm:$0xff]  ;;  %v8608_v49 = vld [vmem:[#allocation11 + $0x888] sm:$0xff] }
 0x558   :  { %11665 = vmatpush1.bf16.msra.mxu1 %v14103_v7  ;;  %11502 = vmatprep.subr.bf16.mxu0 %v14110_v21  ;;  %v8567_v7 = vld [vmem:[#allocation11 + $0x740] sm:$0xff]  ;;  %v8612_v5 = vld [vmem:[#allocation11 + $0x8a8] sm:$0xff] }
 0x559   :  { %11666 = vmatprep.subr.bf16.mxu1 %v14112_v9  ;;  %v8571_v21 = vld [vmem:[#allocation11 + $0x760] sm:$0xff]  ;;  %v8568_v9 = vld [vmem:[#allocation11 + $0x748] sm:$0xff] }
 0x55a   :  { %v14166_v26 = vcombine.high %v8567_v7, %v8571_v21  ;;  %v14165_v28 = vcombine.low %v8567_v7, %v8571_v21  ;;  %v14167_v29 = vcombine.low %v8568_v9, %v8572_v10  ;;  %v8615_v7 = vld [vmem:[#allocation11 + $0x8c0] sm:$0xff] }
 0x55b   :  { %11503 = vmatpush1.bf16.msra.mxu0 %v14109_v20  ;;  %v5058_v20 = vrot.slane %v15478_v39, %v15406_v55  ;;  %v8588_v39 = vld [vmem:[#allocation11 + $0x7e8] sm:$0xff]  ;;  %v8619_v21 = vld [vmem:[#allocation11 + $0x8e0] sm:$0xff] }
 0x55c   :  { %11667 = vmatpush1.bf16.msra.mxu1 %v14111_v22  ;;  %11504 = vmatprep.subr.bf16.mxu0 %v14118_v15  ;;  %v14168_v22 = vcombine.high %v8568_v9, %v8572_v10  ;;  %v8575_v15 = vld [vmem:[#allocation11 + $0x780] sm:$0xff]  ;;  %v14183_v53 = vcombine.low %v8584_v31, %v8588_v39  ;;  %v8616_v9 = vld [vmem:[#allocation11 + $0x8c8] sm:$0xff] }
 0x55d   :  { %11668 = vmatprep.subr.bf16.mxu1 %v14120_v8  ;;  %v8579_v8 = vld [vmem:[#allocation11 + $0x7a0] sm:$0xff]  ;;  %v8620_v10 = vld [vmem:[#allocation11 + $0x8e8] sm:$0xff] }
 0x55e   :  { %v14173_v42 = vcombine.low %v8575_v15, %v8579_v8 }
 0x55f   :  { %11505 = vmatpush1.bf16.msra.mxu0 %v14117_v41  ;;  %v14174_v41 = vcombine.high %v8575_v15, %v8579_v8  ;;  %v8627_v15 = vld [vmem:[#allocation11 + $0x920] sm:$0xff]  ;;  %v8624_v8 = vld [vmem:[#allocation11 + $0x908] sm:$0xff] }
 0x560   :  { %11669 = vmatpush1.bf16.msra.mxu1 %v14119_v62  ;;  %11506 = vmatprep.subr.bf16.mxu0 %v14126_v34  ;;  %v14608_v62 = vadd.f32 %v15472_v61, %v5058_v20  ;;  %v14176_v34 = vcombine.high %v8576_v23, %v8580_v27  ;;  %v8596_v61 = vld [vmem:[#allocation11 + $0x828] sm:$0xff]  ;;  %v14216_v20 = vcombine.high %v8616_v9, %v8620_v10 }
 0x561   :  { %11670 = vmatprep.subr.bf16.mxu1 %v14128_v57  ;;  %v8583_v57 = vld [vmem:[#allocation11 + $0x7c0] sm:$0xff]  ;;  %v8628_v23 = vld [vmem:[#allocation11 + $0x928] sm:$0xff]  ;;  %v14213_v27 = vcombine.low %v8615_v7, %v8619_v21 }
 0x562   :  { %vm8305_vm11 = vcmp.ge.f32.partialorder %v14608_v62, 0.0  ;;  %v14181_v48 = vcombine.low %v8583_v57, %v8587_v38 }
 0x563   :  { %11507 = vmatpush1.bf16.msra.mxu0 %v14125_v43  ;;  %v14182_v43 = vcombine.high %v8583_v57, %v8587_v38  ;;  %v8632_v57 = vld [vmem:[#allocation11 + $0x948] sm:$0xff] }
 0x564   :  { %11671 = vmatpush1.bf16.msra.mxu1 %v14127_v45  ;;  %11508 = vmatprep.subr.bf16.mxu0 %v14134_v37  ;;  %v8313_v45 = vmul.f32 0.2, %v14608_v62  ;;  %v14184_v37 = vcombine.high %v8584_v31, %v8588_v39  ;;  %v8636_v38 = vld [vmem:[#allocation11 + $0x968] sm:$0xff]  ;;  %v14223_v39 = vcombine.low %v8624_v8, %v8628_v23 }
 0x565   :  { %11672 = vmatprep.subr.bf16.mxu1 %v14136_v44  ;;  %v8591_v44 = vld [vmem:[#allocation11 + $0x800] sm:$0xff] }
 0x566   :  { %v14189_v32 = vcombine.low %v8591_v44, %v8595_v24 }
 0x567   :  { %11509 = vmatpush1.bf16.msra.mxu0 %v14133_v52  ;;  %v14190_v52 = vcombine.high %v8591_v44, %v8595_v24  ;;  %v8644_v44 = vld [vmem:[#allocation11 + $0x9a8] sm:$0xff] }
 0x568   :  { %11673 = vmatpush1.bf16.msra.mxu1 %v14135_v54  ;;  %11510 = vmatprep.subr.bf16.mxu0 %v14142_v56  ;;  %v8321_v54 = vsel %vm8305_vm11, %v14608_v62, %v8313_v45  ;;  %v14192_v56 = vcombine.high %v8592_v47, %v8596_v61  ;;  %v8631_v62 = vld [vmem:[#allocation11 + $0x940] sm:$0xff] }
 0x569   :  { %11674 = vmatprep.subr.bf16.mxu1 %v14144_v59  ;;  %v8599_v59 = vld [vmem:[#allocation11 + $0x840] sm:$0xff] }
 0x56a   :  { %v8643_v45 = vld [vmem:[#allocation11 + $0x9a0] sm:$0xff] }
 0x56b   :  { %11511 = vmatpush1.bf16.msra.mxu0 %v14141_v11  ;;  %v15506_v11 = vpack.c.bf16 %v8321_v54, %v8321_v54  ;;  %v8648_v54 = vld [vmem:[#allocation11 + $0x9c8] sm:$0xff] }
 0x56c   :  { %11675 = vmatpush1.bf16.msra.mxu1 %v14143_v1  ;;  %11512 = vmatprep.subr.bf16.mxu0 %v14150_v2  ;;  %v14191_v1 = vcombine.low %v8592_v47, %v8596_v61  ;;  %v14198_v2 = vcombine.high %v8599_v59, %v8603_v36  ;;  %v14231_v47 = vcombine.low %v8632_v57, %v8636_v38 }
 0x56d   :  { %11676 = vmatprep.subr.bf16.mxu1 %v14152_v3  ;;  %v14200_v3 = vcombine.high %v8600_v63, %v8604_v0 }
 0x56f   :  { %11513 = vmatpush1.bf16.msra.mxu0 %v14149_v46  ;;  %v14197_v46 = vcombine.low %v8599_v59, %v8603_v36 }
 0x570   :  { %11677 = vmatpush1.bf16.msra.mxu1 %v14151_v60  ;;  %11514 = vmatprep.subr.bf16.mxu0 %v14158_v6  ;;  %v14199_v60 = vcombine.low %v8600_v63, %v8604_v0  ;;  %v14206_v6 = vcombine.high %v8607_v4, %v8611_v40 }
 0x571   :  { %11678 = vmatprep.subr.bf16.mxu1 %v14160_v18  ;;  %v14208_v18 = vcombine.high %v8608_v49, %v8612_v5 }
 0x573   :  { %11515 = vmatpush1.bf16.msra.mxu0 %v14157_v13  ;;  %v14205_v13 = vcombine.low %v8607_v4, %v8611_v40 }
 0x574   :  { %11679 = vmatpush1.bf16.msra.mxu1 %v14159_v19  ;;  %11516 = vmatprep.subr.bf16.mxu0 %v14166_v26  ;;  %v14207_v19 = vcombine.low %v8608_v49, %v8612_v5  ;;  %v14214_v26 = vcombine.high %v8615_v7, %v8619_v21 }
 0x575   :  { %11680 = vmatprep.subr.bf16.mxu1 %v14168_v22  ;;  %v8623_v22 = vld [vmem:[#allocation11 + $0x900] sm:$0xff] }
 0x576   :  { %v14221_v31 = vcombine.low %v8623_v22, %v8627_v15 }
 0x577   :  { %11517 = vmatpush1.bf16.msra.mxu0 %v14165_v28  ;;  %v14215_v28 = vcombine.low %v8616_v9, %v8620_v10 }
 0x578   :  { %11681 = vmatpush1.bf16.msra.mxu1 %v14167_v29  ;;  %11518 = vmatprep.subr.bf16.mxu0 %v14174_v41  ;;  %v14222_v29 = vcombine.high %v8623_v22, %v8627_v15  ;;  %v14224_v41 = vcombine.high %v8624_v8, %v8628_v23 }
 0x579   :  { %11682 = vmatprep.subr.bf16.mxu1 %v14176_v34  ;;  %v8635_v34 = vld [vmem:[#allocation11 + $0x960] sm:$0xff] }
 0x57a   :  { %v14229_v24 = vcombine.low %v8631_v62, %v8635_v34 }
 0x57b   :  { %11519 = vmatpush1.bf16.msra.mxu0 %v14173_v42  ;;  %v14230_v42 = vcombine.high %v8631_v62, %v8635_v34 }
 0x57c   :  { %11683 = vmatpush1.bf16.msra.mxu1 %v14175_v12  ;;  %11520 = vmatprep.subr.bf16.mxu0 %v14182_v43  ;;  %v14232_v12 = vcombine.high %v8632_v57, %v8636_v38  ;;  %v8639_v43 = vld [vmem:[#allocation11 + $0x980] sm:$0xff] }
 0x57d   :  { %11684 = vmatprep.subr.bf16.mxu1 %v14184_v37  ;;  %v8640_v37 = vld [vmem:[#allocation11 + $0x988] sm:$0xff]  ;;  %v14238_v61 = vcombine.high %v8639_v43, %v8643_v45  ;;  %v14237_v59 = vcombine.low %v8639_v43, %v8643_v45 }
 0x57e   :  { %v14239_v36 = vcombine.low %v8640_v37, %v8644_v44 }
 0x57f   :  { %11521 = vmatpush1.bf16.msra.mxu0 %v14181_v48  ;;  %v14240_v48 = vcombine.high %v8640_v37, %v8644_v44 }
 0x580   :  { %11685 = vmatpush1.bf16.msra.mxu1 %v14183_v53  ;;  %11531 = vmatprep.subr.bf16.mxu0 %v14190_v52  ;;  %v8647_v53 = vld [vmem:[#allocation11 + $0x9c0] sm:$0xff] }
 0x581   :  { %11695 = vmatprep.subr.bf16.mxu1 %v14192_v56  ;;  %v8651_v52 = vld [vmem:[#allocation11 + $0x9e0] sm:$0xff]  ;;  %v8652_v56 = vld [vmem:[#allocation11 + $0x9e8] sm:$0xff] }
 0x582   :  { %11523 = vmatmul.mubr.bf16.vlgmr.msra.gmra.mrb[16].mxu0 %v15506_v11  ;;  %v14246_v63 = vcombine.high %v8647_v53, %v8651_v52  ;;  %v14248_v0 = vcombine.high %v8648_v54, %v8652_v56  ;;  %v14245_v4 = vcombine.low %v8647_v53, %v8651_v52  ;;  %v14247_v40 = vcombine.low %v8648_v54, %v8652_v56 }
 0x583   :  { %11687 = vmatmul.mubr.bf16.vlgmr.msra.gmra.mrb[16].mxu1 %v15506_v11  ;;  %11532 = vmatpush1.bf16.msra.mxu0 %v14189_v32  ;;  %v8655_v32 = vld [vmem:[#allocation11 + $0xa00] sm:$0xff] }
 0x584   :  { %11696 = vmatpush1.bf16.msra.mxu1 %v14191_v1  ;;  %11533 = vmatprep.subr.bf16.mxu0 %v14198_v2  ;;  %v8659_v1 = vld [vmem:[#allocation11 + $0xa20] sm:$0xff]  ;;  %v8656_v2 = vld [vmem:[#allocation11 + $0xa08] sm:$0xff] }
 0x585   :  { %11697 = vmatprep.subr.bf16.mxu1 %v14200_v3  ;;  %v8660_v3 = vld [vmem:[#allocation11 + $0xa28] sm:$0xff]  ;;  %v14254_v49 = vcombine.high %v8655_v32, %v8659_v1  ;;  %v14253_v7 = vcombine.low %v8655_v32, %v8659_v1 }
 0x586   :  { %v14256_v5 = vcombine.high %v8656_v2, %v8660_v3  ;;  %v14255_v21 = vcombine.low %v8656_v2, %v8660_v3 }
 0x587   :  { %11534 = vmatpush1.bf16.msra.mxu0 %v14197_v46  ;;  %v8663_v46 = vld [vmem:[#allocation11 + $0xa40] sm:$0xff] }
 0x588   :  { %11698 = vmatpush1.bf16.msra.mxu1 %v14199_v60  ;;  %11535 = vmatprep.subr.bf16.mxu0 %v14206_v6  ;;  %v8667_v60 = vld [vmem:[#allocation11 + $0xa60] sm:$0xff]  ;;  %v8664_v6 = vld [vmem:[#allocation11 + $0xa48] sm:$0xff] }
 0x589   :  { %11699 = vmatprep.subr.bf16.mxu1 %v14208_v18  ;;  %v8668_v18 = vld [vmem:[#allocation11 + $0xa68] sm:$0xff]  ;;  %v14262_v9 = vcombine.high %v8663_v46, %v8667_v60  ;;  %v14261_v22 = vcombine.low %v8663_v46, %v8667_v60 }
 0x58a   :  { %v14264_v10 = vcombine.high %v8664_v6, %v8668_v18  ;;  %v14263_v15 = vcombine.low %v8664_v6, %v8668_v18 }
 0x58b   :  { %11536 = vmatpush1.bf16.msra.mxu0 %v14205_v13  ;;  %v8671_v13 = vld [vmem:[#allocation11 + $0xa80] sm:$0xff] }
 0x58c   :  { %11700 = vmatpush1.bf16.msra.mxu1 %v14207_v19  ;;  %11537 = vmatprep.subr.bf16.mxu0 %v14214_v26  ;;  %v8675_v19 = vld [vmem:[#allocation11 + $0xaa0] sm:$0xff]  ;;  %v8672_v26 = vld [vmem:[#allocation11 + $0xa88] sm:$0xff] }
 0x58d   :  { %11701 = vmatprep.subr.bf16.mxu1 %v14216_v20  ;;  %v8676_v20 = vld [vmem:[#allocation11 + $0xaa8] sm:$0xff]  ;;  %v14270_v8 = vcombine.high %v8671_v13, %v8675_v19  ;;  %v14269_v62 = vcombine.low %v8671_v13, %v8675_v19 }
 0x58e   :  { %v14272_v23 = vcombine.high %v8672_v26, %v8676_v20  ;;  %v14271_v34 = vcombine.low %v8672_v26, %v8676_v20 }
 0x58f   :  { %11538 = vmatpush1.bf16.msra.mxu0 %v14213_v27  ;;  %v8679_v27 = vld [vmem:[#allocation11 + $0xac0] sm:$0xff] }
 0x590   :  { %11702 = vmatpush1.bf16.msra.mxu1 %v14215_v28  ;;  %11539 = vmatprep.subr.bf16.mxu0 %v14222_v29  ;;  %v8683_v28 = vld [vmem:[#allocation11 + $0xae0] sm:$0xff]  ;;  %v8680_v29 = vld [vmem:[#allocation11 + $0xac8] sm:$0xff] }
 0x591   :  { %11703 = vmatprep.subr.bf16.mxu1 %v14224_v41  ;;  %v8684_v41 = vld [vmem:[#allocation11 + $0xae8] sm:$0xff]  ;;  %v14278_v57 = vcombine.high %v8679_v27, %v8683_v28  ;;  %v14277_v43 = vcombine.low %v8679_v27, %v8683_v28 }
 0x592   :  { %v14280_v38 = vcombine.high %v8680_v29, %v8684_v41  ;;  %v14279_v45 = vcombine.low %v8680_v29, %v8684_v41 }
 0x593   :  { %11540 = vmatpush1.bf16.msra.mxu0 %v14221_v31  ;;  %v8687_v31 = vld [vmem:[#allocation11 + $0xb00] sm:$0xff] }
 0x594   :  { %11704 = vmatpush1.bf16.msra.mxu1 %v14223_v39  ;;  %11541 = vmatprep.subr.bf16.mxu0 %v14230_v42  ;;  %v8691_v39 = vld [vmem:[#allocation11 + $0xb20] sm:$0xff]  ;;  %v8688_v42 = vld [vmem:[#allocation11 + $0xb08] sm:$0xff] }
 0x595   :  { %11705 = vmatprep.subr.bf16.mxu1 %v14232_v12  ;;  %v8692_v12 = vld [vmem:[#allocation11 + $0xb28] sm:$0xff]  ;;  %v14286_v37 = vcombine.high %v8687_v31, %v8691_v39  ;;  %v14285_v53 = vcombine.low %v8687_v31, %v8691_v39 }
 0x596   :  { %v14288_v44 = vcombine.high %v8688_v42, %v8692_v12  ;;  %v14287_v52 = vcombine.low %v8688_v42, %v8692_v12 }
 0x597   :  { %11542 = vmatpush1.bf16.msra.mxu0 %v14229_v24  ;;  %v8695_v24 = vld [vmem:[#allocation11 + $0xb40] sm:$0xff] }
 0x598   :  { %11706 = vmatpush1.bf16.msra.mxu1 %v14231_v47  ;;  %11543 = vmatprep.subr.bf16.mxu0 %v14238_v61  ;;  %v8699_v47 = vld [vmem:[#allocation11 + $0xb60] sm:$0xff]  ;;  %v8696_v61 = vld [vmem:[#allocation11 + $0xb48] sm:$0xff] }
 0x599   :  { %11707 = vmatprep.subr.bf16.mxu1 %v14240_v48  ;;  %v8700_v48 = vld [vmem:[#allocation11 + $0xb68] sm:$0xff]  ;;  %v14294_v54 = vcombine.high %v8695_v24, %v8699_v47  ;;  %v14293_v32 = vcombine.low %v8695_v24, %v8699_v47  ;;  %v8731_v47 = vld [vmem:[#allocation11 + $0xc60] sm:$0xff] }
 0x59a   :  { %v14296_v56 = vcombine.high %v8696_v61, %v8700_v48  ;;  %v14295_v1 = vcombine.low %v8696_v61, %v8700_v48  ;;  %v8728_v61 = vld [vmem:[#allocation11 + $0xc48] sm:$0xff] }
 0x59b   :  { %11544 = vmatpush1.bf16.msra.mxu0 %v14237_v59  ;;  %v8703_v59 = vld [vmem:[#allocation11 + $0xb80] sm:$0xff]  ;;  %v8732_v48 = vld [vmem:[#allocation11 + $0xc68] sm:$0xff] }
 0x59c   :  { %11708 = vmatpush1.bf16.msra.mxu1 %v14239_v36  ;;  %11545 = vmatprep.subr.bf16.mxu0 %v14246_v63  ;;  %v8707_v36 = vld [vmem:[#allocation11 + $0xba0] sm:$0xff]  ;;  %v8704_v63 = vld [vmem:[#allocation11 + $0xb88] sm:$0xff] }
 0x59d   :  { %11709 = vmatprep.subr.bf16.mxu1 %v14248_v0  ;;  %v8708_v0 = vld [vmem:[#allocation11 + $0xba8] sm:$0xff]  ;;  %v14302_v2 = vcombine.high %v8703_v59, %v8707_v36  ;;  %v14301_v46 = vcombine.low %v8703_v59, %v8707_v36  ;;  %v8735_v36 = vld [vmem:[#allocation11 + $0xc80] sm:$0xff] }
 0x59e   :  { %v14304_v3 = vcombine.high %v8704_v63, %v8708_v0  ;;  %v14303_v60 = vcombine.low %v8704_v63, %v8708_v0  ;;  %v14328_v0 = vcombine.high %v8728_v61, %v8732_v48 }
 0x59f   :  { %11546 = vmatpush1.bf16.msra.mxu0 %v14245_v4  ;;  %v8711_v4 = vld [vmem:[#allocation11 + $0xbc0] sm:$0xff] }
 0x5a0   :  { %11710 = vmatpush1.bf16.msra.mxu1 %v14247_v40  ;;  %11547 = vmatprep.subr.bf16.mxu0 %v14254_v49  ;;  %v8715_v40 = vld [vmem:[#allocation11 + $0xbe0] sm:$0xff]  ;;  %v8712_v49 = vld [vmem:[#allocation11 + $0xbc8] sm:$0xff] }
 0x5a1   :  { %11711 = vmatprep.subr.bf16.mxu1 %v14256_v5  ;;  %v8716_v5 = vld [vmem:[#allocation11 + $0xbe8] sm:$0xff]  ;;  %v14310_v6 = vcombine.high %v8711_v4, %v8715_v40  ;;  %v14309_v13 = vcombine.low %v8711_v4, %v8715_v40  ;;  %v14327_v40 = vcombine.low %v8728_v61, %v8732_v48  ;;  %v8775_v61 = vld [vmem:[#allocation11 + $0xdc0] sm:$0xff] }
 0x5a2   :  { %v14312_v18 = vcombine.high %v8712_v49, %v8716_v5  ;;  %v14311_v19 = vcombine.low %v8712_v49, %v8716_v5  ;;  %v8779_v48 = vld [vmem:[#allocation11 + $0xde0] sm:$0xff] }
 0x5a3   :  { %11548 = vmatpush1.bf16.msra.mxu0 %v14253_v7  ;;  %v8719_v7 = vld [vmem:[#allocation11 + $0xc00] sm:$0xff] }
 0x5a4   :  { %11712 = vmatpush1.bf16.msra.mxu1 %v14255_v21  ;;  %11549 = vmatprep.subr.bf16.mxu0 %v14262_v9  ;;  %v8723_v21 = vld [vmem:[#allocation11 + $0xc20] sm:$0xff]  ;;  %v8720_v9 = vld [vmem:[#allocation11 + $0xc08] sm:$0xff] }
 0x5a5   :  { %11713 = vmatprep.subr.bf16.mxu1 %v14264_v10  ;;  %v8724_v10 = vld [vmem:[#allocation11 + $0xc28] sm:$0xff]  ;;  %v14318_v26 = vcombine.high %v8719_v7, %v8723_v21 }
 0x5a6   :  { %v14320_v20 = vcombine.high %v8720_v9, %v8724_v10 }
 0x5a7   :  { %11550 = vmatpush1.bf16.msra.mxu0 %v14261_v22  ;;  %v15510_v22 = vld [vmem:[#allocation10] sm:$0xff] }
 0x5a8   :  { %11714 = vmatpush1.bf16.msra.mxu1 %v14263_v15  ;;  %11551 = vmatprep.subr.bf16.mxu0 %v14270_v8  ;;  %v5066_v15 = vrot.slane %v15510_v22, %v15416_v14  ;;  %v5070_v8 = vrot.slane %v15510_v22, %v15419_v16 }
 0x5a9   :  { %11715 = vmatprep.subr.bf16.mxu1 %v14272_v23  ;;  %v5078_v23 = vrot.slane %v15510_v22, %v15422_v17 }
 0x5ab   :  { %11552 = vmatpush1.bf16.msra.mxu0 %v14269_v62 }
 0x5ac   :  { %11716 = vmatpush1.bf16.msra.mxu1 %v14271_v34  ;;  %11553 = vmatprep.subr.bf16.mxu0 %v14278_v57 }
 0x5ad   :  { %11717 = vmatprep.subr.bf16.mxu1 %v14280_v38 }
 0x5af   :  { %11554 = vmatpush1.bf16.msra.mxu0 %v14277_v43 }
 0x5b0   :  { %11718 = vmatpush1.bf16.msra.mxu1 %v14279_v45  ;;  %11555 = vmatprep.subr.bf16.mxu0 %v14286_v37 }
 0x5b1   :  { %11719 = vmatprep.subr.bf16.mxu1 %v14288_v44  ;;  %v8727_v44 = vld [vmem:[#allocation11 + $0xc40] sm:$0xff] }
 0x5b2   :  { %v14326_v63 = vcombine.high %v8727_v44, %v8731_v47  ;;  %v14325_v4 = vcombine.low %v8727_v44, %v8731_v47 }
 0x5b3   :  { %11556 = vmatpush1.bf16.msra.mxu0 %v14285_v53 }
 0x5b4   :  { %11720 = vmatpush1.bf16.msra.mxu1 %v14287_v52  ;;  %11557 = vmatprep.subr.bf16.mxu0 %v14294_v54  ;;  %v14317_v54 = vcombine.low %v8719_v7, %v8723_v21 }
 0x5b5   :  { %11721 = vmatprep.subr.bf16.mxu1 %v14296_v56  ;;  %v14319_v56 = vcombine.low %v8720_v9, %v8724_v10 }
 0x5b7   :  { %11558 = vmatpush1.bf16.msra.mxu0 %v14293_v32  ;;  %v8739_v32 = vld [vmem:[#allocation11 + $0xca0] sm:$0xff] }
 0x5b8   :  { %11722 = vmatpush1.bf16.msra.mxu1 %v14295_v1  ;;  %11559 = vmatprep.subr.bf16.mxu0 %v14302_v2  ;;  %v8736_v1 = vld [vmem:[#allocation11 + $0xc88] sm:$0xff]  ;;  %v14334_v49 = vcombine.high %v8735_v36, %v8739_v32  ;;  %v14333_v7 = vcombine.low %v8735_v36, %v8739_v32  ;;  %v8783_v32 = vld [vmem:[#allocation11 + $0xe00] sm:$0xff] }
 0x5b9   :  { %11723 = vmatprep.subr.bf16.mxu1 %v14304_v3  ;;  %v8740_v2 = vld [vmem:[#allocation11 + $0xca8] sm:$0xff] }
 0x5ba   :  { %v14336_v5 = vcombine.high %v8736_v1, %v8740_v2  ;;  %v14335_v21 = vcombine.low %v8736_v1, %v8740_v2  ;;  %v8787_v1 = vld [vmem:[#allocation11 + $0xe20] sm:$0xff]  ;;  %v8784_v2 = vld [vmem:[#allocation11 + $0xe08] sm:$0xff] }
 0x5bb   :  { %11560 = vmatpush1.bf16.msra.mxu0 %v14301_v46  ;;  %v8743_v46 = vld [vmem:[#allocation11 + $0xcc0] sm:$0xff] }
 0x5bc   :  { %11724 = vmatpush1.bf16.msra.mxu1 %v14303_v60  ;;  %11561 = vmatprep.subr.bf16.mxu0 %v14310_v6  ;;  %v8747_v60 = vld [vmem:[#allocation11 + $0xce0] sm:$0xff]  ;;  %v8744_v6 = vld [vmem:[#allocation11 + $0xcc8] sm:$0xff] }
 0x5bd   :  { %11725 = vmatprep.subr.bf16.mxu1 %v14312_v18  ;;  %v8748_v18 = vld [vmem:[#allocation11 + $0xce8] sm:$0xff]  ;;  %v14342_v9 = vcombine.high %v8743_v46, %v8747_v60 }
 0x5be   :  { %v14344_v10 = vcombine.high %v8744_v6, %v8748_v18 }
 0x5bf   :  { %11562 = vmatpush1.bf16.msra.mxu0 %v14309_v13  ;;  %v8751_v13 = vld [vmem:[#allocation11 + $0xd00] sm:$0xff] }
 0x5c0   :  { %11726 = vmatpush1.bf16.msra.mxu1 %v14311_v19  ;;  %11572 = vmatprep.subr.bf16.mxu0 %v14318_v26  ;;  %v8755_v19 = vld [vmem:[#allocation11 + $0xd20] sm:$0xff]  ;;  %v8752_v26 = vld [vmem:[#allocation11 + $0xd08] sm:$0xff] }
 0x5c1   :  { %11736 = vmatprep.subr.bf16.mxu1 %v14320_v20  ;;  %v8756_v20 = vld [vmem:[#allocation11 + $0xd28] sm:$0xff] }
 0x5d5   :  { %v8132_v27 = vpop.f32.mrb[12].mxu0 }
 0x5d6   :  { %v14610_v28 = vadd.f32 %v8132_v27, %v5066_v15  ;;  %v15518_v29 = vpop.f32.mrb[12].mxu1  ;;  %v8134_v41 = vpop.f32.mrb[13].mxu0  ;;  %v14341_v15 = vcombine.low %v8743_v46, %v8747_v60  ;;  %v14352_v27 = vcombine.high %v8752_v26, %v8756_v20  ;;  %v8791_v60 = vld [vmem:[#allocation11 + $0xe40] sm:$0xff] }
 0x5d7   :  { %v14611_v62 = vadd.f32 %v8134_v41, %v5070_v8  ;;  %v8298_v34 = vpop.f32.mrb[13].mxu1  ;;  %v8136_v57 = vpop.f32.mrb[14].mxu0  ;;  %v14343_v8 = vcombine.low %v8744_v6, %v8748_v18  ;;  %v8763_v41 = vld [vmem:[#allocation11 + $0xd60] sm:$0xff]  ;;  %v8792_v18 = vld [vmem:[#allocation11 + $0xe48] sm:$0xff] }
 0x5d8   :  { %vm8307_vm12 = vcmp.ge.f32.partialorder %v14610_v28, 0.0  ;;  %v8315_v38 = vmul.f32 0.2, %v14610_v28  ;;  %v14613_v31 = vadd.f32 %v8298_v34, %v5078_v23  ;;  %v8300_v39 = vpop.f32.mrb[14].mxu1  ;;  %v8137_v42 = vpop.f32.mrb[15].mxu0  ;;  %v14350_v23 = vcombine.high %v8751_v13, %v8755_v19  ;;  %v8764_v34 = vld [vmem:[#allocation11 + $0xd68] sm:$0xff] }
 0x5d9   :  { %vm8308_vm13 = vcmp.ge.f32.partialorder %v14611_v62, 0.0  ;;  %v8316_v12 = vmul.f32 0.2, %v14611_v62  ;;  %v8301_v37 = vpop.f32.mrb[15].mxu1  ;;  %v14349_v57 = vcombine.low %v8751_v13, %v8755_v19  ;;  %v8767_v42 = vld [vmem:[#allocation11 + $0xd80] sm:$0xff] }
 0x5da   :  { %v8323_v43 = vsel %vm8307_vm12, %v14610_v28, %v8315_v38  ;;  %vm8310_vm14 = vcmp.ge.f32.partialorder %v14613_v31, 0.0  ;;  %v8318_v45 = vmul.f32 0.2, %v14613_v31  ;;  %v8759_v28 = vld [vmem:[#allocation11 + $0xd40] sm:$0xff]  ;;  %v14351_v38 = vcombine.low %v8752_v26, %v8756_v20  ;;  %v8800_v20 = vld [vmem:[#allocation11 + $0xe88] sm:$0xff] }
 0x5db   :  { %v8324_v24 = vsel %vm8308_vm13, %v14611_v62, %v8316_v12  ;;  %v15522_v59 = vpack.c.bf16 %v8323_v43, %v8323_v43  ;;  %v8760_v62 = vld [vmem:[#allocation11 + $0xd48] sm:$0xff]  ;;  %v8771_v12 = vld [vmem:[#allocation11 + $0xda0] sm:$0xff]  ;;  %v14357_v37 = vcombine.low %v8759_v28, %v8763_v41 }
 0x5dc   :  { %v15520_v53 = vpack.c.bf16 %v8324_v24, %v8324_v24  ;;  %v8326_v52 = vsel %vm8310_vm14, %v14613_v31, %v8318_v45  ;;  %v14358_v31 = vcombine.high %v8759_v28, %v8763_v41  ;;  %v14360_v39 = vcombine.high %v8760_v62, %v8764_v34  ;;  %v8768_v43 = vld [vmem:[#allocation11 + $0xd88] sm:$0xff]  ;;  %v8795_v6 = vld [vmem:[#allocation11 + $0xe60] sm:$0xff] }
 0x5dd   :  { %v15526_v3 = vpack.c.bf16 %v8326_v52, %v8326_v52  ;;  %v8772_v45 = vld [vmem:[#allocation11 + $0xda8] sm:$0xff]  ;;  %v14359_v44 = vcombine.low %v8760_v62, %v8764_v34  ;;  %v14366_v24 = vcombine.high %v8767_v42, %v8771_v12  ;;  %v8799_v19 = vld [vmem:[#allocation11 + $0xe80] sm:$0xff] }
 0x5de   :  { %11563 = vmatprep.mubr.bf16.mxu0 %v15520_v53  ;;  %11727 = vmatprep.mubr.bf16.mxu1 %v15520_v53  ;;  %v14368_v47 = vcombine.high %v8768_v43, %v8772_v45  ;;  %v8776_v52 = vld [vmem:[#allocation11 + $0xdc8] sm:$0xff]  ;;  %v14367_v36 = vcombine.low %v8768_v43, %v8772_v45  ;;  %v8803_v26 = vld [vmem:[#allocation11 + $0xea0] sm:$0xff] }
 0x5df   :  { %11564 = vmatmul.mubr.bf16.vlgmr.msra.gmra.mrb[16].mxu0 %v15522_v59  ;;  %11728 = vmatmul.mubr.bf16.vlgmr.msra.gmra.mrb[16].mxu1 %v15522_v59  ;;  %v8807_v41 = vld [vmem:[#allocation11 + $0xec0] sm:$0xff]  ;;  %v8808_v34 = vld [vmem:[#allocation11 + $0xec8] sm:$0xff] }
 0x5e0   :  { %11573 = vmatpush1.bf16.msra.mxu0 %v14317_v54  ;;  %11737 = vmatpush1.bf16.msra.mxu1 %v14319_v56  ;;  %v8780_v54 = vld [vmem:[#allocation11 + $0xde8] sm:$0xff]  ;;  %v14365_v56 = vcombine.low %v8767_v42, %v8771_v12  ;;  %v8811_v62 = vld [vmem:[#allocation11 + $0xee0] sm:$0xff] }
 0x5e1   :  { %11604 = vmatprep.mubr.bf16.mxu0 %v15526_v3  ;;  %11768 = vmatprep.mubr.bf16.mxu1 %v15526_v3  ;;  %v8815_v12 = vld [vmem:[#allocation11 + $0xf00] sm:$0xff]  ;;  %v8816_v45 = vld [vmem:[#allocation11 + $0xf08] sm:$0xff] }
 0x5e2   :  { %11574 = vmatprep.subr.bf16.mxu0 %v14326_v63  ;;  %11738 = vmatprep.subr.bf16.mxu1 %v14328_v0  ;;  %v14374_v63 = vcombine.high %v8775_v61, %v8779_v48  ;;  %v14376_v0 = vcombine.high %v8776_v52, %v8780_v54  ;;  %v8819_v43 = vld [vmem:[#allocation11 + $0xf20] sm:$0xff] }
 0x5e4   :  { %11575 = vmatpush1.bf16.msra.mxu0 %v14325_v4  ;;  %11739 = vmatpush1.bf16.msra.mxu1 %v14327_v40  ;;  %v8788_v4 = vld [vmem:[#allocation11 + $0xe28] sm:$0xff]  ;;  %v14373_v40 = vcombine.low %v8775_v61, %v8779_v48  ;;  %v8823_v48 = vld [vmem:[#allocation11 + $0xf40] sm:$0xff] }
 0x5e5   :  { %11576 = vmatprep.subr.bf16.mxu0 %v14334_v49  ;;  %11740 = vmatprep.subr.bf16.mxu1 %v14336_v5  ;;  %v14375_v49 = vcombine.low %v8776_v52, %v8780_v54  ;;  %v14382_v5 = vcombine.high %v8783_v32, %v8787_v1  ;;  %v14384_v46 = vcombine.high %v8784_v2, %v8788_v4  ;;  %v8827_v52 = vld [vmem:[#allocation11 + $0xf60] sm:$0xff]  ;;  %v8824_v54 = vld [vmem:[#allocation11 + $0xf48] sm:$0xff] }
 0x5e8   :  { %11577 = vmatpush1.bf16.msra.mxu0 %v14333_v7  ;;  %11741 = vmatpush1.bf16.msra.mxu1 %v14335_v21  ;;  %v8796_v7 = vld [vmem:[#allocation11 + $0xe68] sm:$0xff]  ;;  %v14381_v21 = vcombine.low %v8783_v32, %v8787_v1  ;;  %v8831_v1 = vld [vmem:[#allocation11 + $0xf80] sm:$0xff] }
 0x5e9   :  { %11578 = vmatprep.subr.bf16.mxu0 %v14342_v9  ;;  %11742 = vmatprep.subr.bf16.mxu1 %v14344_v10  ;;  %v14383_v9 = vcombine.low %v8784_v2, %v8788_v4  ;;  %v14390_v10 = vcombine.high %v8791_v60, %v8795_v6  ;;  %v14392_v13 = vcombine.high %v8792_v18, %v8796_v7  ;;  %v8835_v4 = vld [vmem:[#allocation11 + $0xfa0] sm:$0xff] }
 0x5ea   :  { %v5074_v2 = vrot.slane %v15510_v22, %v15447_v50  ;;  %v14429_v22 = vcombine.low %v8831_v1, %v8835_v4 }
 0x5ec   :  { %11579 = vmatpush1.bf16.msra.mxu0 %v14341_v15  ;;  %11743 = vmatpush1.bf16.msra.mxu1 %v14343_v8  ;;  %v8804_v15 = vld [vmem:[#allocation11 + $0xea8] sm:$0xff]  ;;  %v14389_v8 = vcombine.low %v8791_v60, %v8795_v6  ;;  %v14430_v60 = vcombine.high %v8831_v1, %v8835_v4 }
 0x5ed   :  { %11580 = vmatprep.subr.bf16.mxu0 %v14350_v23  ;;  %11744 = vmatprep.subr.bf16.mxu1 %v14352_v27  ;;  %v14391_v23 = vcombine.low %v8792_v18, %v8796_v7  ;;  %v14398_v27 = vcombine.high %v8799_v19, %v8803_v26  ;;  %v14400_v28 = vcombine.high %v8800_v20, %v8804_v15  ;;  %v8839_v18 = vld [vmem:[#allocation11 + $0xfc0] sm:$0xff] }
 0x5ee   :  { %v14612_v7 = vadd.f32 %v15518_v29, %v5074_v2 }
 0x5f0   :  { %11581 = vmatpush1.bf16.msra.mxu0 %v14349_v57  ;;  %11745 = vmatpush1.bf16.msra.mxu1 %v14351_v38  ;;  %v8812_v57 = vld [vmem:[#allocation11 + $0xee8] sm:$0xff]  ;;  %v14397_v38 = vcombine.low %v8799_v19, %v8803_v26  ;;  %vm8309_vm15 = vcmp.ge.f32.partialorder %v14612_v7, 0.0 }
 0x5f1   :  { %11582 = vmatprep.subr.bf16.mxu0 %v14358_v31  ;;  %11746 = vmatprep.subr.bf16.mxu1 %v14360_v39  ;;  %v14399_v31 = vcombine.low %v8800_v20, %v8804_v15  ;;  %v14406_v39 = vcombine.high %v8807_v41, %v8811_v62  ;;  %v14408_v42 = vcombine.high %v8808_v34, %v8812_v57  ;;  %v8337_v20 = vld [vmem:[#allocation11 + $0x10] sm:$0xff]  ;;  %v8317_v15 = vmul.f32 0.2, %v14612_v7 }
 0x5f4   :  { %11583 = vmatpush1.bf16.msra.mxu0 %v14357_v37  ;;  %11747 = vmatpush1.bf16.msra.mxu1 %v14359_v44  ;;  %v8820_v37 = vld [vmem:[#allocation11 + $0xf28] sm:$0xff]  ;;  %v14405_v44 = vcombine.low %v8807_v41, %v8811_v62 }
 0x5f5   :  { %11584 = vmatprep.subr.bf16.mxu0 %v14366_v24  ;;  %11748 = vmatprep.subr.bf16.mxu1 %v14368_v47  ;;  %v14407_v24 = vcombine.low %v8808_v34, %v8812_v57  ;;  %v14414_v47 = vcombine.high %v8815_v12, %v8819_v43  ;;  %v14416_v61 = vcombine.high %v8816_v45, %v8820_v37  ;;  %v8345_v57 = vld [vmem:[#allocation11 + $0x50] sm:$0xff] }
 0x5f6   :  { %v8325_v34 = vsel %vm8309_vm15, %v14612_v7, %v8317_v15  ;;  %v8385_v15 = vld [vmem:[#allocation11 + $0x190] sm:$0xff] }
 0x5f8   :  { %11585 = vmatpush1.bf16.msra.mxu0 %v14365_v56  ;;  %11749 = vmatpush1.bf16.msra.mxu1 %v14367_v36  ;;  %v8828_v56 = vld [vmem:[#allocation11 + $0xf68] sm:$0xff]  ;;  %v14413_v36 = vcombine.low %v8815_v12, %v8819_v43  ;;  %v15535_v12 = vpack.c.bf16 %v8325_v34, %v8325_v34  ;;  %v8393_v34 = vld [vmem:[#allocation11 + $0x1d0] sm:$0xff] }
 0x5f9   :  { %11586 = vmatprep.subr.bf16.mxu0 %v14374_v63  ;;  %11750 = vmatprep.subr.bf16.mxu1 %v14376_v0  ;;  %v14415_v63 = vcombine.low %v8816_v45, %v8820_v37  ;;  %v14422_v0 = vcombine.high %v8823_v48, %v8827_v52  ;;  %v14424_v32 = vcombine.high %v8824_v54, %v8828_v56 }
 0x5fc   :  { %11587 = vmatpush1.bf16.msra.mxu0 %v14373_v40  ;;  %11751 = vmatpush1.bf16.msra.mxu1 %v14375_v49  ;;  %v8832_v40 = vld [vmem:[#allocation11 + $0xf88] sm:$0xff] }
 0x5fd   :  { %11588 = vmatprep.subr.bf16.mxu0 %v14382_v5  ;;  %11752 = vmatprep.subr.bf16.mxu1 %v14384_v46  ;;  %v8836_v49 = vld [vmem:[#allocation11 + $0xfa8] sm:$0xff]  ;;  %v14421_v5 = vcombine.low %v8823_v48, %v8827_v52  ;;  %v14423_v46 = vcombine.low %v8824_v54, %v8828_v56 }
 0x5fe   :  { %v14432_v6 = vcombine.high %v8832_v40, %v8836_v49 }
 0x600   :  { %11589 = vmatpush1.bf16.msra.mxu0 %v14381_v21  ;;  %11753 = vmatpush1.bf16.msra.mxu1 %v14383_v9  ;;  %v8843_v21 = vld [vmem:[#allocation11 + $0xfe0] sm:$0xff]  ;;  %v8840_v9 = vld [vmem:[#allocation11 + $0xfc8] sm:$0xff] }
 0x601   :  { %11590 = vmatprep.subr.bf16.mxu0 %v14390_v10  ;;  %11754 = vmatprep.subr.bf16.mxu1 %v14392_v13  ;;  %v8844_v10 = vld [vmem:[#allocation11 + $0xfe8] sm:$0xff]  ;;  %v14431_v13 = vcombine.low %v8832_v40, %v8836_v49  ;;  %v14438_v19 = vcombine.high %v8839_v18, %v8843_v21  ;;  %v14437_v29 = vcombine.low %v8839_v18, %v8843_v21  ;;  %v8369_v49 = vld [vmem:[#allocation11 + $0x110] sm:$0xff] }
 0x602   :  { %v14440_v26 = vcombine.high %v8840_v9, %v8844_v10  ;;  %v8377_v21 = vld [vmem:[#allocation11 + $0x150] sm:$0xff] }
 0x604   :  { %11591 = vmatpush1.bf16.msra.mxu0 %v14389_v8  ;;  %11755 = vmatpush1.bf16.msra.mxu1 %v14391_v23  ;;  %v8341_v8 = vld [vmem:[#allocation11 + $0x30] sm:$0xff]  ;;  %v8338_v23 = vld [vmem:[#allocation11 + $0x18] sm:$0xff] }
 0x605   :  { %11592 = vmatprep.subr.bf16.mxu0 %v14398_v27  ;;  %11756 = vmatprep.subr.bf16.mxu1 %v14400_v28  ;;  %v8342_v27 = vld [vmem:[#allocation11 + $0x38] sm:$0xff]  ;;  %v14439_v28 = vcombine.low %v8840_v9, %v8844_v10  ;;  %v13938_v41 = vcombine.high %v8337_v20, %v8341_v8  ;;  %v8381_v9 = vld [vmem:[#allocation11 + $0x170] sm:$0xff] }
 0x606   :  { %v13940_v62 = vcombine.high %v8338_v23, %v8342_v27  ;;  %v13939_v43 = vcombine.low %v8338_v23, %v8342_v27  ;;  %v8378_v10 = vld [vmem:[#allocation11 + $0x158] sm:$0xff] }
 0x607   :  { %v8386_v23 = vld [vmem:[#allocation11 + $0x198] sm:$0xff] }
 0x608   :  { %11593 = vmatpush1.bf16.msra.mxu0 %v14397_v38  ;;  %11757 = vmatpush1.bf16.msra.mxu1 %v14399_v31  ;;  %v8349_v38 = vld [vmem:[#allocation11 + $0x70] sm:$0xff]  ;;  %v8346_v31 = vld [vmem:[#allocation11 + $0x58] sm:$0xff] }
 0x609   :  { %11594 = vmatprep.subr.bf16.mxu0 %v14406_v39  ;;  %11758 = vmatprep.subr.bf16.mxu1 %v14408_v42  ;;  %v8350_v39 = vld [vmem:[#allocation11 + $0x78] sm:$0xff]  ;;  %v13937_v42 = vcombine.low %v8337_v20, %v8341_v8  ;;  %v13946_v45 = vcombine.high %v8345_v57, %v8349_v38  ;;  %v13945_v48 = vcombine.low %v8345_v57, %v8349_v38  ;;  %v8389_v8 = vld [vmem:[#allocation11 + $0x1b0] sm:$0xff] }
 0x60a   :  { %v13948_v37 = vcombine.high %v8346_v31, %v8350_v39  ;;  %v13947_v52 = vcombine.low %v8346_v31, %v8350_v39  ;;  %v8390_v27 = vld [vmem:[#allocation11 + $0x1b8] sm:$0xff]  ;;  %v8397_v57 = vld [vmem:[#allocation11 + $0x1f0] sm:$0xff]  ;;  %v13985_v39 = vcombine.low %v8385_v15, %v8389_v8 }
 0x60b   :  { %v8394_v38 = vld [vmem:[#allocation11 + $0x1d8] sm:$0xff] }
 0x60c   :  { %11595 = vmatpush1.bf16.msra.mxu0 %v14405_v44  ;;  %11759 = vmatpush1.bf16.msra.mxu1 %v14407_v24  ;;  %v8353_v44 = vld [vmem:[#allocation11 + $0x90] sm:$0xff]  ;;  %v8398_v31 = vld [vmem:[#allocation11 + $0x1f8] sm:$0xff] }
 0x60d   :  { %11596 = vmatprep.subr.bf16.mxu0 %v14414_v47  ;;  %11760 = vmatprep.subr.bf16.mxu1 %v14416_v61  ;;  %v8357_v24 = vld [vmem:[#allocation11 + $0xb0] sm:$0xff]  ;;  %v8354_v47 = vld [vmem:[#allocation11 + $0x98] sm:$0xff] }
 0x60e   :  { %v8358_v61 = vld [vmem:[#allocation11 + $0xb8] sm:$0xff]  ;;  %v13954_v54 = vcombine.high %v8353_v44, %v8357_v24  ;;  %v13953_v1 = vcombine.low %v8353_v44, %v8357_v24  ;;  %v8405_v44 = vld [vmem:[#allocation11 + $0x230] sm:$0xff] }
 0x60f   :  { %v13956_v56 = vcombine.high %v8354_v47, %v8358_v61  ;;  %v13955_v2 = vcombine.low %v8354_v47, %v8358_v61  ;;  %v8402_v24 = vld [vmem:[#allocation11 + $0x218] sm:$0xff]  ;;  %v13993_v61 = vcombine.low %v8393_v34, %v8397_v57 }
 0x610   :  { %11597 = vmatpush1.bf16.msra.mxu0 %v14413_v36  ;;  %11761 = vmatpush1.bf16.msra.mxu1 %v14415_v63  ;;  %v8361_v36 = vld [vmem:[#allocation11 + $0xd0] sm:$0xff]  ;;  %v8406_v47 = vld [vmem:[#allocation11 + $0x238] sm:$0xff] }
 0x611   :  { %11598 = vmatprep.subr.bf16.mxu0 %v14422_v0  ;;  %11762 = vmatprep.subr.bf16.mxu1 %v14424_v32  ;;  %v8365_v63 = vld [vmem:[#allocation11 + $0xf0] sm:$0xff]  ;;  %v8362_v0 = vld [vmem:[#allocation11 + $0xd8] sm:$0xff] }
 0x612   :  { %v8366_v32 = vld [vmem:[#allocation11 + $0xf8] sm:$0xff]  ;;  %v13962_v4 = vcombine.high %v8361_v36, %v8365_v63 }
 0x613   :  { %v13964_v40 = vcombine.high %v8362_v0, %v8366_v32 }
 0x614   :  { %11599 = vmatpush1.bf16.msra.mxu0 %v14421_v5  ;;  %11763 = vmatpush1.bf16.msra.mxu1 %v14423_v46  ;;  %v8373_v5 = vld [vmem:[#allocation11 + $0x130] sm:$0xff]  ;;  %v8374_v46 = vld [vmem:[#allocation11 + $0x138] sm:$0xff] }
 0x615   :  { %11600 = vmatprep.subr.bf16.mxu0 %v14430_v60  ;;  %11764 = vmatprep.subr.bf16.mxu1 %v14432_v6  ;;  %v13961_v60 = vcombine.low %v8361_v36, %v8365_v63  ;;  %v13963_v6 = vcombine.low %v8362_v0, %v8366_v32  ;;  %v13970_v18 = vcombine.high %v8369_v49, %v8373_v5  ;;  %v8413_v36 = vld [vmem:[#allocation11 + $0x270] sm:$0xff]  ;;  %v8410_v63 = vld [vmem:[#allocation11 + $0x258] sm:$0xff] }
 0x616   :  { %v8414_v0 = vld [vmem:[#allocation11 + $0x278] sm:$0xff] }
 0x618   :  { %11601 = vmatpush1.bf16.msra.mxu0 %v14429_v22  ;;  %11765 = vmatpush1.bf16.msra.mxu1 %v14431_v13  ;;  %v8382_v22 = vld [vmem:[#allocation11 + $0x178] sm:$0xff]  ;;  %v13969_v13 = vcombine.low %v8369_v49, %v8373_v5  ;;  %v8421_v49 = vld [vmem:[#allocation11 + $0x2b0] sm:$0xff] }
 0x619   :  { %11602 = vmatprep.subr.bf16.mxu0 %v14438_v19  ;;  %11766 = vmatprep.subr.bf16.mxu1 %v14440_v26  ;;  %v13978_v26 = vcombine.high %v8377_v21, %v8381_v9  ;;  %v13980_v20 = vcombine.high %v8378_v10, %v8382_v22  ;;  %v8418_v5 = vld [vmem:[#allocation11 + $0x298] sm:$0xff] }
 0x61c   :  { %11603 = vmatpush1.bf16.msra.mxu0 %v14437_v29  ;;  %11767 = vmatpush1.bf16.msra.mxu1 %v14439_v28  ;;  %v13977_v29 = vcombine.low %v8377_v21, %v8381_v9  ;;  %v13979_v28 = vcombine.low %v8378_v10, %v8382_v22  ;;  %v8429_v21 = vld [vmem:[#allocation11 + $0x2f0] sm:$0xff]  ;;  %v8426_v9 = vld [vmem:[#allocation11 + $0x2d8] sm:$0xff] }
 0x61d   :  { %11777 = vmatprep.subr.bf16.mxu0 %v13938_v41  ;;  %11941 = vmatprep.subr.bf16.mxu1 %v13940_v62  ;;  %v13986_v41 = vcombine.high %v8385_v15, %v8389_v8  ;;  %v13988_v62 = vcombine.high %v8386_v23, %v8390_v27  ;;  %v8430_v10 = vld [vmem:[#allocation11 + $0x2f8] sm:$0xff]  ;;  %v8437_v15 = vld [vmem:[#allocation11 + $0x330] sm:$0xff] }
 0x61e   :  { %v8434_v8 = vld [vmem:[#allocation11 + $0x318] sm:$0xff] }
 0x61f   :  { %11605 = vmatmul.mubr.bf16.vlgmr.msra.gmra.mrb[16].mxu0 %v15535_v12  ;;  %11769 = vmatmul.mubr.bf16.vlgmr.msra.gmra.mrb[16].mxu1 %v15535_v12 }
 0x620   :  { %11778 = vmatpush1.bf16.msra.mxu0 %v13937_v42  ;;  %11809 = vmatprep.mubr.bf16.mxu0 %v15483_v25  ;;  %v13987_v42 = vcombine.low %v8386_v23, %v8390_v27  ;;  %v8438_v23 = vld [vmem:[#allocation11 + $0x338] sm:$0xff] }
 0x621   :  { %11942 = vmatpush1.bf16.msra.mxu1 %v13939_v43  ;;  %11973 = vmatprep.mubr.bf16.mxu1 %v15483_v25  ;;  %v8370_v25 = vld [vmem:[#allocation11 + $0x118] sm:$0xff]  ;;  %v13994_v43 = vcombine.high %v8393_v34, %v8397_v57  ;;  %v8445_v34 = vld [vmem:[#allocation11 + $0x370] sm:$0xff] }
 0x622   :  { %11779 = vmatprep.subr.bf16.mxu0 %v13946_v45  ;;  %11943 = vmatprep.subr.bf16.mxu1 %v13948_v37  ;;  %v13972_v7 = vcombine.high %v8370_v25, %v8374_v46  ;;  %v13971_v19 = vcombine.low %v8370_v25, %v8374_v46  ;;  %v13996_v45 = vcombine.high %v8394_v38, %v8398_v31  ;;  %v8401_v37 = vld [vmem:[#allocation11 + $0x210] sm:$0xff]  ;;  %v8422_v25 = vld [vmem:[#allocation11 + $0x2b8] sm:$0xff] }
 0x623   :  { %v14001_v32 = vcombine.low %v8401_v37, %v8405_v44  ;;  %v8442_v57 = vld [vmem:[#allocation11 + $0x358] sm:$0xff] }
 0x624   :  { %11780 = vmatpush1.bf16.msra.mxu0 %v13945_v48  ;;  %v13995_v48 = vcombine.low %v8394_v38, %v8398_v31  ;;  %v8446_v38 = vld [vmem:[#allocation11 + $0x378] sm:$0xff] }
 0x625   :  { %11944 = vmatpush1.bf16.msra.mxu1 %v13947_v52  ;;  %11781 = vmatprep.subr.bf16.mxu0 %v13954_v54  ;;  %v14002_v52 = vcombine.high %v8401_v37, %v8405_v44  ;;  %v14004_v54 = vcombine.high %v8402_v24, %v8406_v47  ;;  %v8453_v37 = vld [vmem:[#allocation11 + $0x3b0] sm:$0xff]  ;;  %v8450_v44 = vld [vmem:[#allocation11 + $0x398] sm:$0xff] }
 0x626   :  { %11945 = vmatprep.subr.bf16.mxu1 %v13956_v56  ;;  %v8409_v56 = vld [vmem:[#allocation11 + $0x250] sm:$0xff] }
 0x627   :  { %v14009_v46 = vcombine.low %v8409_v56, %v8413_v36 }
 0x628   :  { %11782 = vmatpush1.bf16.msra.mxu0 %v13953_v1  ;;  %v14003_v1 = vcombine.low %v8402_v24, %v8406_v47  ;;  %v8454_v24 = vld [vmem:[#allocation11 + $0x3b8] sm:$0xff] }
 0x629   :  { %11946 = vmatpush1.bf16.msra.mxu1 %v13955_v2  ;;  %11783 = vmatprep.subr.bf16.mxu0 %v13962_v4  ;;  %v14010_v2 = vcombine.high %v8409_v56, %v8413_v36  ;;  %v14012_v4 = vcombine.high %v8410_v63, %v8414_v0  ;;  %v8461_v56 = vld [vmem:[#allocation11 + $0x3f0] sm:$0xff]  ;;  %v8458_v36 = vld [vmem:[#allocation11 + $0x3d8] sm:$0xff] }
 0x62a   :  { %11947 = vmatprep.subr.bf16.mxu1 %v13964_v40  ;;  %v8417_v40 = vld [vmem:[#allocation11 + $0x290] sm:$0xff] }
 0x62b   :  { %v14017_v22 = vcombine.low %v8417_v40, %v8421_v49 }
 0x62c   :  { %11784 = vmatpush1.bf16.msra.mxu0 %v13961_v60  ;;  %v14011_v60 = vcombine.low %v8410_v63, %v8414_v0  ;;  %v8462_v63 = vld [vmem:[#allocation11 + $0x3f8] sm:$0xff] }
 0x62d   :  { %11948 = vmatpush1.bf16.msra.mxu1 %v13963_v6  ;;  %11785 = vmatprep.subr.bf16.mxu0 %v13970_v18  ;;  %v14018_v6 = vcombine.high %v8417_v40, %v8421_v49  ;;  %v14020_v18 = vcombine.high %v8418_v5, %v8422_v25  ;;  %v8469_v40 = vld [vmem:[#allocation11 + $0x430] sm:$0xff]  ;;  %v8466_v49 = vld [vmem:[#allocation11 + $0x418] sm:$0xff] }
 0x62e   :  { %11949 = vmatprep.subr.bf16.mxu1 %v13972_v7  ;;  %v8425_v7 = vld [vmem:[#allocation11 + $0x2d0] sm:$0xff] }
 0x62f   :  { %v14025_v27 = vcombine.low %v8425_v7, %v8429_v21 }
 0x630   :  { %11786 = vmatpush1.bf16.msra.mxu0 %v13969_v13  ;;  %v14019_v13 = vcombine.low %v8418_v5, %v8422_v25  ;;  %v8470_v5 = vld [vmem:[#allocation11 + $0x438] sm:$0xff] }
 0x631   :  { %11950 = vmatpush1.bf16.msra.mxu1 %v13971_v19  ;;  %11787 = vmatprep.subr.bf16.mxu0 %v13978_v26  ;;  %v14026_v19 = vcombine.high %v8425_v7, %v8429_v21  ;;  %v14028_v26 = vcombine.high %v8426_v9, %v8430_v10  ;;  %v8477_v7 = vld [vmem:[#allocation11 + $0x470] sm:$0xff] }
 0x632   :  { %11951 = vmatprep.subr.bf16.mxu1 %v13980_v20  ;;  %v8433_v20 = vld [vmem:[#allocation11 + $0x310] sm:$0xff] }
 0x633   :  { %v14033_v31 = vcombine.low %v8433_v20, %v8437_v15 }
 0x634   :  { %11788 = vmatpush1.bf16.msra.mxu0 %v13977_v29  ;;  %v14027_v29 = vcombine.low %v8426_v9, %v8430_v10  ;;  %v8474_v9 = vld [vmem:[#allocation11 + $0x458] sm:$0xff] }
 0x635   :  { %11952 = vmatpush1.bf16.msra.mxu1 %v13979_v28  ;;  %11789 = vmatprep.subr.bf16.mxu0 %v13986_v41  ;;  %v14034_v28 = vcombine.high %v8433_v20, %v8437_v15  ;;  %v14036_v41 = vcombine.high %v8434_v8, %v8438_v23  ;;  %v8478_v10 = vld [vmem:[#allocation11 + $0x478] sm:$0xff] }
 0x636   :  { %11953 = vmatprep.subr.bf16.mxu1 %v13988_v62  ;;  %v8441_v62 = vld [vmem:[#allocation11 + $0x350] sm:$0xff]  ;;  %v14076_v20 = vcombine.high %v8474_v9, %v8478_v10  ;;  %v8482_v15 = vld [vmem:[#allocation11 + $0x498] sm:$0xff] }
 0x637   :  { %v14041_v47 = vcombine.low %v8441_v62, %v8445_v34 }
 0x638   :  { %11790 = vmatpush1.bf16.msra.mxu0 %v13985_v39  ;;  %v14035_v39 = vcombine.low %v8434_v8, %v8438_v23  ;;  %v8486_v8 = vld [vmem:[#allocation11 + $0x4b8] sm:$0xff] }
 0x639   :  { %11954 = vmatpush1.bf16.msra.mxu1 %v13987_v42  ;;  %11791 = vmatprep.subr.bf16.mxu0 %v13994_v43  ;;  %v14042_v42 = vcombine.high %v8441_v62, %v8445_v34  ;;  %v14044_v43 = vcombine.high %v8442_v57, %v8446_v38  ;;  %v8493_v62 = vld [vmem:[#allocation11 + $0x4f0] sm:$0xff]  ;;  %v8490_v34 = vld [vmem:[#allocation11 + $0x4d8] sm:$0xff] }
 0x63a   :  { %11955 = vmatprep.subr.bf16.mxu1 %v13996_v45  ;;  %v8449_v45 = vld [vmem:[#allocation11 + $0x390] sm:$0xff] }
 0x63b   :  { %v14049_v0 = vcombine.low %v8449_v45, %v8453_v37 }
 0x63c   :  { %11792 = vmatpush1.bf16.msra.mxu0 %v13993_v61  ;;  %v14043_v61 = vcombine.low %v8442_v57, %v8446_v38  ;;  %v8494_v57 = vld [vmem:[#allocation11 + $0x4f8] sm:$0xff] }
 0x63d   :  { %11956 = vmatpush1.bf16.msra.mxu1 %v13995_v48  ;;  %11793 = vmatprep.subr.bf16.mxu0 %v14002_v52  ;;  %v14050_v48 = vcombine.high %v8449_v45, %v8453_v37  ;;  %v14052_v52 = vcombine.high %v8450_v44, %v8454_v24  ;;  %v8498_v45 = vld [vmem:[#allocation11 + $0x518] sm:$0xff] }
 0x63e   :  { %11957 = vmatprep.subr.bf16.mxu1 %v14004_v54  ;;  %v8457_v54 = vld [vmem:[#allocation11 + $0x3d0] sm:$0xff]  ;;  %v8502_v37 = vld [vmem:[#allocation11 + $0x538] sm:$0xff] }
 0x63f   :  { %v14057_v25 = vcombine.low %v8457_v54, %v8461_v56 }
 0x640   :  { %11794 = vmatpush1.bf16.msra.mxu0 %v14001_v32  ;;  %v14051_v32 = vcombine.low %v8450_v44, %v8454_v24  ;;  %v14091_v44 = vcombine.low %v8490_v34, %v8494_v57 }
 0x641   :  { %11958 = vmatpush1.bf16.msra.mxu1 %v14003_v1  ;;  %11795 = vmatprep.subr.bf16.mxu0 %v14010_v2  ;;  %v14058_v1 = vcombine.high %v8457_v54, %v8461_v56  ;;  %v14060_v2 = vcombine.high %v8458_v36, %v8462_v63  ;;  %v8510_v54 = vld [vmem:[#allocation11 + $0x578] sm:$0xff] }
 0x642   :  { %11959 = vmatprep.subr.bf16.mxu1 %v14012_v4  ;;  %v8465_v4 = vld [vmem:[#allocation11 + $0x410] sm:$0xff] }
 0x643   :  { %v14065_v21 = vcombine.low %v8465_v4, %v8469_v40 }
 0x644   :  { %11796 = vmatpush1.bf16.msra.mxu0 %v14009_v46  ;;  %v14059_v46 = vcombine.low %v8458_v36, %v8462_v63  ;;  %v14099_v36 = vcombine.low %v8498_v45, %v8502_v37 }
 0x645   :  { %11960 = vmatpush1.bf16.msra.mxu1 %v14011_v60  ;;  %11797 = vmatprep.subr.bf16.mxu0 %v14018_v6  ;;  %v14066_v60 = vcombine.high %v8465_v4, %v8469_v40  ;;  %v14068_v6 = vcombine.high %v8466_v49, %v8470_v5  ;;  %v8518_v4 = vld [vmem:[#allocation11 + $0x5b8] sm:$0xff] }
 0x646   :  { %11961 = vmatprep.subr.bf16.mxu1 %v14020_v18  ;;  %v8473_v18 = vld [vmem:[#allocation11 + $0x450] sm:$0xff] }
 0x647   :  { %v14073_v23 = vcombine.low %v8473_v18, %v8477_v7 }
 0x648   :  { %11798 = vmatpush1.bf16.msra.mxu0 %v14017_v22  ;;  %v14067_v22 = vcombine.low %v8466_v49, %v8470_v5 }
 0x649   :  { %11962 = vmatpush1.bf16.msra.mxu1 %v14019_v13  ;;  %11799 = vmatprep.subr.bf16.mxu0 %v14026_v19  ;;  %v14074_v13 = vcombine.high %v8473_v18, %v8477_v7  ;;  %v8481_v19 = vld [vmem:[#allocation11 + $0x490] sm:$0xff]  ;;  %v8526_v18 = vld [vmem:[#allocation11 + $0x5f8] sm:$0xff] }
 0x64a   :  { %11963 = vmatprep.subr.bf16.mxu1 %v14028_v26  ;;  %v8485_v26 = vld [vmem:[#allocation11 + $0x4b0] sm:$0xff] }
 0x64b   :  { %v14081_v38 = vcombine.low %v8481_v19, %v8485_v26 }
 0x64c   :  { %11800 = vmatpush1.bf16.msra.mxu0 %v14025_v27  ;;  %v14075_v27 = vcombine.low %v8474_v9, %v8478_v10 }
 0x64d   :  { %11964 = vmatpush1.bf16.msra.mxu1 %v14027_v29  ;;  %11801 = vmatprep.subr.bf16.mxu0 %v14034_v28  ;;  %v14082_v29 = vcombine.high %v8481_v19, %v8485_v26  ;;  %v14084_v28 = vcombine.high %v8482_v15, %v8486_v8  ;;  %v8530_v19 = vld [vmem:[#allocation11 + $0x618] sm:$0xff] }
 0x64e   :  { %11965 = vmatprep.subr.bf16.mxu1 %v14036_v41  ;;  %v8489_v41 = vld [vmem:[#allocation11 + $0x4d0] sm:$0xff]  ;;  %v8534_v26 = vld [vmem:[#allocation11 + $0x638] sm:$0xff] }
 0x650   :  { %11802 = vmatpush1.bf16.msra.mxu0 %v14033_v31  ;;  %v14090_v31 = vcombine.high %v8489_v41, %v8493_v62 }
 0x651   :  { %11966 = vmatpush1.bf16.msra.mxu1 %v14035_v39  ;;  %11803 = vmatprep.subr.bf16.mxu0 %v14042_v42  ;;  %v14092_v39 = vcombine.high %v8490_v34, %v8494_v57  ;;  %v8497_v42 = vld [vmem:[#allocation11 + $0x510] sm:$0xff]  ;;  %v14131_v34 = vcombine.low %v8530_v19, %v8534_v26 }
 0x652   :  { %11967 = vmatprep.subr.bf16.mxu1 %v14044_v43  ;;  %v8501_v43 = vld [vmem:[#allocation11 + $0x530] sm:$0xff] }
 0x653   :  { %v14098_v24 = vcombine.high %v8497_v42, %v8501_v43  ;;  %v14097_v56 = vcombine.low %v8497_v42, %v8501_v43  ;;  %v8550_v42 = vld [vmem:[#allocation11 + $0x6b8] sm:$0xff] }
 0x654   :  { %11804 = vmatpush1.bf16.msra.mxu0 %v14041_v47  ;;  %v14100_v47 = vcombine.high %v8498_v45, %v8502_v37 }
 0x655   :  { %11968 = vmatpush1.bf16.msra.mxu1 %v14043_v61  ;;  %11805 = vmatprep.subr.bf16.mxu0 %v14050_v48  ;;  %v8505_v61 = vld [vmem:[#allocation11 + $0x550] sm:$0xff] }
 0x656   :  { %11969 = vmatprep.subr.bf16.mxu1 %v14052_v52  ;;  %v8509_v48 = vld [vmem:[#allocation11 + $0x570] sm:$0xff]  ;;  %v8506_v52 = vld [vmem:[#allocation11 + $0x558] sm:$0xff] }
 0x657   :  { %v14106_v63 = vcombine.high %v8505_v61, %v8509_v48  ;;  %v14105_v40 = vcombine.low %v8505_v61, %v8509_v48  ;;  %v14107_v49 = vcombine.low %v8506_v52, %v8510_v54  ;;  %v8558_v61 = vld [vmem:[#allocation11 + $0x6f8] sm:$0xff] }
 0x658   :  { %11806 = vmatpush1.bf16.msra.mxu0 %v14049_v0  ;;  %v14108_v0 = vcombine.high %v8506_v52, %v8510_v54 }
 0x659   :  { %11970 = vmatpush1.bf16.msra.mxu1 %v14051_v32  ;;  %11807 = vmatprep.subr.bf16.mxu0 %v14058_v1  ;;  %v8513_v32 = vld [vmem:[#allocation11 + $0x590] sm:$0xff] }
 0x65a   :  { %11971 = vmatprep.subr.bf16.mxu1 %v14060_v2  ;;  %v8517_v1 = vld [vmem:[#allocation11 + $0x5b0] sm:$0xff]  ;;  %v8514_v2 = vld [vmem:[#allocation11 + $0x598] sm:$0xff] }
 0x65b   :  { %v14114_v5 = vcombine.high %v8513_v32, %v8517_v1  ;;  %v14113_v7 = vcombine.low %v8513_v32, %v8517_v1  ;;  %v8566_v32 = vld [vmem:[#allocation11 + $0x738] sm:$0xff] }
 0x65c   :  { %11808 = vmatpush1.bf16.msra.mxu0 %v14057_v25  ;;  %v14116_v25 = vcombine.high %v8514_v2, %v8518_v4 }
 0x65d   :  { %11972 = vmatpush1.bf16.msra.mxu1 %v14059_v46  ;;  %11818 = vmatprep.subr.bf16.mxu0 %v14066_v60  ;;  %v8521_v46 = vld [vmem:[#allocation11 + $0x5d0] sm:$0xff] }
 0x65e   :  { %11982 = vmatprep.subr.bf16.mxu1 %v14068_v6  ;;  %v8525_v60 = vld [vmem:[#allocation11 + $0x5f0] sm:$0xff]  ;;  %v8522_v6 = vld [vmem:[#allocation11 + $0x5d8] sm:$0xff] }
 0x65f   :  { %11810 = vmatmul.mubr.bf16.vlgmr.msra.gmra.mrb[20].mxu0 %v15495_v30  ;;  %v14122_v9 = vcombine.high %v8521_v46, %v8525_v60  ;;  %v14124_v10 = vcombine.high %v8522_v6, %v8526_v18 }
 0x660   :  { %11974 = vmatmul.mubr.bf16.vlgmr.msra.gmra.mrb[20].mxu1 %v15495_v30  ;;  %11819 = vmatpush1.bf16.msra.mxu0 %v14065_v21  ;;  %v14083_v30 = vcombine.low %v8482_v15, %v8486_v8  ;;  %v14115_v21 = vcombine.low %v8514_v2, %v8518_v4  ;;  %v14123_v15 = vcombine.low %v8522_v6, %v8526_v18 }
 0x661   :  { %11850 = vmatprep.mubr.bf16.mxu0 %v15497_v33  ;;  %11983 = vmatpush1.bf16.msra.mxu1 %v14067_v22  ;;  %v8529_v22 = vld [vmem:[#allocation11 + $0x610] sm:$0xff] }
 0x662   :  { %12014 = vmatprep.mubr.bf16.mxu1 %v15497_v33  ;;  %11820 = vmatprep.subr.bf16.mxu0 %v14074_v13  ;;  %v14089_v33 = vcombine.low %v8489_v41, %v8493_v62  ;;  %v8533_v13 = vld [vmem:[#allocation11 + $0x630] sm:$0xff]  ;;  %v8542_v41 = vld [vmem:[#allocation11 + $0x678] sm:$0xff] }
 0x663   :  { %11984 = vmatprep.subr.bf16.mxu1 %v14076_v20  ;;  %v14121_v20 = vcombine.low %v8521_v46, %v8525_v60  ;;  %v14130_v8 = vcombine.high %v8529_v22, %v8533_v13  ;;  %v14129_v62 = vcombine.low %v8529_v22, %v8533_v13  ;;  %v8574_v46 = vld [vmem:[#allocation11 + $0x778] sm:$0xff] }
 0x664   :  { %11821 = vmatpush1.bf16.msra.mxu0 %v14073_v23  ;;  %v14132_v23 = vcombine.high %v8530_v19, %v8534_v26  ;;  %v8582_v22 = vld [vmem:[#allocation11 + $0x7b8] sm:$0xff] }
 0x665   :  { %11985 = vmatpush1.bf16.msra.mxu1 %v14075_v27  ;;  %11822 = vmatprep.subr.bf16.mxu0 %v14082_v29  ;;  %v8537_v27 = vld [vmem:[#allocation11 + $0x650] sm:$0xff] }
 0x666   :  { %11986 = vmatprep.subr.bf16.mxu1 %v14084_v28  ;;  %v8541_v29 = vld [vmem:[#allocation11 + $0x670] sm:$0xff]  ;;  %v8538_v28 = vld [vmem:[#allocation11 + $0x658] sm:$0xff] }
 0x667   :  { %v14138_v57 = vcombine.high %v8537_v27, %v8541_v29  ;;  %v14137_v43 = vcombine.low %v8537_v27, %v8541_v29  ;;  %v14139_v45 = vcombine.low %v8538_v28, %v8542_v41  ;;  %v8590_v27 = vld [vmem:[#allocation11 + $0x7f8] sm:$0xff] }
 0x668   :  { %11823 = vmatpush1.bf16.msra.mxu0 %v14081_v38  ;;  %v14140_v38 = vcombine.high %v8538_v28, %v8542_v41 }
 0x669   :  { %11987 = vmatpush1.bf16.msra.mxu1 %v14083_v30  ;;  %11824 = vmatprep.subr.bf16.mxu0 %v14090_v31  ;;  %v8545_v30 = vld [vmem:[#allocation11 + $0x690] sm:$0xff] }
 0x66a   :  { %11988 = vmatprep.subr.bf16.mxu1 %v14092_v39  ;;  %v8549_v31 = vld [vmem:[#allocation11 + $0x6b0] sm:$0xff]  ;;  %v8546_v39 = vld [vmem:[#allocation11 + $0x698] sm:$0xff] }
 0x66b   :  { %v14146_v37 = vcombine.high %v8545_v30, %v8549_v31  ;;  %v14145_v48 = vcombine.low %v8545_v30, %v8549_v31  ;;  %v14147_v52 = vcombine.low %v8546_v39, %v8550_v42  ;;  %v8598_v30 = vld [vmem:[#allocation11 + $0x838] sm:$0xff] }
 0x66c   :  { %11825 = vmatpush1.bf16.msra.mxu0 %v14089_v33  ;;  %v14148_v33 = vcombine.high %v8546_v39, %v8550_v42 }
 0x66d   :  { %11989 = vmatpush1.bf16.msra.mxu1 %v14091_v44  ;;  %11826 = vmatprep.subr.bf16.mxu0 %v14098_v24  ;;  %v8553_v44 = vld [vmem:[#allocation11 + $0x6d0] sm:$0xff] }
 0x66e   :  { %11990 = vmatprep.subr.bf16.mxu1 %v14100_v47  ;;  %v8557_v24 = vld [vmem:[#allocation11 + $0x6f0] sm:$0xff]  ;;  %v8554_v47 = vld [vmem:[#allocation11 + $0x6d8] sm:$0xff] }
 0x66f   :  { %v14154_v54 = vcombine.high %v8553_v44, %v8557_v24  ;;  %v14153_v1 = vcombine.low %v8553_v44, %v8557_v24  ;;  %v14155_v2 = vcombine.low %v8554_v47, %v8558_v61  ;;  %v8602_v44 = vld [vmem:[#allocation11 + $0x858] sm:$0xff] }
 0x670   :  { %11827 = vmatpush1.bf16.msra.mxu0 %v14097_v56  ;;  %v14156_v56 = vcombine.high %v8554_v47, %v8558_v61  ;;  %v8606_v24 = vld [vmem:[#allocation11 + $0x878] sm:$0xff] }
 0x671   :  { %11991 = vmatpush1.bf16.msra.mxu1 %v14099_v36  ;;  %11828 = vmatprep.subr.bf16.mxu0 %v14106_v63  ;;  %v8561_v36 = vld [vmem:[#allocation11 + $0x710] sm:$0xff] }
 0x672   :  { %11992 = vmatprep.subr.bf16.mxu1 %v14108_v0  ;;  %v8565_v63 = vld [vmem:[#allocation11 + $0x730] sm:$0xff]  ;;  %v8562_v0 = vld [vmem:[#allocation11 + $0x718] sm:$0xff] }
 0x673   :  { %v14162_v4 = vcombine.high %v8561_v36, %v8565_v63  ;;  %v14161_v60 = vcombine.low %v8561_v36, %v8565_v63  ;;  %v14163_v6 = vcombine.low %v8562_v0, %v8566_v32  ;;  %v8614_v36 = vld [vmem:[#allocation11 + $0x8b8] sm:$0xff] }
 0x674   :  { %11829 = vmatpush1.bf16.msra.mxu0 %v14105_v40  ;;  %v14164_v40 = vcombine.high %v8562_v0, %v8566_v32  ;;  %v14203_v0 = vcombine.low %v8602_v44, %v8606_v24 }
 0x675   :  { %11993 = vmatpush1.bf16.msra.mxu1 %v14107_v49  ;;  %11830 = vmatprep.subr.bf16.mxu0 %v14114_v5  ;;  %v8569_v49 = vld [vmem:[#allocation11 + $0x750] sm:$0xff] }
 0x676   :  { %11994 = vmatprep.subr.bf16.mxu1 %v14116_v25  ;;  %v8573_v5 = vld [vmem:[#allocation11 + $0x770] sm:$0xff]  ;;  %v8570_v25 = vld [vmem:[#allocation11 + $0x758] sm:$0xff] }
 0x677   :  { %v14170_v18 = vcombine.high %v8569_v49, %v8573_v5  ;;  %v14169_v13 = vcombine.low %v8569_v49, %v8573_v5  ;;  %v14171_v19 = vcombine.low %v8570_v25, %v8574_v46  ;;  %v8622_v49 = vld [vmem:[#allocation11 + $0x8f8] sm:$0xff] }
 0x678   :  { %11831 = vmatpush1.bf16.msra.mxu0 %v14113_v7  ;;  %v14172_v7 = vcombine.high %v8570_v25, %v8574_v46 }
 0x679   :  { %11995 = vmatpush1.bf16.msra.mxu1 %v14115_v21  ;;  %11832 = vmatprep.subr.bf16.mxu0 %v14122_v9  ;;  %v8577_v21 = vld [vmem:[#allocation11 + $0x790] sm:$0xff] }
 0x67a   :  { %11996 = vmatprep.subr.bf16.mxu1 %v14124_v10  ;;  %v8581_v9 = vld [vmem:[#allocation11 + $0x7b0] sm:$0xff]  ;;  %v8578_v10 = vld [vmem:[#allocation11 + $0x798] sm:$0xff] }
 0x67b   :  { %v14178_v26 = vcombine.high %v8577_v21, %v8581_v9  ;;  %v14177_v29 = vcombine.low %v8577_v21, %v8581_v9  ;;  %v14179_v28 = vcombine.low %v8578_v10, %v8582_v22 }
 0x67c   :  { %11833 = vmatpush1.bf16.msra.mxu0 %v14121_v20  ;;  %v14180_v20 = vcombine.high %v8578_v10, %v8582_v22  ;;  %v8633_v22 = vld [vmem:[#allocation11 + $0x950] sm:$0xff] }
 0x67d   :  { %11997 = vmatpush1.bf16.msra.mxu1 %v14123_v15  ;;  %11834 = vmatprep.subr.bf16.mxu0 %v14130_v8  ;;  %v8585_v15 = vld [vmem:[#allocation11 + $0x7d0] sm:$0xff] }
 0x67e   :  { %11998 = vmatprep.subr.bf16.mxu1 %v14132_v23  ;;  %v8589_v8 = vld [vmem:[#allocation11 + $0x7f0] sm:$0xff]  ;;  %v8586_v23 = vld [vmem:[#allocation11 + $0x7d8] sm:$0xff] }
 0x67f   :  { %v14186_v41 = vcombine.high %v8585_v15, %v8589_v8  ;;  %v14185_v31 = vcombine.low %v8585_v15, %v8589_v8  ;;  %v14187_v39 = vcombine.low %v8586_v23, %v8590_v27 }
 0x680   :  { %11835 = vmatpush1.bf16.msra.mxu0 %v14129_v62  ;;  %v14188_v62 = vcombine.high %v8586_v23, %v8590_v27  ;;  %v8641_v27 = vld [vmem:[#allocation11 + $0x990] sm:$0xff] }
 0x681   :  { %11999 = vmatpush1.bf16.msra.mxu1 %v14131_v34  ;;  %11836 = vmatprep.subr.bf16.mxu0 %v14138_v57  ;;  %v8593_v34 = vld [vmem:[#allocation11 + $0x810] sm:$0xff] }
 0x682   :  { %12000 = vmatprep.subr.bf16.mxu1 %v14140_v38  ;;  %v8597_v57 = vld [vmem:[#allocation11 + $0x830] sm:$0xff]  ;;  %v8594_v38 = vld [vmem:[#allocation11 + $0x818] sm:$0xff] }
 0x683   :  { %v14194_v42 = vcombine.high %v8593_v34, %v8597_v57  ;;  %v14195_v47 = vcombine.low %v8594_v38, %v8598_v30 }
 0x684   :  { %11837 = vmatpush1.bf16.msra.mxu0 %v14137_v43  ;;  %v14196_v43 = vcombine.high %v8594_v38, %v8598_v30  ;;  %v8649_v30 = vld [vmem:[#allocation11 + $0x9d0] sm:$0xff] }
 0x685   :  { %12001 = vmatpush1.bf16.msra.mxu1 %v14139_v45  ;;  %11838 = vmatprep.subr.bf16.mxu0 %v14146_v37  ;;  %v8601_v45 = vld [vmem:[#allocation11 + $0x850] sm:$0xff] }
 0x686   :  { %12002 = vmatprep.subr.bf16.mxu1 %v14148_v33  ;;  %v8605_v37 = vld [vmem:[#allocation11 + $0x870] sm:$0xff]  ;;  %v14193_v33 = vcombine.low %v8593_v34, %v8597_v57 }
 0x687   :  { %v14202_v61 = vcombine.high %v8601_v45, %v8605_v37  ;;  %v14201_v63 = vcombine.low %v8601_v45, %v8605_v37 }
 0x688   :  { %11839 = vmatpush1.bf16.msra.mxu0 %v14145_v48  ;;  %v8609_v48 = vld [vmem:[#allocation11 + $0x890] sm:$0xff] }
 0x689   :  { %12003 = vmatpush1.bf16.msra.mxu1 %v14147_v52  ;;  %11840 = vmatprep.subr.bf16.mxu0 %v14154_v54  ;;  %v8613_v52 = vld [vmem:[#allocation11 + $0x8b0] sm:$0xff]  ;;  %v14204_v54 = vcombine.high %v8602_v44, %v8606_v24 }
 0x68a   :  { %12004 = vmatprep.subr.bf16.mxu1 %v14156_v56  ;;  %v8610_v56 = vld [vmem:[#allocation11 + $0x898] sm:$0xff]  ;;  %v14210_v32 = vcombine.high %v8609_v48, %v8613_v52  ;;  %v14209_v5 = vcombine.low %v8609_v48, %v8613_v52  ;;  %v8657_v44 = vld [vmem:[#allocation11 + $0xa10] sm:$0xff] }
 0x68b   :  { %v8661_v24 = vld [vmem:[#allocation11 + $0xa30] sm:$0xff] }
 0x68c   :  { %11841 = vmatpush1.bf16.msra.mxu0 %v14153_v1  ;;  %v14212_v1 = vcombine.high %v8610_v56, %v8614_v36 }
 0x68d   :  { %12005 = vmatpush1.bf16.msra.mxu1 %v14155_v2  ;;  %11842 = vmatprep.subr.bf16.mxu0 %v14162_v4  ;;  %v8617_v2 = vld [vmem:[#allocation11 + $0x8d0] sm:$0xff] }
 0x68e   :  { %12006 = vmatprep.subr.bf16.mxu1 %v14164_v40  ;;  %v8621_v4 = vld [vmem:[#allocation11 + $0x8f0] sm:$0xff]  ;;  %v8618_v40 = vld [vmem:[#allocation11 + $0x8d8] sm:$0xff] }
 0x68f   :  { %v14218_v25 = vcombine.high %v8617_v2, %v8621_v4  ;;  %v14220_v46 = vcombine.high %v8618_v40, %v8622_v49  ;;  %v14219_v21 = vcombine.low %v8618_v40, %v8622_v49  ;;  %v8673_v49 = vld [vmem:[#allocation11 + $0xa90] sm:$0xff] }
 0x690   :  { %11843 = vmatpush1.bf16.msra.mxu0 %v14161_v60  ;;  %v8625_v60 = vld [vmem:[#allocation11 + $0x910] sm:$0xff] }
 0x691   :  { %12007 = vmatpush1.bf16.msra.mxu1 %v14163_v6  ;;  %11844 = vmatprep.subr.bf16.mxu0 %v14170_v18  ;;  %v8629_v6 = vld [vmem:[#allocation11 + $0x930] sm:$0xff]  ;;  %v8626_v18 = vld [vmem:[#allocation11 + $0x918] sm:$0xff] }
 0x692   :  { %12008 = vmatprep.subr.bf16.mxu1 %v14172_v7  ;;  %v8630_v7 = vld [vmem:[#allocation11 + $0x938] sm:$0xff]  ;;  %v14226_v9 = vcombine.high %v8625_v60, %v8629_v6 }
 0x693   :  { %v14228_v10 = vcombine.high %v8626_v18, %v8630_v7  ;;  %v14227_v15 = vcombine.low %v8626_v18, %v8630_v7  ;;  %v8681_v7 = vld [vmem:[#allocation11 + $0xad0] sm:$0xff] }
 0x694   :  { %11845 = vmatpush1.bf16.msra.mxu0 %v14169_v13  ;;  %v8637_v13 = vld [vmem:[#allocation11 + $0x970] sm:$0xff] }
 0x695   :  { %12009 = vmatpush1.bf16.msra.mxu1 %v14171_v19  ;;  %11846 = vmatprep.subr.bf16.mxu0 %v14178_v26  ;;  %v8634_v19 = vld [vmem:[#allocation11 + $0x958] sm:$0xff]  ;;  %v14234_v8 = vcombine.high %v8633_v22, %v8637_v13 }
 0x696   :  { %12010 = vmatprep.subr.bf16.mxu1 %v14180_v20  ;;  %v8638_v26 = vld [vmem:[#allocation11 + $0x978] sm:$0xff]  ;;  %v14225_v20 = vcombine.low %v8625_v60, %v8629_v6 }
 0x697   :  { %v14236_v23 = vcombine.high %v8634_v19, %v8638_v26  ;;  %v14235_v34 = vcombine.low %v8634_v19, %v8638_v26  ;;  %v8689_v26 = vld [vmem:[#allocation11 + $0xb10] sm:$0xff] }
 0x698   :  { %11847 = vmatpush1.bf16.msra.mxu0 %v14177_v29  ;;  %v8645_v29 = vld [vmem:[#allocation11 + $0x9b0] sm:$0xff] }
 0x699   :  { %12011 = vmatpush1.bf16.msra.mxu1 %v14179_v28  ;;  %11848 = vmatprep.subr.bf16.mxu0 %v14186_v41  ;;  %v8642_v28 = vld [vmem:[#allocation11 + $0x998] sm:$0xff]  ;;  %v14242_v57 = vcombine.high %v8641_v27, %v8645_v29 }
 0x69a   :  { %12012 = vmatprep.subr.bf16.mxu1 %v14188_v62  ;;  %v8646_v41 = vld [vmem:[#allocation11 + $0x9b8] sm:$0xff]  ;;  %v14233_v62 = vcombine.low %v8633_v22, %v8637_v13 }
 0x69b   :  { %v14244_v38 = vcombine.high %v8642_v28, %v8646_v41  ;;  %v14243_v45 = vcombine.low %v8642_v28, %v8646_v41  ;;  %v8697_v41 = vld [vmem:[#allocation11 + $0xb50] sm:$0xff] }
 0x69c   :  { %11849 = vmatpush1.bf16.msra.mxu0 %v14185_v31  ;;  %v8653_v31 = vld [vmem:[#allocation11 + $0x9f0] sm:$0xff] }
 0x69d   :  { %12013 = vmatpush1.bf16.msra.mxu1 %v14187_v39  ;;  %11859 = vmatprep.subr.bf16.mxu0 %v14194_v42  ;;  %v8650_v39 = vld [vmem:[#allocation11 + $0x9d8] sm:$0xff]  ;;  %v14250_v37 = vcombine.high %v8649_v30, %v8653_v31  ;;  %v14249_v48 = vcombine.low %v8649_v30, %v8653_v31 }
 0x69e   :  { %12023 = vmatprep.subr.bf16.mxu1 %v14196_v43  ;;  %v8654_v42 = vld [vmem:[#allocation11 + $0x9f8] sm:$0xff]  ;;  %v14241_v43 = vcombine.low %v8641_v27, %v8645_v29 }
 0x69f   :  { %11851 = vmatmul.mubr.bf16.vlgmr.msra.gmra.mrb[20].mxu0 %v15506_v11  ;;  %v14251_v52 = vcombine.low %v8650_v39, %v8654_v42 }
 0x6a0   :  { %12015 = vmatmul.mubr.bf16.vlgmr.msra.gmra.mrb[20].mxu1 %v15506_v11  ;;  %11860 = vmatpush1.bf16.msra.mxu0 %v14193_v33  ;;  %v14211_v11 = vcombine.low %v8610_v56, %v8614_v36  ;;  %v14252_v33 = vcombine.high %v8650_v39, %v8654_v42  ;;  %v8665_v36 = vld [vmem:[#allocation11 + $0xa50] sm:$0xff] }
 0x6a1   :  { %11891 = vmatprep.mubr.bf16.mxu0 %v15520_v53  ;;  %12024 = vmatpush1.bf16.msra.mxu1 %v14195_v47  ;;  %v8658_v47 = vld [vmem:[#allocation11 + $0xa18] sm:$0xff]  ;;  %v8705_v42 = vld [vmem:[#allocation11 + $0xb90] sm:$0xff] }
 0x6a2   :  { %12055 = vmatprep.mubr.bf16.mxu1 %v15520_v53  ;;  %11861 = vmatprep.subr.bf16.mxu0 %v14202_v61  ;;  %v14217_v53 = vcombine.low %v8617_v2, %v8621_v4  ;;  %v8662_v61 = vld [vmem:[#allocation11 + $0xa38] sm:$0xff] }
 0x6a3   :  { %12025 = vmatprep.subr.bf16.mxu1 %v14204_v54  ;;  %v14258_v54 = vcombine.high %v8657_v44, %v8661_v24  ;;  %v14260_v56 = vcombine.high %v8658_v47, %v8662_v61  ;;  %v14259_v2 = vcombine.low %v8658_v47, %v8662_v61  ;;  %v8713_v61 = vld [vmem:[#allocation11 + $0xbd0] sm:$0xff] }
 0x6a4   :  { %11862 = vmatpush1.bf16.msra.mxu0 %v14201_v63  ;;  %v8669_v63 = vld [vmem:[#allocation11 + $0xa70] sm:$0xff] }
 0x6a5   :  { %12026 = vmatpush1.bf16.msra.mxu1 %v14203_v0  ;;  %11863 = vmatprep.subr.bf16.mxu0 %v14210_v32  ;;  %v8666_v0 = vld [vmem:[#allocation11 + $0xa58] sm:$0xff]  ;;  %v14266_v4 = vcombine.high %v8665_v36, %v8669_v63 }
 0x6a6   :  { %12027 = vmatprep.subr.bf16.mxu1 %v14212_v1  ;;  %v8670_v32 = vld [vmem:[#allocation11 + $0xa78] sm:$0xff]  ;;  %v14257_v1 = vcombine.low %v8657_v44, %v8661_v24 }
 0x6a7   :  { %v14268_v40 = vcombine.high %v8666_v0, %v8670_v32  ;;  %v14267_v60 = vcombine.low %v8666_v0, %v8670_v32  ;;  %v8721_v32 = vld [vmem:[#allocation11 + $0xc10] sm:$0xff] }
 0x6a8   :  { %11864 = vmatpush1.bf16.msra.mxu0 %v14209_v5  ;;  %v8677_v5 = vld [vmem:[#allocation11 + $0xab0] sm:$0xff] }
 0x6a9   :  { %12028 = vmatpush1.bf16.msra.mxu1 %v14211_v11  ;;  %11865 = vmatprep.subr.bf16.mxu0 %v14218_v25  ;;  %v8674_v11 = vld [vmem:[#allocation11 + $0xa98] sm:$0xff]  ;;  %v14274_v6 = vcombine.high %v8673_v49, %v8677_v5 }
 0x6aa   :  { %12029 = vmatprep.subr.bf16.mxu1 %v14220_v46  ;;  %v8678_v25 = vld [vmem:[#allocation11 + $0xab8] sm:$0xff]  ;;  %v14265_v46 = vcombine.low %v8665_v36, %v8669_v63 }
 0x6ab   :  { %v14276_v18 = vcombine.high %v8674_v11, %v8678_v25  ;;  %v14275_v22 = vcombine.low %v8674_v11, %v8678_v25  ;;  %v8729_v25 = vld [vmem:[#allocation11 + $0xc50] sm:$0xff] }
 0x6ac   :  { %11866 = vmatpush1.bf16.msra.mxu0 %v14217_v53  ;;  %v8685_v53 = vld [vmem:[#allocation11 + $0xaf0] sm:$0xff] }
 0x6ad   :  { %12030 = vmatpush1.bf16.msra.mxu1 %v14219_v21  ;;  %11867 = vmatprep.subr.bf16.mxu0 %v14226_v9  ;;  %v8682_v21 = vld [vmem:[#allocation11 + $0xad8] sm:$0xff]  ;;  %v14282_v13 = vcombine.high %v8681_v7, %v8685_v53 }
 0x6ae   :  { %12031 = vmatprep.subr.bf16.mxu1 %v14228_v10  ;;  %v8686_v9 = vld [vmem:[#allocation11 + $0xaf8] sm:$0xff]  ;;  %v14273_v10 = vcombine.low %v8673_v49, %v8677_v5 }
 0x6af   :  { %v14284_v19 = vcombine.high %v8682_v21, %v8686_v9  ;;  %v14283_v27 = vcombine.low %v8682_v21, %v8686_v9  ;;  %v8737_v21 = vld [vmem:[#allocation11 + $0xc90] sm:$0xff] }
 0x6b0   :  { %11868 = vmatpush1.bf16.msra.mxu0 %v14225_v20  ;;  %v8693_v20 = vld [vmem:[#allocation11 + $0xb30] sm:$0xff] }
 0x6b1   :  { %12032 = vmatpush1.bf16.msra.mxu1 %v14227_v15  ;;  %11869 = vmatprep.subr.bf16.mxu0 %v14234_v8  ;;  %v8690_v15 = vld [vmem:[#allocation11 + $0xb18] sm:$0xff]  ;;  %v14290_v29 = vcombine.high %v8689_v26, %v8693_v20  ;;  %v8741_v9 = vld [vmem:[#allocation11 + $0xcb0] sm:$0xff] }
 0x6b2   :  { %12033 = vmatprep.subr.bf16.mxu1 %v14236_v23  ;;  %v8694_v8 = vld [vmem:[#allocation11 + $0xb38] sm:$0xff]  ;;  %v14281_v23 = vcombine.low %v8681_v7, %v8685_v53 }
 0x6b3   :  { %v14292_v28 = vcombine.high %v8690_v15, %v8694_v8  ;;  %v14291_v30 = vcombine.low %v8690_v15, %v8694_v8  ;;  %v8745_v8 = vld [vmem:[#allocation11 + $0xcd0] sm:$0xff] }
 0x6b4   :  { %11870 = vmatpush1.bf16.msra.mxu0 %v14233_v62  ;;  %v8701_v62 = vld [vmem:[#allocation11 + $0xb70] sm:$0xff] }
 0x6b5   :  { %12034 = vmatpush1.bf16.msra.mxu1 %v14235_v34  ;;  %11871 = vmatprep.subr.bf16.mxu0 %v14242_v57  ;;  %v8698_v34 = vld [vmem:[#allocation11 + $0xb58] sm:$0xff]  ;;  %v14298_v31 = vcombine.high %v8697_v41, %v8701_v62 }
 0x6b6   :  { %12035 = vmatprep.subr.bf16.mxu1 %v14244_v38  ;;  %v8702_v57 = vld [vmem:[#allocation11 + $0xb78] sm:$0xff]  ;;  %v14289_v38 = vcombine.low %v8689_v26, %v8693_v20  ;;  %v14338_v20 = vcombine.high %v8737_v21, %v8741_v9 }
 0x6b7   :  { %v14300_v39 = vcombine.high %v8698_v34, %v8702_v57  ;;  %v14299_v44 = vcombine.low %v8698_v34, %v8702_v57  ;;  %v8753_v34 = vld [vmem:[#allocation11 + $0xd10] sm:$0xff] }
 0x6b8   :  { %11872 = vmatpush1.bf16.msra.mxu0 %v14241_v43  ;;  %v8709_v43 = vld [vmem:[#allocation11 + $0xbb0] sm:$0xff] }
 0x6b9   :  { %12036 = vmatpush1.bf16.msra.mxu1 %v14243_v45  ;;  %11873 = vmatprep.subr.bf16.mxu0 %v14250_v37  ;;  %v8706_v45 = vld [vmem:[#allocation11 + $0xb98] sm:$0xff]  ;;  %v14306_v24 = vcombine.high %v8705_v42, %v8709_v43  ;;  %v8757_v57 = vld [vmem:[#allocation11 + $0xd30] sm:$0xff] }
 0x6ba   :  { %12037 = vmatprep.subr.bf16.mxu1 %v14252_v33  ;;  %v8710_v37 = vld [vmem:[#allocation11 + $0xbb8] sm:$0xff]  ;;  %v14297_v33 = vcombine.low %v8697_v41, %v8701_v62 }
 0x6bb   :  { %v14308_v47 = vcombine.high %v8706_v45, %v8710_v37  ;;  %v14307_v36 = vcombine.low %v8706_v45, %v8710_v37  ;;  %v8765_v45 = vld [vmem:[#allocation11 + $0xd70] sm:$0xff]  ;;  %v8762_v37 = vld [vmem:[#allocation11 + $0xd58] sm:$0xff] }
 0x6bc   :  { %11874 = vmatpush1.bf16.msra.mxu0 %v14249_v48  ;;  %v8717_v48 = vld [vmem:[#allocation11 + $0xbf0] sm:$0xff] }
 0x6bd   :  { %12038 = vmatpush1.bf16.msra.mxu1 %v14251_v52  ;;  %11875 = vmatprep.subr.bf16.mxu0 %v14258_v54  ;;  %v8714_v52 = vld [vmem:[#allocation11 + $0xbd8] sm:$0xff]  ;;  %v14314_v63 = vcombine.high %v8713_v61, %v8717_v48 }
 0x6be   :  { %12039 = vmatprep.subr.bf16.mxu1 %v14260_v56  ;;  %v8718_v54 = vld [vmem:[#allocation11 + $0xbf8] sm:$0xff]  ;;  %v14305_v56 = vcombine.low %v8705_v42, %v8709_v43  ;;  %v8761_v43 = vld [vmem:[#allocation11 + $0xd50] sm:$0xff] }
 0x6bf   :  { %v14316_v0 = vcombine.high %v8714_v52, %v8718_v54  ;;  %v14315_v49 = vcombine.low %v8714_v52, %v8718_v54  ;;  %v8773_v52 = vld [vmem:[#allocation11 + $0xdb0] sm:$0xff]  ;;  %v8770_v54 = vld [vmem:[#allocation11 + $0xd98] sm:$0xff] }
 0x6c0   :  { %11876 = vmatpush1.bf16.msra.mxu0 %v14257_v1  ;;  %v8725_v1 = vld [vmem:[#allocation11 + $0xc30] sm:$0xff] }
 0x6c1   :  { %12040 = vmatpush1.bf16.msra.mxu1 %v14259_v2  ;;  %11877 = vmatprep.subr.bf16.mxu0 %v14266_v4  ;;  %v8722_v2 = vld [vmem:[#allocation11 + $0xc18] sm:$0xff]  ;;  %v14322_v5 = vcombine.high %v8721_v32, %v8725_v1 }
 0x6c2   :  { %12041 = vmatprep.subr.bf16.mxu1 %v14268_v40  ;;  %v8726_v4 = vld [vmem:[#allocation11 + $0xc38] sm:$0xff]  ;;  %v14313_v40 = vcombine.low %v8713_v61, %v8717_v48  ;;  %v8769_v48 = vld [vmem:[#allocation11 + $0xd90] sm:$0xff] }
 0x6c3   :  { %v14324_v11 = vcombine.high %v8722_v2, %v8726_v4  ;;  %v14323_v7 = vcombine.low %v8722_v2, %v8726_v4  ;;  %v8777_v4 = vld [vmem:[#allocation11 + $0xdd0] sm:$0xff] }
 0x6c4   :  { %11878 = vmatpush1.bf16.msra.mxu0 %v14265_v46  ;;  %v8733_v46 = vld [vmem:[#allocation11 + $0xc70] sm:$0xff] }
 0x6c5   :  { %12042 = vmatpush1.bf16.msra.mxu1 %v14267_v60  ;;  %11879 = vmatprep.subr.bf16.mxu0 %v14274_v6  ;;  %v14321_v60 = vcombine.low %v8721_v32, %v8725_v1  ;;  %v8730_v6 = vld [vmem:[#allocation11 + $0xc58] sm:$0xff]  ;;  %v14330_v53 = vcombine.high %v8729_v25, %v8733_v46 }
 0x6c6   :  { %12043 = vmatprep.subr.bf16.mxu1 %v14276_v18  ;;  %v8734_v18 = vld [vmem:[#allocation11 + $0xc78] sm:$0xff] }
 0x6c7   :  { %v14331_v26 = vcombine.low %v8730_v6, %v8734_v18 }
 0x6c8   :  { %11880 = vmatpush1.bf16.msra.mxu0 %v14273_v10  ;;  %v14332_v10 = vcombine.high %v8730_v6, %v8734_v18  ;;  %v14369_v6 = vcombine.low %v8769_v48, %v8773_v52 }
 0x6c9   :  { %12044 = vmatpush1.bf16.msra.mxu1 %v14275_v22  ;;  %11881 = vmatprep.subr.bf16.mxu0 %v14282_v13  ;;  %v8738_v22 = vld [vmem:[#allocation11 + $0xc98] sm:$0xff] }
 0x6ca   :  { %12045 = vmatprep.subr.bf16.mxu1 %v14284_v19  ;;  %v8742_v13 = vld [vmem:[#allocation11 + $0xcb8] sm:$0xff]  ;;  %v14329_v19 = vcombine.low %v8729_v25, %v8733_v46 }
 0x6cb   :  { %v14340_v15 = vcombine.high %v8738_v22, %v8742_v13  ;;  %v8782_v25 = vld [vmem:[#allocation11 + $0xdf8] sm:$0xff] }
 0x6cc   :  { %11882 = vmatpush1.bf16.msra.mxu0 %v14281_v23  ;;  %v8749_v23 = vld [vmem:[#allocation11 + $0xcf0] sm:$0xff] }
 0x6cd   :  { %12046 = vmatpush1.bf16.msra.mxu1 %v14283_v27  ;;  %11883 = vmatprep.subr.bf16.mxu0 %v14290_v29  ;;  %v8746_v27 = vld [vmem:[#allocation11 + $0xcd8] sm:$0xff]  ;;  %v14346_v41 = vcombine.high %v8745_v8, %v8749_v23 }
 0x6ce   :  { %12047 = vmatprep.subr.bf16.mxu1 %v14292_v28  ;;  %v8750_v29 = vld [vmem:[#allocation11 + $0xcf8] sm:$0xff]  ;;  %v14337_v28 = vcombine.low %v8737_v21, %v8741_v9  ;;  %v8785_v21 = vld [vmem:[#allocation11 + $0xe10] sm:$0xff] }
 0x6cf   :  { %v14348_v62 = vcombine.high %v8746_v27, %v8750_v29  ;;  %v8789_v9 = vld [vmem:[#allocation11 + $0xe30] sm:$0xff] }
 0x6d0   :  { %11884 = vmatpush1.bf16.msra.mxu0 %v14289_v38  ;;  %v8754_v38 = vld [vmem:[#allocation11 + $0xd18] sm:$0xff] }
 0x6d1   :  { %12048 = vmatpush1.bf16.msra.mxu1 %v14291_v30  ;;  %11885 = vmatprep.subr.bf16.mxu0 %v14298_v31  ;;  %v8758_v30 = vld [vmem:[#allocation11 + $0xd38] sm:$0xff]  ;;  %v14347_v31 = vcombine.low %v8746_v27, %v8750_v29  ;;  %v8797_v27 = vld [vmem:[#allocation11 + $0xe70] sm:$0xff] }
 0x6d2   :  { %12049 = vmatprep.subr.bf16.mxu1 %v14300_v39  ;;  %v14354_v39 = vcombine.high %v8753_v34, %v8757_v57  ;;  %v14356_v42 = vcombine.high %v8754_v38, %v8758_v30  ;;  %v8794_v29 = vld [vmem:[#allocation11 + $0xe58] sm:$0xff] }
 0x6d4   :  { %11886 = vmatpush1.bf16.msra.mxu0 %v14297_v33  ;;  %v8766_v33 = vld [vmem:[#allocation11 + $0xd78] sm:$0xff] }
 0x6d5   :  { %12050 = vmatpush1.bf16.msra.mxu1 %v14299_v44  ;;  %11887 = vmatprep.subr.bf16.mxu0 %v14306_v24  ;;  %v14353_v44 = vcombine.low %v8753_v34, %v8757_v57  ;;  %v14355_v24 = vcombine.low %v8754_v38, %v8758_v30  ;;  %v14364_v61 = vcombine.high %v8762_v37, %v8766_v33  ;;  %v8801_v57 = vld [vmem:[#allocation11 + $0xe90] sm:$0xff]  ;;  %v8802_v30 = vld [vmem:[#allocation11 + $0xe98] sm:$0xff] }
 0x6d6   :  { %12051 = vmatprep.subr.bf16.mxu1 %v14308_v47  ;;  %v14362_v47 = vcombine.high %v8761_v43, %v8765_v45  ;;  %v8805_v38 = vld [vmem:[#allocation11 + $0xeb0] sm:$0xff] }
 0x6d8   :  { %11888 = vmatpush1.bf16.msra.mxu0 %v14305_v56  ;;  %v8774_v56 = vld [vmem:[#allocation11 + $0xdb8] sm:$0xff] }
 0x6d9   :  { %12052 = vmatpush1.bf16.msra.mxu1 %v14307_v36  ;;  %11889 = vmatprep.subr.bf16.mxu0 %v14314_v63  ;;  %v14361_v36 = vcombine.low %v8761_v43, %v8765_v45  ;;  %v14363_v63 = vcombine.low %v8762_v37, %v8766_v33  ;;  %v14372_v2 = vcombine.high %v8770_v54, %v8774_v56  ;;  %v8809_v45 = vld [vmem:[#allocation11 + $0xed0] sm:$0xff]  ;;  %v8810_v33 = vld [vmem:[#allocation11 + $0xed8] sm:$0xff] }
 0x6da   :  { %12053 = vmatprep.subr.bf16.mxu1 %v14316_v0  ;;  %v14370_v0 = vcombine.high %v8769_v48, %v8773_v52  ;;  %v14371_v18 = vcombine.low %v8770_v54, %v8774_v56  ;;  %v8813_v37 = vld [vmem:[#allocation11 + $0xef0] sm:$0xff]  ;;  %v8818_v56 = vld [vmem:[#allocation11 + $0xf18] sm:$0xff] }
 0x6db   :  { %v8817_v52 = vld [vmem:[#allocation11 + $0xf10] sm:$0xff] }
 0x6dc   :  { %11890 = vmatpush1.bf16.msra.mxu0 %v14313_v40  ;;  %v8781_v40 = vld [vmem:[#allocation11 + $0xdf0] sm:$0xff] }
 0x6dd   :  { %12054 = vmatpush1.bf16.msra.mxu1 %v14315_v49  ;;  %11900 = vmatprep.subr.bf16.mxu0 %v14322_v5  ;;  %v8821_v54 = vld [vmem:[#allocation11 + $0xf30] sm:$0xff] }
 0x6de   :  { %12064 = vmatprep.subr.bf16.mxu1 %v14324_v11  ;;  %v8778_v11 = vld [vmem:[#allocation11 + $0xdd8] sm:$0xff] }
 0x6df   :  { %11892 = vmatmul.mubr.bf16.vlgmr.msra.gmra.mrb[20].mxu0 %v15522_v59 }
 0x6e0   :  { %12056 = vmatmul.mubr.bf16.vlgmr.msra.gmra.mrb[20].mxu1 %v15522_v59  ;;  %11901 = vmatpush1.bf16.msra.mxu0 %v14321_v60  ;;  %v14339_v59 = vcombine.low %v8738_v22, %v8742_v13  ;;  %v8786_v13 = vld [vmem:[#allocation11 + $0xe18] sm:$0xff] }
 0x6e1   :  { %11932 = vmatprep.mubr.bf16.mxu0 %v15526_v3  ;;  %12065 = vmatpush1.bf16.msra.mxu1 %v14323_v7  ;;  %v14378_v7 = vcombine.high %v8777_v4, %v8781_v40 }
 0x6e2   :  { %12096 = vmatprep.mubr.bf16.mxu1 %v15526_v3  ;;  %11902 = vmatprep.subr.bf16.mxu0 %v14330_v53  ;;  %v14345_v3 = vcombine.low %v8745_v8, %v8749_v23  ;;  %v14380_v53 = vcombine.high %v8778_v11, %v8782_v25  ;;  %v8793_v23 = vld [vmem:[#allocation11 + $0xe50] sm:$0xff] }
 0x6e3   :  { %12066 = vmatprep.subr.bf16.mxu1 %v14332_v10 }
 0x6e4   :  { %11903 = vmatpush1.bf16.msra.mxu0 %v14329_v19  ;;  %v8790_v19 = vld [vmem:[#allocation11 + $0xe38] sm:$0xff] }
 0x6e5   :  { %12067 = vmatpush1.bf16.msra.mxu1 %v14331_v26  ;;  %11904 = vmatprep.subr.bf16.mxu0 %v14338_v20  ;;  %v14377_v26 = vcombine.low %v8777_v4, %v8781_v40  ;;  %v14379_v20 = vcombine.low %v8778_v11, %v8782_v25  ;;  %v14388_v8 = vcombine.high %v8786_v13, %v8790_v19  ;;  %v8825_v40 = vld [vmem:[#allocation11 + $0xf50] sm:$0xff]  ;;  %v8826_v25 = vld [vmem:[#allocation11 + $0xf58] sm:$0xff] }
 0x6e6   :  { %12068 = vmatprep.subr.bf16.mxu1 %v14340_v15  ;;  %v14386_v15 = vcombine.high %v8785_v21, %v8789_v9  ;;  %v8829_v11 = vld [vmem:[#allocation11 + $0xf70] sm:$0xff] }
 0x6e8   :  { %11905 = vmatpush1.bf16.msra.mxu0 %v14337_v28  ;;  %v8798_v28 = vld [vmem:[#allocation11 + $0xe78] sm:$0xff] }
 0x6e9   :  { %12069 = vmatpush1.bf16.msra.mxu1 %v14339_v59  ;;  %11906 = vmatprep.subr.bf16.mxu0 %v14346_v41  ;;  %v14385_v59 = vcombine.low %v8785_v21, %v8789_v9  ;;  %v14387_v41 = vcombine.low %v8786_v13, %v8790_v19  ;;  %v14396_v34 = vcombine.high %v8794_v29, %v8798_v28  ;;  %v8833_v21 = vld [vmem:[#allocation11 + $0xf90] sm:$0xff] }
 0x6ea   :  { %12070 = vmatprep.subr.bf16.mxu1 %v14348_v62  ;;  %v14394_v62 = vcombine.high %v8793_v23, %v8797_v27  ;;  %v8837_v9 = vld [vmem:[#allocation11 + $0xfb0] sm:$0xff]  ;;  %v14425_v19 = vcombine.low %v8825_v40, %v8829_v11 }
 0x6ec   :  { %11907 = vmatpush1.bf16.msra.mxu0 %v14345_v3  ;;  %v8806_v3 = vld [vmem:[#allocation11 + $0xeb8] sm:$0xff] }
 0x6ed   :  { %12071 = vmatpush1.bf16.msra.mxu1 %v14347_v31  ;;  %11908 = vmatprep.subr.bf16.mxu0 %v14354_v39  ;;  %v14393_v31 = vcombine.low %v8793_v23, %v8797_v27  ;;  %v14395_v39 = vcombine.low %v8794_v29, %v8798_v28  ;;  %v14404_v43 = vcombine.high %v8802_v30, %v8806_v3  ;;  %v8841_v23 = vld [vmem:[#allocation11 + $0xfd0] sm:$0xff]  ;;  %v8842_v29 = vld [vmem:[#allocation11 + $0xfd8] sm:$0xff] }
 0x6ee   :  { %12072 = vmatprep.subr.bf16.mxu1 %v14356_v42  ;;  %v14402_v42 = vcombine.high %v8801_v57, %v8805_v38  ;;  %v8845_v27 = vld [vmem:[#allocation11 + $0xff0] sm:$0xff]  ;;  %v8846_v28 = vld [vmem:[#allocation11 + $0xff8] sm:$0xff] }
 0x6f0   :  { %11909 = vmatpush1.bf16.msra.mxu0 %v14353_v44  ;;  %v8814_v44 = vld [vmem:[#allocation11 + $0xef8] sm:$0xff] }
 0x6f1   :  { %12073 = vmatpush1.bf16.msra.mxu1 %v14355_v24  ;;  %11910 = vmatprep.subr.bf16.mxu0 %v14362_v47  ;;  %v14401_v24 = vcombine.low %v8801_v57, %v8805_v38  ;;  %v14403_v47 = vcombine.low %v8802_v30, %v8806_v3  ;;  %v14412_v48 = vcombine.high %v8810_v33, %v8814_v44 }
 0x6f2   :  { %v15553_v32 = vpop.f32.mrb[16].mxu0  ;;  %v15555_v1 = vpop.f32.mrb[16].mxu1  ;;  %12074 = vmatprep.subr.bf16.mxu1 %v14364_v61  ;;  %v14410_v61 = vcombine.high %v8809_v45, %v8813_v37  ;;  %v14441_v38 = vcombine.low %v8841_v23, %v8845_v27  ;;  %v14443_v3 = vcombine.low %v8842_v29, %v8846_v28 }
 0x6f3   :  { %v15557_v49 = vpop.f32.mrb[17].mxu0  ;;  %v15559_v5 = vpop.f32.mrb[17].mxu1 }
 0x6f4   :  { %v11610_v46 = vpop.f32.mrb[18].mxu0  ;;  %v11774_v60 = vpop.f32.mrb[18].mxu1  ;;  %11911 = vmatpush1.bf16.msra.mxu0 %v14361_v36  ;;  %v8822_v36 = vld [vmem:[#allocation11 + $0xf38] sm:$0xff] }
 0x6f5   :  { %12075 = vmatpush1.bf16.msra.mxu1 %v14363_v63  ;;  %11912 = vmatprep.subr.bf16.mxu0 %v14370_v0  ;;  %v11611_v10 = vpop.f32.mrb[19].mxu0  ;;  %v11775_v22 = vpop.f32.mrb[19].mxu1  ;;  %v14409_v63 = vcombine.low %v8809_v45, %v8813_v37  ;;  %v14411_v0 = vcombine.low %v8810_v33, %v8814_v44  ;;  %v14420_v4 = vcombine.high %v8818_v56, %v8822_v36  ;;  %v8830_v46 = vld [vmem:[#allocation11 + $0xf78] sm:$0xff]  ;;  %v14810_v45 = vld [vmem:[#allocation14 + $0x48] sm:$0xff]  }
 0x6f6   :  { %12076 = vmatprep.subr.bf16.mxu1 %v14372_v2  ;;  %v14418_v2 = vcombine.high %v8817_v52, %v8821_v54  ;;  %v14417_v60 = vcombine.low %v8817_v52, %v8821_v54  ;;  %v8834_v10 = vld [vmem:[#allocation11 + $0xf98] sm:$0xff]  ;;  %v14811_v33 = vld [vmem:[#allocation14 + $0xc8] sm:$0xff]  }
 0x6f7   :  { %v8838_v22 = vld [vmem:[#allocation11 + $0xfb8] sm:$0xff] }
 0x6f8   :  { %11913 = vmatpush1.bf16.msra.mxu0 %v14369_v6  ;;  %v15561_v6 = vld [vmem:[#allocation13] sm:$0xff]  ;;  %v14816_v52 = vld [vmem:[#allocation14 + $0x10] sm:$0xff]  }
 0x6f9   :  { %12077 = vmatpush1.bf16.msra.mxu1 %v14371_v18  ;;  %11914 = vmatprep.subr.bf16.mxu0 %v14378_v7  ;;  %v14419_v18 = vcombine.low %v8818_v56, %v8822_v36  ;;  %v14426_v7 = vcombine.high %v8825_v40, %v8829_v11  ;;  %v8856_v13 = vrot.slane %v15561_v6, %v15374_v35  ;;  %v14817_v54 = vld [vmem:[#allocation14 + $0x90] sm:$0xff]   ;;  %v14818_v56 = vld [vmem:[#allocation14 + $0x58] sm:$0xff]   ;;  %v14825_v40 = vld [vmem:[#allocation14 + $0xa0] sm:$0xff]  }
 0x6fa   :  { %12078 = vmatprep.subr.bf16.mxu1 %v14380_v53  ;;  %v14428_v53 = vcombine.high %v8826_v25, %v8830_v46  ;;  %v14819_v36 = vld [vmem:[#allocation14 + $0xd8] sm:$0xff]   ;;  %v14826_v11 = vld [vmem:[#allocation14 + $0x68] sm:$0xff]  }
 0x6fc   :  { %11915 = vmatpush1.bf16.msra.mxu0 %v14377_v26  ;;  %v8864_v26 = vrot.slane %v15561_v6, %v15389_v58  ;;  %v14442_v58 = vcombine.high %v8841_v23, %v8845_v27  ;;  %v14840_v27 = vld [vmem:[#allocation14 + $0x100] sm:$0xff]  }
 0x6fd   :  { %12079 = vmatpush1.bf16.msra.mxu1 %v14379_v20  ;;  %11916 = vmatprep.subr.bf16.mxu0 %v14386_v15  ;;  %v14427_v20 = vcombine.low %v8826_v25, %v8830_v46  ;;  %v14434_v15 = vcombine.high %v8833_v21, %v8837_v9  ;;  %v8852_v25 = vrot.slane %v15561_v6, %v15386_v51  ;;  %v14827_v46 = vld [vmem:[#allocation14 + $0xe8] sm:$0xff]   ;;  %v14833_v51 = vld [vmem:[#allocation14 + $0xb0] sm:$0xff]  }
 0x6fe   :  { %12080 = vmatprep.subr.bf16.mxu1 %v14388_v8  ;;  %v14436_v8 = vcombine.high %v8834_v10, %v8838_v22  ;;  %v14617_v35 = vadd.f32 %v15559_v5, %v8864_v26  ;;  %v14808_v5 = vld [vmem:[#allocation14] sm:$0xff]  }
 0x700   :  { %11917 = vmatpush1.bf16.msra.mxu0 %v14385_v59  ;;  %v14615_v59 = vadd.f32 %v15557_v49, %v8856_v13  ;;  %v12116_v30 = vmul.f32 0.2, %v14617_v35  ;;  %vm12108_vm1 = vcmp.ge.f32.partialorder %v14617_v35, 0.0  ;;  %v14807_v49 = vld [vmem:[#allocation14 + $0xc0] sm:$0xff]   ;;  %v14834_v13 = vld [vmem:[#allocation14 + $0x78] sm:$0xff]  }
 0x701   :  { %12081 = vmatpush1.bf16.msra.mxu1 %v14387_v41  ;;  %11918 = vmatprep.subr.bf16.mxu0 %v14394_v62  ;;  %v14433_v41 = vcombine.low %v8833_v21, %v8837_v9  ;;  %v14435_v62 = vcombine.low %v8834_v10, %v8838_v22  ;;  %v14614_v21 = vadd.f32 %v15553_v32, %v8852_v25  ;;  %v14831_v9 = vld [vmem:[#allocation14 + $0xf0] sm:$0xff]   ;;  %v14837_v32 = vld [vmem:[#allocation14 + $0xb8] sm:$0xff]  }
 0x702   :  { %12082 = vmatprep.subr.bf16.mxu1 %v14396_v34  ;;  %v14444_v34 = vcombine.high %v8842_v29, %v8846_v28  ;;  %v12114_v57 = vmul.f32 0.2, %v14615_v59  ;;  %vm12106_vm0 = vcmp.ge.f32.partialorder %v14615_v59, 0.0  ;;  %v14832_v22 = vld [vmem:[#allocation14 + $0x30] sm:$0xff]   ;;  %v14841_v28 = vld [vmem:[#allocation14 + $0x180] sm:$0xff]  }
 0x703   :  { %vm12105_vm2 = vcmp.ge.f32.partialorder %v14614_v21, 0.0 }
 0x704   :  { %11919 = vmatpush1.bf16.msra.mxu0 %v14393_v31  ;;  %v14806_v31 = vld [vmem:[#allocation14 + $0x40] sm:$0xff]  }
 0x705   :  { %12083 = vmatpush1.bf16.msra.mxu1 %v14395_v39  ;;  %11920 = vmatprep.subr.bf16.mxu0 %v14402_v42  ;;  %v12122_v39 = vsel %vm12106_vm0, %v14615_v59, %v12114_v57  ;;  %v14809_v42 = vld [vmem:[#allocation14 + $0x80] sm:$0xff]   ;;  %v14842_v59 = vld [vmem:[#allocation14 + $0x148] sm:$0xff]   ;;  %v14847_v57 = vld [vmem:[#allocation14 + $0x1d0] sm:$0xff]  }
 0x706   :  { %12084 = vmatprep.subr.bf16.mxu1 %v14404_v43  ;;  %v12124_v43 = vsel %vm12108_vm1, %v14617_v35, %v12116_v30  ;;  %v12130_v37 = vpack.c.bf16 %v12122_v39, %v12122_v39  ;;  %v14843_v35 = vld [vmem:[#allocation14 + $0x1c8] sm:$0xff]   ;;  %v14849_v30 = vld [vmem:[#allocation14 + $0x190] sm:$0xff]   ;;  %v14854_v39 = vld [vmem:[#allocation14 + $0x160] sm:$0xff]  }
 0x707   :  { %v12132_v44 = vpack.c.bf16 %v12124_v43, %v12124_v43  ;;  %v14856_v43 = vld [vmem:[#allocation14 + $0x120] sm:$0xff]  }
 0x708   :  { %11921 = vmatpush1.bf16.msra.mxu0 %v14401_v24  ;;  %v14812_v24 = vld [vmem:[#allocation14 + $0x8] sm:$0xff]  }
 0x709   :  { %12085 = vmatpush1.bf16.msra.mxu1 %v14403_v47  ;;  %11922 = vmatprep.subr.bf16.mxu0 %v14410_v61  ;;  %v14813_v47 = vld [vmem:[#allocation14 + $0x88] sm:$0xff]   ;;  %v14814_v61 = vld [vmem:[#allocation14 + $0x50] sm:$0xff]  }
 0x70a   :  { %12086 = vmatprep.subr.bf16.mxu1 %v14412_v48  ;;  %v14815_v48 = vld [vmem:[#allocation14 + $0xd0] sm:$0xff]  }
 0x70c   :  { %11923 = vmatpush1.bf16.msra.mxu0 %v14409_v63  ;;  %v14821_v63 = vld [vmem:[#allocation14 + $0x98] sm:$0xff]  }
 0x70d   :  { %12087 = vmatpush1.bf16.msra.mxu1 %v14411_v0  ;;  %11924 = vmatprep.subr.bf16.mxu0 %v14418_v2  ;;  %v14822_v0 = vld [vmem:[#allocation14 + $0x60] sm:$0xff]  }
 0x70e   :  { %12088 = vmatprep.subr.bf16.mxu1 %v14420_v4  ;;  %v14823_v2 = vld [vmem:[#allocation14 + $0xe0] sm:$0xff]  }
 0x70f   :  { %v14824_v4 = vld [vmem:[#allocation14 + $0x20] sm:$0xff]  }
 0x710   :  { %11925 = vmatpush1.bf16.msra.mxu0 %v14417_v60  ;;  %v8860_v60 = vrot.slane %v15561_v6, %v15406_v55  ;;  %v14835_v55 = vld [vmem:[#allocation14 + $0xf8] sm:$0xff]  }
 0x711   :  { %12089 = vmatpush1.bf16.msra.mxu1 %v14419_v18  ;;  %11926 = vmatprep.subr.bf16.mxu0 %v14426_v7  ;;  %v14828_v18 = vld [vmem:[#allocation14 + $0x28] sm:$0xff]  }
 0x712   :  { %12090 = vmatprep.subr.bf16.mxu1 %v14428_v53  ;;  %v14829_v7 = vld [vmem:[#allocation14 + $0xa8] sm:$0xff]   ;;  %v14830_v53 = vld [vmem:[#allocation14 + $0x70] sm:$0xff]   ;;  %v14616_v10 = vadd.f32 %v15555_v1, %v8860_v60  ;;  %v14839_v1 = vld [vmem:[#allocation14 + $0x1c0] sm:$0xff]  }
 0x714   :  { %11927 = vmatpush1.bf16.msra.mxu0 %v14425_v19  ;;  %v12113_v19 = vmul.f32 0.2, %v14614_v21  ;;  %v12115_v26 = vmul.f32 0.2, %v14616_v10  ;;  %vm12107_vm3 = vcmp.ge.f32.partialorder %v14616_v10, 0.0 }
 0x715   :  { %12091 = vmatpush1.bf16.msra.mxu1 %v14427_v20  ;;  %11928 = vmatprep.subr.bf16.mxu0 %v14434_v15  ;;  %v14836_v20 = vld [vmem:[#allocation14 + $0x38] sm:$0xff]   ;;  %v14838_v15 = vld [vmem:[#allocation14 + $0x140] sm:$0xff]  }
 0x716   :  { %12092 = vmatprep.subr.bf16.mxu1 %v14436_v8  ;;  %v12121_v8 = vsel %vm12105_vm2, %v14614_v21, %v12113_v19  ;;  %v12123_v23 = vsel %vm12107_vm3, %v14616_v10, %v12115_v26 }
 0x717   :  { %v12129_v29 = vpack.c.bf16 %v12121_v8, %v12121_v8 }
 0x718   :  { %11929 = vmatpush1.bf16.msra.mxu0 %v14433_v41  ;;  %v12131_v41 = vpack.c.bf16 %v12123_v23, %v12123_v23 }
 0x719   :  { %12093 = vmatpush1.bf16.msra.mxu1 %v14435_v62  ;;  %11930 = vmatprep.subr.bf16.mxu0 %v14442_v58  ;;  %v14844_v62 = vld [vmem:[#allocation14 + $0x108] sm:$0xff]  }
 0x71a   :  { %12094 = vmatprep.subr.bf16.mxu1 %v14444_v34  ;;  %v14845_v58 = vld [vmem:[#allocation14 + $0x188] sm:$0xff]   ;;  %v14846_v34 = vld [vmem:[#allocation14 + $0x150] sm:$0xff]  }
 0x71c   :  { %11931 = vmatpush1.bf16.msra.mxu0 %v14441_v38  ;;  %v14848_v38 = vld [vmem:[#allocation14 + $0x110] sm:$0xff]  }
 0x71d   :  { %12095 = vmatpush1.bf16.msra.mxu1 %v14443_v3  ;;  %14510 = vmatprep.subr.bf16.mxu0 %v14806_v31  ;;  %v14850_v3 = vld [vmem:[#allocation14 + $0x158] sm:$0xff]  }
 0x71e   :  { %14532 = vmatprep.subr.bf16.mxu1 %v14807_v49  ;;  %v14851_v31 = vld [vmem:[#allocation14 + $0x1d8] sm:$0xff]  }
 0x71f   :  { %11933 = vmatmul.mubr.bf16.vlgmr.msra.gmra.mrb[20].mxu0 %v15535_v12  ;;  %v14852_v49 = vld [vmem:[#allocation14 + $0x118] sm:$0xff]  }
 0x720   :  { %12097 = vmatmul.mubr.bf16.vlgmr.msra.gmra.mrb[20].mxu1 %v15535_v12  ;;  %14511 = vmatpush3.bf16.msra.mxu0 %v14808_v5  ;;  %v14820_v12 = vld [vmem:[#allocation14 + $0x18] sm:$0xff]  }
 0x721   :  { %12688 = vmatprep.mubr.bf16.mxu0 %v12130_v37  ;;  %14533 = vmatpush3.bf16.msra.mxu1 %v14809_v42  ;;  %v14853_v5 = vld [vmem:[#allocation14 + $0x198] sm:$0xff]   ;;  %v14855_v42 = vld [vmem:[#allocation14 + $0x1e0] sm:$0xff]   ;;  %v14858_v37 = vld [vmem:[#allocation14 + $0x168] sm:$0xff]  }
 0x722   :  { %12728 = vmatprep.mubr.bf16.mxu1 %v12132_v44  ;;  %14512 = vmatprep.subr.bf16.mxu0 %v14810_v45  ;;  %v14857_v45 = vld [vmem:[#allocation14 + $0x1a0] sm:$0xff]   ;;  %v14860_v44 = vld [vmem:[#allocation14 + $0x128] sm:$0xff]  }
 0x723   :  { %14534 = vmatprep.subr.bf16.mxu1 %v14811_v33  ;;  %v14859_v33 = vld [vmem:[#allocation14 + $0x1e8] sm:$0xff]  }
 0x724   :  { %14513 = vmatpush3.bf16.msra.mxu0 %v14812_v24  ;;  %v14861_v24 = vld [vmem:[#allocation14 + $0x1a8] sm:$0xff]  }
 0x725   :  { %14535 = vmatpush3.bf16.msra.mxu1 %v14813_v47  ;;  %14514 = vmatprep.subr.bf16.mxu0 %v14814_v61  ;;  %v14862_v47 = vld [vmem:[#allocation14 + $0x170] sm:$0xff]  }
 0x726   :  { %14536 = vmatprep.subr.bf16.mxu1 %v14815_v48  ;;  %v14863_v61 = vld [vmem:[#allocation14 + $0x1f0] sm:$0xff]  }
 0x727   :  { %v14864_v48 = vld [vmem:[#allocation14 + $0x130] sm:$0xff]  }
 0x728   :  { %14515 = vmatpush3.bf16.msra.mxu0 %v14816_v52  ;;  %v14865_v52 = vld [vmem:[#allocation14 + $0x1b0] sm:$0xff]  }
 0x729   :  { %14537 = vmatpush3.bf16.msra.mxu1 %v14817_v54  ;;  %14516 = vmatprep.subr.bf16.mxu0 %v14818_v56  ;;  %v14866_v54 = vld [vmem:[#allocation14 + $0x178] sm:$0xff]  }
 0x72a   :  { %14538 = vmatprep.subr.bf16.mxu1 %v14819_v36  ;;  %v14867_v56 = vld [vmem:[#allocation14 + $0x1f8] sm:$0xff]  }
 0x72b   :  { %v14868_v36 = vld [vmem:[#allocation14 + $0x138] sm:$0xff]  }
 0x72c   :  { %14517 = vmatpush3.bf16.msra.mxu0 %v14820_v12  ;;  %v14869_v12 = vld [vmem:[#allocation14 + $0x1b8] sm:$0xff]  }
 0x72d   :  { %14539 = vmatpush3.bf16.msra.mxu1 %v14821_v63  ;;  %14518 = vmatprep.subr.bf16.mxu0 %v14822_v0  ;;  %v8868_v63 = vrot.slane %v15561_v6, %v15416_v14  ;;  %v8876_v0 = vrot.slane %v15561_v6, %v15447_v50 }
 0x72e   :  { %14540 = vmatprep.subr.bf16.mxu1 %v14823_v2  ;;  %v8872_v2 = vrot.slane %v15561_v6, %v15419_v16 }
 0x730   :  { %14519 = vmatpush3.bf16.msra.mxu0 %v14824_v4  ;;  %v8880_v4 = vrot.slane %v15561_v6, %v15422_v17 }
 0x731   :  { %14541 = vmatpush3.bf16.msra.mxu1 %v14825_v40  ;;  %14520 = vmatprep.subr.bf16.mxu0 %v14826_v11 }
 0x732   :  { %14542 = vmatprep.subr.bf16.mxu1 %v14827_v46 }
 0x734   :  { %14521 = vmatpush3.bf16.msra.mxu0 %v14828_v18 }
 0x735   :  { %14543 = vmatpush3.bf16.msra.mxu1 %v14829_v7  ;;  %14522 = vmatprep.subr.bf16.mxu0 %v14830_v53 }
 0x736   :  { %14544 = vmatprep.subr.bf16.mxu1 %v14831_v9 }
 0x738   :  { %14523 = vmatpush3.bf16.msra.mxu0 %v14832_v22 }
 0x739   :  { %14545 = vmatpush3.bf16.msra.mxu1 %v14833_v51  ;;  %14524 = vmatprep.subr.bf16.mxu0 %v14834_v13 }
 0x73a   :  { %14546 = vmatprep.subr.bf16.mxu1 %v14835_v55 }
 0x73c   :  { %14525 = vmatpush3.bf16.msra.mxu0 %v14836_v20 }
 0x73d   :  { %14547 = vmatpush3.bf16.msra.mxu1 %v14837_v32  ;;  %14554 = vmatprep.subr.bf16.mxu0 %v14838_v15 }
 0x73e   :  { %14576 = vmatprep.subr.bf16.mxu1 %v14839_v1  ;;  %v14445_v1 = vld [vmem:[#allocation16] ss:$0 sm:$0xff] }
 0x73f   :  { %12689 = vmatmul.mubr.bf16.vlgmr.msra.gmra.mrb[24].mxu0 %v12129_v29 }
 0x740   :  { %12729 = vmatmul.mubr.bf16.vlgmr.msra.gmra.mrb[24].mxu1 %v12131_v41  ;;  %14555 = vmatpush3.bf16.msra.mxu0 %v14840_v27 }
 0x741   :  { %14577 = vmatpush3.bf16.msra.mxu1 %v14841_v28  ;;  %14556 = vmatprep.subr.bf16.mxu0 %v14842_v59 }
 0x742   :  { %14578 = vmatprep.subr.bf16.mxu1 %v14843_v35 }
 0x744   :  { %14557 = vmatpush3.bf16.msra.mxu0 %v14844_v62 }
 0x745   :  { %14579 = vmatpush3.bf16.msra.mxu1 %v14845_v58  ;;  %14558 = vmatprep.subr.bf16.mxu0 %v14846_v34 }
 0x746   :  { %14580 = vmatprep.subr.bf16.mxu1 %v14847_v57 }
 0x748   :  { %14559 = vmatpush3.bf16.msra.mxu0 %v14848_v38 }
 0x749   :  { %14581 = vmatpush3.bf16.msra.mxu1 %v14849_v30  ;;  %14560 = vmatprep.subr.bf16.mxu0 %v14850_v3 }
 0x74a   :  { %14582 = vmatprep.subr.bf16.mxu1 %v14851_v31 }
 0x74c   :  { %14561 = vmatpush3.bf16.msra.mxu0 %v14852_v49 }
 0x74d   :  { %14583 = vmatpush3.bf16.msra.mxu1 %v14853_v5  ;;  %14562 = vmatprep.subr.bf16.mxu0 %v14854_v39 }
 0x74e   :  { %14584 = vmatprep.subr.bf16.mxu1 %v14855_v42 }
 0x750   :  { %14563 = vmatpush3.bf16.msra.mxu0 %v14856_v43 }
 0x751   :  { %14585 = vmatpush3.bf16.msra.mxu1 %v14857_v45  ;;  %14564 = vmatprep.subr.bf16.mxu0 %v14858_v37 }
 0x752   :  { %14586 = vmatprep.subr.bf16.mxu1 %v14859_v33 }
 0x754   :  { %14565 = vmatpush3.bf16.msra.mxu0 %v14860_v44 }
 0x755   :  { %14587 = vmatpush3.bf16.msra.mxu1 %v14861_v24  ;;  %14566 = vmatprep.subr.bf16.mxu0 %v14862_v47 }
 0x756   :  { %14588 = vmatprep.subr.bf16.mxu1 %v14863_v61 }
 0x758   :  { %14567 = vmatpush3.bf16.msra.mxu0 %v14864_v48 }
 0x759   :  { %14589 = vmatpush3.bf16.msra.mxu1 %v14865_v52  ;;  %14568 = vmatprep.subr.bf16.mxu0 %v14866_v54 }
 0x75a   :  { %14590 = vmatprep.subr.bf16.mxu1 %v14867_v56 }
 0x75c   :  { %14569 = vmatpush3.bf16.msra.mxu0 %v14868_v36 }
 0x75d   :  { %14591 = vmatpush3.bf16.msra.mxu1 %v14869_v12 }
 0x7f2   :  { %v11934_v40 = vpop.f32.mrb[20].mxu0 }
 0x7f3   :  { %v14618_v11 = vadd.f32 %v11934_v40, %v8868_v63  ;;  %v12098_v25 = vpop.f32.mrb[20].mxu1  ;;  %v11936_v46 = vpop.f32.mrb[21].mxu0 }
 0x7f4   :  { %v14620_v60 = vadd.f32 %v12098_v25, %v8876_v0  ;;  %v14619_v18 = vadd.f32 %v11936_v46, %v8872_v2  ;;  %v12100_v7 = vpop.f32.mrb[21].mxu1  ;;  %v11938_v53 = vpop.f32.mrb[22].mxu0 }
 0x7f5   :  { %vm12109_vm4 = vcmp.ge.f32.partialorder %v14618_v11, 0.0  ;;  %v12117_v21 = vmul.f32 0.2, %v14618_v11  ;;  %v14621_v14 = vadd.f32 %v12100_v7, %v8880_v4  ;;  %v12102_v9 = vpop.f32.mrb[22].mxu1  ;;  %v11939_v10 = vpop.f32.mrb[23].mxu0 }
 0x7f6   :  { %vm12111_vm5 = vcmp.ge.f32.partialorder %v14620_v60, 0.0  ;;  %v12119_v50 = vmul.f32 0.2, %v14620_v60  ;;  %vm12110_vm6 = vcmp.ge.f32.partialorder %v14619_v18, 0.0  ;;  %v12118_v16 = vmul.f32 0.2, %v14619_v18 }
 0x7f7   :  { %v12125_v22 = vsel %vm12109_vm4, %v14618_v11, %v12117_v21  ;;  %vm12112_vm7 = vcmp.ge.f32.partialorder %v14621_v14, 0.0  ;;  %v12120_v17 = vmul.f32 0.2, %v14621_v14  ;;  %v12103_v6 = vpop.f32.mrb[23].mxu1 }
 0x7f8   :  { %v12127_v51 = vsel %vm12111_vm5, %v14620_v60, %v12119_v50  ;;  %v12126_v13 = vsel %vm12110_vm6, %v14619_v18, %v12118_v16  ;;  %v12133_v26 = vpack.c.bf16 %v12125_v22, %v12125_v22 }
 0x7f9   :  { %v12134_v19 = vpack.c.bf16 %v12126_v13, %v12126_v13  ;;  %v12128_v55 = vsel %vm12112_vm7, %v14621_v14, %v12120_v17  ;;  %v12135_v32 = vpack.c.bf16 %v12127_v51, %v12127_v51 }
 0x7fa   :  { %v12136_v20 = vpack.c.bf16 %v12128_v55, %v12128_v55 }
 0x7fb   :  { %12768 = vmatprep.mubr.bf16.mxu0 %v12134_v19 }
 0x7fc   :  { %12808 = vmatprep.mubr.bf16.mxu1 %v12136_v20  ;;  %12769 = vmatmul.mubr.bf16.vlgmr.msra.gmra.mrb[28].mxu0 %v12133_v26 }
 0x7fd   :  { %12809 = vmatmul.mubr.bf16.vlgmr.msra.gmra.mrb[28].mxu1 %v12135_v32 }
 0x812   :  { %v14526_v15 = vpop.f32.mrb[24].mxu0 }
 0x813   :  { %v14548_v8 = vpop.f32.mrb[24].mxu1  ;;  %v14527_v23 = vpop.f32.mrb[25].mxu0 }
 0x814   :  { %v14528_v27 = vadd.f32 %v14527_v23, %v14526_v15  ;;  %v14549_v29 = vpop.f32.mrb[25].mxu1  ;;  %v14529_v28 = vpop.f32.mrb[26].mxu0 }
 0x815   :  { %v14550_v59 = vadd.f32 %v14549_v29, %v14548_v8  ;;  %v14551_v41 = vpop.f32.mrb[26].mxu1  ;;  %v14530_v35 = vpop.f32.mrb[27].mxu0 }
 0x816   :  { %v12691_v62 = vadd.f32 %v14528_v27, %v14445_v1  ;;  %v14552_v58 = vpop.f32.mrb[27].mxu1 }
 0x818   :  { %v12731_v34 = vadd.f32 %v14550_v59, %v12691_v62 }
 0x8cf   :  { %v14570_v57 = vpop.f32.mrb[28].mxu0 }
 0x8d0   :  { %v14592_v38 = vpop.f32.mrb[28].mxu1  ;;  %v14571_v30 = vpop.f32.mrb[29].mxu0 }
 0x8d1   :  { %v14572_v3 = vadd.f32 %v14571_v30, %v14570_v57  ;;  %v14593_v31 = vpop.f32.mrb[29].mxu1  ;;  %v14573_v49 = vpop.f32.mrb[30].mxu0 }
 0x8d2   :  { %v14594_v5 = vadd.f32 %v14593_v31, %v14592_v38  ;;  %v14595_v39 = vpop.f32.mrb[30].mxu1  ;;  %v14574_v42 = vpop.f32.mrb[31].mxu0 }
 0x8d3   :  { %v12771_v43 = vadd.f32 %v14572_v3, %v12731_v34  ;;  %v14596_v45 = vpop.f32.mrb[31].mxu1 }
 0x8d5   :  { %v12811_v37 = vadd.f32 %v14594_v5, %v12771_v43 }
 0x8d7   :  { %12816 = vst [vmem:[#allocation17] sm:$0xff] %v12811_v37 }
 0x8d8   :  { %15082 = shalt.err (!%p15079_p6)
}
 0x8d9   :  { %s15083_s18 = scalar_lea.hbm %s15606_s9, 128 }
 0x8da   :  { %p15084_p7 = scmp.ne.s32.totalorder %s15606_s9, %s15083_s18  ;;  %p15087_p8 = scmp.lt.u32.totalorder %s15083_s18, %s15606_s9 }
 0x8dc   :  { %p15089_p9 = pnand %p15087_p8, %p15084_p7 }
 0x8de   :  { %15092 = shalt.err (!%p15089_p9)
}
 0x8df   :  { %12826 = dma.vmem_to_hbm [thread:$0]  %s12824_s25, 128, %s15606_s9, [#allocation4]  }
 0x8e0   :  { %15103 = dma.done.wait [#allocation4], 128  }
 0x8e1   :  { %15104 = vsyncadd [#allocation4], 4294967168 }
 0x8e2   :  { %12830 = vsyncpa [#allocation3], 1 }
 0x8e3   :  { %12831 = vsyncpa [#allocation6], 1 }
 0x8e4   :  { %12832 = vsyncpa [#allocation9], 1 }
 0x8e5   :  { %12833 = vsyncpa [#allocation12], 1 }
 0x8e6   :  { %12834 = vsyncpa [#allocation15], 1 }
 0x8e7   :  { %12835 = vsyncpa [#allocation4], 1 }

</bundles_post_ra>
